<compile_context>
chip_gen: v7x
topology: tpu7x:2x2x1
jax: 0.10.0
libtpu: 0.0.40
codegen_flags: <defaults>
</compile_context>

<pallas_src>
import numpy as np
import jax
import jax.numpy as jnp
from jax.experimental import pallas as pl
from jax.experimental.pallas import tpu as pltpu

LANE = 128
SUBLANE = 8


def _round_up(a, b):
    return (a + b - 1) // b * b


def _fold_bn(gamma, beta, mean, var, eps):
    scale = gamma / jnp.sqrt(var + eps)
    bias = beta - mean * scale
    return scale, bias


def conv_act_forward(x, w1, bn1, w2, bn2, *, eps=1e-5):
    """Fused ConvAct forward: (Conv3x3 s1 p1 no-bias -> BN(eval) -> ReLU) x 2.

    x  : (N, C_in, H, W) float32, NCHW (PyTorch layout)
    w1 : (C_mid, C_in, 3, 3)   w2 : (C_out, C_mid, 3, 3)
    bn1, bn2 : tuples (gamma, beta, running_mean, running_var), each (C,)
    returns (N, C_out, H, W) float32
    """
    N, c_in, H, W = x.shape
    c_mid = w1.shape[0]
    c_out = w2.shape[0]

    # Lane-dense padding for the dims we store / contract over in stage 2.
    c_mid_p = _round_up(c_mid, LANE)
    c_out_p = _round_up(c_out, LANE)

    # Padded spatial geometry.  Wp % 8 == 0 keeps the ky tap shifts and the
    # scratch store offsets sublane-aligned; the extra columns live in the
    # masked ring.
    Wp = _round_up(W + 2, SUBLANE)
    Hp = H + 2
    P = Hp * Wp            # flattened padded image (rows of the matmul)
    M = 2 * Wp             # flat zero margin (2 extra rows top/bottom, >= Wp+1)
    L = P + 2 * M          # == (H + 6) * Wp

    # ---- cheap XLA-side data prep (one transpose + ONE pad over x) --------
    # NCHW -> NHWC, then pad H by (3,3) [1 ring + 2 margin rows each side],
    # W by (1, Wp-W-1) [ring + lane-alignment extra], flatten to (N, L, c_in).
    x_nhwc = jnp.transpose(x.astype(jnp.bfloat16), (0, 2, 3, 1))
    x_flat = jnp.pad(x_nhwc, ((0, 0), (3, 3), (1, Wp - W - 1), (0, 0))
                     ).reshape(N, L, c_in)

    # Per-tap weight matrices (bf16, lane-padded on the output channel axis).
    def prep_taps(w, kin, kin_p, kout_p):
        t = jnp.transpose(w, (2, 3, 1, 0))                       # (3,3,kin,kout)
        t = jnp.pad(t, ((0, 0), (0, 0), (0, kin_p - kin),
                        (0, kout_p - t.shape[-1])))
        return t.reshape(9, kin_p, kout_p).astype(jnp.bfloat16)

    w1_taps = prep_taps(w1, c_in, c_in, c_mid_p)
    w2_taps = prep_taps(w2, c_mid, c_mid_p, c_out_p)

    # Fold BN (inference) into per-channel scale/bias (f32, zero-padded lanes
    # -> padded output lanes stay exactly 0 after ReLU).
    s1, b1 = _fold_bn(*[a.astype(jnp.float32) for a in bn1], eps)
    s2, b2 = _fold_bn(*[a.astype(jnp.float32) for a in bn2], eps)
    s1 = jnp.pad(s1, (0, c_mid_p - c_mid)).reshape(1, c_mid_p)
    b1 = jnp.pad(b1, (0, c_mid_p - c_mid)).reshape(1, c_mid_p)
    s2 = jnp.pad(s2, (0, c_out_p - c_out)).reshape(1, c_out_p)
    b2 = jnp.pad(b2, (0, c_out_p - c_out)).reshape(1, c_out_p)

    # Interior mask over the padded flat grid: 1 inside HxW, 0 on the ring and
    # alignment columns -> turns the stage-1 ring back into exact zero padding
    # for stage 2.
    hh = np.arange(Hp)
    ww = np.arange(Wp)
    interior = (((hh >= 1) & (hh <= H))[:, None]
                & ((ww >= 1) & (ww <= W))[None, :])
    inner_mask = jnp.asarray(interior.reshape(P, 1).astype(np.float32))

    # Static flat row offset of each 3x3 tap in the margin-padded layout.
    tap_starts = tuple(M + (ky - 1) * Wp + (kx - 1)
                       for ky in range(3) for kx in range(3))
    st0 = tap_starts[0]

    def kernel(x_ref, mask_ref, w1_ref, s1_ref, b1_ref,
               w2_ref, s2_ref, b2_ref, o_ref, mid_ref):
        # ---- stage 1: conv3x3 as 9 shifted bf16 matmuls (f32 acc) ---------
        acc1 = jnp.dot(x_ref[0, st0:st0 + P, :], w1_ref[0],
                       preferred_element_type=jnp.float32)
        for k in range(1, 9):
            st = tap_starts[k]
            acc1 += jnp.dot(x_ref[0, st:st + P, :], w1_ref[k],
                            preferred_element_type=jnp.float32)
        y1 = jnp.maximum(acc1 * s1_ref[...] + b1_ref[...], 0.0) * mask_ref[...]

        # Stage the masked activation into the margin-padded bf16 scratch.
        # Only the margin rows are cleared; rows [M, M+P) are fully written.
        zeros_margin = jnp.zeros((M, c_mid_p), mid_ref.dtype)
        mid_ref[0:M, :] = zeros_margin
        mid_ref[M + P:L, :] = zeros_margin
        mid_ref[M:M + P, :] = y1.astype(mid_ref.dtype)

        # ---- stage 2: conv3x3 + BN + ReLU ----------------------------------
        acc2 = jnp.dot(mid_ref[st0:st0 + P, :], w2_ref[0],
                       preferred_element_type=jnp.float32)
        for k in range(1, 9):
            st = tap_starts[k]
            acc2 += jnp.dot(mid_ref[st:st + P, :], w2_ref[k],
                            preferred_element_type=jnp.float32)
        o_ref[0] = jnp.maximum(acc2 * s2_ref[...] + b2_ref[...], 0.0
                               ).astype(o_ref.dtype)

    # ---- VMEM budget (actual block + scratch bytes, with headroom) ---------
    bytes_x = 2 * (L * c_in * 2)                       # bf16, double-buffered
    bytes_out = 2 * (P * c_out_p * 4)                  # f32, double-buffered
    bytes_w = 2 * 2 * 9 * (c_in * c_mid_p + c_mid_p * c_out_p)
    bytes_bn = 2 * 4 * 2 * (c_mid_p + c_out_p)
    bytes_mask = 2 * 4 * P
    bytes_mid = L * c_mid_p * 2
    vmem_est = bytes_x + bytes_out + bytes_w + bytes_bn + bytes_mask + bytes_mid
    vmem_limit = int(min(max(int(vmem_est * 1.5) + (2 << 20), 8 << 20), 48 << 20))

    flops = 2 * N * P * 9 * (c_in * c_mid_p + c_mid_p * c_out_p)
    bytes_accessed = int(N * L * c_in * 2 + N * P * c_out_p * 4
                         + 9 * (c_in * c_mid_p + c_mid_p * c_out_p) * 2
                         + P * 4 + 4 * 2 * (c_mid_p + c_out_p))
    cost = pl.CostEstimate(flops=int(flops), transcendentals=0,
                           bytes_accessed=bytes_accessed)

    out_flat = pl.pallas_call(
        kernel,
        out_shape=jax.ShapeDtypeStruct((N, P, c_out_p), jnp.float32),
        grid_spec=pltpu.PrefetchScalarGridSpec(
            num_scalar_prefetch=0,
            grid=(N,),
            in_specs=[
                pl.BlockSpec((1, L, c_in), lambda n: (n, 0, 0)),       # x
                pl.BlockSpec((P, 1), lambda n: (0, 0)),                # mask
                pl.BlockSpec((9, c_in, c_mid_p), lambda n: (0, 0, 0)), # conv1 taps
                pl.BlockSpec((1, c_mid_p), lambda n: (0, 0)),          # bn1 scale
                pl.BlockSpec((1, c_mid_p), lambda n: (0, 0)),          # bn1 bias
                pl.BlockSpec((9, c_mid_p, c_out_p), lambda n: (0, 0, 0)),  # conv2
                pl.BlockSpec((1, c_out_p), lambda n: (0, 0)),          # bn2 scale
                pl.BlockSpec((1, c_out_p), lambda n: (0, 0)),          # bn2 bias
            ],
            out_specs=pl.BlockSpec((1, P, c_out_p), lambda n: (n, 0, 0)),
            scratch_shapes=[pltpu.VMEM((L, c_mid_p), jnp.bfloat16)],
        ),
        compiler_params=pltpu.CompilerParams(
            dimension_semantics=("parallel",),
            vmem_limit_bytes=vmem_limit),
        cost_estimate=cost,
    )(x_flat, inner_mask, w1_taps, s1, b1, w2_taps, s2, b2)

    # (N, P, C_out_p) -> crop padding ring + lane padding -> NCHW.
    out = out_flat.reshape(N, Hp, Wp, c_out_p)[:, 1:H + 1, 1:W + 1, :c_out]
    return jnp.transpose(out, (0, 3, 1, 2))


def _conv_bn_relu_ref(x, w, gamma, beta, mean, var, eps=1e-5):
    """NumPy float64 reference for one Conv3x3(p=1,s=1,no-bias)+BN(eval)+ReLU."""
    x = np.asarray(x, np.float64)
    w = np.asarray(w, np.float64)
    N, C_in, H, W = x.shape
    xp = np.pad(x, ((0, 0), (0, 0), (1, 1), (1, 1)))
    out = np.zeros((N, w.shape[0], H, W), np.float64)
    for ky in range(3):
        for kx in range(3):
            out += np.einsum('nchw,oc->nohw',
                             xp[:, :, ky:ky + H, kx:kx + W], w[:, :, ky, kx])
    scale = np.asarray(gamma, np.float64) / np.sqrt(np.asarray(var, np.float64) + eps)
    bias = np.asarray(beta, np.float64) - np.asarray(mean, np.float64) * scale
    out = out * scale[None, :, None, None] + bias[None, :, None, None]
    return np.maximum(out, 0.0)


if __name__ == "__main__":
    key = jax.random.PRNGKey(0)
    N, dim_in, dim_mid, dim_out, H, W = 2, 4, 8, 8, 16, 16
    ks = jax.random.split(key, 11)

    x = jax.random.normal(ks[0], (N, dim_in, H, W), jnp.float32)
    w1 = 0.2 * jax.random.normal(ks[1], (dim_mid, dim_in, 3, 3), jnp.float32)
    w2 = 0.2 * jax.random.normal(ks[2], (dim_out, dim_mid, 3, 3), jnp.float32)
    bn1 = (1.0 + 0.1 * jax.random.normal(ks[3], (dim_mid,), jnp.float32),
           0.1 * jax.random.normal(ks[4], (dim_mid,), jnp.float32),
           0.1 * jax.random.normal(ks[5], (dim_mid,), jnp.float32),
           jax.random.uniform(ks[6], (dim_mid,), jnp.float32, 0.5, 1.5))
    bn2 = (1.0 + 0.1 * jax.random.normal(ks[7], (dim_out,), jnp.float32),
           0.1 * jax.random.normal(ks[8], (dim_out,), jnp.float32),
           0.1 * jax.random.normal(ks[9], (dim_out,), jnp.float32),
           jax.random.uniform(ks[10], (dim_out,), jnp.float32, 0.5, 1.5))

    fwd = jax.jit(conv_act_forward)
    out = jax.block_until_ready(fwd(x, w1, bn1, w2, bn2))
    assert out.shape == (N, dim_out, H, W)

    mid = _conv_bn_relu_ref(np.asarray(x), np.asarray(w1),
                            *[np.asarray(a) for a in bn1])
    ref = _conv_bn_relu_ref(mid, np.asarray(w2),
                            *[np.asarray(a) for a in bn2])
    # Tolerance covers bf16 MXU operands (f32 accumulation) vs the float64
    # NumPy reference; genuine layout/index bugs produce O(1) errors.
    np.testing.assert_allclose(np.asarray(out), ref.astype(np.float32),
                               rtol=3e-2, atol=3e-2)
    print("KERNEL_OK")
</pallas_src>

<mosaic_0001>
module attributes {stable_mosaic.version = 11 : i64} {
  func.func @kernel(%arg0: i32, %arg1: memref<1x528x4xbf16, #tpu.memory_space<vmem>>, %arg2: memref<432x1xf32, #tpu.memory_space<vmem>>, %arg3: memref<9x4x128xbf16, #tpu.memory_space<vmem>>, %arg4: memref<1x128xf32, #tpu.memory_space<vmem>>, %arg5: memref<1x128xf32, #tpu.memory_space<vmem>>, %arg6: memref<9x128x128xbf16, #tpu.memory_space<vmem>>, %arg7: memref<1x128xf32, #tpu.memory_space<vmem>>, %arg8: memref<1x128xf32, #tpu.memory_space<vmem>>, %arg9: memref<1x432x128xf32, #tpu.memory_space<vmem>>, %arg10: memref<528x128xbf16, #tpu.memory_space<vmem>>) attributes {dimension_semantics = [#tpu.dimension_semantics<parallel>], iteration_bounds = array<i64: 2>, scalar_prefetch = 0 : i64, scratch_operands = 1 : i64, tpu.core_type = #tpu.core_type<tc>, window_params = [{transform_indices = @transform_0, window_bounds = array<i64: 1, 528, 4>}, {pipeline_mode = #tpu.pipeline_mode<synchronous>, transform_indices = @transform_1, window_bounds = array<i64: 432, 1>}, {pipeline_mode = #tpu.pipeline_mode<synchronous>, transform_indices = @transform_2, window_bounds = array<i64: 9, 4, 128>}, {pipeline_mode = #tpu.pipeline_mode<synchronous>, transform_indices = @transform_3, window_bounds = array<i64: 1, 128>}, {pipeline_mode = #tpu.pipeline_mode<synchronous>, transform_indices = @transform_4, window_bounds = array<i64: 1, 128>}, {pipeline_mode = #tpu.pipeline_mode<synchronous>, transform_indices = @transform_5, window_bounds = array<i64: 9, 128, 128>}, {pipeline_mode = #tpu.pipeline_mode<synchronous>, transform_indices = @transform_6, window_bounds = array<i64: 1, 128>}, {pipeline_mode = #tpu.pipeline_mode<synchronous>, transform_indices = @transform_7, window_bounds = array<i64: 1, 128>}, {transform_indices = @transform_8, window_bounds = array<i64: 1, 432, 128>}]} {
    %c0 = arith.constant 0 : index
    %c23 = arith.constant 23 : index
    %c0_0 = arith.constant 0 : index
    %0 = vector.load %arg1[%c0, %c23, %c0_0] : memref<1x528x4xbf16, #tpu.memory_space<vmem>>, vector<1x432x4xbf16>
    %1 = vector.shape_cast %0 : vector<1x432x4xbf16> to vector<432x4xbf16>
    %c0_1 = arith.constant 0 : index
    %c0_2 = arith.constant 0 : index
    %c0_3 = arith.constant 0 : index
    %2 = vector.load %arg3[%c0_1, %c0_2, %c0_3] : memref<9x4x128xbf16, #tpu.memory_space<vmem>>, vector<1x4x128xbf16>
    %3 = vector.shape_cast %2 : vector<1x4x128xbf16> to vector<4x128xbf16>
    %cst = arith.constant dense<0.000000e+00> : vector<432x128xf32>
    %4 = tpu.matmul %1, %3, %cst {dimension_numbers = #tpu.dot_dimension_numbers<[1], [0], [0], [1], [0, 0, 1, 1], [], []>} : vector<432x4xbf16>, vector<4x128xbf16>, vector<432x128xf32> -> vector<432x128xf32>
    %c0_4 = arith.constant 0 : index
    %c24 = arith.constant 24 : index
    %c0_5 = arith.constant 0 : index
    %5 = vector.load %arg1[%c0_4, %c24, %c0_5] : memref<1x528x4xbf16, #tpu.memory_space<vmem>>, vector<1x432x4xbf16>
    %6 = vector.shape_cast %5 : vector<1x432x4xbf16> to vector<432x4xbf16>
    %c1 = arith.constant 1 : index
    %c0_6 = arith.constant 0 : index
    %c0_7 = arith.constant 0 : index
    %7 = vector.load %arg3[%c1, %c0_6, %c0_7] : memref<9x4x128xbf16, #tpu.memory_space<vmem>>, vector<1x4x128xbf16>
    %8 = vector.shape_cast %7 : vector<1x4x128xbf16> to vector<4x128xbf16>
    %cst_8 = arith.constant dense<0.000000e+00> : vector<432x128xf32>
    %9 = tpu.matmul %6, %8, %cst_8 {dimension_numbers = #tpu.dot_dimension_numbers<[1], [0], [0], [1], [0, 0, 1, 1], [], []>} : vector<432x4xbf16>, vector<4x128xbf16>, vector<432x128xf32> -> vector<432x128xf32>
    %10 = arith.addf %4, %9 : vector<432x128xf32>
    %c0_9 = arith.constant 0 : index
    %c25 = arith.constant 25 : index
    %c0_10 = arith.constant 0 : index
    %11 = vector.load %arg1[%c0_9, %c25, %c0_10] : memref<1x528x4xbf16, #tpu.memory_space<vmem>>, vector<1x432x4xbf16>
    %12 = vector.shape_cast %11 : vector<1x432x4xbf16> to vector<432x4xbf16>
    %c2 = arith.constant 2 : index
    %c0_11 = arith.constant 0 : index
    %c0_12 = arith.constant 0 : index
    %13 = vector.load %arg3[%c2, %c0_11, %c0_12] : memref<9x4x128xbf16, #tpu.memory_space<vmem>>, vector<1x4x128xbf16>
    %14 = vector.shape_cast %13 : vector<1x4x128xbf16> to vector<4x128xbf16>
    %cst_13 = arith.constant dense<0.000000e+00> : vector<432x128xf32>
    %15 = tpu.matmul %12, %14, %cst_13 {dimension_numbers = #tpu.dot_dimension_numbers<[1], [0], [0], [1], [0, 0, 1, 1], [], []>} : vector<432x4xbf16>, vector<4x128xbf16>, vector<432x128xf32> -> vector<432x128xf32>
    %16 = arith.addf %10, %15 : vector<432x128xf32>
    %c0_14 = arith.constant 0 : index
    %c47 = arith.constant 47 : index
    %c0_15 = arith.constant 0 : index
    %17 = vector.load %arg1[%c0_14, %c47, %c0_15] : memref<1x528x4xbf16, #tpu.memory_space<vmem>>, vector<1x432x4xbf16>
    %18 = vector.shape_cast %17 : vector<1x432x4xbf16> to vector<432x4xbf16>
    %c3 = arith.constant 3 : index
    %c0_16 = arith.constant 0 : index
    %c0_17 = arith.constant 0 : index
    %19 = vector.load %arg3[%c3, %c0_16, %c0_17] : memref<9x4x128xbf16, #tpu.memory_space<vmem>>, vector<1x4x128xbf16>
    %20 = vector.shape_cast %19 : vector<1x4x128xbf16> to vector<4x128xbf16>
    %cst_18 = arith.constant dense<0.000000e+00> : vector<432x128xf32>
    %21 = tpu.matmul %18, %20, %cst_18 {dimension_numbers = #tpu.dot_dimension_numbers<[1], [0], [0], [1], [0, 0, 1, 1], [], []>} : vector<432x4xbf16>, vector<4x128xbf16>, vector<432x128xf32> -> vector<432x128xf32>
    %22 = arith.addf %16, %21 : vector<432x128xf32>
    %c0_19 = arith.constant 0 : index
    %c48 = arith.constant 48 : index
    %c0_20 = arith.constant 0 : index
    %23 = vector.load %arg1[%c0_19, %c48, %c0_20] : memref<1x528x4xbf16, #tpu.memory_space<vmem>>, vector<1x432x4xbf16>
    %24 = vector.shape_cast %23 : vector<1x432x4xbf16> to vector<432x4xbf16>
    %c4 = arith.constant 4 : index
    %c0_21 = arith.constant 0 : index
    %c0_22 = arith.constant 0 : index
    %25 = vector.load %arg3[%c4, %c0_21, %c0_22] : memref<9x4x128xbf16, #tpu.memory_space<vmem>>, vector<1x4x128xbf16>
    %26 = vector.shape_cast %25 : vector<1x4x128xbf16> to vector<4x128xbf16>
    %cst_23 = arith.constant dense<0.000000e+00> : vector<432x128xf32>
    %27 = tpu.matmul %24, %26, %cst_23 {dimension_numbers = #tpu.dot_dimension_numbers<[1], [0], [0], [1], [0, 0, 1, 1], [], []>} : vector<432x4xbf16>, vector<4x128xbf16>, vector<432x128xf32> -> vector<432x128xf32>
    %28 = arith.addf %22, %27 : vector<432x128xf32>
    %c0_24 = arith.constant 0 : index
    %c49 = arith.constant 49 : index
    %c0_25 = arith.constant 0 : index
    %29 = vector.load %arg1[%c0_24, %c49, %c0_25] : memref<1x528x4xbf16, #tpu.memory_space<vmem>>, vector<1x432x4xbf16>
    %30 = vector.shape_cast %29 : vector<1x432x4xbf16> to vector<432x4xbf16>
    %c5 = arith.constant 5 : index
    %c0_26 = arith.constant 0 : index
    %c0_27 = arith.constant 0 : index
    %31 = vector.load %arg3[%c5, %c0_26, %c0_27] : memref<9x4x128xbf16, #tpu.memory_space<vmem>>, vector<1x4x128xbf16>
    %32 = vector.shape_cast %31 : vector<1x4x128xbf16> to vector<4x128xbf16>
    %cst_28 = arith.constant dense<0.000000e+00> : vector<432x128xf32>
    %33 = tpu.matmul %30, %32, %cst_28 {dimension_numbers = #tpu.dot_dimension_numbers<[1], [0], [0], [1], [0, 0, 1, 1], [], []>} : vector<432x4xbf16>, vector<4x128xbf16>, vector<432x128xf32> -> vector<432x128xf32>
    %34 = arith.addf %28, %33 : vector<432x128xf32>
    %c0_29 = arith.constant 0 : index
    %c71 = arith.constant 71 : index
    %c0_30 = arith.constant 0 : index
    %35 = vector.load %arg1[%c0_29, %c71, %c0_30] : memref<1x528x4xbf16, #tpu.memory_space<vmem>>, vector<1x432x4xbf16>
    %36 = vector.shape_cast %35 : vector<1x432x4xbf16> to vector<432x4xbf16>
    %c6 = arith.constant 6 : index
    %c0_31 = arith.constant 0 : index
    %c0_32 = arith.constant 0 : index
    %37 = vector.load %arg3[%c6, %c0_31, %c0_32] : memref<9x4x128xbf16, #tpu.memory_space<vmem>>, vector<1x4x128xbf16>
    %38 = vector.shape_cast %37 : vector<1x4x128xbf16> to vector<4x128xbf16>
    %cst_33 = arith.constant dense<0.000000e+00> : vector<432x128xf32>
    %39 = tpu.matmul %36, %38, %cst_33 {dimension_numbers = #tpu.dot_dimension_numbers<[1], [0], [0], [1], [0, 0, 1, 1], [], []>} : vector<432x4xbf16>, vector<4x128xbf16>, vector<432x128xf32> -> vector<432x128xf32>
    %40 = arith.addf %34, %39 : vector<432x128xf32>
    %c0_34 = arith.constant 0 : index
    %c72 = arith.constant 72 : index
    %c0_35 = arith.constant 0 : index
    %41 = vector.load %arg1[%c0_34, %c72, %c0_35] : memref<1x528x4xbf16, #tpu.memory_space<vmem>>, vector<1x432x4xbf16>
    %42 = vector.shape_cast %41 : vector<1x432x4xbf16> to vector<432x4xbf16>
    %c7 = arith.constant 7 : index
    %c0_36 = arith.constant 0 : index
    %c0_37 = arith.constant 0 : index
    %43 = vector.load %arg3[%c7, %c0_36, %c0_37] : memref<9x4x128xbf16, #tpu.memory_space<vmem>>, vector<1x4x128xbf16>
    %44 = vector.shape_cast %43 : vector<1x4x128xbf16> to vector<4x128xbf16>
    %cst_38 = arith.constant dense<0.000000e+00> : vector<432x128xf32>
    %45 = tpu.matmul %42, %44, %cst_38 {dimension_numbers = #tpu.dot_dimension_numbers<[1], [0], [0], [1], [0, 0, 1, 1], [], []>} : vector<432x4xbf16>, vector<4x128xbf16>, vector<432x128xf32> -> vector<432x128xf32>
    %46 = arith.addf %40, %45 : vector<432x128xf32>
    %c0_39 = arith.constant 0 : index
    %c73 = arith.constant 73 : index
    %c0_40 = arith.constant 0 : index
    %47 = vector.load %arg1[%c0_39, %c73, %c0_40] : memref<1x528x4xbf16, #tpu.memory_space<vmem>>, vector<1x432x4xbf16>
    %48 = vector.shape_cast %47 : vector<1x432x4xbf16> to vector<432x4xbf16>
    %c8 = arith.constant 8 : index
    %c0_41 = arith.constant 0 : index
    %c0_42 = arith.constant 0 : index
    %49 = vector.load %arg3[%c8, %c0_41, %c0_42] : memref<9x4x128xbf16, #tpu.memory_space<vmem>>, vector<1x4x128xbf16>
    %50 = vector.shape_cast %49 : vector<1x4x128xbf16> to vector<4x128xbf16>
    %cst_43 = arith.constant dense<0.000000e+00> : vector<432x128xf32>
    %51 = tpu.matmul %48, %50, %cst_43 {dimension_numbers = #tpu.dot_dimension_numbers<[1], [0], [0], [1], [0, 0, 1, 1], [], []>} : vector<432x4xbf16>, vector<4x128xbf16>, vector<432x128xf32> -> vector<432x128xf32>
    %52 = arith.addf %46, %51 : vector<432x128xf32>
    %c0_44 = arith.constant 0 : index
    %c0_45 = arith.constant 0 : index
    %53 = vector.load %arg4[%c0_44, %c0_45] : memref<1x128xf32, #tpu.memory_space<vmem>>, vector<1x128xf32>
    %54 = vector.broadcast %53 : vector<1x128xf32> to vector<432x128xf32>
    %55 = arith.mulf %52, %54 : vector<432x128xf32>
    %c0_46 = arith.constant 0 : index
    %c0_47 = arith.constant 0 : index
    %56 = vector.load %arg5[%c0_46, %c0_47] : memref<1x128xf32, #tpu.memory_space<vmem>>, vector<1x128xf32>
    %57 = vector.broadcast %56 : vector<1x128xf32> to vector<432x128xf32>
    %58 = arith.addf %55, %57 : vector<432x128xf32>
    %cst_48 = arith.constant 0.000000e+00 : f32
    %59 = vector.broadcast %cst_48 : f32 to vector<432x128xf32>
    %60 = arith.maximumf %58, %59 : vector<432x128xf32>
    %c0_49 = arith.constant 0 : index
    %c0_50 = arith.constant 0 : index
    %61 = vector.load %arg2[%c0_49, %c0_50] : memref<432x1xf32, #tpu.memory_space<vmem>>, vector<432x1xf32>
    %62 = vector.broadcast %61 : vector<432x1xf32> to vector<432x128xf32>
    %63 = arith.mulf %60, %62 : vector<432x128xf32>
    %cst_51 = arith.constant 0.000000e+00 : bf16
    %64 = vector.broadcast %cst_51 : bf16 to vector<48x128xbf16>
    %c0_52 = arith.constant 0 : index
    %c0_53 = arith.constant 0 : index
    %65 = vector.load %arg10[%c0_52, %c0_53] : memref<528x128xbf16, #tpu.memory_space<vmem>>, vector<48x128xbf16>
    tpu.vector_store %arg10[%c0_52, %c0_53], %64 {strides = array<i32>} : memref<528x128xbf16, #tpu.memory_space<vmem>>, vector<48x128xbf16>,
    %c480 = arith.constant 480 : index
    %c0_54 = arith.constant 0 : index
    %66 = vector.load %arg10[%c480, %c0_54] : memref<528x128xbf16, #tpu.memory_space<vmem>>, vector<48x128xbf16>
    tpu.vector_store %arg10[%c480, %c0_54], %64 {strides = array<i32>} : memref<528x128xbf16, #tpu.memory_space<vmem>>, vector<48x128xbf16>,
    %67 = arith.truncf %63 : vector<432x128xf32> to vector<432x128xbf16>
    %c48_55 = arith.constant 48 : index
    %c0_56 = arith.constant 0 : index
    %68 = vector.load %arg10[%c48_55, %c0_56] : memref<528x128xbf16, #tpu.memory_space<vmem>>, vector<432x128xbf16>
    tpu.vector_store %arg10[%c48_55, %c0_56], %67 {strides = array<i32>} : memref<528x128xbf16, #tpu.memory_space<vmem>>, vector<432x128xbf16>,
    %c23_57 = arith.constant 23 : index
    %c0_58 = arith.constant 0 : index
    %69 = vector.load %arg10[%c23_57, %c0_58] : memref<528x128xbf16, #tpu.memory_space<vmem>>, vector<432x128xbf16>
    %c0_59 = arith.constant 0 : index
    %c0_60 = arith.constant 0 : index
    %c0_61 = arith.constant 0 : index
    %70 = vector.load %arg6[%c0_59, %c0_60, %c0_61] : memref<9x128x128xbf16, #tpu.memory_space<vmem>>, vector<1x128x128xbf16>
    %71 = vector.shape_cast %70 : vector<1x128x128xbf16> to vector<128x128xbf16>
    %cst_62 = arith.constant dense<0.000000e+00> : vector<432x128xf32>
    %72 = tpu.matmul %69, %71, %cst_62 {dimension_numbers = #tpu.dot_dimension_numbers<[1], [0], [0], [1], [0, 0, 1, 1], [], []>} : vector<432x128xbf16>, vector<128x128xbf16>, vector<432x128xf32> -> vector<432x128xf32>
    %c24_63 = arith.constant 24 : index
    %c0_64 = arith.constant 0 : index
    %73 = vector.load %arg10[%c24_63, %c0_64] : memref<528x128xbf16, #tpu.memory_space<vmem>>, vector<432x128xbf16>
    %c1_65 = arith.constant 1 : index
    %c0_66 = arith.constant 0 : index
    %c0_67 = arith.constant 0 : index
    %74 = vector.load %arg6[%c1_65, %c0_66, %c0_67] : memref<9x128x128xbf16, #tpu.memory_space<vmem>>, vector<1x128x128xbf16>
    %75 = vector.shape_cast %74 : vector<1x128x128xbf16> to vector<128x128xbf16>
    %cst_68 = arith.constant dense<0.000000e+00> : vector<432x128xf32>
    %76 = tpu.matmul %73, %75, %cst_68 {dimension_numbers = #tpu.dot_dimension_numbers<[1], [0], [0], [1], [0, 0, 1, 1], [], []>} : vector<432x128xbf16>, vector<128x128xbf16>, vector<432x128xf32> -> vector<432x128xf32>
    %77 = arith.addf %72, %76 : vector<432x128xf32>
    %c25_69 = arith.constant 25 : index
    %c0_70 = arith.constant 0 : index
    %78 = vector.load %arg10[%c25_69, %c0_70] : memref<528x128xbf16, #tpu.memory_space<vmem>>, vector<432x128xbf16>
    %c2_71 = arith.constant 2 : index
    %c0_72 = arith.constant 0 : index
    %c0_73 = arith.constant 0 : index
    %79 = vector.load %arg6[%c2_71, %c0_72, %c0_73] : memref<9x128x128xbf16, #tpu.memory_space<vmem>>, vector<1x128x128xbf16>
    %80 = vector.shape_cast %79 : vector<1x128x128xbf16> to vector<128x128xbf16>
    %cst_74 = arith.constant dense<0.000000e+00> : vector<432x128xf32>
    %81 = tpu.matmul %78, %80, %cst_74 {dimension_numbers = #tpu.dot_dimension_numbers<[1], [0], [0], [1], [0, 0, 1, 1], [], []>} : vector<432x128xbf16>, vector<128x128xbf16>, vector<432x128xf32> -> vector<432x128xf32>
    %82 = arith.addf %77, %81 : vector<432x128xf32>
    %c47_75 = arith.constant 47 : index
    %c0_76 = arith.constant 0 : index
    %83 = vector.load %arg10[%c47_75, %c0_76] : memref<528x128xbf16, #tpu.memory_space<vmem>>, vector<432x128xbf16>
    %c3_77 = arith.constant 3 : index
    %c0_78 = arith.constant 0 : index
    %c0_79 = arith.constant 0 : index
    %84 = vector.load %arg6[%c3_77, %c0_78, %c0_79] : memref<9x128x128xbf16, #tpu.memory_space<vmem>>, vector<1x128x128xbf16>
    %85 = vector.shape_cast %84 : vector<1x128x128xbf16> to vector<128x128xbf16>
    %cst_80 = arith.constant dense<0.000000e+00> : vector<432x128xf32>
    %86 = tpu.matmul %83, %85, %cst_80 {dimension_numbers = #tpu.dot_dimension_numbers<[1], [0], [0], [1], [0, 0, 1, 1], [], []>} : vector<432x128xbf16>, vector<128x128xbf16>, vector<432x128xf32> -> vector<432x128xf32>
    %87 = arith.addf %82, %86 : vector<432x128xf32>
    %c48_81 = arith.constant 48 : index
    %c0_82 = arith.constant 0 : index
    %88 = vector.load %arg10[%c48_81, %c0_82] : memref<528x128xbf16, #tpu.memory_space<vmem>>, vector<432x128xbf16>
    %c4_83 = arith.constant 4 : index
    %c0_84 = arith.constant 0 : index
    %c0_85 = arith.constant 0 : index
    %89 = vector.load %arg6[%c4_83, %c0_84, %c0_85] : memref<9x128x128xbf16, #tpu.memory_space<vmem>>, vector<1x128x128xbf16>
    %90 = vector.shape_cast %89 : vector<1x128x128xbf16> to vector<128x128xbf16>
    %cst_86 = arith.constant dense<0.000000e+00> : vector<432x128xf32>
    %91 = tpu.matmul %88, %90, %cst_86 {dimension_numbers = #tpu.dot_dimension_numbers<[1], [0], [0], [1], [0, 0, 1, 1], [], []>} : vector<432x128xbf16>, vector<128x128xbf16>, vector<432x128xf32> -> vector<432x128xf32>
    %92 = arith.addf %87, %91 : vector<432x128xf32>
    %c49_87 = arith.constant 49 : index
    %c0_88 = arith.constant 0 : index
    %93 = vector.load %arg10[%c49_87, %c0_88] : memref<528x128xbf16, #tpu.memory_space<vmem>>, vector<432x128xbf16>
    %c5_89 = arith.constant 5 : index
    %c0_90 = arith.constant 0 : index
    %c0_91 = arith.constant 0 : index
    %94 = vector.load %arg6[%c5_89, %c0_90, %c0_91] : memref<9x128x128xbf16, #tpu.memory_space<vmem>>, vector<1x128x128xbf16>
    %95 = vector.shape_cast %94 : vector<1x128x128xbf16> to vector<128x128xbf16>
    %cst_92 = arith.constant dense<0.000000e+00> : vector<432x128xf32>
    %96 = tpu.matmul %93, %95, %cst_92 {dimension_numbers = #tpu.dot_dimension_numbers<[1], [0], [0], [1], [0, 0, 1, 1], [], []>} : vector<432x128xbf16>, vector<128x128xbf16>, vector<432x128xf32> -> vector<432x128xf32>
    %97 = arith.addf %92, %96 : vector<432x128xf32>
    %c71_93 = arith.constant 71 : index
    %c0_94 = arith.constant 0 : index
    %98 = vector.load %arg10[%c71_93, %c0_94] : memref<528x128xbf16, #tpu.memory_space<vmem>>, vector<432x128xbf16>
    %c6_95 = arith.constant 6 : index
    %c0_96 = arith.constant 0 : index
    %c0_97 = arith.constant 0 : index
    %99 = vector.load %arg6[%c6_95, %c0_96, %c0_97] : memref<9x128x128xbf16, #tpu.memory_space<vmem>>, vector<1x128x128xbf16>
    %100 = vector.shape_cast %99 : vector<1x128x128xbf16> to vector<128x128xbf16>
    %cst_98 = arith.constant dense<0.000000e+00> : vector<432x128xf32>
    %101 = tpu.matmul %98, %100, %cst_98 {dimension_numbers = #tpu.dot_dimension_numbers<[1], [0], [0], [1], [0, 0, 1, 1], [], []>} : vector<432x128xbf16>, vector<128x128xbf16>, vector<432x128xf32> -> vector<432x128xf32>
    %102 = arith.addf %97, %101 : vector<432x128xf32>
    %c72_99 = arith.constant 72 : index
    %c0_100 = arith.constant 0 : index
    %103 = vector.load %arg10[%c72_99, %c0_100] : memref<528x128xbf16, #tpu.memory_space<vmem>>, vector<432x128xbf16>
    %c7_101 = arith.constant 7 : index
    %c0_102 = arith.constant 0 : index
    %c0_103 = arith.constant 0 : index
    %104 = vector.load %arg6[%c7_101, %c0_102, %c0_103] : memref<9x128x128xbf16, #tpu.memory_space<vmem>>, vector<1x128x128xbf16>
    %105 = vector.shape_cast %104 : vector<1x128x128xbf16> to vector<128x128xbf16>
    %cst_104 = arith.constant dense<0.000000e+00> : vector<432x128xf32>
    %106 = tpu.matmul %103, %105, %cst_104 {dimension_numbers = #tpu.dot_dimension_numbers<[1], [0], [0], [1], [0, 0, 1, 1], [], []>} : vector<432x128xbf16>, vector<128x128xbf16>, vector<432x128xf32> -> vector<432x128xf32>
    %107 = arith.addf %102, %106 : vector<432x128xf32>
    %c73_105 = arith.constant 73 : index
    %c0_106 = arith.constant 0 : index
    %108 = vector.load %arg10[%c73_105, %c0_106] : memref<528x128xbf16, #tpu.memory_space<vmem>>, vector<432x128xbf16>
    %c8_107 = arith.constant 8 : index
    %c0_108 = arith.constant 0 : index
    %c0_109 = arith.constant 0 : index
    %109 = vector.load %arg6[%c8_107, %c0_108, %c0_109] : memref<9x128x128xbf16, #tpu.memory_space<vmem>>, vector<1x128x128xbf16>
    %110 = vector.shape_cast %109 : vector<1x128x128xbf16> to vector<128x128xbf16>
    %cst_110 = arith.constant dense<0.000000e+00> : vector<432x128xf32>
    %111 = tpu.matmul %108, %110, %cst_110 {dimension_numbers = #tpu.dot_dimension_numbers<[1], [0], [0], [1], [0, 0, 1, 1], [], []>} : vector<432x128xbf16>, vector<128x128xbf16>, vector<432x128xf32> -> vector<432x128xf32>
    %112 = arith.addf %107, %111 : vector<432x128xf32>
    %c0_111 = arith.constant 0 : index
    %c0_112 = arith.constant 0 : index
    %113 = vector.load %arg7[%c0_111, %c0_112] : memref<1x128xf32, #tpu.memory_space<vmem>>, vector<1x128xf32>
    %114 = vector.broadcast %113 : vector<1x128xf32> to vector<432x128xf32>
    %115 = arith.mulf %112, %114 : vector<432x128xf32>
    %c0_113 = arith.constant 0 : index
    %c0_114 = arith.constant 0 : index
    %116 = vector.load %arg8[%c0_113, %c0_114] : memref<1x128xf32, #tpu.memory_space<vmem>>, vector<1x128xf32>
    %117 = vector.broadcast %116 : vector<1x128xf32> to vector<432x128xf32>
    %118 = arith.addf %115, %117 : vector<432x128xf32>
    %cst_115 = arith.constant 0.000000e+00 : f32
    %119 = vector.broadcast %cst_115 : f32 to vector<432x128xf32>
    %120 = arith.maximumf %118, %119 : vector<432x128xf32>
    %c0_116 = arith.constant 0 : index
    %c0_117 = arith.constant 0 : index
    %c0_118 = arith.constant 0 : index
    %121 = vector.load %arg9[%c0_116, %c0_117, %c0_118] : memref<1x432x128xf32, #tpu.memory_space<vmem>>, vector<1x432x128xf32>
    %122 = vector.shape_cast %121 : vector<1x432x128xf32> to vector<432x128xf32>
    %123 = vector.shape_cast %120 : vector<432x128xf32> to vector<1x432x128xf32>
    tpu.vector_store %arg9[%c0_116, %c0_117, %c0_118], %123 {strides = array<i32>} : memref<1x432x128xf32, #tpu.memory_space<vmem>>, vector<1x432x128xf32>,
    return
  }
  func.func @transform_0(%arg0: i32) -> (i32, i32, i32) {
    %c0_i32 = arith.constant 0 : i32
    %c0_i32_0 = arith.constant 0 : i32
    %c0_i32_1 = arith.constant 0 : i32
    return %arg0, %c0_i32, %c0_i32_0 : i32, i32, i32
  }
  func.func @transform_1(%arg0: i32) -> (i32, i32) {
    %c0_i32 = arith.constant 0 : i32
    %c0_i32_0 = arith.constant 0 : i32
    %c0_i32_1 = arith.constant 0 : i32
    return %c0_i32, %c0_i32_0 : i32, i32
  }
  func.func @transform_2(%arg0: i32) -> (i32, i32, i32) {
    %c0_i32 = arith.constant 0 : i32
    %c0_i32_0 = arith.constant 0 : i32
    %c0_i32_1 = arith.constant 0 : i32
    %c0_i32_2 = arith.constant 0 : i32
    return %c0_i32, %c0_i32_0, %c0_i32_1 : i32, i32, i32
  }
  func.func @transform_3(%arg0: i32) -> (i32, i32) {
    %c0_i32 = arith.constant 0 : i32
    %c0_i32_0 = arith.constant 0 : i32
    %c0_i32_1 = arith.constant 0 : i32
    return %c0_i32, %c0_i32_0 : i32, i32
  }
  func.func @transform_4(%arg0: i32) -> (i32, i32) {
    %c0_i32 = arith.constant 0 : i32
    %c0_i32_0 = arith.constant 0 : i32
    %c0_i32_1 = arith.constant 0 : i32
    return %c0_i32, %c0_i32_0 : i32, i32
  }
  func.func @transform_5(%arg0: i32) -> (i32, i32, i32) {
    %c0_i32 = arith.constant 0 : i32
    %c0_i32_0 = arith.constant 0 : i32
    %c0_i32_1 = arith.constant 0 : i32
    %c0_i32_2 = arith.constant 0 : i32
    return %c0_i32, %c0_i32_0, %c0_i32_1 : i32, i32, i32
  }
  func.func @transform_6(%arg0: i32) -> (i32, i32) {
    %c0_i32 = arith.constant 0 : i32
    %c0_i32_0 = arith.constant 0 : i32
    %c0_i32_1 = arith.constant 0 : i32
    return %c0_i32, %c0_i32_0 : i32, i32
  }
  func.func @transform_7(%arg0: i32) -> (i32, i32) {
    %c0_i32 = arith.constant 0 : i32
    %c0_i32_0 = arith.constant 0 : i32
    %c0_i32_1 = arith.constant 0 : i32
    return %c0_i32, %c0_i32_0 : i32, i32
  }
  func.func @transform_8(%arg0: i32) -> (i32, i32, i32) {
    %c0_i32 = arith.constant 0 : i32
    %c0_i32_0 = arith.constant 0 : i32
    %c0_i32_1 = arith.constant 0 : i32
    return %arg0, %c0_i32, %c0_i32_0 : i32, i32, i32
  }
}

</mosaic_0001>

<bundles_post_ra>
// kernel: conv_act_forward.1
= control target key start
LH: loop header
LB: loop body
LE: loop exit
PB: predicated region body
PF: predicated region fallthrough
CT: control target
= control target key end

     0   :  { %s17696_s27 = smov 0   ;;  %s22191_s0 = inlined_call_operand.vmem [shape: bf16[2,528,4], index: 0, kind: input, shape index: {}]   ;;  %s22192_s1 = inlined_call_operand.vmem [shape: f32[432,1], index: 1, kind: input, shape index: {}]   ;;  %s22193_s2 = inlined_call_operand.vmem [shape: bf16[9,4,128], index: 2, kind: input, shape index: {}]   ;;  %s22194_s3 = inlined_call_operand.vmem [shape: f32[1,128], index: 3, kind: input, shape index: {}]   ;;  %s22195_s4 = inlined_call_operand.vmem [shape: f32[1,128], index: 4, kind: input, shape index: {}]   ;;  %s22196_s5 = inlined_call_operand.vmem [shape: bf16[9,128,128], index: 5, kind: input, shape index: {}]   ;;  %s22197_s6 = inlined_call_operand.vmem [shape: f32[1,128], index: 6, kind: input, shape index: {}]   ;;  %s22198_s7 = inlined_call_operand.vmem [shape: f32[1,128], index: 7, kind: input, shape index: {}]   ;;  %s22199_s8 = inlined_call_operand.vmem [shape: f32[2,432,128], index: 8, kind: output, shape index: {}]  }
   0x1 LB: > { %s12142_s28 = sadd.s32 4294967295, %s17646_s27   ;;  %p12146_p0 = scmp.ge.s32.totalorder %s17646_s27, 1  ;;  %s17646_s27 = sphi %s17696_s27, %s18_s27  }
   0x2   : > { %p262_p1 = scmp.lt.s32.totalorder %s17646_s27, 3 }
   0x4   : > { %p263_p2 = pnand %p12146_p0, %p262_p1 }
   0x6   : > { %266 = sbr.rel (%p263_p2) target bundleno = 4134 (0x1026), region = 52 }
   0xd   : > { %v12149_v0 = vld [vmem:[%s22193_s2 + $0x2] sm:$0x3]  ;;  %vm582_vm0 = vcmask 1041408   ;;  %p296_p3 = scmp.lt.s32.totalorder %s12142_s28, 1  ;;  %v22200_v1 = vmov 0.0   ;;  %vm17649_vm1 = vmmov 0  }
   0xe   : > { %13422 = vmatprep.subr.bf16.mxu0 %v22200_v1  ;;  %v584_v2 = vsel %vm582_vm0, %v12149_v0, 0  ;;  %13424 = vmatprep.mubr.msk.bf16.mxu0 %vm17649_vm1, %v22200_v1  ;;  %v362_v3 = vld [vmem:[%s22193_s2] sm:$0x3]  ;;  %vm500_vm2 = vcmask 31744   ;;  %vm865_vm3 = vsmask.f32 4352 }
   0xf   : > { %13423 = vmatpush3.bf16.msra.mxu0 %v584_v2  ;;  %s22651_s28 = smov (!%p296_p3, %s12142_s28), 1  ;;  %15528 = vmatprep.subr.bf16.mxu1 %v22200_v1  ;;  %v1199_v6 = vsel %vm582_vm0, %v362_v3, 0  ;;  %vm1645_vm4 = vsmask.f32 7424  ;;  %vm7059_vm5 = vcmask 1043456  }
  0x10   : > { %13532 = vmatprep.subr.bf16.mxu0 %v22200_v1  ;;  %14432 = vmatprep.mubr.msk.bf16.mxu1 %vm17649_vm1, %v22200_v1  ;;  %s17270_s11 = smul.u32 264, %s22651_s28  ;;  %vm8032_vm6 = vsmask.f32 3328  ;;  %vm8577_vm7 = vsmask.f32 256 }
  0x11   : > { %s17271_s18 = smul.u32 432, %s22651_s28 }
  0x12   : > { %s17724_s14 = scalar_lea.vmem %s22191_s0, %s17270_s11 }
  0x13   : > { %v17727_v4 = vld [vmem:[%s17724_s14 + $0xc] sm:$0xf]  ;;  %v309_v5 = vld [vmem:[%s17724_s14 + $0x10] sm:$0xf]  ;;  %v310_v8 = vld [vmem:[%s17724_s14 + $0x14] sm:$0xf]  ;;  %s22027_s22 = scalar_lea.vmem %s22199_s8, %s17271_s18 }
  0x14   : > { %v12150_v7 = vcombine.low %v17727_v4, %v309_v5  ;;  %v311_v9 = vld [vmem:[%s17724_s14 + $0x18] sm:$0xf]  ;;  %v312_v10 = vld [vmem:[%s17724_s14 + $0x1c] sm:$0xf]  ;;  %v17735_v11 = vcombine.low %v309_v5, %v310_v8  ;;  %v313_v13 = vld [vmem:[%s17724_s14 + $0x20] sm:$0xf] }
  0x15   : > { %v17737_v12 = vcombine.low %v311_v9, %v312_v10  ;;  %v314_v14 = vld [vmem:[%s17724_s14 + $0x24] sm:$0xf]  ;;  %v315_v15 = vld [vmem:[%s17724_s14 + $0x28] sm:$0xf]  ;;  %v316_v17 = vld [vmem:[%s17724_s14 + $0x2c] sm:$0xf]  ;;  %v12151_v27 = vcombine.low %v310_v8, %v311_v9  ;;  %v12152_v59 = vcombine.low %v312_v10, %v313_v13 }
  0x16   : > { %13425 = vmatmul.mubr.msk.bf16.vlgmr.msra.gmra.mrb[0].mxu0 %vm500_vm2, %v12150_v7  ;;  %v17745_v16 = vcombine.low %v313_v13, %v314_v14  ;;  %v317_v18 = vld [vmem:[%s17724_s14 + $0x30] sm:$0xf]  ;;  %v17749_v19 = vcombine.low %v315_v15, %v316_v17  ;;  %v17752_v20 = vld [vmem:[%s17724_s14 + $0x34] sm:$0xf]  ;;  %v17755_v21 = vld [vmem:[%s17724_s14 + $0x38] sm:$0xf]  ;;  %v12153_v63 = vcombine.low %v314_v14, %v315_v15 }
  0x17   : > { %13533 = vmatpush3.bf16.msra.mxu0 %v1199_v6  ;;  %13428 = vmatprep.mubr.msk.bf16.mxu0 %vm17649_vm1, %v22200_v1  ;;  %v17758_v22 = vld [vmem:[%s17724_s14 + $0x3c] sm:$0xf]  ;;  %v17762_v23 = vcombine.low %v317_v18, %v17752_v20  ;;  %v17765_v24 = vld [vmem:[%s17724_s14 + $0x40] sm:$0xf]  ;;  %v17768_v25 = vld [vmem:[%s17724_s14 + $0x44] sm:$0xf]  ;;  %v12154_v5 = vcombine.low %v316_v17, %v317_v18  ;;  %v12155_v9 = vcombine.low %v17752_v20, %v17755_v21 }
  0x18   : > { %13642 = vmatprep.subr.bf16.mxu0 %v22200_v1  ;;  %v17771_v26 = vld [vmem:[%s17724_s14 + $0x48] sm:$0xf]  ;;  %v17775_v28 = vcombine.low %v17755_v21, %v17758_v22  ;;  %v17779_v29 = vcombine.low %v17765_v24, %v17768_v25  ;;  %v17782_v30 = vld [vmem:[%s17724_s14 + $0x4c] sm:$0xf]  ;;  %v17785_v31 = vld [vmem:[%s17724_s14 + $0x50] sm:$0xf]  ;;  %v12156_v15 = vcombine.low %v17758_v22, %v17765_v24 }
  0x19   : > { %v17788_v32 = vld [vmem:[%s17724_s14 + $0x54] sm:$0xf]  ;;  %v17792_v33 = vcombine.low %v17771_v26, %v17782_v30  ;;  %v17795_v34 = vld [vmem:[%s17724_s14 + $0x58] sm:$0xf]  ;;  %v17802_v36 = vld [vmem:[%s17724_s14 + $0x5c] sm:$0xf]  ;;  %v12157_v21 = vcombine.low %v17768_v25, %v17771_v26 }
  0x1a   : > { %v17799_v35 = vcombine.low %v17785_v31, %v17788_v32  ;;  %v17805_v37 = vld [vmem:[%s17724_s14 + $0x60] sm:$0xf]  ;;  %v17809_v38 = vcombine.low %v17795_v34, %v17802_v36  ;;  %v17812_v39 = vld [vmem:[%s17724_s14 + $0x64] sm:$0xf]  ;;  %v17815_v40 = vld [vmem:[%s17724_s14 + $0x68] sm:$0xf] }
  0x1b   : > { %v17818_v41 = vld [vmem:[%s17724_s14 + $0x6c] sm:$0xf]  ;;  %v17822_v42 = vcombine.low %v17805_v37, %v17812_v39  ;;  %v17825_v43 = vld [vmem:[%s17724_s14 + $0x70] sm:$0xf]  ;;  %v17832_v45 = vld [vmem:[%s17724_s14 + $0x74] sm:$0xf] }
  0x1c   : > { %v17829_v44 = vcombine.low %v17815_v40, %v17818_v41  ;;  %v17835_v46 = vld [vmem:[%s17724_s14 + $0x78] sm:$0xf]  ;;  %v17840_v47 = vcombine.low %v17825_v43, %v17832_v45  ;;  %v17843_v48 = vld [vmem:[%s17724_s14 + $0x7c] sm:$0xf]  ;;  %v17846_v49 = vld [vmem:[%s17724_s14 + $0x80] sm:$0xf] }
  0x1d   : > { %v17849_v50 = vld [vmem:[%s17724_s14 + $0x84] sm:$0xf]  ;;  %v17855_v51 = vcombine.low %v17835_v46, %v17843_v48  ;;  %v17858_v52 = vld [vmem:[%s17724_s14 + $0x88] sm:$0xf]  ;;  %v17865_v54 = vld [vmem:[%s17724_s14 + $0x8c] sm:$0xf] }
  0x1e   : > { %13429 = vmatmul.mubr.msk.bf16.gmra.mrb[4].mxu0 %vm500_vm2, %v12151_v27  ;;  %v17862_v53 = vcombine.low %v17846_v49, %v17849_v50  ;;  %v17868_v55 = vld [vmem:[%s17724_s14 + $0x90] sm:$0xf]  ;;  %v17872_v56 = vcombine.low %v17858_v52, %v17865_v54  ;;  %v17875_v57 = vld [vmem:[%s17724_s14 + $0x94] sm:$0xf]  ;;  %v17882_v60 = vld [vmem:[%s17724_s14 + $0x98] sm:$0xf] }
  0x1f   : > { %13432 = vmatprep.mubr.msk.bf16.mxu0 %vm17649_vm1, %v22200_v1  ;;  %v17879_v58 = vcombine.low %v17868_v55, %v17875_v57  ;;  %v17885_v61 = vld [vmem:[%s17724_s14 + $0x9c] sm:$0xf]  ;;  %v17895_v0 = vld [vmem:[%s17724_s14 + $0xa0] sm:$0xf]  ;;  %v17898_v2 = vld [vmem:[%s17724_s14 + $0xa4] sm:$0xf] }
  0x20   : > { %v17890_v62 = vcombine.low %v17882_v60, %v17885_v61  ;;  %v17903_v3 = vcombine.low %v17895_v0, %v17898_v2  ;;  %v17908_v6 = vld [vmem:[%s17724_s14 + $0xa8] sm:$0xf]  ;;  %v17911_v7 = vld [vmem:[%s17724_s14 + $0xac] sm:$0xf]  ;;  %v17923_v10 = vld [vmem:[%s17724_s14 + $0xb0] sm:$0xf] }
  0x21   : > { %v17916_v8 = vcombine.low %v17908_v6, %v17911_v7  ;;  %v17926_v13 = vld [vmem:[%s17724_s14 + $0xb4] sm:$0xf]  ;;  %v17938_v17 = vld [vmem:[%s17724_s14 + $0xb8] sm:$0xf]  ;;  %v17941_v18 = vld [vmem:[%s17724_s14 + $0xbc] sm:$0xf] }
  0x22   : > { %v17931_v14 = vcombine.low %v17923_v10, %v17926_v13  ;;  %v17946_v20 = vcombine.low %v17938_v17, %v17941_v18  ;;  %v17953_v27 = vld [vmem:[%s17724_s14 + $0xc0] sm:$0xf]  ;;  %v17956_v22 = vld [vmem:[%s17724_s14 + $0xc4] sm:$0xf]  ;;  %v17970_v26 = vld [vmem:[%s17724_s14 + $0xc8] sm:$0xf] }
  0x23   : > { %v17961_v24 = vcombine.low %v17953_v27, %v17956_v22 }
  0x24   : > { %22340 = vst [vmem:[#allocation3_spill] sm:$0xff] %v17931_v14  ;;  %22341 = vst [vmem:[#allocation4_spill] sm:$0xff] %v17946_v20  ;;  %v18005_v14 = vld [vmem:[%s17724_s14 + $0xdc] sm:$0xf] }
  0x25   : > { %22342 = vst [vmem:[#allocation5_spill] sm:$0xff] %v17961_v24 }
  0x26   : > { %13433 = vmatmul.mubr.msk.bf16.gmra.mrb[8].mxu0 %vm500_vm2, %v12152_v59  ;;  %v307_v59 = vld [vmem:[%s17724_s14 + $0x8] sm:$0x8] }
  0x27   : > { %13436 = vmatprep.mubr.msk.bf16.mxu0 %vm17649_vm1, %v22200_v1  ;;  %v12204_v25 = vcombine.low %v307_v59, %v17727_v4  ;;  %v12159_v4 = vcombine.low %v17788_v32, %v17795_v34  ;;  %v17987_v59 = vld [vmem:[%s17724_s14 + $0xd0] sm:$0xf]  ;;  %v12160_v32 = vcombine.low %v17802_v36, %v17805_v37  ;;  %v18002_v34 = vld [vmem:[%s17724_s14 + $0xd8] sm:$0xf]  ;;  %v12161_v36 = vcombine.low %v17812_v39, %v17815_v40 }
  0x28   : > { %v884_v37 = vshrl.u32 %v17737_v12, 16  ;;  %v893_v39 = vshrl.u32 %v17745_v16, 16  ;;  %v896_v40 = vshll.u32 %v17745_v16, 16 }
  0x2e   : > { %13437 = vmatmul.mubr.msk.bf16.gmra.mrb[12].mxu0 %vm500_vm2, %v12153_v63  ;;  %v12158_v63 = vcombine.low %v17782_v30, %v17785_v31  ;;  %v878_v30 = vshll.u32 %v17735_v11, 16  ;;  %v22344_v31 = vmov 0.0  }
  0x2f   : > { %13440 = vmatprep.mubr.msk.bf16.mxu0 %vm17649_vm1, %v22200_v1 }
  0x36   : > { %13441 = vmatmul.mubr.msk.bf16.gmra.mrb[16].mxu0 %vm500_vm2, %v12154_v5  ;;  %v17973_v5 = vld [vmem:[%s17724_s14 + $0xcc] sm:$0xf] }
  0x37   : > { %13444 = vmatprep.mubr.msk.bf16.mxu0 %vm17649_vm1, %v22200_v1 }
  0x3e   : > { %13445 = vmatmul.mubr.msk.bf16.gmra.mrb[20].mxu0 %vm500_vm2, %v12155_v9  ;;  %v17978_v9 = vcombine.low %v17970_v26, %v17973_v5 }
  0x3f   : > { %13448 = vmatprep.mubr.msk.bf16.mxu0 %vm17649_vm1, %v22200_v1 }
  0x40   : > { %22343 = vst [vmem:[#allocation6_spill] sm:$0xff] %v17978_v9 }
  0x46   : > { %13449 = vmatmul.mubr.msk.bf16.gmra.mrb[24].mxu0 %vm500_vm2, %v12156_v15  ;;  %v867_v15 = vshrl.u32 %v12204_v25, 16 }
  0x47   : > { %13452 = vmatprep.mubr.msk.bf16.mxu0 %vm17649_vm1, %v22200_v1 }
  0x48   : > { %v869_v9 = vrot.slane %v867_v15, 3 }
  0x4e   : > { %13453 = vmatmul.mubr.msk.bf16.gmra.mrb[28].mxu0 %vm500_vm2, %v12157_v21  ;;  %v870_v21 = vshll.u32 %v12204_v25, 16 }
  0x4f   : > { %13456 = vmatprep.mubr.msk.bf16.mxu0 %vm17649_vm1, %v22200_v1  ;;  %v875_v1 = vshrl.u32 %v17735_v11, 16  ;;  %v880_v11 = vrot.slane %v878_v30, 4  ;;  %v887_v30 = vshll.u32 %v17737_v12, 16  ;;  %v898_v12 = vrot.slane %v896_v40, 4 }
  0x50   : > { %v872_v24 = vrot.slane %v870_v21, 4  ;;  %v923_v40 = vshll.u32 %v17775_v28, 16 }
  0x51   : > { %v877_v20 = vrot.slane %v875_v1, 3 }
  0x52   : > { %v873_v1 = vor.u32 %v872_v24, %v869_v9 }
  0x53   : > { %v881_v15 = vor.u32 %v880_v11, %v877_v20  ;;  %v12162_v20 = vcombine.low %v17818_v41, %v17825_v43  ;;  %v895_v11 = vrot.slane %v893_v39, 3  ;;  %v902_v43 = vshrl.u32 %v17749_v19, 16 }
  0x55   : > { %v18015_v21 = vsel %vm865_vm3, %v873_v1, %v881_v15  ;;  %v12163_v1 = vcombine.low %v17832_v45, %v17835_v46  ;;  %v911_v46 = vshrl.u32 %v17762_v23, 16 }
  0x56   : > { %13457 = vmatmul.mubr.msk.bf16.gmra.mrb[32].mxu0 %vm500_vm2, %v12158_v63  ;;  %v17990_v63 = vld [vmem:[%s17724_s14 + $0xd4] sm:$0xf] }
  0x57   : > { %13460 = vmatprep.mubr.msk.bf16.mxu0 %vm17649_vm1, %v22344_v31  ;;  %v17995_v25 = vcombine.low %v17987_v59, %v17990_v63 }
  0x5e   : > { %13461 = vmatmul.mubr.msk.bf16.gmra.mrb[36].mxu0 %vm500_vm2, %v12159_v4  ;;  %v18010_v4 = vcombine.low %v18002_v34, %v18005_v14 }
  0x5f   : > { %13464 = vmatprep.mubr.msk.bf16.mxu0 %vm17649_vm1, %v22344_v31 }
  0x60   : > { %22345 = vst [vmem:[#allocation7_spill] sm:$0xff] %v18010_v4  ;;  %v889_v4 = vrot.slane %v887_v30, 4 }
  0x66   : > { %13465 = vmatmul.mubr.msk.bf16.gmra.mrb[40].mxu0 %vm500_vm2, %v12160_v32  ;;  %v886_v32 = vrot.slane %v884_v37, 3  ;;  %v12164_v37 = vcombine.low %v17843_v48, %v17846_v49  ;;  %v920_v49 = vshrl.u32 %v17775_v28, 16 }
  0x67   : > { %13468 = vmatprep.mubr.msk.bf16.mxu0 %vm17649_vm1, %v22344_v31 }
  0x68   : > { %v890_v24 = vor.u32 %v889_v4, %v886_v32  ;;  %v905_v4 = vshll.u32 %v17749_v19, 16  ;;  %v914_v32 = vshll.u32 %v17762_v23, 16  ;;  %v925_v23 = vrot.slane %v923_v40, 4 }
  0x69   : > { %v12170_v40 = vcombine.low %v17911_v7, %v17923_v10  ;;  %v974_v10 = vshrl.u32 %v17829_v44, 16 }
  0x6a   : > { %v18027_v9 = vsel %vm865_vm3, %v881_v15, %v890_v24  ;;  %v904_v15 = vrot.slane %v902_v43, 3  ;;  %v907_v16 = vrot.slane %v905_v4, 4  ;;  %v916_v19 = vrot.slane %v914_v32, 4 }
  0x6b   : > { %v12167_v4 = vcombine.low %v17875_v57, %v17882_v60  ;;  %v947_v60 = vshrl.u32 %v17799_v35, 16  ;;  %v950_v32 = vshll.u32 %v17799_v35, 16 }
  0x6c   : > { %v908_v30 = vor.u32 %v907_v16, %v904_v15  ;;  %v941_v16 = vshll.u32 %v17792_v33, 16 }
  0x6e   : > { %13469 = vmatmul.mubr.msk.bf16.gmra.mrb[44].mxu0 %vm500_vm2, %v12161_v36  ;;  %v899_v36 = vor.u32 %v898_v12, %v895_v11  ;;  %v922_v11 = vrot.slane %v920_v49, 3  ;;  %v12166_v12 = vcombine.low %v17865_v54, %v17868_v55  ;;  %v938_v55 = vshrl.u32 %v17792_v33, 16 }
  0x6f   : > { %13472 = vmatprep.mubr.msk.bf16.mxu0 %vm17649_vm1, %v22344_v31  ;;  %v952_v33 = vrot.slane %v950_v32, 4  ;;  %v1004_v32 = vshll.u32 %v17862_v53, 16 }
  0x70   : > { %v18037_v41 = vsel %vm865_vm3, %v890_v24, %v899_v36  ;;  %v18047_v45 = vsel %vm865_vm3, %v899_v36, %v908_v30  ;;  %v12165_v24 = vcombine.low %v17849_v50, %v17858_v52  ;;  %v929_v52 = vshrl.u32 %v17779_v29, 16 }
  0x71   : > { %v932_v36 = vshll.u32 %v17779_v29, 16  ;;  %v943_v29 = vrot.slane %v941_v16, 4  ;;  %v12173_v16 = vcombine.low %v17956_v22, %v17970_v26 }
  0x72   : > { %v931_v43 = vrot.slane %v929_v52, 3 }
  0x73   : > { %v934_v28 = vrot.slane %v932_v36, 4  ;;  %v977_v36 = vshll.u32 %v17829_v44, 16 }
  0x75   : > { %v935_v15 = vor.u32 %v934_v28, %v931_v43  ;;  %v976_v43 = vrot.slane %v974_v10, 3  ;;  %v12172_v28 = vcombine.low %v17941_v18, %v17953_v27  ;;  %v992_v27 = vshrl.u32 %v17855_v51, 16 }
  0x76   : > { %13473 = vmatmul.mubr.msk.bf16.gmra.mrb[48].mxu0 %vm500_vm2, %v12162_v20  ;;  %v913_v20 = vrot.slane %v911_v46, 3 }
  0x77   : > { %13476 = vmatprep.mubr.msk.bf16.mxu0 %vm17649_vm1, %v22344_v31 }
  0x78   : > { %v917_v39 = vor.u32 %v916_v19, %v913_v20  ;;  %v949_v20 = vrot.slane %v947_v60, 3  ;;  %v12169_v19 = vcombine.low %v17898_v2, %v17908_v6  ;;  %v965_v6 = vshrl.u32 %v17822_v42, 16 }
  0x79   : > { %v1001_v60 = vshrl.u32 %v17862_v53, 16  ;;  %v1013_v53 = vshll.u32 %v17872_v56, 16 }
  0x7a   : > { %v18057_v48 = vsel %vm865_vm3, %v908_v30, %v917_v39  ;;  %v12168_v30 = vcombine.low %v17885_v61, %v17895_v0  ;;  %v956_v0 = vshrl.u32 %v17809_v38, 16 }
  0x7c   : > { %v958_v49 = vrot.slane %v956_v0, 3 }
  0x7e   : > { %13477 = vmatmul.mubr.msk.bf16.gmra.mrb[52].mxu0 %vm500_vm2, %v12163_v1  ;;  %v926_v1 = vor.u32 %v925_v23, %v922_v11  ;;  %v968_v23 = vshll.u32 %v17822_v42, 16  ;;  %v979_v42 = vrot.slane %v977_v36, 4 }
  0x7f   : > { %13480 = vmatprep.mubr.msk.bf16.mxu0 %vm17649_vm1, %v22344_v31 }
  0x80   : > { %v18067_v50 = vsel %vm865_vm3, %v917_v39, %v926_v1  ;;  %v18077_v54 = vsel %vm865_vm3, %v926_v1, %v935_v15  ;;  %v959_v39 = vshll.u32 %v17809_v38, 16  ;;  %v970_v38 = vrot.slane %v968_v23, 4 }
  0x81   : > { %v12171_v1 = vcombine.low %v17926_v13, %v17938_v17  ;;  %v983_v17 = vshrl.u32 %v17840_v47, 16 }
  0x82   : > { %v961_v35 = vrot.slane %v959_v39, 4  ;;  %v1015_v39 = vrot.slane %v1013_v53, 4 }
  0x84   : > { %v962_v11 = vor.u32 %v961_v35, %v958_v49  ;;  %v1019_v35 = vshrl.u32 %v17879_v58, 16 }
  0x86   : > { %13481 = vmatmul.mubr.msk.bf16.gmra.mrb[56].mxu0 %vm500_vm2, %v12164_v37  ;;  %v940_v37 = vrot.slane %v938_v55, 3  ;;  %v985_v55 = vrot.slane %v983_v17, 3  ;;  %v1049_v17 = vshll.u32 %v17916_v8, 16 }
  0x87   : > { %13484 = vmatprep.mubr.msk.bf16.mxu0 %vm17649_vm1, %v22344_v31 }
  0x88   : > { %v944_v46 = vor.u32 %v943_v29, %v940_v37  ;;  %v995_v29 = vshll.u32 %v17855_v51, 16  ;;  %v1003_v51 = vrot.slane %v1001_v60, 3 }
  0x8a   : > { %v18087_v57 = vsel %vm865_vm3, %v935_v15, %v944_v46  ;;  %v986_v15 = vshll.u32 %v17840_v47, 16  ;;  %v997_v47 = vrot.slane %v995_v29, 4 }
  0x8c   : > { %v988_v44 = vrot.slane %v986_v15, 4 }
  0x8e   : > { %13485 = vmatmul.mubr.msk.bf16.gmra.mrb[60].mxu0 %vm500_vm2, %v12165_v24  ;;  %v953_v24 = vor.u32 %v952_v33, %v949_v20  ;;  %v989_v37 = vor.u32 %v988_v44, %v985_v55  ;;  %v1006_v20 = vrot.slane %v1004_v32, 4  ;;  %v12175_v33 = vcombine.low %v17990_v63, %v18002_v34 }
  0x8f   : > { %13488 = vmatprep.mubr.msk.bf16.mxu0 %vm17649_vm1, %v22344_v31  ;;  %v1051_v55 = vrot.slane %v1049_v17, 4 }
  0x90   : > { %v18097_v61 = vsel %vm865_vm3, %v944_v46, %v953_v24  ;;  %v18107_v2 = vsel %vm865_vm3, %v953_v24, %v962_v11  ;;  %v12174_v46 = vcombine.low %v17973_v5, %v17987_v59  ;;  %v18163_v59 = vld [vmem:[%s17724_s14 + $0xe0] sm:$0xf]  ;;  %v1010_v24 = vshrl.u32 %v17872_v56, 16  ;;  %v12259_v56 = vld [vmem:[%s22193_s2 + $0x4] sm:$0x3] }
  0x91   : > { %v12176_v63 = vcombine.low %v18005_v14, %v18163_v59  ;;  %v1948_v23 = vsel %vm582_vm0, %v12259_v56, 0 }
  0x92   : > { %v1012_v0 = vrot.slane %v1010_v24, 3 }
  0x94   : > { %v1016_v34 = vor.u32 %v1015_v39, %v1012_v0  ;;  %v22349_v39 = vld [vmem:[#allocation6_spill] sm:$0xff] }
  0x96   : > { %13489 = vmatmul.mubr.msk.bf16.gmra.mrb[64].mxu0 %vm500_vm2, %v12166_v12  ;;  %v967_v12 = vrot.slane %v965_v6, 3 }
  0x97   : > { %13492 = vmatprep.mubr.msk.bf16.mxu0 %vm17649_vm1, %v22344_v31 }
  0x98   : > { %v971_v52 = vor.u32 %v970_v38, %v967_v12  ;;  %v1031_v38 = vshll.u32 %v17890_v62, 16 }
  0x9a   : > { %v18117_v7 = vsel %vm865_vm3, %v962_v11, %v971_v52  ;;  %v1021_v11 = vrot.slane %v1019_v35, 3 }
  0x9e   : > { %13493 = vmatmul.mubr.msk.bf16.gmra.mrb[68].mxu0 %vm500_vm2, %v12167_v4  ;;  %v980_v4 = vor.u32 %v979_v42, %v976_v43  ;;  %v1040_v43 = vshll.u32 %v17903_v3, 16 }
  0x9f   : > { %13496 = vmatprep.mubr.msk.bf16.mxu0 %vm17649_vm1, %v22344_v31 }
  0xa0   : > { %v18127_v13 = vsel %vm865_vm3, %v971_v52, %v980_v4  ;;  %v18137_v18 = vsel %vm865_vm3, %v980_v4, %v989_v37  ;;  %v1033_v52 = vrot.slane %v1031_v38, 4  ;;  %v22350_v38 = vld [vmem:[#allocation7_spill] sm:$0xff] }
  0xa6   : > { %13497 = vmatmul.mubr.msk.bf16.gmra.mrb[72].mxu0 %vm500_vm2, %v12168_v30  ;;  %v994_v30 = vrot.slane %v992_v27, 3 }
  0xa7   : > { %13500 = vmatprep.mubr.msk.bf16.mxu0 %vm17649_vm1, %v22344_v31 }
  0xa8   : > { %v998_v22 = vor.u32 %v997_v47, %v994_v30 }
  0xaa   : > { %v18147_v26 = vsel %vm865_vm3, %v989_v37, %v998_v22 }
  0xae   : > { %13501 = vmatmul.mubr.msk.bf16.gmra.mrb[76].mxu0 %vm500_vm2, %v12169_v19  ;;  %v1007_v19 = vor.u32 %v1006_v20, %v1003_v51 }
  0xaf   : > { %13504 = vmatprep.mubr.msk.bf16.mxu0 %vm17649_vm1, %v22344_v31 }
  0xb0   : > { %v18157_v5 = vsel %vm865_vm3, %v998_v22, %v1007_v19  ;;  %v18170_v49 = vsel %vm865_vm3, %v1007_v19, %v1016_v34 }
  0xb6   : > { %13505 = vmatmul.mubr.msk.bf16.gmra.mrb[80].mxu0 %vm500_vm2, %v12170_v40  ;;  %v1022_v40 = vshll.u32 %v17879_v58, 16  ;;  %v1028_v58 = vshrl.u32 %v17890_v62, 16  ;;  %v1042_v62 = vrot.slane %v1040_v43, 4 }
  0xb7   : > { %13508 = vmatprep.mubr.msk.bf16.mxu0 %vm17649_vm1, %v22344_v31 }
  0xb8   : > { %v1024_v6 = vrot.slane %v1022_v40, 4 }
  0xba   : > { %v1025_v14 = vor.u32 %v1024_v6, %v1021_v11  ;;  %v1094_v11 = vshll.u32 %v17995_v25, 16 }
  0xbc   : > { %v18182_v12 = vsel %vm865_vm3, %v1016_v34, %v1025_v14 }
  0xbe   : > { %13509 = vmatmul.mubr.msk.bf16.gmra.mrb[84].mxu0 %vm500_vm2, %v12171_v1  ;;  %v1030_v1 = vrot.slane %v1028_v58, 3 }
  0xbf   : > { %13512 = vmatprep.mubr.msk.bf16.mxu0 %vm17649_vm1, %v22344_v31 }
  0xc0   : > { %v1034_v10 = vor.u32 %v1033_v52, %v1030_v1  ;;  %v1103_v1 = vshll.u32 %v22350_v38, 16 }
  0xc2   : > { %v18192_v36 = vsel %vm865_vm3, %v1025_v14, %v1034_v10  ;;  %v1096_v14 = vrot.slane %v1094_v11, 4 }
  0xc6   : > { %13513 = vmatmul.mubr.msk.bf16.gmra.mrb[88].mxu0 %vm500_vm2, %v12172_v28 }
  0xc7   : > { %13516 = vmatprep.mubr.msk.bf16.mxu0 %vm17649_vm1, %v22344_v31 }
  0xce   : > { %13517 = vmatmul.mubr.msk.bf16.gmra.mrb[92].mxu0 %vm500_vm2, %v12173_v16 }
  0xcf   : > { %13520 = vmatprep.mubr.msk.bf16.mxu0 %vm17649_vm1, %v22344_v31 }
  0xd6   : > { %13521 = vmatmul.mubr.msk.bf16.gmra.mrb[96].mxu0 %vm500_vm2, %v12174_v46 }
  0xd7   : > { %13524 = vmatprep.mubr.msk.bf16.mxu0 %vm17649_vm1, %v22344_v31 }
  0xde   : > { %13525 = vmatmul.mubr.msk.bf16.gmra.mrb[100].mxu0 %vm500_vm2, %v12175_v33 }
  0xdf   : > { %13528 = vmatprep.mubr.msk.bf16.mxu0 %vm17649_vm1, %v22344_v31 }
  0xe6   : > { %13529 = vmatmul.mubr.msk.bf16.gmra.mrb[104].mxu0 %vm500_vm2, %v12176_v63  ;;  %v1085_v63 = vshll.u32 %v22349_v39, 16 }
  0xe7   : > { %13534 = vmatprep.mubr.msk.bf16.mxu0 %vm17649_vm1, %v22344_v31 }
  0xe8   : > { %v1087_v35 = vrot.slane %v1085_v63, 4 }
  0xee   : > { %13535 = vmatmul.mubr.msk.bf16.vlgmr.msra.gmra.mrb[0].mxu0 %vm500_vm2, %v18015_v21  ;;  %v1037_v21 = vshrl.u32 %v17903_v3, 16 }
  0xef   : > { %13643 = vmatpush3.bf16.msra.mxu0 %v1948_v23  ;;  %13538 = vmatprep.mubr.msk.bf16.mxu0 %vm17649_vm1, %v22344_v31 }
  0xf0   : > { %13752 = vmatprep.subr.bf16.mxu0 %v22344_v31  ;;  %v1039_v42 = vrot.slane %v1037_v21, 3 }
  0xf2   : > { %v1043_v28 = vor.u32 %v1042_v62, %v1039_v42 }
  0xf4   : > { %v18201_v4 = vsel %vm865_vm3, %v1034_v10, %v1043_v28  ;;  %v1105_v10 = vrot.slane %v1103_v1, 4 }
  0xf6   : > { %13539 = vmatmul.mubr.msk.bf16.gmra.mrb[4].mxu0 %vm500_vm2, %v18027_v9  ;;  %v1046_v9 = vshrl.u32 %v17916_v8, 16 }
  0xf7   : > { %13542 = vmatprep.mubr.msk.bf16.mxu0 %vm17649_vm1, %v22344_v31 }
  0xf8   : > { %v1048_v15 = vrot.slane %v1046_v9, 3 }
  0xfa   : > { %v1052_v44 = vor.u32 %v1051_v55, %v1048_v15 }
  0xfc   : > { %v18210_v3 = vsel %vm865_vm3, %v1043_v28, %v1052_v44 }
  0xfe   : > { %13543 = vmatmul.mubr.msk.bf16.gmra.mrb[8].mxu0 %vm500_vm2, %v18037_v41  ;;  %v22346_v41 = vld [vmem:[#allocation3_spill] sm:$0xff] }
  0xff   : > { %13546 = vmatprep.mubr.msk.bf16.mxu0 %vm17649_vm1, %v22344_v31  ;;  %v1055_v16 = vshrl.u32 %v22346_v41, 16  ;;  %v1058_v37 = vshll.u32 %v22346_v41, 16 }
 0x101   : > { %v1057_v27 = vrot.slane %v1055_v16, 3  ;;  %v1060_v29 = vrot.slane %v1058_v37, 4  ;;  %v17343_v16 = vld [vmem:[%s17724_s14 + $0x24] sm:$0xff]  }
 0x103   : > { %v1061_v30 = vor.u32 %v1060_v29, %v1057_v27  ;;  %v1670_v29 = vshll.u32 %v17343_v16, 16 }
 0x105   : > { %v18219_v8 = vsel %vm865_vm3, %v1052_v44, %v1061_v30 }
 0x106   : > { %13547 = vmatmul.mubr.msk.bf16.gmra.mrb[12].mxu0 %vm500_vm2, %v18047_v45  ;;  %v22347_v45 = vld [vmem:[#allocation4_spill] sm:$0xff] }
 0x107   : > { %13550 = vmatprep.mubr.msk.bf16.mxu0 %vm17649_vm1, %v22344_v31  ;;  %v1064_v47 = vshrl.u32 %v22347_v45, 16  ;;  %v1067_v46 = vshll.u32 %v22347_v45, 16  ;;  %v17344_v45 = vld [vmem:[%s17724_s14 + $0x2c] sm:$0xff]  }
 0x109   : > { %v1066_v22 = vrot.slane %v1064_v47, 3  ;;  %v1069_v60 = vrot.slane %v1067_v46, 4  ;;  %v1674_v46 = vshrl.u32 %v17343_v16, 16 }
 0x10b   : > { %v1070_v32 = vor.u32 %v1069_v60, %v1066_v22  ;;  %v1678_v22 = vshll.u32 %v17344_v45, 16 }
 0x10d   : > { %v18228_v51 = vsel %vm865_vm3, %v1061_v30, %v1070_v32 }
 0x10e   : > { %13551 = vmatmul.mubr.msk.bf16.gmra.mrb[16].mxu0 %vm500_vm2, %v18057_v48  ;;  %v22348_v48 = vld [vmem:[#allocation5_spill] sm:$0xff] }
 0x10f   : > { %13554 = vmatprep.mubr.msk.bf16.mxu0 %vm17649_vm1, %v22344_v31  ;;  %v1073_v20 = vshrl.u32 %v22348_v48, 16  ;;  %v1076_v33 = vshll.u32 %v22348_v48, 16 }
 0x111   : > { %v1075_v19 = vrot.slane %v1073_v20, 3  ;;  %v1078_v24 = vrot.slane %v1076_v33, 4  ;;  %v1682_v20 = vshrl.u32 %v17344_v45, 16 }
 0x113   : > { %v1079_v53 = vor.u32 %v1078_v24, %v1075_v19 }
 0x115   : > { %v1080_v0 = vsel %vm865_vm3, %v1070_v32, %v1079_v53  ;;  %v1680_v32 = vrot.slane %v1678_v22, 1  ;;  %v17355_v22 = vld [vmem:[%s17724_s14 + $0x84] sm:$0xff]  }
 0x116   : > { %13555 = vmatmul.mubr.msk.bf16.gmra.mrb[20].mxu0 %vm500_vm2, %v18067_v50  ;;  %v1082_v50 = vshrl.u32 %v22349_v39, 16 }
 0x117   : > { %13558 = vmatprep.mubr.msk.bf16.mxu0 %vm17649_vm1, %v22344_v31  ;;  %v1684_v19 = vor.u32 %v1682_v20, %v1680_v32 }
 0x118   : > { %v1084_v34 = vrot.slane %v1082_v50, 3 }
 0x11a   : > { %v1088_v40 = vor.u32 %v1087_v35, %v1084_v34  ;;  %v17347_v35 = vld [vmem:[%s17724_s14 + $0x44] sm:$0xff]  }
 0x11c   : > { %v1089_v56 = vsel %vm865_vm3, %v1079_v53, %v1088_v40  ;;  %v17346_v53 = vld [vmem:[%s17724_s14 + $0x3c] sm:$0xff]  }
 0x11d   : > { %v1694_v50 = vshll.u32 %v17346_v53, 16 }
 0x11e   : > { %13559 = vmatmul.mubr.msk.bf16.gmra.mrb[24].mxu0 %vm500_vm2, %v18077_v54  ;;  %v1091_v54 = vshrl.u32 %v17995_v25, 16  ;;  %v12231_v25 = vcombine.low %v18163_v59, %v18163_v59 }
 0x11f   : > { %13562 = vmatprep.mubr.msk.bf16.mxu0 %vm17649_vm1, %v22344_v31  ;;  %v1696_v34 = vrot.slane %v1694_v50, 1  ;;  %v17357_v50 = vld [vmem:[%s17724_s14 + $0x94] sm:$0xff]  }
 0x120   : > { %v1093_v6 = vrot.slane %v1091_v54, 3  ;;  %v1112_v42 = vshll.u32 %v12231_v25, 16  ;;  %v1702_v54 = vshll.u32 %v17347_v35, 16 }
 0x122   : > { %v1097_v23 = vor.u32 %v1096_v14, %v1093_v6  ;;  %v1114_v28 = vrot.slane %v1112_v42, 4  ;;  %v1704_v6 = vrot.slane %v1702_v54, 1  ;;  %v17348_v14 = vld [vmem:[%s17724_s14 + $0x4c] sm:$0xff]   ;;  %v17350_v42 = vld [vmem:[%s17724_s14 + $0x5c] sm:$0xff]  }
 0x123   : > { %v17358_v54 = vld [vmem:[%s17724_s14 + $0x9c] sm:$0xff]  }
 0x124   : > { %v1098_v58 = vsel %vm865_vm3, %v1088_v40, %v1097_v23 }
 0x126   : > { %13563 = vmatmul.mubr.msk.bf16.gmra.mrb[28].mxu0 %vm500_vm2, %v18087_v57  ;;  %v1100_v57 = vshrl.u32 %v22350_v38, 16  ;;  %v1710_v38 = vshll.u32 %v17348_v14, 16 }
 0x127   : > { %13566 = vmatprep.mubr.msk.bf16.mxu0 %vm17649_vm1, %v22344_v31 }
 0x128   : > { %v1102_v52 = vrot.slane %v1100_v57, 3  ;;  %v1712_v1 = vrot.slane %v1710_v38, 1  ;;  %v17359_v38 = vld [vmem:[%s17724_s14 + $0xa4] sm:$0xff]  }
 0x12a   : > { %v1106_v21 = vor.u32 %v1105_v10, %v1102_v52  ;;  %v17349_v52 = vld [vmem:[%s17724_s14 + $0x54] sm:$0xff]  }
 0x12c   : > { %v1107_v43 = vsel %vm865_vm3, %v1097_v23, %v1106_v21 }
 0x12e   : > { %13567 = vmatmul.mubr.msk.bf16.gmra.mrb[32].mxu0 %vm500_vm2, %v18097_v61  ;;  %v1109_v61 = vshrl.u32 %v12231_v25, 16  ;;  %v1714_v25 = vshrl.u32 %v17348_v14, 16  ;;  %v1790_v14 = vshll.u32 %v17358_v54, 16 }
 0x12f   : > { %13570 = vmatprep.mubr.msk.bf16.mxu0 %vm17649_vm1, %v22344_v31 }
 0x130   : > { %v1111_v62 = vrot.slane %v1109_v61, 3 }
 0x132   : > { %v1115_v9 = vor.u32 %v1114_v28, %v1111_v62  ;;  %v1722_v28 = vshrl.u32 %v17349_v52, 16 }
 0x134   : > { %v1116_v17 = vsel %vm865_vm3, %v1106_v21, %v1115_v9  ;;  %v1718_v21 = vshll.u32 %v17349_v52, 16  ;;  %v1726_v9 = vshll.u32 %v17350_v42, 16  ;;  %v1798_v52 = vshll.u32 %v17359_v38, 16 }
 0x136   : > { %13571 = vmatmul.mubr.msk.bf16.gmra.mrb[36].mxu0 %vm500_vm2, %v18107_v2  ;;  %v17340_v2 = vld [vmem:[%s17724_s14 + $0xc] sm:$0xff]   ;;  %v1720_v61 = vrot.slane %v1718_v21, 1 }
 0x137   : > { %13574 = vmatprep.mubr.msk.bf16.mxu0 %vm17649_vm1, %v22344_v31  ;;  %v17360_v21 = vld [vmem:[%s17724_s14 + $0xac] sm:$0xff]  }
 0x13e   : > { %13575 = vmatmul.mubr.msk.bf16.gmra.mrb[40].mxu0 %vm500_vm2, %v18117_v7  ;;  %v17341_v7 = vld [vmem:[%s17724_s14 + $0x14] sm:$0xff]  }
 0x13f   : > { %13578 = vmatprep.mubr.msk.bf16.mxu0 %vm17649_vm1, %v22344_v31  ;;  %v1658_v15 = vshrl.u32 %v17341_v7, 16 }
 0x146   : > { %13579 = vmatmul.mubr.msk.bf16.gmra.mrb[44].mxu0 %vm500_vm2, %v18127_v13  ;;  %v1649_v13 = vshll.u32 %v17340_v2, 16 }
 0x147   : > { %13582 = vmatprep.mubr.msk.bf16.mxu0 %vm17649_vm1, %v22344_v31 }
 0x14e   : > { %13583 = vmatmul.mubr.msk.bf16.gmra.mrb[48].mxu0 %vm500_vm2, %v18137_v18  ;;  %v1647_v18 = vshrl.u32 %v17340_v2, 16  ;;  %v1728_v2 = vrot.slane %v1726_v9, 1  ;;  %v17361_v9 = vld [vmem:[%s17724_s14 + $0xb4] sm:$0xff]  }
 0x14f   : > { %13586 = vmatprep.mubr.msk.bf16.mxu0 %vm17649_vm1, %v22344_v31 }
 0x156   : > { %13587 = vmatmul.mubr.msk.bf16.gmra.mrb[52].mxu0 %vm500_vm2, %v18147_v26  ;;  %v1651_v26 = vrot.slane %v1649_v13, 1 }
 0x157   : > { %13590 = vmatprep.mubr.msk.bf16.mxu0 %vm17649_vm1, %v22344_v31 }
 0x158   : > { %v1652_v59 = vor.u32 %v1651_v26, %v1647_v18  ;;  %v1730_v18 = vshrl.u32 %v17350_v42, 16  ;;  %v1806_v42 = vshll.u32 %v17360_v21, 16 }
 0x15e   : > { %13591 = vmatmul.mubr.msk.bf16.gmra.mrb[56].mxu0 %vm500_vm2, %v18157_v5  ;;  %v1654_v5 = vshll.u32 %v17341_v7, 16  ;;  %v17351_v7 = vld [vmem:[%s17724_s14 + $0x64] sm:$0xff]  }
 0x15f   : > { %13594 = vmatprep.mubr.msk.bf16.mxu0 %vm17649_vm1, %v22344_v31  ;;  %v1734_v26 = vshll.u32 %v17351_v7, 16 }
 0x166   : > { %13595 = vmatmul.mubr.msk.bf16.gmra.mrb[60].mxu0 %vm500_vm2, %v18170_v49  ;;  %v1656_v49 = vrot.slane %v1654_v5, 1  ;;  %v1732_v5 = vor.u32 %v1730_v18, %v1728_v2 }
 0x167   : > { %13598 = vmatprep.mubr.msk.bf16.mxu0 %vm17649_vm1, %v22344_v31 }
 0x16e   : > { %13599 = vmatmul.mubr.msk.bf16.gmra.mrb[64].mxu0 %vm500_vm2, %v18182_v12  ;;  %v17342_v12 = vld [vmem:[%s17724_s14 + $0x1c] sm:$0xff]  }
 0x16f   : > { %13602 = vmatprep.mubr.msk.bf16.mxu0 %vm17649_vm1, %v22344_v31  ;;  %v1662_v55 = vshll.u32 %v17342_v12, 16  ;;  %v1666_v27 = vshrl.u32 %v17342_v12, 16 }
 0x171   : > { %v1664_v41 = vrot.slane %v1662_v55, 1 }
 0x173   : > { %v1668_v30 = vor.u32 %v1666_v27, %v1664_v41 }
 0x176   : > { %13603 = vmatmul.mubr.msk.bf16.gmra.mrb[68].mxu0 %vm500_vm2, %v18192_v36  ;;  %v12315_v36 = vld [vmem:[%s22193_s2 + $0x6] sm:$0x3] }
 0x177   : > { %13606 = vmatprep.mubr.msk.bf16.mxu0 %vm17649_vm1, %v22344_v31  ;;  %v2781_v44 = vsel %vm582_vm0, %v12315_v36, 0  ;;  %v1738_v36 = vshrl.u32 %v17351_v7, 16  ;;  %v1814_v7 = vshll.u32 %v17361_v9, 16 }
 0x179   : > { %v1816_v18 = vrot.slane %v1814_v7, 1  ;;  %v12371_v7 = vld [vmem:[%s22193_s2 + $0x8] sm:$0x3] }
 0x17e   : > { %13607 = vmatmul.mubr.msk.bf16.gmra.mrb[72].mxu0 %vm500_vm2, %v18201_v4  ;;  %v1657_v4 = vsel %vm1645_vm4, %v1652_v59, %v1656_v49  ;;  %v1736_v59 = vrot.slane %v1734_v26, 1  ;;  %v17362_v26 = vld [vmem:[%s17724_s14 + $0xbc] sm:$0xff]  }
 0x17f   : > { %13610 = vmatprep.mubr.msk.bf16.mxu0 %vm17649_vm1, %v22344_v31 }
 0x180   : > { %v1737_v12 = vsel %vm1645_vm4, %v1732_v5, %v1736_v59 }
 0x186   : > { %13611 = vmatmul.mubr.msk.bf16.gmra.mrb[76].mxu0 %vm500_vm2, %v18210_v3  ;;  %v1660_v3 = vor.u32 %v1658_v15, %v1656_v49  ;;  %v17352_v49 = vld [vmem:[%s17724_s14 + $0x6c] sm:$0xff]   ;;  %v1740_v15 = vor.u32 %v1738_v36, %v1736_v59  ;;  %v1818_v59 = vshrl.u32 %v17361_v9, 16 }
 0x187   : > { %13614 = vmatprep.mubr.msk.bf16.mxu0 %vm17649_vm1, %v22344_v31 }
 0x188   : > { %v1665_v37 = vsel %vm1645_vm4, %v1660_v3, %v1664_v41  ;;  %v1746_v41 = vshrl.u32 %v17352_v49, 16 }
 0x18e   : > { %13615 = vmatmul.mubr.msk.bf16.gmra.mrb[80].mxu0 %vm500_vm2, %v18219_v8  ;;  %v1672_v8 = vrot.slane %v1670_v29, 1  ;;  %v17354_v29 = vld [vmem:[%s17724_s14 + $0x7c] sm:$0xff]  }
 0x18f   : > { %13618 = vmatprep.mubr.msk.bf16.mxu0 %vm17649_vm1, %v22344_v31  ;;  %v1758_v45 = vshll.u32 %v17354_v29, 16 }
 0x190   : > { %v1673_v47 = vsel %vm1645_vm4, %v1668_v30, %v1672_v8  ;;  %v1676_v60 = vor.u32 %v1674_v46, %v1672_v8 }
 0x191   : > { %v1760_v46 = vrot.slane %v1758_v45, 1  ;;  %v17365_v45 = vld [vmem:[%s17724_s14 + $0xd4] sm:$0xff]  }
 0x192   : > { %v1681_v48 = vsel %vm1645_vm4, %v1676_v60, %v1680_v32  ;;  %v1762_v32 = vshrl.u32 %v17354_v29, 16 }
 0x196   : > { %13619 = vmatmul.mubr.msk.bf16.gmra.mrb[84].mxu0 %vm500_vm2, %v18228_v51  ;;  %v17345_v51 = vld [vmem:[%s17724_s14 + $0x34] sm:$0xff]  }
 0x197   : > { %13622 = vmatprep.mubr.msk.bf16.mxu0 %vm17649_vm1, %v22344_v31  ;;  %v1686_v33 = vshll.u32 %v17345_v51, 16  ;;  %v1690_v39 = vshrl.u32 %v17345_v51, 16  ;;  %v1766_v51 = vshll.u32 %v17355_v22, 16 }
 0x199   : > { %v1688_v24 = vrot.slane %v1686_v33, 1  ;;  %v1768_v20 = vrot.slane %v1766_v51, 1  ;;  %v17356_v33 = vld [vmem:[%s17724_s14 + $0x8c] sm:$0xff]   ;;  %v17366_v51 = vld [vmem:[%s17724_s14 + $0xdc] sm:$0xff]  }
 0x19b   : > { %v1692_v63 = vor.u32 %v1690_v39, %v1688_v24 }
 0x19d   : > { %v1697_v40 = vsel %vm1645_vm4, %v1692_v63, %v1696_v34 }
 0x19e   : > { %13623 = vmatmul.mubr.msk.bf16.gmra.mrb[88].mxu0 %vm500_vm2, %v1080_v0  ;;  %v1689_v0 = vsel %vm1645_vm4, %v1684_v19, %v1688_v24  ;;  %v1770_v24 = vshrl.u32 %v17355_v22, 16  ;;  %v1846_v22 = vshll.u32 %v17365_v45, 16 }
 0x19f   : > { %13626 = vmatprep.mubr.msk.bf16.mxu0 %vm17649_vm1, %v22344_v31 }
 0x1a6   : > { %13627 = vmatmul.mubr.msk.bf16.gmra.mrb[92].mxu0 %vm500_vm2, %v1089_v56  ;;  %v1698_v56 = vshrl.u32 %v17346_v53, 16  ;;  %v1774_v53 = vshll.u32 %v17356_v33, 16 }
 0x1a7   : > { %13630 = vmatprep.mubr.msk.bf16.mxu0 %vm17649_vm1, %v22344_v31 }
 0x1a8   : > { %v1700_v11 = vor.u32 %v1698_v56, %v1696_v34  ;;  %v1776_v39 = vrot.slane %v1774_v53, 1  ;;  %v1778_v34 = vshrl.u32 %v17356_v33, 16  ;;  %v1854_v33 = vshll.u32 %v17366_v51, 16 }
 0x1aa   : > { %v1705_v23 = vsel %vm1645_vm4, %v1700_v11, %v1704_v6  ;;  %v1856_v53 = vrot.slane %v1854_v33, 1 }
 0x1ae   : > { %13631 = vmatmul.mubr.msk.bf16.gmra.mrb[96].mxu0 %vm500_vm2, %v1098_v58  ;;  %v1706_v58 = vshrl.u32 %v17347_v35, 16  ;;  %v1782_v35 = vshll.u32 %v17357_v50, 16 }
 0x1af   : > { %13634 = vmatprep.mubr.msk.bf16.mxu0 %vm17649_vm1, %v22344_v31 }
 0x1b0   : > { %v1708_v57 = vor.u32 %v1706_v58, %v1704_v6  ;;  %v1784_v56 = vrot.slane %v1782_v35, 1  ;;  %v1786_v6 = vshrl.u32 %v17357_v50, 16  ;;  %v1792_v58 = vrot.slane %v1790_v14, 1  ;;  %v18466_v50 = vld [vmem:[%s17724_s14 + $0x1c] sm:$0xf] }
 0x1b2   : > { %v1713_v10 = vsel %vm1645_vm4, %v1708_v57, %v1712_v1 }
 0x1b6   : > { %13635 = vmatmul.mubr.msk.bf16.gmra.mrb[100].mxu0 %vm500_vm2, %v1107_v43  ;;  %v1716_v43 = vor.u32 %v1714_v25, %v1712_v1  ;;  %v1794_v1 = vshrl.u32 %v17358_v54, 16  ;;  %v1800_v25 = vrot.slane %v1798_v52, 1 }
 0x1b7   : > { %13638 = vmatprep.mubr.msk.bf16.mxu0 %vm17649_vm1, %v22344_v31 }
 0x1b8   : > { %v1721_v62 = vsel %vm1645_vm4, %v1716_v43, %v1720_v61 }
 0x1be   : > { %13639 = vmatmul.mubr.msk.bf16.gmra.mrb[104].mxu0 %vm500_vm2, %v1116_v17  ;;  %v1724_v17 = vor.u32 %v1722_v28, %v1720_v61  ;;  %v1802_v61 = vshrl.u32 %v17359_v38, 16  ;;  %v1808_v28 = vrot.slane %v1806_v42, 1 }
 0x1bf   : > { %13644 = vmatprep.mubr.msk.bf16.mxu0 %vm17649_vm1, %v22344_v31 }
 0x1c0   : > { %v1729_v13 = vsel %vm1645_vm4, %v1724_v17, %v1728_v2  ;;  %v1810_v2 = vshrl.u32 %v17360_v21, 16 }
 0x1c6   : > { %13645 = vmatmul.mubr.msk.bf16.vlgmr.msra.gmra.mrb[0].mxu0 %vm500_vm2, %v1657_v4  ;;  %v1742_v4 = vshll.u32 %v17352_v49, 16  ;;  %v1822_v49 = vshll.u32 %v17362_v26, 16 }
 0x1c7   : > { %13753 = vmatpush3.bf16.msra.mxu0 %v2781_v44  ;;  %13648 = vmatprep.mubr.msk.bf16.mxu0 %vm17649_vm1, %v22344_v31  ;;  %v17353_v44 = vld [vmem:[%s17724_s14 + $0x74] sm:$0xff]  }
 0x1c8   : > { %13862 = vmatprep.subr.bf16.mxu0 %v22344_v31  ;;  %v1744_v55 = vrot.slane %v1742_v4, 1  ;;  %v1750_v16 = vshll.u32 %v17353_v44, 16  ;;  %v1754_v8 = vshrl.u32 %v17353_v44, 16  ;;  %v1824_v36 = vrot.slane %v1822_v49, 1  ;;  %v17363_v4 = vld [vmem:[%s17724_s14 + $0xc4] sm:$0xff]  }
 0x1c9   : > { %v1830_v44 = vshll.u32 %v17363_v4, 16 }
 0x1ca   : > { %v1745_v3 = vsel %vm1645_vm4, %v1740_v15, %v1744_v55  ;;  %v1752_v27 = vrot.slane %v1750_v16, 1  ;;  %v17364_v16 = vld [vmem:[%s17724_s14 + $0xcc] sm:$0xff]  }
 0x1cb   : > { %v1838_v29 = vshll.u32 %v17364_v16, 16 }
 0x1ce   : > { %13649 = vmatmul.mubr.msk.bf16.gmra.mrb[4].mxu0 %vm500_vm2, %v1665_v37  ;;  %v1748_v37 = vor.u32 %v1746_v41, %v1744_v55  ;;  %v1826_v55 = vshrl.u32 %v17362_v26, 16  ;;  %v1832_v41 = vrot.slane %v1830_v44, 1 }
 0x1cf   : > { %13652 = vmatprep.mubr.msk.bf16.mxu0 %vm17649_vm1, %v22344_v31 }
 0x1d0   : > { %v1753_v30 = vsel %vm1645_vm4, %v1748_v37, %v1752_v27 }
 0x1d6   : > { %13653 = vmatmul.mubr.msk.bf16.gmra.mrb[8].mxu0 %vm500_vm2, %v1673_v47  ;;  %v1756_v47 = vor.u32 %v1754_v8, %v1752_v27  ;;  %v1834_v27 = vshrl.u32 %v17363_v4, 16  ;;  %v1840_v8 = vrot.slane %v1838_v29, 1  ;;  %v18507_v4 = vld [vmem:[%s17724_s14 + $0x34] sm:$0xf]  ;;  %v18520_v29 = vld [vmem:[%s17724_s14 + $0x3c] sm:$0xf] }
 0x1d7   : > { %13656 = vmatprep.mubr.msk.bf16.mxu0 %vm17649_vm1, %v22344_v31 }
 0x1d8   : > { %v1761_v60 = vsel %vm1645_vm4, %v1756_v47, %v1760_v46 }
 0x1de   : > { %13657 = vmatmul.mubr.msk.bf16.gmra.mrb[12].mxu0 %vm500_vm2, %v1681_v48  ;;  %v1764_v48 = vor.u32 %v1762_v32, %v1760_v46  ;;  %v1842_v46 = vshrl.u32 %v17364_v16, 16  ;;  %v1848_v32 = vrot.slane %v1846_v22, 1 }
 0x1df   : > { %13660 = vmatprep.mubr.msk.bf16.mxu0 %vm17649_vm1, %v22344_v31 }
 0x1e0   : > { %v1769_v19 = vsel %vm1645_vm4, %v1764_v48, %v1768_v20 }
 0x1e6   : > { %13661 = vmatmul.mubr.msk.bf16.gmra.mrb[16].mxu0 %vm500_vm2, %v1689_v0  ;;  %v1772_v0 = vor.u32 %v1770_v24, %v1768_v20  ;;  %v1850_v20 = vshrl.u32 %v17365_v45, 16 }
 0x1e7   : > { %13664 = vmatprep.mubr.msk.bf16.mxu0 %vm17649_vm1, %v22344_v31 }
 0x1e8   : > { %v1777_v63 = vsel %vm1645_vm4, %v1772_v0, %v1776_v39  ;;  %v1852_v24 = vor.u32 %v1850_v20, %v1848_v32  ;;  %v2253_v0 = vld [vmem:[%s17724_s14 + $0x14] sm:$0x8] }
 0x1ee   : > { %13665 = vmatmul.mubr.msk.bf16.gmra.mrb[20].mxu0 %vm500_vm2, %v1697_v40  ;;  %v1780_v40 = vor.u32 %v1778_v34, %v1776_v39  ;;  %v18463_v39 = vld [vmem:[%s17724_s14 + $0x18] sm:$0xf]  ;;  %v1858_v34 = vshrl.u32 %v17366_v51, 16  ;;  %v18532_v51 = vld [vmem:[%s17724_s14 + $0x44] sm:$0xf] }
 0x1ef   : > { %13668 = vmatprep.mubr.msk.bf16.mxu0 %vm17649_vm1, %v22344_v31 }
 0x1f0   : > { %v1785_v11 = vsel %vm1645_vm4, %v1780_v40, %v1784_v56  ;;  %v12316_v40 = vcombine.low %v2253_v0, %v18463_v39 }
 0x1f2   : > { %v2449_v14 = vshrl.u32 %v12316_v40, 16 }
 0x1f6   : > { %13669 = vmatmul.mubr.msk.bf16.gmra.mrb[24].mxu0 %vm500_vm2, %v1705_v23  ;;  %v1788_v23 = vor.u32 %v1786_v6, %v1784_v56  ;;  %v1857_v56 = vsel %vm1645_vm4, %v1852_v24, %v1856_v53 }
 0x1f7   : > { %13672 = vmatprep.mubr.msk.bf16.mxu0 %vm17649_vm1, %v22344_v31 }
 0x1f8   : > { %v1793_v57 = vsel %vm1645_vm4, %v1788_v23, %v1792_v58  ;;  %v2452_v23 = vshll.u32 %v12316_v40, 16  ;;  %v18547_v40 = vld [vmem:[%s17724_s14 + $0x50] sm:$0xf] }
 0x1fe   : > { %13673 = vmatmul.mubr.msk.bf16.gmra.mrb[28].mxu0 %vm500_vm2, %v1713_v10  ;;  %v1796_v10 = vor.u32 %v1794_v1, %v1792_v58  ;;  %v18482_v1 = vld [vmem:[%s17724_s14 + $0x28] sm:$0xf] }
 0x1ff   : > { %13676 = vmatprep.mubr.msk.bf16.mxu0 %vm17649_vm1, %v22344_v31 }
 0x200   : > { %v1801_v43 = vsel %vm1645_vm4, %v1796_v10, %v1800_v25  ;;  %v2451_v10 = vrot.slane %v2449_v14, 3 }
 0x206   : > { %13677 = vmatmul.mubr.msk.bf16.gmra.mrb[32].mxu0 %vm500_vm2, %v1721_v62  ;;  %v1804_v62 = vor.u32 %v1802_v61, %v1800_v25  ;;  %v2454_v25 = vrot.slane %v2452_v23, 4 }
 0x207   : > { %13680 = vmatprep.mubr.msk.bf16.mxu0 %vm17649_vm1, %v22344_v31 }
 0x208   : > { %v1809_v17 = vsel %vm1645_vm4, %v1804_v62, %v1808_v28  ;;  %v2455_v42 = vor.u32 %v2454_v25, %v2451_v10 }
 0x20e   : > { %13681 = vmatmul.mubr.msk.bf16.gmra.mrb[36].mxu0 %vm500_vm2, %v1729_v13  ;;  %v1812_v13 = vor.u32 %v1810_v2, %v1808_v28  ;;  %v18494_v2 = vld [vmem:[%s17724_s14 + $0x30] sm:$0xf] }
 0x20f   : > { %13684 = vmatprep.mubr.msk.bf16.mxu0 %vm17649_vm1, %v22344_v31 }
 0x210   : > { %v1817_v5 = vsel %vm1645_vm4, %v1812_v13, %v1816_v18 }
 0x216   : > { %13685 = vmatmul.mubr.msk.bf16.gmra.mrb[40].mxu0 %vm500_vm2, %v1737_v12  ;;  %v1820_v12 = vor.u32 %v1818_v59, %v1816_v18  ;;  %v3197_v59 = vsel %vm582_vm0, %v12371_v7, 0 }
 0x217   : > { %13688 = vmatprep.mubr.msk.bf16.mxu0 %vm17649_vm1, %v22344_v31 }
 0x218   : > { %v1825_v15 = vsel %vm1645_vm4, %v1820_v12, %v1824_v36 }
 0x21e   : > { %13689 = vmatmul.mubr.msk.bf16.gmra.mrb[44].mxu0 %vm500_vm2, %v1745_v3  ;;  %v1828_v3 = vor.u32 %v1826_v55, %v1824_v36 }
 0x21f   : > { %13692 = vmatprep.mubr.msk.bf16.mxu0 %vm17649_vm1, %v22344_v31 }
 0x220   : > { %v1833_v37 = vsel %vm1645_vm4, %v1828_v3, %v1832_v41 }
 0x226   : > { %13693 = vmatmul.mubr.msk.bf16.gmra.mrb[48].mxu0 %vm500_vm2, %v1753_v30  ;;  %v1836_v30 = vor.u32 %v1834_v27, %v1832_v41 }
 0x227   : > { %13696 = vmatprep.mubr.msk.bf16.mxu0 %vm17649_vm1, %v22344_v31 }
 0x228   : > { %v1841_v47 = vsel %vm1645_vm4, %v1836_v30, %v1840_v8  ;;  %v18523_v30 = vld [vmem:[%s17724_s14 + $0x40] sm:$0xf] }
 0x22e   : > { %13697 = vmatmul.mubr.msk.bf16.gmra.mrb[52].mxu0 %vm500_vm2, %v1761_v60  ;;  %v1844_v60 = vor.u32 %v1842_v46, %v1840_v8  ;;  %v12321_v46 = vcombine.low %v18520_v29, %v18523_v30 }
 0x22f   : > { %13700 = vmatprep.mubr.msk.bf16.mxu0 %vm17649_vm1, %v22344_v31 }
 0x230   : > { %v1849_v48 = vsel %vm1645_vm4, %v1844_v60, %v1848_v32  ;;  %v2493_v60 = vshrl.u32 %v12321_v46, 16  ;;  %v2496_v32 = vshll.u32 %v12321_v46, 16 }
 0x232   : > { %v2495_v33 = vrot.slane %v2493_v60, 3 }
 0x236   : > { %13701 = vmatmul.mubr.msk.bf16.gmra.mrb[56].mxu0 %vm500_vm2, %v1769_v19  ;;  %v17367_v19 = vld [vmem:[%s17724_s14 + $0xe4] ss:$0 sps:$4 sm:$0x11]  }
 0x237   : > { %13704 = vmatprep.mubr.msk.bf16.mxu0 %vm17649_vm1, %v22344_v31  ;;  %v1862_v35 = vshll.u32 %v17367_v19, 16  ;;  %v2498_v19 = vrot.slane %v2496_v32, 4 }
 0x239   : > { %v1864_v6 = vrot.slane %v1862_v35, 1  ;;  %v18544_v35 = vld [vmem:[%s17724_s14 + $0x4c] sm:$0xf] }
 0x23e   : > { %13705 = vmatmul.mubr.msk.bf16.gmra.mrb[60].mxu0 %vm500_vm2, %v1777_v63  ;;  %v18469_v63 = vld [vmem:[%s17724_s14 + $0x20] sm:$0xf] }
 0x23f   : > { %13708 = vmatprep.mubr.msk.bf16.mxu0 %vm17649_vm1, %v22344_v31  ;;  %v12317_v54 = vcombine.low %v18466_v50, %v18469_v63 }
 0x241   : > { %v2457_v58 = vshrl.u32 %v12317_v54, 16  ;;  %v2460_v38 = vshll.u32 %v12317_v54, 16 }
 0x243   : > { %v2459_v21 = vrot.slane %v2457_v58, 3 }
 0x246   : > { %13709 = vmatmul.mubr.msk.bf16.gmra.mrb[64].mxu0 %vm500_vm2, %v1785_v11  ;;  %v1860_v11 = vor.u32 %v1858_v34, %v1856_v53  ;;  %v2499_v53 = vor.u32 %v2498_v19, %v2495_v33  ;;  %v18604_v19 = vld [vmem:[%s17724_s14 + $0x74] sm:$0xf] }
 0x247   : > { %13712 = vmatprep.mubr.msk.bf16.mxu0 %vm17649_vm1, %v22344_v31 }
 0x248   : > { %v1865_v52 = vsel %vm1645_vm4, %v1860_v11, %v1864_v6  ;;  %v12323_v6 = vcombine.low %v18544_v35, %v18547_v40 }
 0x24a   : > { %v2511_v23 = vshrl.u32 %v12323_v6, 16  ;;  %v2514_v58 = vshll.u32 %v12323_v6, 16 }
 0x24c   : > { %v2513_v25 = vrot.slane %v2511_v23, 3  ;;  %v18619_v23 = vld [vmem:[%s17724_s14 + $0x80] sm:$0xf] }
 0x24e   : > { %13713 = vmatmul.mubr.msk.bf16.gmra.mrb[68].mxu0 %vm500_vm2, %v1793_v57  ;;  %v18479_v57 = vld [vmem:[%s17724_s14 + $0x24] sm:$0xf] }
 0x24f   : > { %13716 = vmatprep.mubr.msk.bf16.mxu0 %vm17649_vm1, %v22344_v31  ;;  %v12318_v61 = vcombine.low %v18479_v57, %v18482_v1 }
 0x251   : > { %v2466_v28 = vshrl.u32 %v12318_v61, 16  ;;  %v2469_v9 = vshll.u32 %v12318_v61, 16 }
 0x253   : > { %v2468_v18 = vrot.slane %v2466_v28, 3  ;;  %v2471_v26 = vrot.slane %v2469_v9, 4  ;;  %v18568_v28 = vld [vmem:[%s17724_s14 + $0x5c] sm:$0xf]  ;;  %v18571_v9 = vld [vmem:[%s17724_s14 + $0x60] sm:$0xf] }
 0x255   : > { %v2472_v49 = vor.u32 %v2471_v26, %v2468_v18  ;;  %v12325_v26 = vcombine.low %v18568_v28, %v18571_v9 }
 0x256   : > { %13717 = vmatmul.mubr.msk.bf16.gmra.mrb[72].mxu0 %vm500_vm2, %v1801_v43  ;;  %v2462_v43 = vrot.slane %v2460_v38, 4  ;;  %v18556_v38 = vld [vmem:[%s17724_s14 + $0x54] sm:$0xf] }
 0x257   : > { %13720 = vmatprep.mubr.msk.bf16.mxu0 %vm17649_vm1, %v22344_v31 }
 0x258   : > { %v2463_v62 = vor.u32 %v2462_v43, %v2459_v21  ;;  %v2516_v21 = vrot.slane %v2514_v58, 4 }
 0x25a   : > { %v2464_v13 = vsel %vm865_vm3, %v2455_v42, %v2463_v62  ;;  %v2473_v55 = vsel %vm865_vm3, %v2463_v62, %v2472_v49  ;;  %v2517_v61 = vor.u32 %v2516_v21, %v2513_v25 }
 0x25e   : > { %13721 = vmatmul.mubr.msk.bf16.gmra.mrb[76].mxu0 %vm500_vm2, %v1809_v17  ;;  %v18491_v17 = vld [vmem:[%s17724_s14 + $0x2c] sm:$0xf] }
 0x25f   : > { %13724 = vmatprep.mubr.msk.bf16.mxu0 %vm17649_vm1, %v22344_v31 }
 0x266   : > { %13725 = vmatmul.mubr.msk.bf16.gmra.mrb[80].mxu0 %vm500_vm2, %v1817_v5  ;;  %v12319_v5 = vcombine.low %v18491_v17, %v18494_v2 }
 0x267   : > { %13728 = vmatprep.mubr.msk.bf16.mxu0 %vm17649_vm1, %v22344_v31 }
 0x268   : > { %v2475_v12 = vshrl.u32 %v12319_v5, 16  ;;  %v2478_v36 = vshll.u32 %v12319_v5, 16 }
 0x26a   : > { %v2477_v44 = vrot.slane %v2475_v12, 3  ;;  %v2480_v3 = vrot.slane %v2478_v36, 4  ;;  %v18580_v12 = vld [vmem:[%s17724_s14 + $0x64] sm:$0xf]  ;;  %v18583_v36 = vld [vmem:[%s17724_s14 + $0x68] sm:$0xf] }
 0x26c   : > { %v2481_v16 = vor.u32 %v2480_v3, %v2477_v44 }
 0x26e   : > { %13729 = vmatmul.mubr.msk.bf16.gmra.mrb[84].mxu0 %vm500_vm2, %v1825_v15  ;;  %v18510_v15 = vld [vmem:[%s17724_s14 + $0x38] sm:$0xf]  ;;  %v2482_v8 = vsel %vm865_vm3, %v2472_v49, %v2481_v16  ;;  %v2532_v49 = vshll.u32 %v12325_v26, 16 }
 0x26f   : > { %13732 = vmatprep.mubr.msk.bf16.mxu0 %vm17649_vm1, %v22344_v31  ;;  %v12320_v41 = vcombine.low %v18507_v4, %v18510_v15 }
 0x270   : > { %v2534_v3 = vrot.slane %v2532_v49, 4 }
 0x271   : > { %v2487_v27 = vshll.u32 %v12320_v41, 16 }
 0x276   : > { %13733 = vmatmul.mubr.msk.bf16.gmra.mrb[88].mxu0 %vm500_vm2, %v1833_v37  ;;  %v2484_v37 = vshrl.u32 %v12320_v41, 16  ;;  %v12326_v41 = vcombine.low %v18580_v12, %v18583_v36 }
 0x277   : > { %13736 = vmatprep.mubr.msk.bf16.mxu0 %vm17649_vm1, %v22344_v31 }
 0x278   : > { %v2486_v45 = vrot.slane %v2484_v37, 3  ;;  %v2538_v37 = vshrl.u32 %v12326_v41, 16 }
 0x27a   : > { %v2540_v46 = vrot.slane %v2538_v37, 3 }
 0x27e   : > { %13737 = vmatmul.mubr.msk.bf16.gmra.mrb[92].mxu0 %vm500_vm2, %v1841_v47  ;;  %v2489_v47 = vrot.slane %v2487_v27, 4  ;;  %v2541_v27 = vshll.u32 %v12326_v41, 16 }
 0x27f   : > { %13740 = vmatprep.mubr.msk.bf16.mxu0 %vm17649_vm1, %v22344_v31 }
 0x280   : > { %v2490_v22 = vor.u32 %v2489_v47, %v2486_v45  ;;  %v18595_v45 = vld [vmem:[%s17724_s14 + $0x70] sm:$0xf] }
 0x282   : > { %v2491_v20 = vsel %vm865_vm3, %v2481_v16, %v2490_v22 }
 0x286   : > { %13741 = vmatmul.mubr.msk.bf16.gmra.mrb[96].mxu0 %vm500_vm2, %v1849_v48  ;;  %v18535_v48 = vld [vmem:[%s17724_s14 + $0x48] sm:$0xf] }
 0x287   : > { %13744 = vmatprep.mubr.msk.bf16.mxu0 %vm17649_vm1, %v22344_v31  ;;  %v12322_v24 = vcombine.low %v18532_v51, %v18535_v48 }
 0x289   : > { %v2502_v0 = vshrl.u32 %v12322_v24, 16  ;;  %v2505_v34 = vshll.u32 %v12322_v24, 16  ;;  %v18607_v24 = vld [vmem:[%s17724_s14 + $0x78] sm:$0xf] }
 0x28b   : > { %v2504_v54 = vrot.slane %v2502_v0, 3  ;;  %v2507_v11 = vrot.slane %v2505_v34, 4 }
 0x28d   : > { %v2508_v14 = vor.u32 %v2507_v11, %v2504_v54 }
 0x28e   : > { %13745 = vmatmul.mubr.msk.bf16.gmra.mrb[100].mxu0 %vm500_vm2, %v1857_v56  ;;  %v2500_v56 = vsel %vm865_vm3, %v2490_v22, %v2499_v53  ;;  %v2543_v22 = vrot.slane %v2541_v27, 4 }
 0x28f   : > { %13748 = vmatprep.mubr.msk.bf16.mxu0 %vm17649_vm1, %v22344_v31  ;;  %v2509_v10 = vsel %vm865_vm3, %v2499_v53, %v2508_v14  ;;  %v2518_v7 = vsel %vm865_vm3, %v2508_v14, %v2517_v61  ;;  %v18616_v14 = vld [vmem:[%s17724_s14 + $0x7c] sm:$0xf] }
 0x290   : > { %v2544_v32 = vor.u32 %v2543_v22, %v2540_v46  ;;  %v12329_v21 = vcombine.low %v18616_v14, %v18619_v23 }
 0x296   : > { %13749 = vmatmul.mubr.msk.bf16.gmra.mrb[104].mxu0 %vm500_vm2, %v1865_v52  ;;  %v18559_v52 = vld [vmem:[%s17724_s14 + $0x58] sm:$0xf] }
 0x297   : > { %13754 = vmatprep.mubr.msk.bf16.mxu0 %vm17649_vm1, %v22344_v31  ;;  %v12324_v43 = vcombine.low %v18556_v38, %v18559_v52 }
 0x299   : > { %v2520_v42 = vshrl.u32 %v12324_v43, 16  ;;  %v2523_v62 = vshll.u32 %v12324_v43, 16 }
 0x29b   : > { %v2525_v18 = vrot.slane %v2523_v62, 4  ;;  %v18628_v62 = vld [vmem:[%s17724_s14 + $0x84] sm:$0xf] }
 0x29e   : > { %13755 = vmatmul.mubr.msk.bf16.vlgmr.msra.gmra.mrb[0].mxu0 %vm500_vm2, %v2464_v13  ;;  %v2522_v13 = vrot.slane %v2520_v42, 3  ;;  %v2568_v42 = vshll.u32 %v12329_v21, 16 }
 0x29f   : > { %13863 = vmatpush3.bf16.msra.mxu0 %v3197_v59  ;;  %13758 = vmatprep.mubr.msk.bf16.mxu0 %vm17649_vm1, %v22344_v31  ;;  %v2529_v59 = vshrl.u32 %v12325_v26, 16 }
 0x2a0   : > { %13972 = vmatprep.subr.bf16.mxu0 %v22344_v31  ;;  %v2526_v5 = vor.u32 %v2525_v18, %v2522_v13  ;;  %v2570_v26 = vrot.slane %v2568_v42, 4 }
 0x2a1   : > { %v2531_v44 = vrot.slane %v2529_v59, 3 }
 0x2a3   : > { %v2535_v16 = vor.u32 %v2534_v3, %v2531_v44  ;;  %v18640_v44 = vld [vmem:[%s17724_s14 + $0x8c] sm:$0xf]  ;;  %v18643_v3 = vld [vmem:[%s17724_s14 + $0x90] sm:$0xf] }
 0x2a4   : > { %v12331_v27 = vcombine.low %v18640_v44, %v18643_v3 }
 0x2a5   : > { %v2536_v47 = vsel %vm865_vm3, %v2526_v5, %v2535_v16  ;;  %v2545_v53 = vsel %vm865_vm3, %v2535_v16, %v2544_v32 }
 0x2a6   : > { %13759 = vmatmul.mubr.msk.bf16.gmra.mrb[4].mxu0 %vm500_vm2, %v2473_v55  ;;  %v2527_v55 = vsel %vm865_vm3, %v2517_v61, %v2526_v5  ;;  %v2565_v61 = vshrl.u32 %v12329_v21, 16  ;;  %v2583_v46 = vshrl.u32 %v12331_v27, 16  ;;  %v2586_v22 = vshll.u32 %v12331_v27, 16  ;;  %v18691_v27 = vld [vmem:[%s17724_s14 + $0xb0] sm:$0xf] }
 0x2a7   : > { %13762 = vmatprep.mubr.msk.bf16.mxu0 %vm17649_vm1, %v22344_v31 }
 0x2a8   : > { %v2567_v18 = vrot.slane %v2565_v61, 3 }
 0x2aa   : > { %v2571_v59 = vor.u32 %v2570_v26, %v2567_v18  ;;  %v18679_v18 = vld [vmem:[%s17724_s14 + $0xa8] sm:$0xf] }
 0x2ae   : > { %13763 = vmatmul.mubr.msk.bf16.gmra.mrb[8].mxu0 %vm500_vm2, %v2482_v8  ;;  %v18592_v8 = vld [vmem:[%s17724_s14 + $0x6c] sm:$0xf] }
 0x2af   : > { %13766 = vmatprep.mubr.msk.bf16.mxu0 %vm17649_vm1, %v22344_v31  ;;  %v12327_v60 = vcombine.low %v18592_v8, %v18595_v45 }
 0x2b1   : > { %v2550_v33 = vshll.u32 %v12327_v60, 16 }
 0x2b3   : > { %v2552_v34 = vrot.slane %v2550_v33, 4  ;;  %v2585_v33 = vrot.slane %v2583_v46, 3 }
 0x2b6   : > { %13767 = vmatmul.mubr.msk.bf16.gmra.mrb[12].mxu0 %vm500_vm2, %v2491_v20  ;;  %v2547_v20 = vshrl.u32 %v12327_v60, 16  ;;  %v18652_v60 = vld [vmem:[%s17724_s14 + $0x94] sm:$0xf] }
 0x2b7   : > { %13770 = vmatprep.mubr.msk.bf16.mxu0 %vm17649_vm1, %v22344_v31 }
 0x2b8   : > { %v2549_v0 = vrot.slane %v2547_v20, 3 }
 0x2ba   : > { %v2553_v54 = vor.u32 %v2552_v34, %v2549_v0 }
 0x2bc   : > { %v2554_v58 = vsel %vm865_vm3, %v2544_v32, %v2553_v54  ;;  %v18655_v32 = vld [vmem:[%s17724_s14 + $0x98] sm:$0xf] }
 0x2bd   : > { %v12332_v0 = vcombine.low %v18652_v60, %v18655_v32 }
 0x2be   : > { %13771 = vmatmul.mubr.msk.bf16.gmra.mrb[16].mxu0 %vm500_vm2, %v2500_v56  ;;  %v12328_v56 = vcombine.low %v18604_v19, %v18607_v24 }
 0x2bf   : > { %13774 = vmatprep.mubr.msk.bf16.mxu0 %vm17649_vm1, %v22344_v31 }
 0x2c0   : > { %v2556_v11 = vshrl.u32 %v12328_v56, 16  ;;  %v2559_v6 = vshll.u32 %v12328_v56, 16  ;;  %v2592_v56 = vshrl.u32 %v12332_v0, 16 }
 0x2c2   : > { %v2561_v25 = vrot.slane %v2559_v6, 4  ;;  %v18667_v6 = vld [vmem:[%s17724_s14 + $0xa0] sm:$0xf] }
 0x2c6   : > { %13775 = vmatmul.mubr.msk.bf16.gmra.mrb[20].mxu0 %vm500_vm2, %v2509_v10  ;;  %v2558_v10 = vrot.slane %v2556_v11, 3  ;;  %v18664_v11 = vld [vmem:[%s17724_s14 + $0x9c] sm:$0xf] }
 0x2c7   : > { %13778 = vmatprep.mubr.msk.bf16.mxu0 %vm17649_vm1, %v22344_v31  ;;  %v12333_v21 = vcombine.low %v18664_v11, %v18667_v6 }
 0x2c8   : > { %v2562_v43 = vor.u32 %v2561_v25, %v2558_v10  ;;  %v2594_v10 = vrot.slane %v2592_v56, 3  ;;  %v18703_v56 = vld [vmem:[%s17724_s14 + $0xb8] sm:$0xf] }
 0x2c9   : > { %v2601_v61 = vshrl.u32 %v12333_v21, 16  ;;  %v2604_v42 = vshll.u32 %v12333_v21, 16 }
 0x2ca   : > { %v2563_v13 = vsel %vm865_vm3, %v2553_v54, %v2562_v43  ;;  %v2572_v41 = vsel %vm865_vm3, %v2562_v43, %v2571_v59  ;;  %v2595_v54 = vshll.u32 %v12332_v0, 16 }
 0x2cc   : > { %v2597_v25 = vrot.slane %v2595_v54, 4 }
 0x2ce   : > { %13779 = vmatmul.mubr.msk.bf16.gmra.mrb[24].mxu0 %vm500_vm2, %v2518_v7  ;;  %v18631_v7 = vld [vmem:[%s17724_s14 + $0x88] sm:$0xf]  ;;  %v2598_v43 = vor.u32 %v2597_v25, %v2594_v10 }
 0x2cf   : > { %13782 = vmatprep.mubr.msk.bf16.mxu0 %vm17649_vm1, %v22344_v31  ;;  %v12330_v5 = vcombine.low %v18628_v62, %v18631_v7 }
 0x2d1   : > { %v2574_v49 = vshrl.u32 %v12330_v5, 16 }
 0x2d3   : > { %v2576_v16 = vrot.slane %v2574_v49, 3 }
 0x2d6   : > { %13783 = vmatmul.mubr.msk.bf16.gmra.mrb[28].mxu0 %vm500_vm2, %v2527_v55  ;;  %v2577_v55 = vshll.u32 %v12330_v5, 16  ;;  %v2603_v5 = vrot.slane %v2601_v61, 3 }
 0x2d7   : > { %13786 = vmatprep.mubr.msk.bf16.mxu0 %vm17649_vm1, %v22344_v31 }
 0x2d8   : > { %v2579_v37 = vrot.slane %v2577_v55, 4 }
 0x2de   : > { %13787 = vmatmul.mubr.msk.bf16.gmra.mrb[32].mxu0 %vm500_vm2, %v2536_v47  ;;  %v2580_v47 = vor.u32 %v2579_v37, %v2576_v16  ;;  %v18688_v37 = vld [vmem:[%s17724_s14 + $0xac] sm:$0xf] }
 0x2df   : > { %13790 = vmatprep.mubr.msk.bf16.mxu0 %vm17649_vm1, %v22344_v31 }
 0x2e0   : > { %v2581_v20 = vsel %vm865_vm3, %v2571_v59, %v2580_v47  ;;  %v2606_v59 = vrot.slane %v2604_v42, 4  ;;  %v18712_v42 = vld [vmem:[%s17724_s14 + $0xbc] sm:$0xf] }
 0x2e2   : > { %v2607_v55 = vor.u32 %v2606_v59, %v2603_v5 }
 0x2e6   : > { %13791 = vmatmul.mubr.msk.bf16.gmra.mrb[36].mxu0 %vm500_vm2, %v2545_v53  ;;  %v2588_v53 = vrot.slane %v2586_v22, 4 }
 0x2e7   : > { %13794 = vmatprep.mubr.msk.bf16.mxu0 %vm17649_vm1, %v22344_v31 }
 0x2e8   : > { %v2589_v34 = vor.u32 %v2588_v53, %v2585_v33 }
 0x2ea   : > { %v2599_v26 = vsel %vm865_vm3, %v2589_v34, %v2598_v43 }
 0x2ee   : > { %13795 = vmatmul.mubr.msk.bf16.gmra.mrb[40].mxu0 %vm500_vm2, %v2554_v58  ;;  %v2590_v58 = vsel %vm865_vm3, %v2580_v47, %v2589_v34  ;;  %v2608_v47 = vsel %vm865_vm3, %v2598_v43, %v2607_v55  ;;  %v18700_v34 = vld [vmem:[%s17724_s14 + $0xb4] sm:$0xf] }
 0x2ef   : > { %13798 = vmatprep.mubr.msk.bf16.mxu0 %vm17649_vm1, %v22344_v31  ;;  %v12336_v25 = vcombine.low %v18700_v34, %v18703_v56 }
 0x2f1   : > { %v2628_v43 = vshrl.u32 %v12336_v25, 16  ;;  %v2631_v61 = vshll.u32 %v12336_v25, 16  ;;  %v18736_v25 = vld [vmem:[%s17724_s14 + $0xcc] sm:$0xf] }
 0x2f3   : > { %v2630_v59 = vrot.slane %v2628_v43, 3  ;;  %v18739_v43 = vld [vmem:[%s17724_s14 + $0xd0] sm:$0xf] }
 0x2f4   : > { %22351 = vst [vmem:[#allocation3_spill] sm:$0xff] %v18739_v43 }
 0x2f6   : > { %13799 = vmatmul.mubr.msk.bf16.gmra.mrb[44].mxu0 %vm500_vm2, %v2563_v13  ;;  %v18676_v13 = vld [vmem:[%s17724_s14 + $0xa4] sm:$0xf] }
 0x2f7   : > { %13802 = vmatprep.mubr.msk.bf16.mxu0 %vm17649_vm1, %v22344_v31  ;;  %v12334_v49 = vcombine.low %v18676_v13, %v18679_v18 }
 0x2f9   : > { %v2613_v16 = vshll.u32 %v12334_v49, 16 }
 0x2fb   : > { %v2615_v22 = vrot.slane %v2613_v16, 4 }
 0x2fe   : > { %13803 = vmatmul.mubr.msk.bf16.gmra.mrb[48].mxu0 %vm500_vm2, %v2572_v41  ;;  %v2610_v41 = vshrl.u32 %v12334_v49, 16  ;;  %v2633_v49 = vrot.slane %v2631_v61, 4 }
 0x2ff   : > { %13806 = vmatprep.mubr.msk.bf16.mxu0 %vm17649_vm1, %v22344_v31 }
 0x300   : > { %v2612_v46 = vrot.slane %v2610_v41, 3  ;;  %v2634_v41 = vor.u32 %v2633_v49, %v2630_v59  ;;  %v12339_v59 = vcombine.low %v18736_v25, %v18739_v43 }
 0x302   : > { %v2616_v33 = vor.u32 %v2615_v22, %v2612_v46  ;;  %v18724_v46 = vld [vmem:[%s17724_s14 + $0xc4] sm:$0xf]  ;;  %v18727_v22 = vld [vmem:[%s17724_s14 + $0xc8] sm:$0xf] }
 0x304   : > { %v2617_v54 = vsel %vm865_vm3, %v2607_v55, %v2616_v33 }
 0x306   : > { %13807 = vmatmul.mubr.msk.bf16.gmra.mrb[52].mxu0 %vm500_vm2, %v2581_v20  ;;  %v12335_v20 = vcombine.low %v18688_v37, %v18691_v27 }
 0x307   : > { %13810 = vmatprep.mubr.msk.bf16.mxu0 %vm17649_vm1, %v22344_v31 }
 0x308   : > { %v2619_v53 = vshrl.u32 %v12335_v20, 16  ;;  %v2622_v0 = vshll.u32 %v12335_v20, 16 }
 0x30a   : > { %v2624_v10 = vrot.slane %v2622_v0, 4  ;;  %v12338_v0 = vcombine.low %v18724_v46, %v18727_v22 }
 0x30e   : > { %13811 = vmatmul.mubr.msk.bf16.gmra.mrb[56].mxu0 %vm500_vm2, %v2590_v58  ;;  %v2621_v58 = vrot.slane %v2619_v53, 3 }
 0x30f   : > { %13814 = vmatprep.mubr.msk.bf16.mxu0 %vm17649_vm1, %v22344_v31 }
 0x310   : > { %v2625_v21 = vor.u32 %v2624_v10, %v2621_v58  ;;  %v2646_v58 = vshrl.u32 %v12338_v0, 16  ;;  %v2649_v10 = vshll.u32 %v12338_v0, 16 }
 0x312   : > { %v2626_v5 = vsel %vm865_vm3, %v2616_v33, %v2625_v21  ;;  %v2635_v20 = vsel %vm865_vm3, %v2625_v21, %v2634_v41  ;;  %v2648_v61 = vrot.slane %v2646_v58, 3 }
 0x316   : > { %13815 = vmatmul.mubr.msk.bf16.gmra.mrb[60].mxu0 %vm500_vm2, %v2599_v26  ;;  %v18715_v26 = vld [vmem:[%s17724_s14 + $0xc0] sm:$0xf] }
 0x317   : > { %13818 = vmatprep.mubr.msk.bf16.mxu0 %vm17649_vm1, %v22344_v31  ;;  %v12337_v55 = vcombine.low %v18712_v42, %v18715_v26 }
 0x319   : > { %v2637_v16 = vshrl.u32 %v12337_v55, 16 }
 0x31b   : > { %v2639_v33 = vrot.slane %v2637_v16, 3  ;;  %v2658_v16 = vshll.u32 %v12339_v59, 16 }
 0x31e   : > { %13819 = vmatmul.mubr.msk.bf16.gmra.mrb[64].mxu0 %vm500_vm2, %v2608_v47  ;;  %v2640_v47 = vshll.u32 %v12337_v55, 16  ;;  %v2655_v55 = vshrl.u32 %v12339_v59, 16 }
 0x31f   : > { %13822 = vmatprep.mubr.msk.bf16.mxu0 %vm17649_vm1, %v22344_v31 }
 0x320   : > { %v2642_v53 = vrot.slane %v2640_v47, 4  ;;  %v18748_v47 = vld [vmem:[%s17724_s14 + $0xd4] sm:$0xf] }
 0x321   : > { %22352 = vst [vmem:[#allocation4_spill] sm:$0xff] %v18748_v47 }
 0x326   : > { %13823 = vmatmul.mubr.msk.bf16.gmra.mrb[68].mxu0 %vm500_vm2, %v2617_v54  ;;  %v2643_v54 = vor.u32 %v2642_v53, %v2639_v33  ;;  %v2657_v33 = vrot.slane %v2655_v55, 3  ;;  %v2660_v53 = vrot.slane %v2658_v16, 4 }
 0x327   : > { %13826 = vmatprep.mubr.msk.bf16.mxu0 %vm17649_vm1, %v22344_v31 }
 0x328   : > { %v2644_v21 = vsel %vm865_vm3, %v2634_v41, %v2643_v54  ;;  %v2661_v58 = vor.u32 %v2660_v53, %v2657_v33 }
 0x32e   : > { %13827 = vmatmul.mubr.msk.bf16.gmra.mrb[72].mxu0 %vm500_vm2, %v2626_v5  ;;  %v2651_v5 = vrot.slane %v2649_v10, 4 }
 0x32f   : > { %13830 = vmatprep.mubr.msk.bf16.mxu0 %vm17649_vm1, %v22344_v31 }
 0x330   : > { %v2652_v49 = vor.u32 %v2651_v5, %v2648_v61  ;;  %v18760_v61 = vld [vmem:[%s17724_s14 + $0xdc] sm:$0xf]  ;;  %v18763_v5 = vld [vmem:[%s17724_s14 + $0xe0] sm:$0xf] }
 0x331   : > { %22354 = vst [vmem:[#allocation6_spill] sm:$0xff] %v18760_v61  ;;  %22355 = vst [vmem:[#allocation7_spill] sm:$0xff] %v18763_v5  ;;  %v12341_v16 = vcombine.low %v18760_v61, %v18763_v5 }
 0x332   : > { %v2653_v41 = vsel %vm865_vm3, %v2643_v54, %v2652_v49  ;;  %v2662_v54 = vsel %vm865_vm3, %v2652_v49, %v2661_v58 }
 0x333   : > { %v2673_v33 = vshrl.u32 %v12341_v16, 16  ;;  %v2676_v53 = vshll.u32 %v12341_v16, 16  ;;  %v18784_v16 = vld [vmem:[%s17724_s14 + $0xec] sm:$0xf] }
 0x336   : > { %13831 = vmatmul.mubr.msk.bf16.gmra.mrb[76].mxu0 %vm500_vm2, %v2635_v20  ;;  %v18751_v20 = vld [vmem:[%s17724_s14 + $0xd8] sm:$0xf] }
 0x337   : > { %13834 = vmatprep.mubr.msk.bf16.mxu0 %vm17649_vm1, %v22344_v31  ;;  %22353 = vst [vmem:[#allocation5_spill] sm:$0xff] %v18751_v20  ;;  %v12340_v0 = vcombine.low %v18748_v47, %v18751_v20  ;;  %v18775_v20 = vld [vmem:[%s17724_s14 + $0xe8] sm:$0xf] }
 0x339   : > { %v2664_v10 = vshrl.u32 %v12340_v0, 16 }
 0x33b   : > { %v2666_v59 = vrot.slane %v2664_v10, 3  ;;  %v2675_v10 = vrot.slane %v2673_v33, 3 }
 0x33e   : > { %13835 = vmatmul.mubr.msk.bf16.gmra.mrb[80].mxu0 %vm500_vm2, %v2644_v21  ;;  %v2667_v21 = vshll.u32 %v12340_v0, 16  ;;  %v18772_v0 = vld [vmem:[%s17724_s14 + $0xe4] sm:$0xf] }
 0x33f   : > { %13838 = vmatprep.mubr.msk.bf16.mxu0 %vm17649_vm1, %v22344_v31  ;;  %v12342_v5 = vcombine.low %v18772_v0, %v18775_v20 }
 0x340   : > { %v2669_v55 = vrot.slane %v2667_v21, 4  ;;  %v2678_v21 = vrot.slane %v2676_v53, 4 }
 0x346   : > { %13839 = vmatmul.mubr.msk.bf16.gmra.mrb[84].mxu0 %vm500_vm2, %v2653_v41  ;;  %v2670_v41 = vor.u32 %v2669_v55, %v2666_v59  ;;  %v2682_v59 = vshrl.u32 %v12342_v5, 16  ;;  %v2685_v55 = vshll.u32 %v12342_v5, 16 }
 0x347   : > { %13842 = vmatprep.mubr.msk.bf16.mxu0 %vm17649_vm1, %v22344_v31 }
 0x348   : > { %v2671_v49 = vsel %vm865_vm3, %v2661_v58, %v2670_v41  ;;  %v2684_v43 = vrot.slane %v2682_v59, 3  ;;  %v2687_v47 = vrot.slane %v2685_v55, 4  ;;  %v12343_v58 = vcombine.low %v18784_v16, %v18784_v16 }
 0x34a   : > { %v2688_v33 = vor.u32 %v2687_v47, %v2684_v43  ;;  %v2691_v53 = vshrl.u32 %v12343_v58, 16  ;;  %v12426_v43 = vld [vmem:[%s22193_s2 + $0xa] sm:$0x3]  ;;  %v12372_v47 = vcombine.low %v18463_v39, %v18466_v50  ;;  %v12374_v39 = vcombine.low %v18482_v1, %v18491_v17 }
 0x34b   : > { %v12375_v50 = vcombine.low %v18494_v2, %v18507_v4  ;;  %v12378_v1 = vcombine.low %v18535_v48, %v18544_v35  ;;  %v12379_v17 = vcombine.low %v18547_v40, %v18556_v38  ;;  %v12380_v2 = vcombine.low %v18559_v52, %v18568_v28 }
 0x34c   : > { %v2693_v5 = vrot.slane %v2691_v53, 3  ;;  %v12381_v4 = vcombine.low %v18571_v9, %v18580_v12  ;;  %v12386_v48 = vcombine.low %v18631_v7, %v18640_v44  ;;  %v12387_v35 = vcombine.low %v18643_v3, %v18652_v60  ;;  %v17423_v44 = vld [vmem:[%s17724_s14 + $0x18] sm:$0xff]   ;;  %v17424_v3 = vld [vmem:[%s17724_s14 + $0x20] sm:$0xff]  }
 0x34d   : > { %v12388_v40 = vcombine.low %v18655_v32, %v18664_v11  ;;  %v12389_v38 = vcombine.low %v18667_v6, %v18676_v13  ;;  %v12390_v52 = vcombine.low %v18679_v18, %v18688_v37  ;;  %v12391_v28 = vcombine.low %v18691_v27, %v18700_v34  ;;  %v17425_v27 = vld [vmem:[%s17724_s14 + $0x28] sm:$0xff]   ;;  %v17427_v53 = vld [vmem:[%s17724_s14 + $0x38] sm:$0xff]  }
 0x34e   : > { %13843 = vmatmul.mubr.msk.bf16.gmra.mrb[88].mxu0 %vm500_vm2, %v2662_v54  ;;  %v2679_v54 = vor.u32 %v2678_v21, %v2675_v10  ;;  %v12392_v9 = vcombine.low %v18703_v56, %v18712_v42  ;;  %v12393_v12 = vcombine.low %v18715_v26, %v18724_v46  ;;  %v3700_v60 = vshll.u32 %v17423_v44, 16  ;;  %v12482_v34 = vld [vmem:[%s22193_s2 + $0xc] sm:$0x3] }
 0x34f   : > { %13846 = vmatprep.mubr.msk.bf16.mxu0 %vm17649_vm1, %v22344_v31  ;;  %v12398_v32 = vcombine.low %v18775_v20, %v18784_v16  ;;  %v3698_v11 = vshrl.u32 %v17423_v44, 16  ;;  %v3705_v13 = vshll.u32 %v17424_v3, 16  ;;  %v3709_v42 = vshrl.u32 %v17424_v3, 16  ;;  %v17426_v20 = vld [vmem:[%s17724_s14 + $0x30] sm:$0xff]  }
 0x350   : > { %v2680_v61 = vsel %vm865_vm3, %v2670_v41, %v2679_v54  ;;  %v2689_v10 = vsel %vm865_vm3, %v2679_v54, %v2688_v33  ;;  %v12373_v54 = vcombine.low %v18469_v63, %v18479_v57  ;;  %v12376_v63 = vcombine.low %v18510_v15, %v18520_v29 }
 0x351   : > { %v12377_v57 = vcombine.low %v18523_v30, %v18532_v51  ;;  %v12382_v15 = vcombine.low %v18583_v36, %v18592_v8  ;;  %v12383_v29 = vcombine.low %v18595_v45, %v18604_v19  ;;  %v12384_v30 = vcombine.low %v18607_v24, %v18616_v14  ;;  %v22356_v8 = vld [vmem:[#allocation4_spill] sm:$0xff]  ;;  %v22357_v45 = vld [vmem:[#allocation3_spill] sm:$0xff]  ;;  %v22358_v24 = vld [vmem:[#allocation6_spill] sm:$0xff] }
 0x352   : > { %v12385_v51 = vcombine.low %v18619_v23, %v18628_v62  ;;  %v12394_v36 = vcombine.low %v18727_v22, %v18736_v25  ;;  %v12395_v19 = vcombine.low %v22357_v45, %v22356_v8  ;;  %v22359_v14 = vld [vmem:[#allocation5_spill] sm:$0xff]  ;;  %v22360_v62 = vld [vmem:[#allocation7_spill] sm:$0xff]  ;;  %v3702_v6 = vrot.slane %v3700_v60, 1  ;;  %v17434_v60 = vld [vmem:[%s17724_s14 + $0x70] sm:$0xff]  }
 0x353   : > { %v12396_v23 = vcombine.low %v22359_v14, %v22358_v24  ;;  %v12397_v7 = vcombine.low %v22360_v62, %v18772_v0  ;;  %v3707_v37 = vrot.slane %v3705_v13, 1  ;;  %v3713_v26 = vshll.u32 %v17425_v27, 16  ;;  %v17433_v14 = vld [vmem:[%s17724_s14 + $0x68] sm:$0xff]  }
 0x354   : > { %v3703_v18 = vor.u32 %v3702_v6, %v3698_v11  ;;  %v4832_v46 = vsel %vm582_vm0, %v12482_v34, 0  ;;  %v3717_v55 = vshrl.u32 %v17425_v27, 16  ;;  %v3721_v16 = vshll.u32 %v17426_v20, 16 }
 0x355   : > { %v3711_v22 = vor.u32 %v3709_v42, %v3707_v37  ;;  %v3715_v25 = vrot.slane %v3713_v26, 1  ;;  %v3781_v11 = vshrl.u32 %v17433_v14, 16  ;;  %v3785_v6 = vshll.u32 %v17434_v60, 16 }
 0x356   : > { %13847 = vmatmul.mubr.msk.bf16.gmra.mrb[92].mxu0 %vm500_vm2, %v2671_v49  ;;  %v2694_v49 = vshll.u32 %v12343_v58, 16  ;;  %v3708_v56 = vsel %vm1645_vm4, %v3703_v18, %v3707_v37  ;;  %v17435_v37 = vld [vmem:[%s17724_s14 + $0x78] sm:$0xff]   ;;  %v3789_v34 = vshrl.u32 %v17434_v60, 16 }
 0x357   : > { %13850 = vmatprep.mubr.msk.bf16.mxu0 %vm17649_vm1, %v22344_v31  ;;  %v3716_v0 = vsel %vm1645_vm4, %v3711_v22, %v3715_v25  ;;  %v3719_v58 = vor.u32 %v3717_v55, %v3715_v25  ;;  %v3787_v18 = vrot.slane %v3785_v6, 1  ;;  %v3797_v25 = vshrl.u32 %v17435_v37, 16  ;;  %v17445_v6 = vld [vmem:[%s17724_s14 + $0xc8] sm:$0xff]  }
 0x358   : > { %v2696_v21 = vrot.slane %v2694_v49, 4 }
 0x359   : > { %v3791_v42 = vor.u32 %v3789_v34, %v3787_v18 }
 0x35a   : > { %v2697_v41 = vor.u32 %v2696_v21, %v2693_v5  ;;  %v3729_v5 = vshll.u32 %v17427_v53, 16 }
 0x35c   : > { %v2698_v59 = vsel %vm865_vm3, %v2688_v33, %v2697_v41  ;;  %v3723_v33 = vrot.slane %v3721_v16, 1  ;;  %v3731_v41 = vrot.slane %v3729_v5, 1  ;;  %v17437_v16 = vld [vmem:[%s17724_s14 + $0x88] sm:$0xff]   ;;  %v17438_v5 = vld [vmem:[%s17724_s14 + $0x90] sm:$0xff]  }
 0x35e   : > { %13851 = vmatmul.mubr.msk.bf16.gmra.mrb[96].mxu0 %vm500_vm2, %v2680_v61  ;;  %v3999_v61 = vsel %vm582_vm0, %v12426_v43, 0  ;;  %v3724_v49 = vsel %vm1645_vm4, %v3719_v58, %v3723_v33 }
 0x35f   : > { %13854 = vmatprep.mubr.msk.bf16.mxu0 %vm17649_vm1, %v22344_v31 }
 0x366   : > { %13855 = vmatmul.mubr.msk.bf16.gmra.mrb[100].mxu0 %vm500_vm2, %v2689_v10  ;;  %v3725_v10 = vshrl.u32 %v17426_v20, 16 }
 0x367   : > { %13858 = vmatprep.mubr.msk.bf16.mxu0 %vm17649_vm1, %v22344_v31 }
 0x368   : > { %v3727_v21 = vor.u32 %v3725_v10, %v3723_v33 }
 0x36a   : > { %v3732_v43 = vsel %vm1645_vm4, %v3727_v21, %v3731_v41 }
 0x36e   : > { %13859 = vmatmul.mubr.msk.bf16.gmra.mrb[104].mxu0 %vm500_vm2, %v2698_v59  ;;  %v17428_v59 = vld [vmem:[%s17724_s14 + $0x40] sm:$0xff]  }
 0x36f   : > { %13864 = vmatprep.mubr.msk.bf16.mxu0 %vm17649_vm1, %v22344_v31 }
 0x376   : > { %13865 = vmatmul.mubr.msk.bf16.vlgmr.msra.gmra.mrb[0].mxu0 %vm500_vm2, %v12372_v47  ;;  %v3733_v47 = vshrl.u32 %v17427_v53, 16  ;;  %v3809_v53 = vshll.u32 %v17437_v16, 16 }
 0x377   : > { %13973 = vmatpush3.bf16.msra.mxu0 %v3999_v61  ;;  %13868 = vmatprep.mubr.msk.bf16.mxu0 %vm17649_vm1, %v22344_v31  ;;  %v3737_v61 = vshll.u32 %v17428_v59, 16 }
 0x378   : > { %14082 = vmatprep.subr.bf16.mxu0 %v22344_v31  ;;  %v3811_v10 = vrot.slane %v3809_v53, 1  ;;  %v17448_v53 = vld [vmem:[%s17724_s14 + $0xe0] sm:$0xff]  }
 0x37e   : > { %13869 = vmatmul.mubr.msk.bf16.gmra.mrb[4].mxu0 %vm500_vm2, %v12373_v54  ;;  %v3735_v54 = vor.u32 %v3733_v47, %v3731_v41  ;;  %v3813_v41 = vshrl.u32 %v17437_v16, 16 }
 0x37f   : > { %13872 = vmatprep.mubr.msk.bf16.mxu0 %vm17649_vm1, %v22344_v31 }
 0x386   : > { %13873 = vmatmul.mubr.msk.bf16.gmra.mrb[8].mxu0 %vm500_vm2, %v12374_v39  ;;  %v3739_v39 = vrot.slane %v3737_v61, 1  ;;  %v17439_v61 = vld [vmem:[%s17724_s14 + $0x98] sm:$0xff]  }
 0x387   : > { %13876 = vmatprep.mubr.msk.bf16.mxu0 %vm17649_vm1, %v22344_v31 }
 0x38e   : > { %13877 = vmatmul.mubr.msk.bf16.gmra.mrb[12].mxu0 %vm500_vm2, %v12375_v50  ;;  %v17429_v50 = vld [vmem:[%s17724_s14 + $0x48] sm:$0xff]  }
 0x38f   : > { %13880 = vmatprep.mubr.msk.bf16.mxu0 %vm17649_vm1, %v22344_v31 }
 0x396   : > { %13881 = vmatmul.mubr.msk.bf16.gmra.mrb[16].mxu0 %vm500_vm2, %v12376_v63  ;;  %v3740_v63 = vsel %vm1645_vm4, %v3735_v54, %v3739_v39 }
 0x397   : > { %13884 = vmatprep.mubr.msk.bf16.mxu0 %vm17649_vm1, %v22344_v31 }
 0x39e   : > { %13885 = vmatmul.mubr.msk.bf16.gmra.mrb[20].mxu0 %vm500_vm2, %v12377_v57  ;;  %v3741_v57 = vshrl.u32 %v17428_v59, 16  ;;  %v3817_v59 = vshll.u32 %v17438_v5, 16 }
 0x39f   : > { %13888 = vmatprep.mubr.msk.bf16.mxu0 %vm17649_vm1, %v22344_v31 }
 0x3a0   : > { %v3819_v47 = vrot.slane %v3817_v59, 1  ;;  %v17449_v59 = vld [vmem:[%s17724_s14 + $0xe8] sm:$0xff]  }
 0x3a6   : > { %13889 = vmatmul.mubr.msk.bf16.gmra.mrb[24].mxu0 %vm500_vm2, %v12378_v1  ;;  %v3745_v1 = vshll.u32 %v17429_v50, 16 }
 0x3a7   : > { %13892 = vmatprep.mubr.msk.bf16.mxu0 %vm17649_vm1, %v22344_v31 }
 0x3ae   : > { %13893 = vmatmul.mubr.msk.bf16.gmra.mrb[28].mxu0 %vm500_vm2, %v12379_v17  ;;  %v3743_v17 = vor.u32 %v3741_v57, %v3739_v39  ;;  %v3821_v39 = vshrl.u32 %v17438_v5, 16  ;;  %v3897_v5 = vshll.u32 %v17448_v53, 16 }
 0x3af   : > { %13896 = vmatprep.mubr.msk.bf16.mxu0 %vm17649_vm1, %v22344_v31 }
 0x3b6   : > { %13897 = vmatmul.mubr.msk.bf16.gmra.mrb[32].mxu0 %vm500_vm2, %v12380_v2  ;;  %v3747_v2 = vrot.slane %v3745_v1, 1  ;;  %v17440_v1 = vld [vmem:[%s17724_s14 + $0xa0] sm:$0xff]  }
 0x3b7   : > { %13900 = vmatprep.mubr.msk.bf16.mxu0 %vm17649_vm1, %v22344_v31 }
 0x3be   : > { %13901 = vmatmul.mubr.msk.bf16.gmra.mrb[36].mxu0 %vm500_vm2, %v12381_v4  ;;  %v17430_v4 = vld [vmem:[%s17724_s14 + $0x50] sm:$0xff]  }
 0x3bf   : > { %13904 = vmatprep.mubr.msk.bf16.mxu0 %vm17649_vm1, %v22344_v31 }
 0x3c6   : > { %13905 = vmatmul.mubr.msk.bf16.gmra.mrb[40].mxu0 %vm500_vm2, %v12382_v15  ;;  %v3748_v15 = vsel %vm1645_vm4, %v3743_v17, %v3747_v2 }
 0x3c7   : > { %13908 = vmatprep.mubr.msk.bf16.mxu0 %vm17649_vm1, %v22344_v31 }
 0x3ce   : > { %13909 = vmatmul.mubr.msk.bf16.gmra.mrb[44].mxu0 %vm500_vm2, %v12383_v29  ;;  %v3749_v29 = vshrl.u32 %v17429_v50, 16  ;;  %v3825_v50 = vshll.u32 %v17439_v61, 16 }
 0x3cf   : > { %13912 = vmatprep.mubr.msk.bf16.mxu0 %vm17649_vm1, %v22344_v31 }
 0x3d0   : > { %v3827_v57 = vrot.slane %v3825_v50, 1 }
 0x3d6   : > { %13913 = vmatmul.mubr.msk.bf16.gmra.mrb[48].mxu0 %vm500_vm2, %v12384_v30  ;;  %v3753_v30 = vshll.u32 %v17430_v4, 16 }
 0x3d7   : > { %13916 = vmatprep.mubr.msk.bf16.mxu0 %vm17649_vm1, %v22344_v31 }
 0x3de   : > { %13917 = vmatmul.mubr.msk.bf16.gmra.mrb[52].mxu0 %vm500_vm2, %v12385_v51  ;;  %v3751_v51 = vor.u32 %v3749_v29, %v3747_v2  ;;  %v3829_v2 = vshrl.u32 %v17439_v61, 16  ;;  %v3905_v61 = vshll.u32 %v17449_v59, 16 }
 0x3df   : > { %13920 = vmatprep.mubr.msk.bf16.mxu0 %vm17649_vm1, %v22344_v31 }
 0x3e0   : > { %v3907_v50 = vrot.slane %v3905_v61, 1 }
 0x3e6   : > { %13921 = vmatmul.mubr.msk.bf16.gmra.mrb[56].mxu0 %vm500_vm2, %v12386_v48  ;;  %v3755_v48 = vrot.slane %v3753_v30, 1  ;;  %v17441_v30 = vld [vmem:[%s17724_s14 + $0xa8] sm:$0xff]  }
 0x3e7   : > { %13924 = vmatprep.mubr.msk.bf16.mxu0 %vm17649_vm1, %v22344_v31 }
 0x3ee   : > { %13925 = vmatmul.mubr.msk.bf16.gmra.mrb[60].mxu0 %vm500_vm2, %v12387_v35  ;;  %v17431_v35 = vld [vmem:[%s17724_s14 + $0x58] sm:$0xff]  }
 0x3ef   : > { %13928 = vmatprep.mubr.msk.bf16.mxu0 %vm17649_vm1, %v22344_v31  ;;  %v3765_v8 = vshrl.u32 %v17431_v35, 16 }
 0x3f6   : > { %13929 = vmatmul.mubr.msk.bf16.gmra.mrb[64].mxu0 %vm500_vm2, %v12388_v40  ;;  %v3756_v40 = vsel %vm1645_vm4, %v3751_v51, %v3755_v48 }
 0x3f7   : > { %13932 = vmatprep.mubr.msk.bf16.mxu0 %vm17649_vm1, %v22344_v31 }
 0x3fe   : > { %13933 = vmatmul.mubr.msk.bf16.gmra.mrb[68].mxu0 %vm500_vm2, %v12389_v38  ;;  %v3757_v38 = vshrl.u32 %v17430_v4, 16  ;;  %v3833_v4 = vshll.u32 %v17440_v1, 16 }
 0x3ff   : > { %13936 = vmatprep.mubr.msk.bf16.mxu0 %vm17649_vm1, %v22344_v31 }
 0x400   : > { %v3835_v29 = vrot.slane %v3833_v4, 1 }
 0x406   : > { %13937 = vmatmul.mubr.msk.bf16.gmra.mrb[72].mxu0 %vm500_vm2, %v12390_v52  ;;  %v3761_v52 = vshll.u32 %v17431_v35, 16  ;;  %v3841_v35 = vshll.u32 %v17441_v30, 16 }
 0x407   : > { %13940 = vmatprep.mubr.msk.bf16.mxu0 %vm17649_vm1, %v22344_v31 }
 0x40e   : > { %13941 = vmatmul.mubr.msk.bf16.gmra.mrb[76].mxu0 %vm500_vm2, %v12391_v28  ;;  %v3759_v28 = vor.u32 %v3757_v38, %v3755_v48  ;;  %v3837_v48 = vshrl.u32 %v17440_v1, 16  ;;  %v3843_v38 = vrot.slane %v3841_v35, 1  ;;  %v19078_v1 = vld [vmem:[%s17724_s14 + $0x28] sm:$0xf] }
 0x40f   : > { %13944 = vmatprep.mubr.msk.bf16.mxu0 %vm17649_vm1, %v22344_v31 }
 0x416   : > { %13945 = vmatmul.mubr.msk.bf16.gmra.mrb[80].mxu0 %vm500_vm2, %v12392_v9  ;;  %v3763_v9 = vrot.slane %v3761_v52, 1  ;;  %v17442_v52 = vld [vmem:[%s17724_s14 + $0xb0] sm:$0xff]  }
 0x417   : > { %13948 = vmatprep.mubr.msk.bf16.mxu0 %vm17649_vm1, %v22344_v31 }
 0x41e   : > { %13949 = vmatmul.mubr.msk.bf16.gmra.mrb[84].mxu0 %vm500_vm2, %v12393_v12  ;;  %v17432_v12 = vld [vmem:[%s17724_s14 + $0x60] sm:$0xff]  }
 0x41f   : > { %13952 = vmatprep.mubr.msk.bf16.mxu0 %vm17649_vm1, %v22344_v31  ;;  %v3769_v45 = vshll.u32 %v17432_v12, 16  ;;  %v3773_v62 = vshrl.u32 %v17432_v12, 16  ;;  %v3849_v12 = vshll.u32 %v17442_v52, 16 }
 0x421   : > { %v3771_v24 = vrot.slane %v3769_v45, 1  ;;  %v17443_v45 = vld [vmem:[%s17724_s14 + $0xb8] sm:$0xff]  }
 0x423   : > { %v3775_v44 = vor.u32 %v3773_v62, %v3771_v24 }
 0x426   : > { %13953 = vmatmul.mubr.msk.bf16.gmra.mrb[88].mxu0 %vm500_vm2, %v12394_v36  ;;  %v3764_v36 = vsel %vm1645_vm4, %v3759_v28, %v3763_v9 }
 0x427   : > { %13956 = vmatprep.mubr.msk.bf16.mxu0 %vm17649_vm1, %v22344_v31 }
 0x42e   : > { %13957 = vmatmul.mubr.msk.bf16.gmra.mrb[92].mxu0 %vm500_vm2, %v12395_v19  ;;  %v3767_v19 = vor.u32 %v3765_v8, %v3763_v9  ;;  %v3845_v9 = vshrl.u32 %v17441_v30, 16  ;;  %v3851_v8 = vrot.slane %v3849_v12, 1 }
 0x42f   : > { %13960 = vmatprep.mubr.msk.bf16.mxu0 %vm17649_vm1, %v22344_v31 }
 0x436   : > { %13961 = vmatmul.mubr.msk.bf16.gmra.mrb[96].mxu0 %vm500_vm2, %v12396_v23  ;;  %v3772_v23 = vsel %vm1645_vm4, %v3767_v19, %v3771_v24  ;;  %v3853_v24 = vshrl.u32 %v17442_v52, 16 }
 0x437   : > { %13964 = vmatprep.mubr.msk.bf16.mxu0 %vm17649_vm1, %v22344_v31 }
 0x43e   : > { %13965 = vmatmul.mubr.msk.bf16.gmra.mrb[100].mxu0 %vm500_vm2, %v12397_v7  ;;  %v3777_v7 = vshll.u32 %v17433_v14, 16  ;;  %v3857_v14 = vshll.u32 %v17443_v45, 16 }
 0x43f   : > { %13968 = vmatprep.mubr.msk.bf16.mxu0 %vm17649_vm1, %v22344_v31 }
 0x440   : > { %v3779_v3 = vrot.slane %v3777_v7, 1  ;;  %v3859_v62 = vrot.slane %v3857_v14, 1  ;;  %v17444_v7 = vld [vmem:[%s17724_s14 + $0xc0] sm:$0xff]  }
 0x441   : > { %v3865_v60 = vshll.u32 %v17444_v7, 16 }
 0x442   : > { %v3783_v13 = vor.u32 %v3781_v11, %v3779_v3 }
 0x443   : > { %v3867_v11 = vrot.slane %v3865_v60, 1  ;;  %v12538_v60 = vld [vmem:[%s22193_s2 + $0xe] sm:$0x3] }
 0x444   : > { %v3788_v27 = vsel %vm1645_vm4, %v3783_v13, %v3787_v18  ;;  %v3869_v18 = vshrl.u32 %v17444_v7, 16 }
 0x446   : > { %13969 = vmatmul.mubr.msk.bf16.gmra.mrb[104].mxu0 %vm500_vm2, %v12398_v32  ;;  %v3780_v32 = vsel %vm1645_vm4, %v3775_v44, %v3779_v3  ;;  %v3861_v3 = vshrl.u32 %v17443_v45, 16 }
 0x447   : > { %13974 = vmatprep.mubr.msk.bf16.mxu0 %vm17649_vm1, %v22344_v31 }
 0x44e   : > { %13975 = vmatmul.mubr.msk.bf16.vlgmr.msra.gmra.mrb[0].mxu0 %vm500_vm2, %v3708_v56  ;;  %v3793_v56 = vshll.u32 %v17435_v37, 16  ;;  %v3873_v37 = vshll.u32 %v17445_v6, 16 }
 0x44f   : > { %14083 = vmatpush3.bf16.msra.mxu0 %v4832_v46  ;;  %13978 = vmatprep.mubr.msk.bf16.mxu0 %vm17649_vm1, %v22344_v31  ;;  %v17436_v46 = vld [vmem:[%s17724_s14 + $0x80] sm:$0xff]  }
 0x450   : > { %14192 = vmatprep.subr.bf16.mxu0 %v22344_v31  ;;  %v3795_v26 = vrot.slane %v3793_v56, 1  ;;  %v3801_v20 = vshll.u32 %v17436_v46, 16  ;;  %v3805_v33 = vshrl.u32 %v17436_v46, 16  ;;  %v3875_v34 = vrot.slane %v3873_v37, 1  ;;  %v17446_v56 = vld [vmem:[%s17724_s14 + $0xd0] sm:$0xff]  }
 0x451   : > { %v3881_v46 = vshll.u32 %v17446_v56, 16 }
 0x452   : > { %v3796_v22 = vsel %vm1645_vm4, %v3791_v42, %v3795_v26  ;;  %v3803_v55 = vrot.slane %v3801_v20, 1  ;;  %v17447_v20 = vld [vmem:[%s17724_s14 + $0xd8] sm:$0xff]  }
 0x453   : > { %v3889_v16 = vshll.u32 %v17447_v20, 16 }
 0x456   : > { %13979 = vmatmul.mubr.msk.bf16.gmra.mrb[4].mxu0 %vm500_vm2, %v3716_v0  ;;  %v3799_v0 = vor.u32 %v3797_v25, %v3795_v26  ;;  %v3877_v26 = vshrl.u32 %v17445_v6, 16  ;;  %v3883_v25 = vrot.slane %v3881_v46, 1 }
 0x457   : > { %13982 = vmatprep.mubr.msk.bf16.mxu0 %vm17649_vm1, %v22344_v31 }
 0x458   : > { %v3804_v58 = vsel %vm1645_vm4, %v3799_v0, %v3803_v55 }
 0x45e   : > { %13983 = vmatmul.mubr.msk.bf16.gmra.mrb[8].mxu0 %vm500_vm2, %v3724_v49  ;;  %v3807_v49 = vor.u32 %v3805_v33, %v3803_v55  ;;  %v3885_v55 = vshrl.u32 %v17446_v56, 16  ;;  %v3891_v33 = vrot.slane %v3889_v16, 1  ;;  %v19119_v56 = vld [vmem:[%s17724_s14 + $0x40] sm:$0xf]  ;;  %v19132_v16 = vld [vmem:[%s17724_s14 + $0x48] sm:$0xf] }
 0x45f   : > { %13986 = vmatprep.mubr.msk.bf16.mxu0 %vm17649_vm1, %v22344_v31 }
 0x460   : > { %v3812_v21 = vsel %vm1645_vm4, %v3807_v49, %v3811_v10 }
 0x466   : > { %13987 = vmatmul.mubr.msk.bf16.gmra.mrb[12].mxu0 %vm500_vm2, %v3732_v43  ;;  %v3815_v43 = vor.u32 %v3813_v41, %v3811_v10  ;;  %v3893_v10 = vshrl.u32 %v17447_v20, 16  ;;  %v3899_v41 = vrot.slane %v3897_v5, 1 }
 0x467   : > { %13990 = vmatprep.mubr.msk.bf16.mxu0 %vm17649_vm1, %v22344_v31 }
 0x468   : > { %v3820_v54 = vsel %vm1645_vm4, %v3815_v43, %v3819_v47 }
 0x46e   : > { %13991 = vmatmul.mubr.msk.bf16.gmra.mrb[16].mxu0 %vm500_vm2, %v3740_v63  ;;  %v3823_v63 = vor.u32 %v3821_v39, %v3819_v47  ;;  %v3901_v47 = vshrl.u32 %v17448_v53, 16 }
 0x46f   : > { %13994 = vmatprep.mubr.msk.bf16.mxu0 %vm17649_vm1, %v22344_v31 }
 0x470   : > { %v3828_v17 = vsel %vm1645_vm4, %v3823_v63, %v3827_v57  ;;  %v3903_v39 = vor.u32 %v3901_v47, %v3899_v41  ;;  %v4304_v63 = vld [vmem:[%s17724_s14 + $0x20] sm:$0x8] }
 0x476   : > { %13995 = vmatmul.mubr.msk.bf16.gmra.mrb[20].mxu0 %vm500_vm2, %v3748_v15  ;;  %v3831_v15 = vor.u32 %v3829_v2, %v3827_v57  ;;  %v19075_v57 = vld [vmem:[%s17724_s14 + $0x24] sm:$0xf]  ;;  %v3909_v2 = vshrl.u32 %v17449_v59, 16  ;;  %v19144_v59 = vld [vmem:[%s17724_s14 + $0x50] sm:$0xf] }
 0x477   : > { %13998 = vmatprep.mubr.msk.bf16.mxu0 %vm17649_vm1, %v22344_v31 }
 0x478   : > { %v3836_v51 = vsel %vm1645_vm4, %v3831_v15, %v3835_v29  ;;  %v12483_v15 = vcombine.low %v4304_v63, %v19075_v57 }
 0x47a   : > { %v4500_v35 = vshrl.u32 %v12483_v15, 16 }
 0x47e   : > { %13999 = vmatmul.mubr.msk.bf16.gmra.mrb[24].mxu0 %vm500_vm2, %v3756_v40  ;;  %v3839_v40 = vor.u32 %v3837_v48, %v3835_v29  ;;  %v3908_v29 = vsel %vm1645_vm4, %v3903_v39, %v3907_v50 }
 0x47f   : > { %14002 = vmatprep.mubr.msk.bf16.mxu0 %vm17649_vm1, %v22344_v31 }
 0x480   : > { %v3844_v28 = vsel %vm1645_vm4, %v3839_v40, %v3843_v38  ;;  %v4503_v40 = vshll.u32 %v12483_v15, 16  ;;  %v19159_v15 = vld [vmem:[%s17724_s14 + $0x5c] sm:$0xf] }
 0x486   : > { %14003 = vmatmul.mubr.msk.bf16.gmra.mrb[28].mxu0 %vm500_vm2, %v3764_v36  ;;  %v3847_v36 = vor.u32 %v3845_v9, %v3843_v38  ;;  %v19094_v9 = vld [vmem:[%s17724_s14 + $0x34] sm:$0xf] }
 0x487   : > { %14006 = vmatprep.mubr.msk.bf16.mxu0 %vm17649_vm1, %v22344_v31 }
 0x488   : > { %v3852_v19 = vsel %vm1645_vm4, %v3847_v36, %v3851_v8  ;;  %v4502_v36 = vrot.slane %v4500_v35, 3 }
 0x48e   : > { %14007 = vmatmul.mubr.msk.bf16.gmra.mrb[32].mxu0 %vm500_vm2, %v3772_v23  ;;  %v3855_v23 = vor.u32 %v3853_v24, %v3851_v8  ;;  %v4505_v8 = vrot.slane %v4503_v40, 4 }
 0x48f   : > { %14010 = vmatprep.mubr.msk.bf16.mxu0 %vm17649_vm1, %v22344_v31 }
 0x490   : > { %v3860_v44 = vsel %vm1645_vm4, %v3855_v23, %v3859_v62  ;;  %v4506_v14 = vor.u32 %v4505_v8, %v4502_v36 }
 0x496   : > { %14011 = vmatmul.mubr.msk.bf16.gmra.mrb[36].mxu0 %vm500_vm2, %v3780_v32  ;;  %v3863_v32 = vor.u32 %v3861_v3, %v3859_v62  ;;  %v19106_v3 = vld [vmem:[%s17724_s14 + $0x3c] sm:$0xf] }
 0x497   : > { %14014 = vmatprep.mubr.msk.bf16.mxu0 %vm17649_vm1, %v22344_v31 }
 0x498   : > { %v3868_v13 = vsel %vm1645_vm4, %v3863_v32, %v3867_v11 }
 0x49e   : > { %14015 = vmatmul.mubr.msk.bf16.gmra.mrb[40].mxu0 %vm500_vm2, %v3788_v27  ;;  %v3871_v27 = vor.u32 %v3869_v18, %v3867_v11  ;;  %v5248_v18 = vsel %vm582_vm0, %v12538_v60, 0 }
 0x49f   : > { %14018 = vmatprep.mubr.msk.bf16.mxu0 %vm17649_vm1, %v22344_v31 }
 0x4a0   : > { %v3876_v42 = vsel %vm1645_vm4, %v3871_v27, %v3875_v34 }
 0x4a6   : > { %14019 = vmatmul.mubr.msk.bf16.gmra.mrb[44].mxu0 %vm500_vm2, %v3796_v22  ;;  %v3879_v22 = vor.u32 %v3877_v26, %v3875_v34 }
 0x4a7   : > { %14022 = vmatprep.mubr.msk.bf16.mxu0 %vm17649_vm1, %v22344_v31 }
 0x4a8   : > { %v3884_v0 = vsel %vm1645_vm4, %v3879_v22, %v3883_v25 }
 0x4ae   : > { %14023 = vmatmul.mubr.msk.bf16.gmra.mrb[48].mxu0 %vm500_vm2, %v3804_v58  ;;  %v3887_v58 = vor.u32 %v3885_v55, %v3883_v25 }
 0x4af   : > { %14026 = vmatprep.mubr.msk.bf16.mxu0 %vm17649_vm1, %v22344_v31 }
 0x4b0   : > { %v3892_v49 = vsel %vm1645_vm4, %v3887_v58, %v3891_v33  ;;  %v19135_v58 = vld [vmem:[%s17724_s14 + $0x4c] sm:$0xf] }
 0x4b6   : > { %14027 = vmatmul.mubr.msk.bf16.gmra.mrb[52].mxu0 %vm500_vm2, %v3812_v21  ;;  %v3895_v21 = vor.u32 %v3893_v10, %v3891_v33  ;;  %v12488_v10 = vcombine.low %v19132_v16, %v19135_v58 }
 0x4b7   : > { %14030 = vmatprep.mubr.msk.bf16.mxu0 %vm17649_vm1, %v22344_v31 }
 0x4b8   : > { %v3900_v43 = vsel %vm1645_vm4, %v3895_v21, %v3899_v41  ;;  %v4544_v21 = vshrl.u32 %v12488_v10, 16  ;;  %v4547_v41 = vshll.u32 %v12488_v10, 16 }
 0x4ba   : > { %v4546_v61 = vrot.slane %v4544_v21, 3 }
 0x4be   : > { %14031 = vmatmul.mubr.msk.bf16.gmra.mrb[56].mxu0 %vm500_vm2, %v3820_v54  ;;  %v17450_v54 = vld [vmem:[%s17724_s14 + $0xf0] ss:$0 sps:$4 sm:$0x11]  }
 0x4bf   : > { %14034 = vmatprep.mubr.msk.bf16.mxu0 %vm17649_vm1, %v22344_v31  ;;  %v3913_v4 = vshll.u32 %v17450_v54, 16  ;;  %v4549_v54 = vrot.slane %v4547_v41, 4 }
 0x4c1   : > { %v3915_v48 = vrot.slane %v3913_v4, 1  ;;  %v19156_v4 = vld [vmem:[%s17724_s14 + $0x58] sm:$0xf] }
 0x4c6   : > { %14035 = vmatmul.mubr.msk.bf16.gmra.mrb[60].mxu0 %vm500_vm2, %v3828_v17  ;;  %v19081_v17 = vld [vmem:[%s17724_s14 + $0x2c] sm:$0xf] }
 0x4c7   : > { %14038 = vmatprep.mubr.msk.bf16.mxu0 %vm17649_vm1, %v22344_v31  ;;  %v12484_v30 = vcombine.low %v19078_v1, %v19081_v17 }
 0x4c9   : > { %v4508_v38 = vshrl.u32 %v12484_v30, 16  ;;  %v4511_v52 = vshll.u32 %v12484_v30, 16 }
 0x4cb   : > { %v4510_v45 = vrot.slane %v4508_v38, 3 }
 0x4ce   : > { %14039 = vmatmul.mubr.msk.bf16.gmra.mrb[64].mxu0 %vm500_vm2, %v3836_v51  ;;  %v3911_v51 = vor.u32 %v3909_v2, %v3907_v50  ;;  %v4550_v50 = vor.u32 %v4549_v54, %v4546_v61  ;;  %v19216_v54 = vld [vmem:[%s17724_s14 + $0x80] sm:$0xf] }
 0x4cf   : > { %14042 = vmatprep.mubr.msk.bf16.mxu0 %vm17649_vm1, %v22344_v31 }
 0x4d0   : > { %v3916_v12 = vsel %vm1645_vm4, %v3911_v51, %v3915_v48  ;;  %v12490_v48 = vcombine.low %v19156_v4, %v19159_v15 }
 0x4d2   : > { %v4562_v40 = vshrl.u32 %v12490_v48, 16  ;;  %v4565_v38 = vshll.u32 %v12490_v48, 16 }
 0x4d4   : > { %v4564_v8 = vrot.slane %v4562_v40, 3  ;;  %v19231_v40 = vld [vmem:[%s17724_s14 + $0x8c] sm:$0xf] }
 0x4d6   : > { %14043 = vmatmul.mubr.msk.bf16.gmra.mrb[68].mxu0 %vm500_vm2, %v3844_v28  ;;  %v19091_v28 = vld [vmem:[%s17724_s14 + $0x30] sm:$0xf] }
 0x4d7   : > { %14046 = vmatprep.mubr.msk.bf16.mxu0 %vm17649_vm1, %v22344_v31  ;;  %v12485_v24 = vcombine.low %v19091_v28, %v19094_v9 }
 0x4d9   : > { %v4517_v62 = vshrl.u32 %v12485_v24, 16  ;;  %v4520_v7 = vshll.u32 %v12485_v24, 16 }
 0x4db   : > { %v4519_v11 = vrot.slane %v4517_v62, 3  ;;  %v4522_v6 = vrot.slane %v4520_v7, 4  ;;  %v19180_v62 = vld [vmem:[%s17724_s14 + $0x68] sm:$0xf]  ;;  %v19183_v7 = vld [vmem:[%s17724_s14 + $0x6c] sm:$0xf] }
 0x4dd   : > { %v4523_v37 = vor.u32 %v4522_v6, %v4519_v11  ;;  %v12492_v6 = vcombine.low %v19180_v62, %v19183_v7 }
 0x4de   : > { %14047 = vmatmul.mubr.msk.bf16.gmra.mrb[72].mxu0 %vm500_vm2, %v3852_v19  ;;  %v4513_v19 = vrot.slane %v4511_v52, 4  ;;  %v19168_v52 = vld [vmem:[%s17724_s14 + $0x60] sm:$0xf] }
 0x4df   : > { %14050 = vmatprep.mubr.msk.bf16.mxu0 %vm17649_vm1, %v22344_v31 }
 0x4e0   : > { %v4514_v23 = vor.u32 %v4513_v19, %v4510_v45  ;;  %v4567_v45 = vrot.slane %v4565_v38, 4 }
 0x4e2   : > { %v4515_v32 = vsel %vm865_vm3, %v4506_v14, %v4514_v23  ;;  %v4524_v26 = vsel %vm865_vm3, %v4514_v23, %v4523_v37  ;;  %v4568_v24 = vor.u32 %v4567_v45, %v4564_v8 }
 0x4e6   : > { %14051 = vmatmul.mubr.msk.bf16.gmra.mrb[76].mxu0 %vm500_vm2, %v3860_v44  ;;  %v19103_v44 = vld [vmem:[%s17724_s14 + $0x38] sm:$0xf] }
 0x4e7   : > { %14054 = vmatprep.mubr.msk.bf16.mxu0 %vm17649_vm1, %v22344_v31 }
 0x4ee   : > { %14055 = vmatmul.mubr.msk.bf16.gmra.mrb[80].mxu0 %vm500_vm2, %v3868_v13  ;;  %v12486_v13 = vcombine.low %v19103_v44, %v19106_v3 }
 0x4ef   : > { %14058 = vmatprep.mubr.msk.bf16.mxu0 %vm17649_vm1, %v22344_v31 }
 0x4f0   : > { %v4526_v27 = vshrl.u32 %v12486_v13, 16  ;;  %v4529_v34 = vshll.u32 %v12486_v13, 16 }
 0x4f2   : > { %v4528_v46 = vrot.slane %v4526_v27, 3  ;;  %v4531_v22 = vrot.slane %v4529_v34, 4  ;;  %v19192_v27 = vld [vmem:[%s17724_s14 + $0x70] sm:$0xf]  ;;  %v19195_v34 = vld [vmem:[%s17724_s14 + $0x74] sm:$0xf] }
 0x4f4   : > { %v4532_v20 = vor.u32 %v4531_v22, %v4528_v46 }
 0x4f6   : > { %14059 = vmatmul.mubr.msk.bf16.gmra.mrb[84].mxu0 %vm500_vm2, %v3876_v42  ;;  %v19122_v42 = vld [vmem:[%s17724_s14 + $0x44] sm:$0xf]  ;;  %v4533_v33 = vsel %vm865_vm3, %v4523_v37, %v4532_v20  ;;  %v4583_v37 = vshll.u32 %v12492_v6, 16 }
 0x4f7   : > { %14062 = vmatprep.mubr.msk.bf16.mxu0 %vm17649_vm1, %v22344_v31  ;;  %v12487_v25 = vcombine.low %v19119_v56, %v19122_v42 }
 0x4f8   : > { %v4585_v22 = vrot.slane %v4583_v37, 4 }
 0x4f9   : > { %v4538_v55 = vshll.u32 %v12487_v25, 16 }
 0x4fe   : > { %14063 = vmatmul.mubr.msk.bf16.gmra.mrb[88].mxu0 %vm500_vm2, %v3884_v0  ;;  %v4535_v0 = vshrl.u32 %v12487_v25, 16  ;;  %v12493_v25 = vcombine.low %v19192_v27, %v19195_v34 }
 0x4ff   : > { %14066 = vmatprep.mubr.msk.bf16.mxu0 %vm17649_vm1, %v22344_v31 }
 0x500   : > { %v4537_v53 = vrot.slane %v4535_v0, 3  ;;  %v4589_v0 = vshrl.u32 %v12493_v25, 16 }
 0x502   : > { %v4591_v10 = vrot.slane %v4589_v0, 3 }
 0x506   : > { %14067 = vmatmul.mubr.msk.bf16.gmra.mrb[92].mxu0 %vm500_vm2, %v3892_v49  ;;  %v4540_v49 = vrot.slane %v4538_v55, 4  ;;  %v4592_v55 = vshll.u32 %v12493_v25, 16 }
 0x507   : > { %14070 = vmatprep.mubr.msk.bf16.mxu0 %vm17649_vm1, %v22344_v31 }
 0x508   : > { %v4541_v5 = vor.u32 %v4540_v49, %v4537_v53  ;;  %v19207_v53 = vld [vmem:[%s17724_s14 + $0x7c] sm:$0xf] }
 0x50a   : > { %v4542_v47 = vsel %vm865_vm3, %v4532_v20, %v4541_v5 }
 0x50e   : > { %14071 = vmatmul.mubr.msk.bf16.gmra.mrb[96].mxu0 %vm500_vm2, %v3900_v43  ;;  %v19147_v43 = vld [vmem:[%s17724_s14 + $0x54] sm:$0xf] }
 0x50f   : > { %14074 = vmatprep.mubr.msk.bf16.mxu0 %vm17649_vm1, %v22344_v31  ;;  %v12489_v39 = vcombine.low %v19144_v59, %v19147_v43 }
 0x511   : > { %v4553_v63 = vshrl.u32 %v12489_v39, 16  ;;  %v4556_v2 = vshll.u32 %v12489_v39, 16  ;;  %v19219_v39 = vld [vmem:[%s17724_s14 + $0x84] sm:$0xf] }
 0x513   : > { %v4555_v30 = vrot.slane %v4553_v63, 3  ;;  %v4558_v51 = vrot.slane %v4556_v2, 4 }
 0x515   : > { %v4559_v35 = vor.u32 %v4558_v51, %v4555_v30 }
 0x516   : > { %14075 = vmatmul.mubr.msk.bf16.gmra.mrb[100].mxu0 %vm500_vm2, %v3908_v29  ;;  %v4551_v29 = vsel %vm865_vm3, %v4541_v5, %v4550_v50  ;;  %v4594_v5 = vrot.slane %v4592_v55, 4 }
 0x517   : > { %14078 = vmatprep.mubr.msk.bf16.mxu0 %vm17649_vm1, %v22344_v31  ;;  %v4560_v36 = vsel %vm865_vm3, %v4550_v50, %v4559_v35  ;;  %v4569_v60 = vsel %vm865_vm3, %v4559_v35, %v4568_v24  ;;  %v19228_v35 = vld [vmem:[%s17724_s14 + $0x88] sm:$0xf] }
 0x518   : > { %v4595_v41 = vor.u32 %v4594_v5, %v4591_v10  ;;  %v12496_v45 = vcombine.low %v19228_v35, %v19231_v40 }
 0x51e   : > { %14079 = vmatmul.mubr.msk.bf16.gmra.mrb[104].mxu0 %vm500_vm2, %v3916_v12  ;;  %v19171_v12 = vld [vmem:[%s17724_s14 + $0x64] sm:$0xf] }
 0x51f   : > { %14084 = vmatprep.mubr.msk.bf16.mxu0 %vm17649_vm1, %v22344_v31  ;;  %v12491_v19 = vcombine.low %v19168_v52, %v19171_v12 }
 0x521   : > { %v4571_v14 = vshrl.u32 %v12491_v19, 16  ;;  %v4574_v23 = vshll.u32 %v12491_v19, 16 }
 0x523   : > { %v4576_v11 = vrot.slane %v4574_v23, 4  ;;  %v19240_v23 = vld [vmem:[%s17724_s14 + $0x90] sm:$0xf] }
 0x526   : > { %14085 = vmatmul.mubr.msk.bf16.vlgmr.msra.gmra.mrb[0].mxu0 %vm500_vm2, %v4515_v32  ;;  %v4573_v32 = vrot.slane %v4571_v14, 3  ;;  %v4619_v14 = vshll.u32 %v12496_v45, 16 }
 0x527   : > { %14193 = vmatpush3.bf16.msra.mxu0 %v5248_v18  ;;  %14088 = vmatprep.mubr.msk.bf16.mxu0 %vm17649_vm1, %v22344_v31  ;;  %v4580_v18 = vshrl.u32 %v12492_v6, 16 }
 0x528   : > { %14302 = vmatprep.subr.bf16.mxu0 %v22344_v31  ;;  %v4577_v13 = vor.u32 %v4576_v11, %v4573_v32  ;;  %v4621_v6 = vrot.slane %v4619_v14, 4 }
 0x529   : > { %v4582_v46 = vrot.slane %v4580_v18, 3 }
 0x52b   : > { %v4586_v20 = vor.u32 %v4585_v22, %v4582_v46  ;;  %v19252_v46 = vld [vmem:[%s17724_s14 + $0x98] sm:$0xf]  ;;  %v19255_v22 = vld [vmem:[%s17724_s14 + $0x9c] sm:$0xf] }
 0x52c   : > { %v12498_v55 = vcombine.low %v19252_v46, %v19255_v22 }
 0x52d   : > { %v4587_v49 = vsel %vm865_vm3, %v4577_v13, %v4586_v20  ;;  %v4596_v50 = vsel %vm865_vm3, %v4586_v20, %v4595_v41 }
 0x52e   : > { %14089 = vmatmul.mubr.msk.bf16.gmra.mrb[4].mxu0 %vm500_vm2, %v4524_v26  ;;  %v4578_v26 = vsel %vm865_vm3, %v4568_v24, %v4577_v13  ;;  %v4616_v24 = vshrl.u32 %v12496_v45, 16  ;;  %v4634_v10 = vshrl.u32 %v12498_v55, 16  ;;  %v4637_v5 = vshll.u32 %v12498_v55, 16  ;;  %v19303_v55 = vld [vmem:[%s17724_s14 + $0xbc] sm:$0xf] }
 0x52f   : > { %14092 = vmatprep.mubr.msk.bf16.mxu0 %vm17649_vm1, %v22344_v31 }
 0x530   : > { %v4618_v11 = vrot.slane %v4616_v24, 3 }
 0x532   : > { %v4622_v18 = vor.u32 %v4621_v6, %v4618_v11  ;;  %v19291_v11 = vld [vmem:[%s17724_s14 + $0xb4] sm:$0xf] }
 0x536   : > { %14093 = vmatmul.mubr.msk.bf16.gmra.mrb[8].mxu0 %vm500_vm2, %v4533_v33  ;;  %v19204_v33 = vld [vmem:[%s17724_s14 + $0x78] sm:$0xf] }
 0x537   : > { %14096 = vmatprep.mubr.msk.bf16.mxu0 %vm17649_vm1, %v22344_v31  ;;  %v12494_v21 = vcombine.low %v19204_v33, %v19207_v53 }
 0x539   : > { %v4601_v61 = vshll.u32 %v12494_v21, 16 }
 0x53b   : > { %v4603_v2 = vrot.slane %v4601_v61, 4  ;;  %v4636_v61 = vrot.slane %v4634_v10, 3 }
 0x53e   : > { %14097 = vmatmul.mubr.msk.bf16.gmra.mrb[12].mxu0 %vm500_vm2, %v4542_v47  ;;  %v4598_v47 = vshrl.u32 %v12494_v21, 16  ;;  %v19264_v21 = vld [vmem:[%s17724_s14 + $0xa0] sm:$0xf] }
 0x53f   : > { %14100 = vmatprep.mubr.msk.bf16.mxu0 %vm17649_vm1, %v22344_v31 }
 0x540   : > { %v4600_v63 = vrot.slane %v4598_v47, 3 }
 0x542   : > { %v4604_v30 = vor.u32 %v4603_v2, %v4600_v63 }
 0x544   : > { %v4605_v38 = vsel %vm865_vm3, %v4595_v41, %v4604_v30  ;;  %v19267_v41 = vld [vmem:[%s17724_s14 + $0xa4] sm:$0xf] }
 0x545   : > { %v12499_v63 = vcombine.low %v19264_v21, %v19267_v41 }
 0x546   : > { %14101 = vmatmul.mubr.msk.bf16.gmra.mrb[16].mxu0 %vm500_vm2, %v4551_v29  ;;  %v12495_v29 = vcombine.low %v19216_v54, %v19219_v39 }
 0x547   : > { %14104 = vmatprep.mubr.msk.bf16.mxu0 %vm17649_vm1, %v22344_v31 }
 0x548   : > { %v4607_v51 = vshrl.u32 %v12495_v29, 16  ;;  %v4610_v48 = vshll.u32 %v12495_v29, 16  ;;  %v4643_v29 = vshrl.u32 %v12499_v63, 16 }
 0x54a   : > { %v4612_v8 = vrot.slane %v4610_v48, 4  ;;  %v19279_v48 = vld [vmem:[%s17724_s14 + $0xac] sm:$0xf] }
 0x54e   : > { %14105 = vmatmul.mubr.msk.bf16.gmra.mrb[20].mxu0 %vm500_vm2, %v4560_v36  ;;  %v4609_v36 = vrot.slane %v4607_v51, 3  ;;  %v19276_v51 = vld [vmem:[%s17724_s14 + $0xa8] sm:$0xf] }
 0x54f   : > { %14108 = vmatprep.mubr.msk.bf16.mxu0 %vm17649_vm1, %v22344_v31  ;;  %v12500_v45 = vcombine.low %v19276_v51, %v19279_v48 }
 0x550   : > { %v4613_v19 = vor.u32 %v4612_v8, %v4609_v36  ;;  %v4645_v36 = vrot.slane %v4643_v29, 3  ;;  %v19315_v29 = vld [vmem:[%s17724_s14 + $0xc4] sm:$0xf] }
 0x551   : > { %v4652_v24 = vshrl.u32 %v12500_v45, 16  ;;  %v4655_v14 = vshll.u32 %v12500_v45, 16 }
 0x552   : > { %v4614_v32 = vsel %vm865_vm3, %v4604_v30, %v4613_v19  ;;  %v4623_v25 = vsel %vm865_vm3, %v4613_v19, %v4622_v18  ;;  %v4646_v30 = vshll.u32 %v12499_v63, 16 }
 0x554   : > { %v4648_v8 = vrot.slane %v4646_v30, 4 }
 0x556   : > { %14109 = vmatmul.mubr.msk.bf16.gmra.mrb[24].mxu0 %vm500_vm2, %v4569_v60  ;;  %v19243_v60 = vld [vmem:[%s17724_s14 + $0x94] sm:$0xf]  ;;  %v4649_v19 = vor.u32 %v4648_v8, %v4645_v36 }
 0x557   : > { %14112 = vmatprep.mubr.msk.bf16.mxu0 %vm17649_vm1, %v22344_v31  ;;  %v12497_v13 = vcombine.low %v19240_v23, %v19243_v60 }
 0x559   : > { %v4625_v37 = vshrl.u32 %v12497_v13, 16 }
 0x55b   : > { %v4627_v20 = vrot.slane %v4625_v37, 3 }
 0x55e   : > { %14113 = vmatmul.mubr.msk.bf16.gmra.mrb[28].mxu0 %vm500_vm2, %v4578_v26  ;;  %v4628_v26 = vshll.u32 %v12497_v13, 16  ;;  %v4654_v13 = vrot.slane %v4652_v24, 3 }
 0x55f   : > { %14116 = vmatprep.mubr.msk.bf16.mxu0 %vm17649_vm1, %v22344_v31 }
 0x560   : > { %v4630_v0 = vrot.slane %v4628_v26, 4 }
 0x566   : > { %14117 = vmatmul.mubr.msk.bf16.gmra.mrb[32].mxu0 %vm500_vm2, %v4587_v49  ;;  %v4631_v49 = vor.u32 %v4630_v0, %v4627_v20  ;;  %v19300_v0 = vld [vmem:[%s17724_s14 + $0xb8] sm:$0xf] }
 0x567   : > { %14120 = vmatprep.mubr.msk.bf16.mxu0 %vm17649_vm1, %v22344_v31 }
 0x568   : > { %v4632_v47 = vsel %vm865_vm3, %v4622_v18, %v4631_v49  ;;  %v4657_v18 = vrot.slane %v4655_v14, 4  ;;  %v19324_v14 = vld [vmem:[%s17724_s14 + $0xc8] sm:$0xf] }
 0x56a   : > { %v4658_v26 = vor.u32 %v4657_v18, %v4654_v13 }
 0x56e   : > { %14121 = vmatmul.mubr.msk.bf16.gmra.mrb[36].mxu0 %vm500_vm2, %v4596_v50  ;;  %v4639_v50 = vrot.slane %v4637_v5, 4 }
 0x56f   : > { %14124 = vmatprep.mubr.msk.bf16.mxu0 %vm17649_vm1, %v22344_v31 }
 0x570   : > { %v4640_v2 = vor.u32 %v4639_v50, %v4636_v61 }
 0x572   : > { %v4650_v6 = vsel %vm865_vm3, %v4640_v2, %v4649_v19 }
 0x576   : > { %14125 = vmatmul.mubr.msk.bf16.gmra.mrb[40].mxu0 %vm500_vm2, %v4605_v38  ;;  %v4641_v38 = vsel %vm865_vm3, %v4631_v49, %v4640_v2  ;;  %v4659_v49 = vsel %vm865_vm3, %v4649_v19, %v4658_v26  ;;  %v19312_v2 = vld [vmem:[%s17724_s14 + $0xc0] sm:$0xf] }
 0x577   : > { %14128 = vmatprep.mubr.msk.bf16.mxu0 %vm17649_vm1, %v22344_v31  ;;  %v12503_v8 = vcombine.low %v19312_v2, %v19315_v29 }
 0x579   : > { %v4679_v19 = vshrl.u32 %v12503_v8, 16  ;;  %v4682_v24 = vshll.u32 %v12503_v8, 16  ;;  %v19348_v8 = vld [vmem:[%s17724_s14 + $0xd8] sm:$0xf] }
 0x57b   : > { %v4681_v18 = vrot.slane %v4679_v19, 3  ;;  %v19351_v19 = vld [vmem:[%s17724_s14 + $0xdc] sm:$0xf] }
 0x57c   : > { %22361 = vst [vmem:[#allocation4_spill] sm:$0xff] %v19351_v19 }
 0x57e   : > { %14129 = vmatmul.mubr.msk.bf16.gmra.mrb[44].mxu0 %vm500_vm2, %v4614_v32  ;;  %v19288_v32 = vld [vmem:[%s17724_s14 + $0xb0] sm:$0xf] }
 0x57f   : > { %14132 = vmatprep.mubr.msk.bf16.mxu0 %vm17649_vm1, %v22344_v31  ;;  %v12501_v37 = vcombine.low %v19288_v32, %v19291_v11 }
 0x581   : > { %v4664_v20 = vshll.u32 %v12501_v37, 16 }
 0x583   : > { %v4666_v5 = vrot.slane %v4664_v20, 4 }
 0x586   : > { %14133 = vmatmul.mubr.msk.bf16.gmra.mrb[48].mxu0 %vm500_vm2, %v4623_v25  ;;  %v4661_v25 = vshrl.u32 %v12501_v37, 16  ;;  %v4684_v37 = vrot.slane %v4682_v24, 4 }
 0x587   : > { %14136 = vmatprep.mubr.msk.bf16.mxu0 %vm17649_vm1, %v22344_v31 }
 0x588   : > { %v4663_v10 = vrot.slane %v4661_v25, 3  ;;  %v4685_v25 = vor.u32 %v4684_v37, %v4681_v18  ;;  %v12506_v18 = vcombine.low %v19348_v8, %v19351_v19 }
 0x58a   : > { %v4667_v61 = vor.u32 %v4666_v5, %v4663_v10  ;;  %v19336_v10 = vld [vmem:[%s17724_s14 + $0xd0] sm:$0xf]  ;;  %v19339_v5 = vld [vmem:[%s17724_s14 + $0xd4] sm:$0xf] }
 0x58c   : > { %v4668_v30 = vsel %vm865_vm3, %v4658_v26, %v4667_v61 }
 0x58e   : > { %14137 = vmatmul.mubr.msk.bf16.gmra.mrb[52].mxu0 %vm500_vm2, %v4632_v47  ;;  %v12502_v47 = vcombine.low %v19300_v0, %v19303_v55 }
 0x58f   : > { %14140 = vmatprep.mubr.msk.bf16.mxu0 %vm17649_vm1, %v22344_v31 }
 0x590   : > { %v4670_v50 = vshrl.u32 %v12502_v47, 16  ;;  %v4673_v63 = vshll.u32 %v12502_v47, 16 }
 0x592   : > { %v4675_v36 = vrot.slane %v4673_v63, 4  ;;  %v12505_v63 = vcombine.low %v19336_v10, %v19339_v5 }
 0x596   : > { %14141 = vmatmul.mubr.msk.bf16.gmra.mrb[56].mxu0 %vm500_vm2, %v4641_v38  ;;  %v4672_v38 = vrot.slane %v4670_v50, 3 }
 0x597   : > { %14144 = vmatprep.mubr.msk.bf16.mxu0 %vm17649_vm1, %v22344_v31 }
 0x598   : > { %v4676_v45 = vor.u32 %v4675_v36, %v4672_v38  ;;  %v4697_v38 = vshrl.u32 %v12505_v63, 16  ;;  %v4700_v36 = vshll.u32 %v12505_v63, 16 }
 0x59a   : > { %v4677_v13 = vsel %vm865_vm3, %v4667_v61, %v4676_v45  ;;  %v4686_v47 = vsel %vm865_vm3, %v4676_v45, %v4685_v25  ;;  %v4699_v24 = vrot.slane %v4697_v38, 3 }
 0x59e   : > { %14145 = vmatmul.mubr.msk.bf16.gmra.mrb[60].mxu0 %vm500_vm2, %v4650_v6  ;;  %v19327_v6 = vld [vmem:[%s17724_s14 + $0xcc] sm:$0xf] }
 0x59f   : > { %14148 = vmatprep.mubr.msk.bf16.mxu0 %vm17649_vm1, %v22344_v31  ;;  %v12504_v26 = vcombine.low %v19324_v14, %v19327_v6 }
 0x5a1   : > { %v4688_v20 = vshrl.u32 %v12504_v26, 16 }
 0x5a3   : > { %v4690_v61 = vrot.slane %v4688_v20, 3  ;;  %v4709_v20 = vshll.u32 %v12506_v18, 16 }
 0x5a6   : > { %14149 = vmatmul.mubr.msk.bf16.gmra.mrb[64].mxu0 %vm500_vm2, %v4659_v49  ;;  %v4691_v49 = vshll.u32 %v12504_v26, 16  ;;  %v4706_v26 = vshrl.u32 %v12506_v18, 16 }
 0x5a7   : > { %14152 = vmatprep.mubr.msk.bf16.mxu0 %vm17649_vm1, %v22344_v31 }
 0x5a8   : > { %v4693_v50 = vrot.slane %v4691_v49, 4  ;;  %v19360_v49 = vld [vmem:[%s17724_s14 + $0xe0] sm:$0xf] }
 0x5a9   : > { %22362 = vst [vmem:[#allocation3_spill] sm:$0xff] %v19360_v49 }
 0x5ae   : > { %14153 = vmatmul.mubr.msk.bf16.gmra.mrb[68].mxu0 %vm500_vm2, %v4668_v30  ;;  %v4694_v30 = vor.u32 %v4693_v50, %v4690_v61  ;;  %v4708_v61 = vrot.slane %v4706_v26, 3  ;;  %v4711_v50 = vrot.slane %v4709_v20, 4 }
 0x5af   : > { %14156 = vmatprep.mubr.msk.bf16.mxu0 %vm17649_vm1, %v22344_v31 }
 0x5b0   : > { %v4695_v45 = vsel %vm865_vm3, %v4685_v25, %v4694_v30  ;;  %v4712_v38 = vor.u32 %v4711_v50, %v4708_v61 }
 0x5b6   : > { %14157 = vmatmul.mubr.msk.bf16.gmra.mrb[72].mxu0 %vm500_vm2, %v4677_v13  ;;  %v4702_v13 = vrot.slane %v4700_v36, 4 }
 0x5b7   : > { %14160 = vmatprep.mubr.msk.bf16.mxu0 %vm17649_vm1, %v22344_v31 }
 0x5b8   : > { %v4703_v37 = vor.u32 %v4702_v13, %v4699_v24  ;;  %v19372_v24 = vld [vmem:[%s17724_s14 + $0xe8] sm:$0xf]  ;;  %v19375_v13 = vld [vmem:[%s17724_s14 + $0xec] sm:$0xf] }
 0x5b9   : > { %22364 = vst [vmem:[#allocation5_spill] sm:$0xff] %v19372_v24  ;;  %22365 = vst [vmem:[#allocation7_spill] sm:$0xff] %v19375_v13  ;;  %v12508_v20 = vcombine.low %v19372_v24, %v19375_v13 }
 0x5ba   : > { %v4704_v25 = vsel %vm865_vm3, %v4694_v30, %v4703_v37  ;;  %v4713_v30 = vsel %vm865_vm3, %v4703_v37, %v4712_v38 }
 0x5bb   : > { %v4724_v61 = vshrl.u32 %v12508_v20, 16  ;;  %v4727_v50 = vshll.u32 %v12508_v20, 16  ;;  %v19396_v20 = vld [vmem:[%s17724_s14 + $0xf8] sm:$0xf] }
 0x5be   : > { %14161 = vmatmul.mubr.msk.bf16.gmra.mrb[76].mxu0 %vm500_vm2, %v4686_v47  ;;  %v19363_v47 = vld [vmem:[%s17724_s14 + $0xe4] sm:$0xf] }
 0x5bf   : > { %14164 = vmatprep.mubr.msk.bf16.mxu0 %vm17649_vm1, %v22344_v31  ;;  %22363 = vst [vmem:[#allocation6_spill] sm:$0xff] %v19363_v47  ;;  %v12507_v63 = vcombine.low %v19360_v49, %v19363_v47  ;;  %v19387_v47 = vld [vmem:[%s17724_s14 + $0xf4] sm:$0xf] }
 0x5c1   : > { %v4715_v36 = vshrl.u32 %v12507_v63, 16 }
 0x5c3   : > { %v4717_v18 = vrot.slane %v4715_v36, 3  ;;  %v4726_v36 = vrot.slane %v4724_v61, 3 }
 0x5c6   : > { %14165 = vmatmul.mubr.msk.bf16.gmra.mrb[80].mxu0 %vm500_vm2, %v4695_v45  ;;  %v4718_v45 = vshll.u32 %v12507_v63, 16  ;;  %v19384_v63 = vld [vmem:[%s17724_s14 + $0xf0] sm:$0xf] }
 0x5c7   : > { %14168 = vmatprep.mubr.msk.bf16.mxu0 %vm17649_vm1, %v22344_v31  ;;  %v12509_v13 = vcombine.low %v19384_v63, %v19387_v47 }
 0x5c8   : > { %v4720_v26 = vrot.slane %v4718_v45, 4  ;;  %v4729_v45 = vrot.slane %v4727_v50, 4 }
 0x5ce   : > { %14169 = vmatmul.mubr.msk.bf16.gmra.mrb[84].mxu0 %vm500_vm2, %v4704_v25  ;;  %v4721_v25 = vor.u32 %v4720_v26, %v4717_v18  ;;  %v4733_v18 = vshrl.u32 %v12509_v13, 16  ;;  %v4736_v26 = vshll.u32 %v12509_v13, 16 }
 0x5cf   : > { %14172 = vmatprep.mubr.msk.bf16.mxu0 %vm17649_vm1, %v22344_v31 }
 0x5d0   : > { %v4722_v37 = vsel %vm865_vm3, %v4712_v38, %v4721_v25  ;;  %v4735_v19 = vrot.slane %v4733_v18, 3  ;;  %v4738_v49 = vrot.slane %v4736_v26, 4  ;;  %v12510_v38 = vcombine.low %v19396_v20, %v19396_v20  ;;  %v6542_v26 = vld [vmem:[%s22192_s1 + $0x58] sm:$0xff] }
 0x5d2   : > { %v4739_v61 = vor.u32 %v4738_v49, %v4735_v19  ;;  %v4742_v50 = vshrl.u32 %v12510_v38, 16  ;;  %v12593_v19 = vld [vmem:[%s22193_s2 + $0x10] sm:$0x3]  ;;  %v12539_v49 = vcombine.low %v19075_v57, %v19078_v1  ;;  %v12541_v57 = vcombine.low %v19094_v9, %v19103_v44 }
 0x5d3   : > { %v12542_v1 = vcombine.low %v19106_v3, %v19119_v56  ;;  %v12545_v9 = vcombine.low %v19147_v43, %v19156_v4  ;;  %v12546_v44 = vcombine.low %v19159_v15, %v19168_v52  ;;  %v12547_v3 = vcombine.low %v19171_v12, %v19180_v62  ;;  %v6535_v43 = vld [vmem:[%s22192_s1 + $0x20] sm:$0xff]  ;;  %v6534_v15 = vld [vmem:[%s22192_s1 + $0x18] sm:$0xff]  ;;  %v6537_v52 = vld [vmem:[%s22192_s1 + $0x30] sm:$0xff] }
 0x5d4   : > { %v4744_v13 = vrot.slane %v4742_v50, 3  ;;  %v22233_v56 = vmov 0   ;;  %v12549_v4 = vcombine.low %v19195_v34, %v19204_v33  ;;  %v6536_v12 = vld [vmem:[%s22192_s1 + $0x28] sm:$0xff]  ;;  %v6539_v62 = vld [vmem:[%s22192_s1 + $0x40] sm:$0xff]  ;;  %v6541_v34 = vld [vmem:[%s22192_s1 + $0x50] sm:$0xff] }
 0x5d5   : > { %17283 = vset.pattern.permute.xlu0 %v22233_v56  ;;  %6909 = vst [vmem:[#allocation2] sm:$0xff] %v22233_v56  ;;  %6910 = vst [vmem:[#allocation2 + $0x8] sm:$0xff] %v22233_v56  ;;  %17284 = vset.pattern.permute.xlu1 %v22233_v56  ;;  %v6540_v33 = vld [vmem:[%s22192_s1 + $0x48] sm:$0xff]  ;;  %v6546_v50 = vld [vmem:[%s22192_s1 + $0x78] sm:$0xff] }
 0x5d6   : > { %14173 = vmatmul.mubr.msk.bf16.gmra.mrb[88].mxu0 %vm500_vm2, %v4713_v30  ;;  %v4730_v30 = vor.u32 %v4729_v45, %v4726_v36  ;;  %6911 = vst [vmem:[#allocation2 + $0x10] sm:$0xff] %v22233_v56  ;;  %6912 = vst [vmem:[#allocation2 + $0xf0] sm:$0xff] %v22233_v56 }
 0x5d7   : > { %14176 = vmatprep.mubr.msk.bf16.mxu0 %vm17649_vm1, %v22344_v31  ;;  %6913 = vst [vmem:[#allocation2 + $0xf8] sm:$0xff] %v22233_v56 }
 0x5d8   : > { %v4731_v24 = vsel %vm865_vm3, %v4721_v25, %v4730_v30  ;;  %v4740_v36 = vsel %vm865_vm3, %v4730_v30, %v4739_v61  ;;  %v12540_v30 = vcombine.low %v19081_v17, %v19091_v28  ;;  %v12543_v17 = vcombine.low %v19122_v42, %v19132_v16  ;;  %v6531_v42 = vld [vmem:[%s22192_s1] sm:$0xff] }
 0x5d9   : > { %v12544_v28 = vcombine.low %v19135_v58, %v19144_v59  ;;  %6587 = vperm.xlu0 %17283, %v6531_v42   ;;  %v12548_v16 = vcombine.low %v19183_v7, %v19192_v27  ;;  %v6532_v58 = vld [vmem:[%s22192_s1 + $0x8] sm:$0xff]  ;;  %v6533_v59 = vld [vmem:[%s22192_s1 + $0x10] sm:$0xff]  ;;  %v12550_v7 = vcombine.low %v19207_v53, %v19216_v54  ;;  %v6538_v27 = vld [vmem:[%s22192_s1 + $0x38] sm:$0xff]  ;;  %v12551_v54 = vcombine.low %v19219_v39, %v19228_v35 }
 0x5da   : > { %6597 = vperm.xlu1 %17284, %v6533_v59   ;;  %v6543_v53 = vld [vmem:[%s22192_s1 + $0x60] sm:$0xff]  ;;  %v6544_v39 = vld [vmem:[%s22192_s1 + $0x68] sm:$0xff]  ;;  %v6570_v42 = vld [vmem:[%s22192_s1 + $0x138] sm:$0xff] }
 0x5db   : > { %v6547_v35 = vld [vmem:[%s22192_s1 + $0x80] sm:$0xff]  ;;  %v6574_v59 = vld [vmem:[%s22192_s1 + $0x158] sm:$0xff] }
 0x5dd   : > { %6592 = vperm.xlu0 %17283, %v6532_v58   ;;  %v12559_v58 = vcombine.low %v19315_v29, %v19324_v14  ;;  %v6576_v29 = vld [vmem:[%s22192_s1 + $0x168] sm:$0xff]  ;;  %v6579_v14 = vld [vmem:[%s22192_s1 + $0x180] sm:$0xff] }
 0x5de   : > { %14177 = vmatmul.mubr.msk.bf16.gmra.mrb[92].mxu0 %vm500_vm2, %v4722_v37  ;;  %v4745_v37 = vshll.u32 %v12510_v38, 16  ;;  %6602 = vperm.xlu1 %17284, %v6534_v15   ;;  %v6545_v38 = vld [vmem:[%s22192_s1 + $0x70] sm:$0xff]  ;;  %v6578_v15 = vld [vmem:[%s22192_s1 + $0x178] sm:$0xff] }
 0x5df   : > { %14180 = vmatprep.mubr.msk.bf16.mxu0 %vm17649_vm1, %v22344_v31 }
 0x5e0   : > { %v4747_v45 = vrot.slane %v4745_v37, 4  ;;  %v6549_v37 = vld [vmem:[%s22192_s1 + $0x90] sm:$0xff] }
 0x5e1   : > { %6607 = vperm.xlu0 %17283, %v6535_v43   ;;  %v6577_v43 = vld [vmem:[%s22192_s1 + $0x170] sm:$0xff] }
 0x5e2   : > { %v4748_v25 = vor.u32 %v4747_v45, %v4744_v13  ;;  %6612 = vperm.xlu1 %17284, %v6536_v12   ;;  %v6550_v13 = vld [vmem:[%s22192_s1 + $0x98] sm:$0xff]  ;;  %v6553_v45 = vld [vmem:[%s22192_s1 + $0xb0] sm:$0xff]  ;;  %v12561_v12 = vcombine.low %v19339_v5, %v19348_v8 }
 0x5e3   : > { %v22367_v5 = vld [vmem:[#allocation4_spill] sm:$0xff] }
 0x5e4   : > { %v4749_v18 = vsel %vm865_vm3, %v4739_v61, %v4748_v25  ;;  %v12552_v61 = vcombine.low %v19231_v40, %v19240_v23  ;;  %v6548_v40 = vld [vmem:[%s22192_s1 + $0x88] sm:$0xff]  ;;  %v6551_v23 = vld [vmem:[%s22192_s1 + $0xa0] sm:$0xff]  ;;  %v12554_v25 = vcombine.low %v19255_v22, %v19264_v21 }
 0x5e5   : > { %6617 = vperm.xlu0 %17283, %v6537_v52   ;;  %v6556_v22 = vld [vmem:[%s22192_s1 + $0xc8] sm:$0xff]  ;;  %v6559_v21 = vld [vmem:[%s22192_s1 + $0xe0] sm:$0xff]  ;;  %v6581_v52 = vld [vmem:[%s22192_s1 + $0x190] sm:$0xff] }
 0x5e6   : > { %14181 = vmatmul.mubr.msk.bf16.gmra.mrb[96].mxu0 %vm500_vm2, %v4731_v24  ;;  %v6050_v24 = vsel %vm582_vm0, %v12593_v19, 0  ;;  %6622 = vperm.xlu1 %17284, %v6538_v27   ;;  %v6557_v19 = vld [vmem:[%s22192_s1 + $0xd0] sm:$0xff]  ;;  %v22366_v27 = vld [vmem:[#allocation3_spill] sm:$0xff] }
 0x5e7   : > { %14184 = vmatprep.mubr.msk.bf16.mxu0 %vm17649_vm1, %v22344_v31  ;;  %v12562_v8 = vcombine.low %v22367_v5, %v22366_v27 }
 0x5e9   : > { %6627 = vperm.xlu0 %17283, %v6539_v62   ;;  %v6582_v62 = vld [vmem:[%s22192_s1 + $0x198] sm:$0xff] }
 0x5ea   : > { %6632 = vperm.xlu1 %17284, %v6540_v33   ;;  %v22369_v33 = vld [vmem:[#allocation6_spill] sm:$0xff] }
 0x5ed   : > { %6637 = vperm.xlu0 %17283, %v6541_v34   ;;  %v22368_v34 = vld [vmem:[#allocation5_spill] sm:$0xff] }
 0x5ee   : > { %14185 = vmatmul.mubr.msk.bf16.gmra.mrb[100].mxu0 %vm500_vm2, %v4740_v36  ;;  %6642 = vperm.xlu1 %17284, %v6542_v26   ;;  %v12553_v36 = vcombine.low %v19243_v60, %v19252_v46  ;;  %v6552_v60 = vld [vmem:[%s22192_s1 + $0xa8] sm:$0xff]  ;;  %v6555_v46 = vld [vmem:[%s22192_s1 + $0xc0] sm:$0xff] }
 0x5ef   : > { %14188 = vmatprep.mubr.msk.bf16.mxu0 %vm17649_vm1, %v22344_v31 }
 0x5f1   : > { %6647 = vperm.xlu0 %17283, %v6543_v53   ;;  %v12563_v53 = vcombine.low %v22369_v33, %v22368_v34  ;;  %v17516_v34 = vld [vmem:[%s17724_s14 + $0x74] sm:$0xff]  }
 0x5f2   : > { %6652 = vperm.xlu1 %17284, %v6544_v39   ;;  %v17507_v39 = vld [vmem:[%s17724_s14 + $0x2c] sm:$0xff]  }
 0x5f5   : > { %6657 = vperm.xlu0 %17283, %v6545_v38   ;;  %v17506_v38 = vld [vmem:[%s17724_s14 + $0x24] sm:$0xff]  }
 0x5f6   : > { %14189 = vmatmul.mubr.msk.bf16.gmra.mrb[104].mxu0 %vm500_vm2, %v4749_v18  ;;  %6662 = vperm.xlu1 %17284, %v6546_v50   ;;  %v6554_v18 = vld [vmem:[%s22192_s1 + $0xb8] sm:$0xff]  ;;  %v5749_v50 = vshrl.u32 %v17506_v38, 16 }
 0x5f7   : > { %14194 = vmatprep.mubr.msk.bf16.mxu0 %vm17649_vm1, %v22344_v31 }
 0x5f9   : > { %6667 = vperm.xlu0 %17283, %v6547_v35   ;;  %v5751_v35 = vshll.u32 %v17506_v38, 16 }
 0x5fa   : > { %6672 = vperm.xlu1 %17284, %v6548_v40   ;;  %v5756_v40 = vshll.u32 %v17507_v39, 16 }
 0x5fd   : > { %6677 = vperm.xlu0 %17283, %v6549_v37   ;;  %v5753_v37 = vrot.slane %v5751_v35, 1  ;;  %v17533_v35 = vld [vmem:[%s22196_s5 + $0x40] sm:$0xff]  }
 0x5fe   : > { %14195 = vmatmul.mubr.msk.bf16.vlgmr.msra.gmra.mrb[0].mxu0 %vm500_vm2, %v12539_v49  ;;  %6682 = vperm.xlu1 %17284, %v6550_v13   ;;  %v12555_v49 = vcombine.low %v19267_v41, %v19276_v51  ;;  %v6560_v41 = vld [vmem:[%s22192_s1 + $0xe8] sm:$0xff]  ;;  %v6563_v51 = vld [vmem:[%s22192_s1 + $0x100] sm:$0xff] }
 0x5ff   : > { %14303 = vmatpush3.bf16.msra.mxu0 %v6050_v24  ;;  %14198 = vmatprep.mubr.msk.bf16.mxu0 %vm17649_vm1, %v22344_v31  ;;  %v6558_v24 = vld [vmem:[%s22192_s1 + $0xd8] sm:$0xff] }
 0x600   : > { %14412 = vmatprep.subr.bf16.mxu0 %v22344_v31  ;;  %15536 = vmatpush3.bf16.msra.mxu1 %v17533_v35 }
 0x601   : > { %6687 = vperm.xlu0 %17283, %v6551_v23   ;;  %v5758_v23 = vrot.slane %v5756_v40, 1  ;;  %15529 = vmatprep.subr.bf16.mxu1 %v22344_v31  ;;  %v17534_v40 = vld [vmem:[%s22196_s5 + $0x48] sm:$0xff]  }
 0x602   : > { %6692 = vperm.xlu1 %17284, %v6552_v60  }
 0x604   : > { %15537 = vmatpush3.bf16.msra.mxu1 %v17534_v40 }
 0x605   : > { %6697 = vperm.xlu0 %17283, %v6553_v45   ;;  %v5760_v45 = vshrl.u32 %v17507_v39, 16  ;;  %v17517_v39 = vld [vmem:[%s17724_s14 + $0x7c] sm:$0xff]   ;;  %15530 = vmatprep.subr.bf16.mxu1 %v22344_v31 }
 0x606   : > { %14199 = vmatmul.mubr.msk.bf16.gmra.mrb[4].mxu0 %vm500_vm2, %v12540_v30  ;;  %6702 = vperm.xlu1 %17284, %v6554_v18   ;;  %v6561_v30 = vld [vmem:[%s22192_s1 + $0xf0] sm:$0xff] }
 0x607   : > { %14202 = vmatprep.mubr.msk.bf16.mxu0 %vm17649_vm1, %v22344_v31 }
 0x609   : > { %6707 = vperm.xlu0 %17283, %v6555_v46   ;;  %v17509_v46 = vld [vmem:[%s17724_s14 + $0x3c] sm:$0xff]  }
 0x60a   : > { %6712 = vperm.xlu1 %17284, %v6556_v22  }
 0x60d   : > { %6717 = vperm.xlu0 %17283, %v6557_v19   ;;  %v5772_v19 = vshll.u32 %v17509_v46, 16 }
 0x60e   : > { %14203 = vmatmul.mubr.msk.bf16.gmra.mrb[8].mxu0 %vm500_vm2, %v12541_v57  ;;  %6722 = vperm.xlu1 %17284, %v6558_v24   ;;  %v12556_v57 = vcombine.low %v19279_v48, %v19288_v32  ;;  %v6564_v48 = vld [vmem:[%s22192_s1 + $0x108] sm:$0xff]  ;;  %v6567_v32 = vld [vmem:[%s22192_s1 + $0x120] sm:$0xff] }
 0x60f   : > { %14206 = vmatprep.mubr.msk.bf16.mxu0 %vm17649_vm1, %v22344_v31 }
 0x611   : > { %6727 = vperm.xlu0 %17283, %v6559_v21   ;;  %v5774_v21 = vrot.slane %v5772_v19, 1  ;;  %v17538_v19 = vld [vmem:[%s22196_s5 + $0x60] sm:$0xff]  }
 0x612   : > { %6732 = vperm.xlu1 %17284, %v6560_v41  }
 0x615   : > { %6737 = vperm.xlu0 %17283, %v6561_v30   ;;  %v5776_v30 = vshrl.u32 %v17509_v46, 16 }
 0x616   : > { %14207 = vmatmul.mubr.msk.bf16.gmra.mrb[12].mxu0 %vm500_vm2, %v12542_v1  ;;  %v6562_v1 = vld [vmem:[%s22192_s1 + $0xf8] sm:$0xff] }
 0x617   : > { %14210 = vmatprep.mubr.msk.bf16.mxu0 %vm17649_vm1, %v22344_v31  ;;  %6742 = vperm.xlu1 %17284, %v6562_v1   ;;  %v17511_v1 = vld [vmem:[%s17724_s14 + $0x4c] sm:$0xff]  }
 0x619   : > { %6747 = vperm.xlu0 %17283, %v6563_v51   ;;  %v5778_v51 = vor.u32 %v5776_v30, %v5774_v21 }
 0x61b   : > { %6752 = vperm.xlu1 %17284, %v6564_v48  }
 0x61e   : > { %14211 = vmatmul.mubr.msk.bf16.gmra.mrb[16].mxu0 %vm500_vm2, %v12543_v17  ;;  %v6565_v17 = vld [vmem:[%s22192_s1 + $0x110] sm:$0xff] }
 0x61f   : > { %14214 = vmatprep.mubr.msk.bf16.mxu0 %vm17649_vm1, %v22344_v31  ;;  %6757 = vperm.xlu0 %17283, %v6565_v17  }
 0x623   : > { %6767 = vperm.xlu0 %17283, %v6567_v32   ;;  %v5788_v32 = vshll.u32 %v17511_v1, 16 }
 0x626   : > { %14215 = vmatmul.mubr.msk.bf16.gmra.mrb[20].mxu0 %vm500_vm2, %v12544_v28  ;;  %v12557_v28 = vcombine.low %v19291_v11, %v19300_v0  ;;  %v6568_v11 = vld [vmem:[%s22192_s1 + $0x128] sm:$0xff]  ;;  %v6571_v0 = vld [vmem:[%s22192_s1 + $0x140] sm:$0xff] }
 0x627   : > { %14218 = vmatprep.mubr.msk.bf16.mxu0 %vm17649_vm1, %v22344_v31 }
 0x62e   : > { %14219 = vmatmul.mubr.msk.bf16.gmra.mrb[24].mxu0 %vm500_vm2, %v12545_v9  ;;  %v6566_v9 = vld [vmem:[%s22192_s1 + $0x118] sm:$0xff] }
 0x62f   : > { %14222 = vmatprep.mubr.msk.bf16.mxu0 %vm17649_vm1, %v22344_v31  ;;  %6762 = vperm.xlu1 %17284, %v6566_v9   ;;  %v5790_v9 = vrot.slane %v5788_v32, 1  ;;  %v17541_v32 = vld [vmem:[%s22196_s5 + $0x78] sm:$0xff]  }
 0x633   : > { %6772 = vperm.xlu1 %17284, %v6568_v11  }
 0x636   : > { %14223 = vmatmul.mubr.msk.bf16.gmra.mrb[28].mxu0 %vm500_vm2, %v12546_v44  ;;  %v6569_v44 = vld [vmem:[%s22192_s1 + $0x130] sm:$0xff] }
 0x637   : > { %14226 = vmatprep.mubr.msk.bf16.mxu0 %vm17649_vm1, %v22344_v31  ;;  %6777 = vperm.xlu0 %17283, %v6569_v44   ;;  %v17512_v44 = vld [vmem:[%s17724_s14 + $0x54] sm:$0xff]  }
 0x638   : > { %6782 = vperm.xlu1 %17284, %v6570_v42  }
 0x63b   : > { %6787 = vperm.xlu0 %17283, %v6571_v0   ;;  %v5792_v0 = vshrl.u32 %v17511_v1, 16 }
 0x63d   : > { %v5794_v42 = vor.u32 %v5792_v0, %v5790_v9  ;;  %v8042_v0 = vrot.slane %v22233_v56, 5 }
 0x63e   : > { %14227 = vmatmul.mubr.msk.bf16.gmra.mrb[32].mxu0 %vm500_vm2, %v12547_v3  ;;  %v12558_v3 = vcombine.low %v19303_v55, %v19312_v2  ;;  %v6572_v55 = vld [vmem:[%s22192_s1 + $0x148] sm:$0xff]  ;;  %v6575_v2 = vld [vmem:[%s22192_s1 + $0x160] sm:$0xff] }
 0x63f   : > { %14230 = vmatprep.mubr.msk.bf16.mxu0 %vm17649_vm1, %v22344_v31  ;;  %6792 = vperm.xlu1 %17284, %v6572_v55   ;;  %v17513_v55 = vld [vmem:[%s17724_s14 + $0x5c] sm:$0xff]  }
 0x643   : > { %6802 = vperm.xlu1 %17284, %v6574_v59   ;;  %v5804_v59 = vshll.u32 %v17513_v55, 16 }
 0x646   : > { %14231 = vmatmul.mubr.msk.bf16.gmra.mrb[36].mxu0 %vm500_vm2, %v12548_v16  ;;  %v6573_v16 = vld [vmem:[%s22192_s1 + $0x150] sm:$0xff] }
 0x647   : > { %14234 = vmatprep.mubr.msk.bf16.mxu0 %vm17649_vm1, %v22344_v31  ;;  %6797 = vperm.xlu0 %17283, %v6573_v16  }
 0x648   : > { %6812 = vperm.xlu1 %17284, %v6576_v29   ;;  %v5806_v29 = vrot.slane %v5804_v59, 1  ;;  %v17522_v59 = vld [vmem:[%s17724_s14 + $0xa4] sm:$0xff]  }
 0x64b   : > { %6807 = vperm.xlu0 %17283, %v6575_v2  }
 0x64c   : > { %6822 = vperm.xlu1 %17284, %v6578_v15   ;;  %v5808_v15 = vshrl.u32 %v17513_v55, 16 }
 0x64e   : > { %14235 = vmatmul.mubr.msk.bf16.gmra.mrb[40].mxu0 %vm500_vm2, %v12549_v4  ;;  %v12560_v4 = vcombine.low %v19327_v6, %v19336_v10  ;;  %v6580_v6 = vld [vmem:[%s22192_s1 + $0x188] sm:$0xff]  ;;  %v6583_v10 = vld [vmem:[%s22192_s1 + $0x1a0] sm:$0xff] }
 0x64f   : > { %14238 = vmatprep.mubr.msk.bf16.mxu0 %vm17649_vm1, %v22344_v31  ;;  %6817 = vperm.xlu0 %17283, %v6577_v43  }
 0x650   : > { %6832 = vperm.xlu1 %17284, %v6580_v6   ;;  %v5810_v6 = vor.u32 %v5808_v15, %v5806_v29 }
 0x653   : > { %6827 = vperm.xlu0 %17283, %v6579_v14   ;;  %v17514_v14 = vld [vmem:[%s17724_s14 + $0x64] sm:$0xff]  }
 0x654   : > { %6842 = vperm.xlu1 %17284, %v6582_v62  }
 0x656   : > { %14239 = vmatmul.mubr.msk.bf16.gmra.mrb[44].mxu0 %vm500_vm2, %v12550_v7  ;;  %v6584_v7 = vld [vmem:[%s22192_s1 + $0x1a8] sm:$0xff] }
 0x657   : > { %14242 = vmatprep.mubr.msk.bf16.mxu0 %vm17649_vm1, %v22344_v31  ;;  %6837 = vperm.xlu0 %17283, %v6581_v52   ;;  %v5812_v52 = vshll.u32 %v17514_v14, 16 }
 0x658   : > { %6852 = vperm.xlu1 %17284, %v6584_v7   ;;  %v5816_v7 = vshrl.u32 %v17514_v14, 16  ;;  %v5876_v14 = vshll.u32 %v17522_v59, 16 }
 0x65a   : > { %v5878_v15 = vrot.slane %v5876_v14, 1 }
 0x65b   : > { %6847 = vperm.xlu0 %17283, %v6583_v10   ;;  %v5814_v10 = vrot.slane %v5812_v52, 1  ;;  %v17523_v52 = vld [vmem:[%s17724_s14 + $0xac] sm:$0xff]  }
 0x65d   : > { %v5815_v62 = vsel %vm1645_vm4, %v5810_v6, %v5814_v10  ;;  %v5818_v5 = vor.u32 %v5816_v7, %v5814_v10  ;;  %v5880_v10 = vshrl.u32 %v17522_v59, 16  ;;  %v17532_v59 = vld [vmem:[%s17724_s14 + $0xf4] sm:$0xff]  }
 0x65e   : > { %14243 = vmatmul.mubr.msk.bf16.gmra.mrb[48].mxu0 %vm500_vm2, %v12551_v54  ;;  %v22370_v54 = vld [vmem:[#allocation7_spill] sm:$0xff]  ;;  %v5956_v14 = vshll.u32 %v17532_v59, 16 }
 0x65f   : > { %14246 = vmatprep.mubr.msk.bf16.mxu0 %vm17649_vm1, %v22344_v31  ;;  %v12564_v26 = vcombine.low %v22370_v54, %v19384_v63  ;;  %v5754_v63 = vor.u32 %v5753_v37, %v5749_v50  ;;  %v5828_v54 = vshll.u32 %v17516_v34, 16  ;;  %v5832_v50 = vshrl.u32 %v17516_v34, 16 }
 0x660   : > { %v5836_v37 = vshll.u32 %v17517_v39, 16 }
 0x661   : > { %v5759_v13 = vsel %vm1645_vm4, %v5754_v63, %v5758_v23  ;;  %v5830_v38 = vrot.slane %v5828_v54, 1  ;;  %v17525_v54 = vld [vmem:[%s17724_s14 + $0xbc] sm:$0xff]  }
 0x663   : > { %v5834_v63 = vor.u32 %v5832_v50, %v5830_v38  ;;  %v17526_v50 = vld [vmem:[%s17724_s14 + $0xc4] sm:$0xff]  }
 0x666   : > { %14247 = vmatmul.mubr.msk.bf16.gmra.mrb[52].mxu0 %vm500_vm2, %v12552_v61  ;;  %v12565_v61 = vcombine.low %v19387_v47, %v19396_v20  ;;  %v5762_v47 = vor.u32 %v5760_v45, %v5758_v23  ;;  %v5838_v23 = vrot.slane %v5836_v37, 1 }
 0x667   : > { %14250 = vmatprep.mubr.msk.bf16.mxu0 %vm17649_vm1, %v22344_v31 }
 0x668   : > { %v5839_v45 = vsel %vm1645_vm4, %v5834_v63, %v5838_v23  ;;  %v5908_v63 = vshll.u32 %v17526_v50, 16 }
 0x66e   : > { %14251 = vmatmul.mubr.msk.bf16.gmra.mrb[56].mxu0 %vm500_vm2, %v12553_v36  ;;  %v17508_v36 = vld [vmem:[%s17724_s14 + $0x34] sm:$0xff]  }
 0x66f   : > { %14254 = vmatprep.mubr.msk.bf16.mxu0 %vm17649_vm1, %v22344_v31  ;;  %v5764_v60 = vshll.u32 %v17508_v36, 16  ;;  %v5768_v18 = vshrl.u32 %v17508_v36, 16  ;;  %v17518_v36 = vld [vmem:[%s17724_s14 + $0x84] sm:$0xff]  }
 0x671   : > { %v5766_v20 = vrot.slane %v5764_v60, 1  ;;  %v5840_v60 = vshrl.u32 %v17517_v39, 16  ;;  %v5900_v39 = vshll.u32 %v17525_v54, 16 }
 0x673   : > { %v5770_v22 = vor.u32 %v5768_v18, %v5766_v20  ;;  %v5842_v46 = vor.u32 %v5840_v60, %v5838_v23  ;;  %v17519_v18 = vld [vmem:[%s17724_s14 + $0x8c] sm:$0xff]   ;;  %v5912_v60 = vshrl.u32 %v17526_v50, 16 }
 0x675   : > { %v5775_v24 = vsel %vm1645_vm4, %v5770_v22, %v5774_v21  ;;  %v5848_v21 = vshrl.u32 %v17518_v36, 16 }
 0x676   : > { %14255 = vmatmul.mubr.msk.bf16.gmra.mrb[60].mxu0 %vm500_vm2, %v12554_v25  ;;  %v5767_v25 = vsel %vm1645_vm4, %v5762_v47, %v5766_v20  ;;  %v5844_v47 = vshll.u32 %v17518_v36, 16  ;;  %v17537_v20 = vld [vmem:[%s22196_s5 + $0x58] sm:$0xff]   ;;  %v5910_v36 = vrot.slane %v5908_v63, 1 }
 0x677   : > { %14258 = vmatprep.mubr.msk.bf16.mxu0 %vm17649_vm1, %v22344_v31 }
 0x67e   : > { %14259 = vmatmul.mubr.msk.bf16.gmra.mrb[64].mxu0 %vm500_vm2, %v12555_v49  ;;  %v17510_v49 = vld [vmem:[%s17724_s14 + $0x44] sm:$0xff]  }
 0x67f   : > { %14262 = vmatprep.mubr.msk.bf16.mxu0 %vm17649_vm1, %v22344_v31  ;;  %v5780_v41 = vshll.u32 %v17510_v49, 16  ;;  %v5784_v48 = vshrl.u32 %v17510_v49, 16  ;;  %v5852_v49 = vshll.u32 %v17519_v18, 16 }
 0x686   : > { %14263 = vmatmul.mubr.msk.bf16.gmra.mrb[68].mxu0 %vm500_vm2, %v12556_v57  ;;  %v5782_v57 = vrot.slane %v5780_v41, 1  ;;  %v5854_v41 = vrot.slane %v5852_v49, 1 }
 0x687   : > { %14266 = vmatprep.mubr.msk.bf16.mxu0 %vm17649_vm1, %v22344_v31 }
 0x688   : > { %v5783_v17 = vsel %vm1645_vm4, %v5778_v51, %v5782_v57  ;;  %v17520_v51 = vld [vmem:[%s17724_s14 + $0x94] sm:$0xff]  }
 0x68e   : > { %14267 = vmatmul.mubr.msk.bf16.gmra.mrb[72].mxu0 %vm500_vm2, %v12557_v28  ;;  %v5786_v28 = vor.u32 %v5784_v48, %v5782_v57  ;;  %v17540_v57 = vld [vmem:[%s22196_s5 + $0x70] sm:$0xff]   ;;  %v5860_v48 = vshll.u32 %v17520_v51, 16 }
 0x68f   : > { %14270 = vmatprep.mubr.msk.bf16.mxu0 %vm17649_vm1, %v22344_v31 }
 0x690   : > { %v5791_v11 = vsel %vm1645_vm4, %v5786_v28, %v5790_v9  ;;  %v5862_v9 = vrot.slane %v5860_v48, 1 }
 0x696   : > { %14271 = vmatmul.mubr.msk.bf16.gmra.mrb[76].mxu0 %vm500_vm2, %v12558_v3  ;;  %v5796_v3 = vshll.u32 %v17512_v44, 16 }
 0x697   : > { %14274 = vmatprep.mubr.msk.bf16.mxu0 %vm17649_vm1, %v22344_v31 }
 0x698   : > { %v5798_v16 = vrot.slane %v5796_v3, 1 }
 0x69a   : > { %v5799_v2 = vsel %vm1645_vm4, %v5794_v42, %v5798_v16  ;;  %v5864_v42 = vshrl.u32 %v17520_v51, 16 }
 0x69e   : > { %14275 = vmatmul.mubr.msk.bf16.gmra.mrb[80].mxu0 %vm500_vm2, %v12559_v58  ;;  %v5800_v58 = vshrl.u32 %v17512_v44, 16  ;;  %v17521_v44 = vld [vmem:[%s17724_s14 + $0x9c] sm:$0xff]  }
 0x69f   : > { %14278 = vmatprep.mubr.msk.bf16.mxu0 %vm17649_vm1, %v22344_v31 }
 0x6a0   : > { %v5802_v43 = vor.u32 %v5800_v58, %v5798_v16  ;;  %v5868_v16 = vshll.u32 %v17521_v44, 16 }
 0x6a2   : > { %v5870_v58 = vrot.slane %v5868_v16, 1 }
 0x6a6   : > { %14279 = vmatmul.mubr.msk.bf16.gmra.mrb[84].mxu0 %vm500_vm2, %v12560_v4  ;;  %v5807_v4 = vsel %vm1645_vm4, %v5802_v43, %v5806_v29  ;;  %v5872_v29 = vshrl.u32 %v17521_v44, 16 }
 0x6a7   : > { %14282 = vmatprep.mubr.msk.bf16.mxu0 %vm17649_vm1, %v22344_v31 }
 0x6ae   : > { %14283 = vmatmul.mubr.msk.bf16.gmra.mrb[88].mxu0 %vm500_vm2, %v12561_v12  ;;  %v17515_v12 = vld [vmem:[%s17724_s14 + $0x6c] sm:$0xff]  }
 0x6af   : > { %14286 = vmatprep.mubr.msk.bf16.mxu0 %vm17649_vm1, %v22344_v31  ;;  %v5820_v27 = vshll.u32 %v17515_v12, 16 }
 0x6b6   : > { %14287 = vmatmul.mubr.msk.bf16.gmra.mrb[92].mxu0 %vm500_vm2, %v12562_v8  ;;  %v5822_v8 = vrot.slane %v5820_v27, 1  ;;  %v17524_v27 = vld [vmem:[%s17724_s14 + $0xb4] sm:$0xff]  }
 0x6b7   : > { %14290 = vmatprep.mubr.msk.bf16.mxu0 %vm17649_vm1, %v22344_v31  ;;  %v5892_v34 = vshll.u32 %v17524_v27, 16 }
 0x6b8   : > { %v5823_v33 = vsel %vm1645_vm4, %v5818_v5, %v5822_v8 }
 0x6be   : > { %14291 = vmatmul.mubr.msk.bf16.gmra.mrb[96].mxu0 %vm500_vm2, %v12563_v53  ;;  %v5824_v53 = vshrl.u32 %v17515_v12, 16  ;;  %v5884_v12 = vshll.u32 %v17523_v52, 16 }
 0x6bf   : > { %14294 = vmatprep.mubr.msk.bf16.mxu0 %vm17649_vm1, %v22344_v31 }
 0x6c0   : > { %v5886_v7 = vrot.slane %v5884_v12, 1 }
 0x6c6   : > { %14295 = vmatmul.mubr.msk.bf16.gmra.mrb[100].mxu0 %vm500_vm2, %v12564_v26  ;;  %v5826_v26 = vor.u32 %v5824_v53, %v5822_v8  ;;  %v5888_v8 = vshrl.u32 %v17523_v52, 16  ;;  %v5894_v53 = vrot.slane %v5892_v34, 1  ;;  %v17535_v52 = vld [vmem:[%s17724_s14 + $0xfc] ss:$0 sps:$4 sm:$0x11]  }
 0x6c7   : > { %14298 = vmatprep.mubr.msk.bf16.mxu0 %vm17649_vm1, %v22344_v31  ;;  %v5964_v12 = vshll.u32 %v17535_v52, 16  ;;  %v19911_v34 = vld [vmem:[%s22195_s4] ss:$0 sm:$0xff]  ;;  %v17544_v52 = vld [vmem:[%s22196_s5 + $0x10] sm:$0xff]  }
 0x6ce   : > { %14299 = vmatmul.mubr.msk.bf16.gmra.mrb[104].mxu0 %vm500_vm2, %v12565_v61  ;;  %v5831_v61 = vsel %vm1645_vm4, %v5826_v26, %v5830_v38  ;;  %v5896_v38 = vshrl.u32 %v17524_v27, 16 }
 0x6cf   : > { %14304 = vmatprep.mubr.msk.bf16.mxu0 %vm17649_vm1, %v22344_v31 }
 0x6d6   : > { %14305 = vmatmul.mubr.msk.bf16.vlgmr.msra.gmra.mrb[0].mxu0 %vm500_vm2, %v5759_v13  ;;  %v17536_v13 = vld [vmem:[%s22196_s5 + $0x50] sm:$0xff]  }
 0x6d7   : > { %14308 = vmatprep.mubr.msk.bf16.mxu0 %vm17649_vm1, %v22344_v31  ;;  %14413 = vmatpush3.bf16.msra.mxu0 %v17533_v35  ;;  %v5898_v35 = vor.u32 %v5896_v38, %v5894_v53 }
 0x6d8   : > { %14414 = vmatprep.subr.bf16.mxu0 %v22344_v31  ;;  %15538 = vmatpush3.bf16.msra.mxu1 %v17536_v13 }
 0x6d9   : > { %15531 = vmatprep.subr.bf16.mxu1 %v22344_v31 }
 0x6db   : > { %14415 = vmatpush3.bf16.msra.mxu0 %v17534_v40  ;;  %v5904_v40 = vshrl.u32 %v17525_v54, 16  ;;  %v6588_v54 = vpop.permute.xlu0 %6587 }
 0x6dc   : > { %14416 = vmatprep.subr.bf16.mxu0 %v22344_v31  ;;  %15539 = vmatpush3.bf16.msra.mxu1 %v17537_v20 }
 0x6dd   : > { %15532 = vmatprep.subr.bf16.mxu1 %v22344_v31 }
 0x6de   : > { %14309 = vmatmul.mubr.msk.bf16.gmra.mrb[4].mxu0 %vm500_vm2, %v5767_v25  ;;  %v5846_v25 = vrot.slane %v5844_v47, 1 }
 0x6df   : > { %14312 = vmatprep.mubr.msk.bf16.mxu0 %vm17649_vm1, %v22344_v31  ;;  %14417 = vmatpush3.bf16.msra.mxu0 %v17536_v13  ;;  %v17527_v13 = vld [vmem:[%s17724_s14 + $0xcc] sm:$0xff]  }
 0x6e0   : > { %14418 = vmatprep.subr.bf16.mxu0 %v22344_v31  ;;  %15540 = vmatpush3.bf16.msra.mxu1 %v17538_v19  ;;  %v5847_v22 = vsel %vm1645_vm4, %v5842_v46, %v5846_v25  ;;  %v5850_v30 = vor.u32 %v5848_v21, %v5846_v25  ;;  %v5916_v47 = vshll.u32 %v17527_v13, 16  ;;  %v17528_v25 = vld [vmem:[%s17724_s14 + $0xd4] sm:$0xff]  }
 0x6e1   : > { %15533 = vmatprep.subr.bf16.mxu1 %v22344_v31 }
 0x6e2   : > { %v5855_v1 = vsel %vm1645_vm4, %v5850_v30, %v5854_v41  ;;  %v5918_v46 = vrot.slane %v5916_v47, 1 }
 0x6e3   : > { %14419 = vmatpush3.bf16.msra.mxu0 %v17537_v20  ;;  %v5914_v20 = vor.u32 %v5912_v60, %v5910_v36  ;;  %v6598_v60 = vpop.permute.xlu1 %6597 }
 0x6e4   : > { %14420 = vmatprep.subr.bf16.mxu0 %v22344_v31 }
 0x6e6   : > { %14313 = vmatmul.mubr.msk.bf16.gmra.mrb[8].mxu0 %vm500_vm2, %v5775_v24  ;;  %v17539_v24 = vld [vmem:[%s22196_s5 + $0x68] sm:$0xff]  }
 0x6e7   : > { %14316 = vmatprep.mubr.msk.bf16.mxu0 %vm17649_vm1, %v22344_v31  ;;  %14421 = vmatpush3.bf16.msra.mxu0 %v17538_v19  ;;  %v5920_v19 = vshrl.u32 %v17527_v13, 16 }
 0x6e8   : > { %14422 = vmatprep.subr.bf16.mxu0 %v22344_v31  ;;  %15541 = vmatpush3.bf16.msra.mxu1 %v17539_v24 }
 0x6e9   : > { %15534 = vmatprep.subr.bf16.mxu1 %v22344_v31  ;;  %v5922_v21 = vor.u32 %v5920_v19, %v5918_v46 }
 0x6eb   : > { %14423 = vmatpush3.bf16.msra.mxu0 %v17539_v24  ;;  %v17529_v24 = vld [vmem:[%s17724_s14 + $0xdc] sm:$0xff]  }
 0x6ec   : > { %14424 = vmatprep.subr.bf16.mxu0 %v22344_v31  ;;  %15542 = vmatpush3.bf16.msra.mxu1 %v17540_v57  ;;  %v5932_v51 = vshll.u32 %v17529_v24, 16 }
 0x6ed   : > { %15535 = vmatprep.subr.bf16.mxu1 %v22344_v31 }
 0x6ee   : > { %14317 = vmatmul.mubr.msk.bf16.gmra.mrb[12].mxu0 %vm500_vm2, %v5783_v17  ;;  %v5856_v17 = vshrl.u32 %v17519_v18, 16  ;;  %v5919_v18 = vsel %vm1645_vm4, %v5914_v20, %v5918_v46 }
 0x6ef   : > { %14320 = vmatprep.mubr.msk.bf16.mxu0 %vm17649_vm1, %v22344_v31  ;;  %14425 = vmatpush3.bf16.msra.mxu0 %v17540_v57 }
 0x6f0   : > { %14426 = vmatprep.subr.bf16.mxu0 %v22344_v31  ;;  %15543 = vmatpush3.bf16.msra.mxu1 %v17541_v32  ;;  %v5858_v28 = vor.u32 %v5856_v17, %v5854_v41  ;;  %v5928_v41 = vshrl.u32 %v17528_v25, 16  ;;  %v17530_v17 = vld [vmem:[%s17724_s14 + $0xe4] sm:$0xff]  }
 0x6f1   : > { %14536 = vmatprep.subr.bf16.mxu1 %v22344_v31 }
 0x6f2   : > { %v5863_v3 = vsel %vm1645_vm4, %v5858_v28, %v5862_v9  ;;  %v5940_v28 = vshll.u32 %v17530_v17, 16 }
 0x6f3   : > { %14427 = vmatpush3.bf16.msra.mxu0 %v17541_v32  ;;  %v5936_v32 = vshrl.u32 %v17529_v24, 16 }
 0x6f4   : > { %v5942_v44 = vrot.slane %v5940_v28, 1 }
 0x6f6   : > { %14321 = vmatmul.mubr.msk.bf16.gmra.mrb[16].mxu0 %vm500_vm2, %v5791_v11  ;;  %v19829_v11 = vrot.slane %v22233_v56, 4 }
 0x6f7   : > { %14324 = vmatprep.mubr.msk.bf16.mxu0 %vm17649_vm1, %v22344_v31 }
 0x6f8   : > { %22371 = vst [vmem:[#allocation3_spill] sm:$0xff] %v19829_v11  ;;  %v19834_v55 = vor.u32 %v8042_v0, %v19829_v11  ;;  %v17531_v0 = vld [vmem:[%s17724_s14 + $0xec] sm:$0xff]  }
 0x6f9   : > { %v5948_v16 = vshll.u32 %v17531_v0, 16 }
 0x6fe   : > { %14325 = vmatmul.mubr.msk.bf16.gmra.mrb[20].mxu0 %vm500_vm2, %v5799_v2  ;;  %v5866_v2 = vor.u32 %v5864_v42, %v5862_v9  ;;  %v5944_v42 = vshrl.u32 %v17530_v17, 16 }
 0x6ff   : > { %14328 = vmatprep.mubr.msk.bf16.mxu0 %vm17649_vm1, %v22344_v31 }
 0x700   : > { %v5871_v43 = vsel %vm1645_vm4, %v5866_v2, %v5870_v58  ;;  %v5946_v2 = vor.u32 %v5944_v42, %v5942_v44 }
 0x706   : > { %14329 = vmatmul.mubr.msk.bf16.gmra.mrb[24].mxu0 %vm500_vm2, %v5807_v4  ;;  %v5874_v4 = vor.u32 %v5872_v29, %v5870_v58  ;;  %v5950_v58 = vrot.slane %v5948_v16, 1  ;;  %v5952_v29 = vshrl.u32 %v17531_v0, 16  ;;  %v17543_v0 = vld [vmem:[%s22196_s5 + $0x8] sm:$0xff]  }
 0x707   : > { %14332 = vmatprep.mubr.msk.bf16.mxu0 %vm17649_vm1, %v22344_v31 }
 0x708   : > { %v5879_v6 = vsel %vm1645_vm4, %v5874_v4, %v5878_v15  ;;  %v5954_v4 = vor.u32 %v5952_v29, %v5950_v58 }
 0x70e   : > { %14333 = vmatmul.mubr.msk.bf16.gmra.mrb[28].mxu0 %vm500_vm2, %v5815_v62  ;;  %v5882_v62 = vor.u32 %v5880_v10, %v5878_v15  ;;  %v5958_v15 = vrot.slane %v5956_v14, 1  ;;  %v5960_v10 = vshrl.u32 %v17532_v59, 16 }
 0x70f   : > { %14336 = vmatprep.mubr.msk.bf16.mxu0 %vm17649_vm1, %v22344_v31 }
 0x710   : > { %v5887_v5 = vsel %vm1645_vm4, %v5882_v62, %v5886_v7  ;;  %v5962_v62 = vor.u32 %v5960_v10, %v5958_v15 }
 0x716   : > { %14337 = vmatmul.mubr.msk.bf16.gmra.mrb[32].mxu0 %vm500_vm2, %v5823_v33  ;;  %v5890_v33 = vor.u32 %v5888_v8, %v5886_v7  ;;  %v5966_v7 = vrot.slane %v5964_v12, 1 }
 0x717   : > { %14340 = vmatprep.mubr.msk.bf16.mxu0 %vm17649_vm1, %v22344_v31 }
 0x718   : > { %v5895_v26 = vsel %vm1645_vm4, %v5890_v33, %v5894_v53  ;;  %v5967_v27 = vsel %vm1645_vm4, %v5962_v62, %v5966_v7 }
 0x71e   : > { %14341 = vmatmul.mubr.msk.bf16.gmra.mrb[36].mxu0 %vm500_vm2, %v5831_v61  ;;  %v5902_v61 = vrot.slane %v5900_v39, 1 }
 0x71f   : > { %14344 = vmatprep.mubr.msk.bf16.mxu0 %vm17649_vm1, %v22344_v31 }
 0x720   : > { %v5903_v37 = vsel %vm1645_vm4, %v5898_v35, %v5902_v61  ;;  %v5906_v23 = vor.u32 %v5904_v40, %v5902_v61  ;;  %v6593_v40 = vpop.permute.xlu0 %6592 }
 0x726   : > { %14345 = vmatmul.mubr.msk.bf16.gmra.mrb[40].mxu0 %vm500_vm2, %v5839_v45  ;;  %v5911_v45 = vsel %vm1645_vm4, %v5906_v23, %v5910_v36 }
 0x727   : > { %14348 = vmatprep.mubr.msk.bf16.mxu0 %vm17649_vm1, %v22344_v31 }
 0x72e   : > { %14349 = vmatmul.mubr.msk.bf16.gmra.mrb[44].mxu0 %vm500_vm2, %v5847_v22  ;;  %v5924_v22 = vshll.u32 %v17528_v25, 16 }
 0x72f   : > { %14352 = vmatprep.mubr.msk.bf16.mxu0 %vm17649_vm1, %v22344_v31 }
 0x730   : > { %v5926_v49 = vrot.slane %v5924_v22, 1 }
 0x732   : > { %v5927_v30 = vsel %vm1645_vm4, %v5922_v21, %v5926_v49  ;;  %v5930_v57 = vor.u32 %v5928_v41, %v5926_v49  ;;  %v17542_v49 = vld [vmem:[%s22196_s5] sm:$0xff]  }
 0x736   : > { %14353 = vmatmul.mubr.msk.bf16.gmra.mrb[48].mxu0 %vm500_vm2, %v5855_v1  ;;  %v5934_v1 = vrot.slane %v5932_v51, 1 }
 0x737   : > { %14356 = vmatprep.mubr.msk.bf16.mxu0 %vm17649_vm1, %v22344_v31 }
 0x738   : > { %v5935_v48 = vsel %vm1645_vm4, %v5930_v57, %v5934_v1  ;;  %v5938_v9 = vor.u32 %v5936_v32, %v5934_v1  ;;  %v6603_v57 = vpop.permute.xlu1 %6602 }
 0x73e   : > { %14357 = vmatmul.mubr.msk.bf16.gmra.mrb[52].mxu0 %vm500_vm2, %v5863_v3  ;;  %v5943_v3 = vsel %vm1645_vm4, %v5938_v9, %v5942_v44 }
 0x73f   : > { %14360 = vmatprep.mubr.msk.bf16.mxu0 %vm17649_vm1, %v22344_v31 }
 0x746   : > { %14361 = vmatmul.mubr.msk.bf16.gmra.mrb[56].mxu0 %vm500_vm2, %v5871_v43  ;;  %v5951_v43 = vsel %vm1645_vm4, %v5946_v2, %v5950_v58 }
 0x747   : > { %14364 = vmatprep.mubr.msk.bf16.mxu0 %vm17649_vm1, %v22344_v31 }
 0x74e   : > { %14365 = vmatmul.mubr.msk.bf16.gmra.mrb[60].mxu0 %vm500_vm2, %v5879_v6  ;;  %v5959_v6 = vsel %vm1645_vm4, %v5954_v4, %v5958_v15 }
 0x74f   : > { %14368 = vmatprep.mubr.msk.bf16.mxu0 %vm17649_vm1, %v22344_v31 }
 0x756   : > { %14369 = vmatmul.mubr.msk.bf16.gmra.mrb[64].mxu0 %vm500_vm2, %v5887_v5  ;;  %v19904_v5 = vld [vmem:[%s22194_s3] ss:$0 sm:$0xff] }
 0x757   : > { %14372 = vmatprep.mubr.msk.bf16.mxu0 %vm17649_vm1, %v22344_v31 }
 0x75e   : > { %14373 = vmatmul.mubr.msk.bf16.gmra.mrb[68].mxu0 %vm500_vm2, %v5895_v26 }
 0x75f   : > { %14376 = vmatprep.mubr.msk.bf16.mxu0 %vm17649_vm1, %v22344_v31 }
 0x766   : > { %14377 = vmatmul.mubr.msk.bf16.gmra.mrb[72].mxu0 %vm500_vm2, %v5903_v37 }
 0x767   : > { %14380 = vmatprep.mubr.msk.bf16.mxu0 %vm17649_vm1, %v22344_v31 }
 0x76e   : > { %14381 = vmatmul.mubr.msk.bf16.gmra.mrb[76].mxu0 %vm500_vm2, %v5911_v45 }
 0x76f   : > { %14384 = vmatprep.mubr.msk.bf16.mxu0 %vm17649_vm1, %v22344_v31 }
 0x776   : > { %14385 = vmatmul.mubr.msk.bf16.gmra.mrb[80].mxu0 %vm500_vm2, %v5919_v18 }
 0x777   : > { %14388 = vmatprep.mubr.msk.bf16.mxu0 %vm17649_vm1, %v22344_v31 }
 0x77e   : > { %14389 = vmatmul.mubr.msk.bf16.gmra.mrb[84].mxu0 %vm500_vm2, %v5927_v30 }
 0x77f   : > { %14392 = vmatprep.mubr.msk.bf16.mxu0 %vm17649_vm1, %v22344_v31 }
 0x786   : > { %14393 = vmatmul.mubr.msk.bf16.gmra.mrb[88].mxu0 %vm500_vm2, %v5935_v48 }
 0x787   : > { %14396 = vmatprep.mubr.msk.bf16.mxu0 %vm17649_vm1, %v22344_v31 }
 0x78e   : > { %14397 = vmatmul.mubr.msk.bf16.gmra.mrb[92].mxu0 %vm500_vm2, %v5943_v3 }
 0x78f   : > { %14400 = vmatprep.mubr.msk.bf16.mxu0 %vm17649_vm1, %v22344_v31 }
 0x796   : > { %14401 = vmatmul.mubr.msk.bf16.gmra.mrb[96].mxu0 %vm500_vm2, %v5951_v43 }
 0x797   : > { %14404 = vmatprep.mubr.msk.bf16.mxu0 %vm17649_vm1, %v22344_v31 }
 0x79e   : > { %14405 = vmatmul.mubr.msk.bf16.gmra.mrb[100].mxu0 %vm500_vm2, %v5959_v6 }
 0x79f   : > { %14408 = vmatprep.mubr.msk.bf16.mxu0 %vm17649_vm1, %v22344_v31 }
 0x7a6   : > { %14409 = vmatmul.mubr.msk.bf16.gmra.mrb[104].mxu0 %vm500_vm2, %v5967_v27  ;;  %v6608_v27 = vpop.permute.xlu0 %6607 }
 0x7a7   : > { %14428 = vmatprep.mubr.msk.bf16.mxu0 %vm17649_vm1, %v22344_v31 }
 0x7a9   : > { %v6086_v8 = vpop.f32.mrb[0].mxu0 }
 0x7aa   : > { %v6362_v33 = vmul.f32 %v19904_v5, %v6086_v8  ;;  %v14306_v53 = vpop.f32.mrb[1].mxu0 }
 0x7ab   : > { %v6089_v26 = vpop.f32.mrb[2].mxu0 }
 0x7ac   : > { %v6423_v38 = vadd.f32 %v19911_v34, %v6362_v33  ;;  %v6363_v39 = vmul.f32 %v19904_v5, %v6089_v26  ;;  %v14307_v35 = vpop.f32.mrb[3].mxu0 }
 0x7ae   : > { %v6477_v61 = vmax.f32 %v6423_v38, 0.0  ;;  %v6424_v50 = vadd.f32 %v19911_v34, %v6363_v39 }
 0x7b0   : > { %v6478_v37 = vmax.f32 %v6424_v50, 0.0  ;;  %v6855_v23 = vmul.f32 %v6588_v54, %v6477_v61  ;;  %v6613_v54 = vpop.permute.xlu1 %6612 }
 0x7b1   : > { %v6094_v63 = vpop.f32.mrb[4].mxu0 }
 0x7b2   : > { %v6856_v36 = vmul.f32 %v6593_v40, %v6478_v37  ;;  %v6364_v13 = vmul.f32 %v19904_v5, %v6094_v63  ;;  %v14310_v45 = vpop.f32.mrb[5].mxu0 }
 0x7b3   : > { %v6097_v47 = vpop.f32.mrb[6].mxu0 }
 0x7b4   : > { %v6915_v20 = vpack.c.bf16 %v6856_v36, %v6855_v23  ;;  %v6425_v46 = vadd.f32 %v19911_v34, %v6364_v13  ;;  %v6365_v25 = vmul.f32 %v19904_v5, %v6097_v47  ;;  %v14311_v18 = vpop.f32.mrb[7].mxu0  ;;  %v17545_v23 = vld [vmem:[%s22196_s5 + $0x18] sm:$0xff]  }
 0x7b6   : > { %6942 = vst [vmem:[#allocation2 + $0x18] sm:$0xff] %v6915_v20  ;;  %v6479_v19 = vmax.f32 %v6425_v46, 0.0  ;;  %v6426_v22 = vadd.f32 %v19911_v34, %v6365_v25  ;;  %v7063_v21 = vrot.slane %v6915_v20, 4  ;;  %v7457_v24 = vshrl.u32 %v6915_v20, 16 }
 0x7b7   : > { %v7460_v30 = vshll.u32 %v6915_v20, 16 }
 0x7b8   : > { %v6480_v41 = vmax.f32 %v6426_v22, 0.0  ;;  %v7064_v51 = vsel %vm7059_vm5, %v19829_v11, %v7063_v21  ;;  %v8045_v17 = vrot.slane %v7457_v24, 4  ;;  %v6857_v32 = vmul.f32 %v6598_v60, %v6479_v19 }
 0x7b9   : > { %v6102_v1 = vpop.f32.mrb[8].mxu0  ;;  %14433 = vmatmul.mubr.bf16.vlgmr.msra.gmra.mrb[0].mxu1 %v7064_v51  ;;  %v8046_v48 = vrot.slane %v7460_v30, 5  ;;  %v7459_v10 = vrot.slane %v7457_v24, 3  ;;  %v7462_v12 = vrot.slane %v7460_v30, 4  ;;  %v17546_v51 = vld [vmem:[%s22196_s5 + $0x20] sm:$0xff]  }
 0x7ba   : > { %v6858_v28 = vmul.f32 %v6603_v57, %v6480_v41  ;;  %v6366_v9 = vmul.f32 %v19904_v5, %v6102_v1  ;;  %v14314_v44 = vpop.f32.mrb[9].mxu0  ;;  %14537 = vmatpush3.bf16.msra.mxu1 %v17542_v49  ;;  %14436 = vmatprep.mubr.msk.bf16.mxu1 %vm17649_vm1, %v22344_v31 }
 0x7bb   : > { %v6105_v3 = vpop.f32.mrb[10].mxu0  ;;  %14538 = vmatprep.subr.bf16.mxu1 %v22344_v31  ;;  %v8047_v42 = vor.u32 %v8046_v48, %v8045_v17  ;;  %v19964_v45 = vor.u32 %v7462_v12, %v7459_v10  ;;  %v6618_v48 = vpop.permute.xlu0 %6617 }
 0x7bc   : > { %v19933_v16 = vpack.c.bf16 %v6858_v28, %v6857_v32  ;;  %v6427_v2 = vadd.f32 %v19911_v34, %v6366_v9  ;;  %v6367_v58 = vmul.f32 %v19904_v5, %v6105_v3  ;;  %v14315_v59 = vpop.f32.mrb[11].mxu0  ;;  %v6623_v44 = vpop.permute.xlu1 %6622 }
 0x7bd   : > { %v19939_v43 = vsel %vm8032_vm6, %v19834_v55, %v8047_v42  ;;  %v19941_v29 = vld [vmem:[#allocation2 + $0x18] sm:$0xff] }
 0x7be   : > { %22372 = vst [vmem:[#allocation4_spill] sm:$0xff] %v19941_v29  ;;  %6943 = vst [vmem:[#allocation2 + $0x20] sm:$0xff] %v19933_v16  ;;  %v6481_v14 = vmax.f32 %v6427_v2, 0.0  ;;  %v6428_v4 = vadd.f32 %v19911_v34, %v6367_v58  ;;  %v7065_v15 = vrot.slane %v19933_v16, 4  ;;  %14539 = vmatpush3.bf16.msra.mxu1 %v17543_v0  ;;  %v7466_v6 = vshrl.u32 %v19933_v16, 16 }
 0x7bf   : > { %14540 = vmatprep.subr.bf16.mxu1 %v22344_v31  ;;  %v7469_v62 = vshll.u32 %v19933_v16, 16  ;;  %v22231_v7 = vshll.u32 %v19941_v29, 16  ;;  %v22232_v61 = vshrl.u32 %v19941_v29, 16 }
 0x7c0   : > { %v6482_v8 = vmax.f32 %v6428_v4, 0.0  ;;  %v7066_v33 = vsel %vm7059_vm5, %v7063_v21, %v7065_v15  ;;  %v7468_v53 = vrot.slane %v7466_v6, 3  ;;  %v8049_v39 = vrot.slane %v7466_v6, 4 }
 0x7c1   : > { %v6110_v26 = vpop.f32.mrb[12].mxu0  ;;  %14437 = vmatmul.mubr.bf16.gmra.mrb[4].mxu1 %v7066_v33  ;;  %v7471_v38 = vrot.slane %v7469_v62, 4  ;;  %v8050_v35 = vrot.slane %v7469_v62, 5  ;;  %v6859_v50 = vmul.f32 %v6608_v27, %v6481_v14  ;;  %v9594_v36 = vrot.slane %v22231_v7, 1 }
 0x7c2   : > { %v6860_v37 = vmul.f32 %v6613_v54, %v6482_v8  ;;  %v6368_v40 = vmul.f32 %v19904_v5, %v6110_v26  ;;  %v14318_v63 = vpop.f32.mrb[13].mxu0  ;;  %14440 = vmatprep.mubr.msk.bf16.mxu1 %vm17649_vm1, %v22344_v31  ;;  %14541 = vmatpush3.bf16.msra.mxu1 %v17544_v52 }
 0x7c3   : > { %v6113_v13 = vpop.f32.mrb[14].mxu0  ;;  %14542 = vmatprep.subr.bf16.mxu1 %v22344_v31  ;;  %v7472_v60 = vor.u32 %v7471_v38, %v7468_v53  ;;  %v8051_v47 = vor.u32 %v8050_v35, %v8049_v39  ;;  %v9595_v19 = vor.u32 %v9594_v36, %v22232_v61  ;;  %v6628_v36 = vpop.permute.xlu0 %6627 }
 0x7c4   : > { %v6917_v20 = vpack.c.bf16 %v6860_v37, %v6859_v50  ;;  %v6429_v46 = vadd.f32 %v19911_v34, %v6368_v40  ;;  %v6369_v25 = vmul.f32 %v19904_v5, %v6113_v13  ;;  %v14319_v18 = vpop.f32.mrb[15].mxu0  ;;  %v17547_v37 = vld [vmem:[%s22196_s5 + $0x28] sm:$0xff]  }
 0x7c5   : > { %v19972_v22 = vsel %vm865_vm3, %v19964_v45, %v7472_v60  ;;  %v19975_v21 = vsel %vm8032_vm6, %v8047_v42, %v8051_v47  ;;  %v19977_v49 = vld [vmem:[#allocation2 + $0x20] sm:$0xff] }
 0x7c6   : > { %22373 = vst [vmem:[#allocation5_spill] sm:$0xff] %v19977_v49  ;;  %6944 = vst [vmem:[#allocation2 + $0x28] sm:$0xff] %v6917_v20  ;;  %v6483_v24 = vmax.f32 %v6429_v46, 0.0  ;;  %v6430_v30 = vadd.f32 %v19911_v34, %v6369_v25  ;;  %v7067_v41 = vrot.slane %v6917_v20, 4  ;;  %14543 = vmatpush3.bf16.msra.mxu1 %v17545_v23  ;;  %v7475_v57 = vshrl.u32 %v6917_v20, 16 }
 0x7c7   : > { %14544 = vmatprep.subr.bf16.mxu1 %v22344_v31  ;;  %v7478_v1 = vshll.u32 %v6917_v20, 16  ;;  %v22227_v17 = vshll.u32 %v19977_v49, 16  ;;  %v22228_v10 = vshrl.u32 %v19977_v49, 16  ;;  %v6633_v20 = vpop.permute.xlu1 %6632 }
 0x7c8   : > { %v6484_v32 = vmax.f32 %v6430_v30, 0.0  ;;  %v7068_v28 = vsel %vm7059_vm5, %v7065_v15, %v7067_v41  ;;  %v7477_v9 = vrot.slane %v7475_v57, 3  ;;  %v8053_v42 = vrot.slane %v7475_v57, 4 }
 0x7c9   : > { %v6118_v0 = vpop.f32.mrb[16].mxu0  ;;  %14441 = vmatmul.mubr.bf16.gmra.mrb[8].mxu1 %v7068_v28  ;;  %v7480_v3 = vrot.slane %v7478_v1, 4  ;;  %v8054_v16 = vrot.slane %v7478_v1, 5  ;;  %v6861_v2 = vmul.f32 %v6618_v48, %v6483_v24  ;;  %v9599_v4 = vrot.slane %v22227_v17, 1 }
 0x7ca   : > { %v6862_v58 = vmul.f32 %v6623_v44, %v6484_v32  ;;  %v6370_v59 = vmul.f32 %v19904_v5, %v6118_v0  ;;  %v14322_v14 = vpop.f32.mrb[17].mxu0  ;;  %14444 = vmatprep.mubr.msk.bf16.mxu1 %vm17649_vm1, %v22344_v31  ;;  %14545 = vmatpush3.bf16.msra.mxu1 %v17546_v51 }
 0x7cb   : > { %v6121_v15 = vpop.f32.mrb[18].mxu0  ;;  %14546 = vmatprep.subr.bf16.mxu1 %v22344_v31  ;;  %v7481_v52 = vor.u32 %v7480_v3, %v7477_v9  ;;  %v8055_v6 = vor.u32 %v8054_v16, %v8053_v42  ;;  %v19996_v33 = vsel %vm1645_vm4, %v9595_v19, %v9599_v4  ;;  %v9603_v38 = vor.u32 %v9599_v4, %v22228_v10 }
 0x7cc   : > { %v6918_v12 = vpack.c.bf16 %v6862_v58, %v6861_v2  ;;  %v6431_v62 = vadd.f32 %v19911_v34, %v6370_v59  ;;  %v6371_v27 = vmul.f32 %v19904_v5, %v6121_v15  ;;  %v14323_v8 = vpop.f32.mrb[19].mxu0  ;;  %22374 = vst [vmem:[#allocation6_spill] sm:$0xff] %v19996_v33 }
 0x7cd   : > { %v19999_v53 = vsel %vm865_vm3, %v7472_v60, %v7481_v52  ;;  %v20002_v54 = vsel %vm8032_vm6, %v8051_v47, %v8055_v6  ;;  %v20004_v26 = vld [vmem:[#allocation2 + $0x28] sm:$0xff]  ;;  %v6638_v8 = vpop.permute.xlu0 %6637 }
 0x7ce   : > { %22375 = vst [vmem:[#allocation7_spill] sm:$0xff] %v20004_v26  ;;  %6945 = vst [vmem:[#allocation2 + $0x30] sm:$0xff] %v6918_v12  ;;  %v6485_v39 = vmax.f32 %v6431_v62, 0.0  ;;  %v6432_v35 = vadd.f32 %v19911_v34, %v6371_v27  ;;  %v7069_v50 = vrot.slane %v6918_v12, 4  ;;  %v7484_v40 = vshrl.u32 %v6918_v12, 16  ;;  %14547 = vmatpush3.bf16.msra.mxu1 %v17547_v37 }
 0x7cf   : > { %v7487_v63 = vshll.u32 %v6918_v12, 16  ;;  %v22224_v23 = vshll.u32 %v20004_v26, 16  ;;  %14548 = vmatprep.subr.bf16.mxu1 %v22344_v31  ;;  %v22226_v28 = vshrl.u32 %v20004_v26, 16 }
 0x7d0   : > { %v6486_v13 = vmax.f32 %v6432_v35, 0.0  ;;  %v7070_v60 = vsel %vm7059_vm5, %v7067_v41, %v7069_v50  ;;  %v7486_v47 = vrot.slane %v7484_v40, 3  ;;  %v8057_v18 = vrot.slane %v7484_v40, 4 }
 0x7d1   : > { %v6126_v46 = vpop.f32.mrb[20].mxu0  ;;  %14445 = vmatmul.mubr.bf16.gmra.mrb[12].mxu1 %v7070_v60  ;;  %v7489_v25 = vrot.slane %v7487_v63, 4  ;;  %v8058_v19 = vrot.slane %v7487_v63, 5  ;;  %v6863_v24 = vmul.f32 %v6628_v36, %v6485_v39  ;;  %v9607_v41 = vrot.slane %v22224_v23, 1  ;;  %v6643_v39 = vpop.permute.xlu1 %6642 }
 0x7d2   : > { %v6864_v30 = vmul.f32 %v6633_v20, %v6486_v13  ;;  %v6372_v51 = vmul.f32 %v19904_v5, %v6126_v46  ;;  %v14326_v57 = vpop.f32.mrb[21].mxu0  ;;  %14448 = vmatprep.mubr.msk.bf16.mxu1 %vm17649_vm1, %v22344_v31 }
 0x7d3   : > { %v6129_v1 = vpop.f32.mrb[22].mxu0  ;;  %v7490_v48 = vor.u32 %v7489_v25, %v7486_v47  ;;  %v8059_v32 = vor.u32 %v8058_v19, %v8057_v18  ;;  %v20024_v42 = vsel %vm1645_vm4, %v9603_v38, %v9607_v41  ;;  %v9611_v59 = vor.u32 %v9607_v41, %v22226_v28 }
 0x7d4   : > { %v6919_v9 = vpack.c.bf16 %v6864_v30, %v6863_v24  ;;  %v6433_v44 = vadd.f32 %v19911_v34, %v6372_v51  ;;  %v6373_v0 = vmul.f32 %v19904_v5, %v6129_v1  ;;  %v14327_v3 = vpop.f32.mrb[23].mxu0  ;;  %22376 = vst [vmem:[#allocation8_spill] sm:$0xff] %v20024_v42 }
 0x7d5   : > { %v20027_v16 = vsel %vm865_vm3, %v7481_v52, %v7490_v48  ;;  %v20030_v2 = vsel %vm8032_vm6, %v8055_v6, %v8059_v32  ;;  %v20032_v58 = vld [vmem:[#allocation2 + $0x30] sm:$0xff] }
 0x7d6   : > { %22377 = vst [vmem:[#allocation9_spill] sm:$0xff] %v20032_v58  ;;  %6946 = vst [vmem:[#allocation2 + $0x38] sm:$0xff] %v6919_v9  ;;  %v6487_v14 = vmax.f32 %v6433_v44, 0.0  ;;  %v6434_v4 = vadd.f32 %v19911_v34, %v6373_v0  ;;  %v7071_v15 = vrot.slane %v6919_v9, 4  ;;  %v7493_v12 = vshrl.u32 %v6919_v9, 16 }
 0x7d7   : > { %v7496_v62 = vshll.u32 %v6919_v9, 16  ;;  %v22221_v27 = vshll.u32 %v20032_v58, 16  ;;  %v22222_v18 = vshrl.u32 %v20032_v58, 16 }
 0x7d8   : > { %v6488_v52 = vmax.f32 %v6434_v4, 0.0  ;;  %v7072_v38 = vsel %vm7059_vm5, %v7069_v50, %v7071_v15  ;;  %v7495_v6 = vrot.slane %v7493_v12, 3  ;;  %v8061_v40 = vrot.slane %v7493_v12, 4 }
 0x7d9   : > { %v6134_v35 = vpop.f32.mrb[24].mxu0  ;;  %14449 = vmatmul.mubr.bf16.gmra.mrb[16].mxu1 %v7072_v38  ;;  %v7498_v37 = vrot.slane %v7496_v62, 4  ;;  %v8062_v63 = vrot.slane %v7496_v62, 5  ;;  %v6865_v36 = vmul.f32 %v6638_v8, %v6487_v14  ;;  %v9615_v20 = vrot.slane %v22221_v27, 1  ;;  %v6648_v62 = vpop.permute.xlu0 %6647 }
 0x7da   : > { %v6866_v13 = vmul.f32 %v6643_v39, %v6488_v52  ;;  %v6374_v60 = vmul.f32 %v19904_v5, %v6134_v35  ;;  %v14330_v47 = vpop.f32.mrb[25].mxu0  ;;  %14452 = vmatprep.mubr.msk.bf16.mxu1 %vm17649_vm1, %v22344_v31  ;;  %v6653_v52 = vpop.permute.xlu1 %6652 }
 0x7db   : > { %v6137_v46 = vpop.f32.mrb[26].mxu0  ;;  %v7499_v50 = vor.u32 %v7498_v37, %v7495_v6  ;;  %v8063_v25 = vor.u32 %v8062_v63, %v8061_v40  ;;  %v20048_v57 = vsel %vm1645_vm4, %v9611_v59, %v9615_v20  ;;  %v9619_v44 = vor.u32 %v9615_v20, %v22222_v18 }
 0x7dc   : > { %v6920_v19 = vpack.c.bf16 %v6866_v13, %v6865_v36  ;;  %v6435_v24 = vadd.f32 %v19911_v34, %v6374_v60  ;;  %v6375_v30 = vmul.f32 %v19904_v5, %v6137_v46  ;;  %v14331_v51 = vpop.f32.mrb[27].mxu0  ;;  %22378 = vst [vmem:[#allocation10_spill] sm:$0xff] %v20048_v57 }
 0x7dd   : > { %v20051_v41 = vsel %vm865_vm3, %v7490_v48, %v7499_v50  ;;  %v20054_v1 = vsel %vm8032_vm6, %v8059_v32, %v8063_v25  ;;  %v20056_v9 = vld [vmem:[#allocation2 + $0x38] sm:$0xff] }
 0x7de   : > { %22379 = vst [vmem:[#allocation11_spill] sm:$0xff] %v20056_v9  ;;  %6947 = vst [vmem:[#allocation2 + $0x40] sm:$0xff] %v6920_v19  ;;  %v6489_v0 = vmax.f32 %v6435_v24, 0.0  ;;  %v6436_v3 = vadd.f32 %v19911_v34, %v6375_v30  ;;  %v7073_v14 = vrot.slane %v6920_v19, 4  ;;  %v7502_v4 = vshrl.u32 %v6920_v19, 16 }
 0x7df   : > { %v7505_v12 = vshll.u32 %v6920_v19, 16  ;;  %v22218_v59 = vshll.u32 %v20056_v9, 16  ;;  %v22220_v20 = vshrl.u32 %v20056_v9, 16 }
 0x7e0   : > { %v6490_v48 = vmax.f32 %v6436_v3, 0.0  ;;  %v7074_v8 = vsel %vm7059_vm5, %v7071_v15, %v7073_v14  ;;  %v7504_v32 = vrot.slane %v7502_v4, 3  ;;  %v8065_v39 = vrot.slane %v7502_v4, 4 }
 0x7e1   : > { %v6142_v38 = vpop.f32.mrb[28].mxu0  ;;  %14453 = vmatmul.mubr.bf16.gmra.mrb[20].mxu1 %v7074_v8  ;;  %v7507_v6 = vrot.slane %v7505_v12, 4  ;;  %v8066_v35 = vrot.slane %v7505_v12, 5  ;;  %v6867_v37 = vmul.f32 %v6648_v62, %v6489_v0  ;;  %v9623_v13 = vrot.slane %v22218_v59, 1 }
 0x7e2   : > { %v6868_v40 = vmul.f32 %v6653_v52, %v6490_v48  ;;  %v6376_v63 = vmul.f32 %v19904_v5, %v6142_v38  ;;  %v14334_v36 = vpop.f32.mrb[29].mxu0  ;;  %14456 = vmatprep.mubr.msk.bf16.mxu1 %vm17649_vm1, %v22344_v31 }
 0x7e3   : > { %v6145_v60 = vpop.f32.mrb[30].mxu0  ;;  %v7508_v15 = vor.u32 %v7507_v6, %v7504_v32  ;;  %v8067_v47 = vor.u32 %v8066_v35, %v8065_v39  ;;  %v20072_v51 = vsel %vm1645_vm4, %v9619_v44, %v9623_v13  ;;  %v9627_v12 = vor.u32 %v9623_v13, %v22220_v20  ;;  %v17548_v44 = vld [vmem:[%s22196_s5 + $0x30] sm:$0xff]   ;;  %v6663_v35 = vpop.permute.xlu1 %6662 }
 0x7e4   : > { %v6921_v46 = vpack.c.bf16 %v6868_v40, %v6867_v37  ;;  %v6437_v19 = vadd.f32 %v19911_v34, %v6376_v63  ;;  %v6377_v24 = vmul.f32 %v19904_v5, %v6145_v60  ;;  %v14335_v30 = vpop.f32.mrb[31].mxu0  ;;  %22380 = vst [vmem:[#allocation12_spill] sm:$0xff] %v20072_v51  ;;  %14549 = vmatpush3.bf16.msra.mxu1 %v17548_v44 }
 0x7e5   : > { %v20075_v0 = vsel %vm865_vm3, %v7499_v50, %v7508_v15  ;;  %v20078_v3 = vsel %vm8032_vm6, %v8063_v25, %v8067_v47  ;;  %v20080_v4 = vld [vmem:[#allocation2 + $0x40] sm:$0xff]  ;;  %v6658_v25 = vpop.permute.xlu0 %6657  ;;  %14550 = vmatprep.subr.bf16.mxu1 %v22344_v31 }
 0x7e6   : > { %22381 = vst [vmem:[#allocation13_spill] sm:$0xff] %v20080_v4  ;;  %6948 = vst [vmem:[#allocation2 + $0x48] sm:$0xff] %v6921_v46  ;;  %v6491_v62 = vmax.f32 %v6437_v19, 0.0  ;;  %v6438_v48 = vadd.f32 %v19911_v34, %v6377_v24  ;;  %v7075_v8 = vrot.slane %v6921_v46, 4  ;;  %v7511_v32 = vshrl.u32 %v6921_v46, 16 }
 0x7e7   : > { %v7514_v50 = vshll.u32 %v6921_v46, 16  ;;  %v22217_v52 = vshll.u32 %v20080_v4, 16  ;;  %v22219_v44 = vshrl.u32 %v20080_v4, 16 }
 0x7e8   : > { %v6492_v38 = vmax.f32 %v6438_v48, 0.0  ;;  %v7076_v6 = vsel %vm7059_vm5, %v7073_v14, %v7075_v8  ;;  %v7513_v39 = vrot.slane %v7511_v32, 3  ;;  %v8069_v63 = vrot.slane %v7511_v32, 4 }
 0x7e9   : > { %v6150_v37 = vpop.f32.mrb[32].mxu0  ;;  %14457 = vmatmul.mubr.bf16.gmra.mrb[24].mxu1 %v7076_v6  ;;  %v7516_v40 = vrot.slane %v7514_v50, 4  ;;  %v8070_v36 = vrot.slane %v7514_v50, 5  ;;  %v6869_v13 = vmul.f32 %v6658_v25, %v6491_v62  ;;  %v9631_v14 = vrot.slane %v22217_v52, 1 }
 0x7ea   : > { %v6870_v60 = vmul.f32 %v6663_v35, %v6492_v38  ;;  %v6378_v46 = vmul.f32 %v19904_v5, %v6150_v37  ;;  %v14338_v19 = vpop.f32.mrb[33].mxu0  ;;  %14460 = vmatprep.mubr.msk.bf16.mxu1 %vm17649_vm1, %v22344_v31 }
 0x7eb   : > { %v6153_v24 = vpop.f32.mrb[34].mxu0  ;;  %v7517_v30 = vor.u32 %v7516_v40, %v7513_v39  ;;  %v8071_v48 = vor.u32 %v8070_v36, %v8069_v63  ;;  %v20100_v25 = vsel %vm1645_vm4, %v9627_v12, %v9631_v14  ;;  %v9635_v39 = vor.u32 %v9631_v14, %v22219_v44 }
 0x7ec   : > { %v6922_v6 = vpack.c.bf16 %v6870_v60, %v6869_v13  ;;  %v6439_v32 = vadd.f32 %v19911_v34, %v6378_v46  ;;  %v6379_v62 = vmul.f32 %v19904_v5, %v6153_v24  ;;  %v14339_v50 = vpop.f32.mrb[35].mxu0  ;;  %22382 = vst [vmem:[#allocation14_spill] sm:$0xff] %v20100_v25  ;;  %v6668_v46 = vpop.permute.xlu0 %6667 }
 0x7ed   : > { %v20103_v38 = vsel %vm865_vm3, %v7508_v15, %v7517_v30  ;;  %v20106_v35 = vsel %vm8032_vm6, %v8067_v47, %v8071_v48  ;;  %v20108_v37 = vld [vmem:[#allocation2 + $0x48] sm:$0xff]  ;;  %v6673_v24 = vpop.permute.xlu1 %6672 }
 0x7ee   : > { %22383 = vst [vmem:[#allocation15_spill] sm:$0xff] %v20108_v37  ;;  %6949 = vst [vmem:[#allocation2 + $0x50] sm:$0xff] %v6922_v6  ;;  %v6493_v40 = vmax.f32 %v6439_v32, 0.0  ;;  %v6440_v63 = vadd.f32 %v19911_v34, %v6379_v62  ;;  %v7077_v36 = vrot.slane %v6922_v6, 4  ;;  %v7520_v13 = vshrl.u32 %v6922_v6, 16 }
 0x7ef   : > { %v7523_v60 = vshll.u32 %v6922_v6, 16  ;;  %v22223_v12 = vshll.u32 %v20108_v37, 16  ;;  %v22225_v18 = vshrl.u32 %v20108_v37, 16 }
 0x7f0   : > { %v6494_v15 = vmax.f32 %v6440_v63, 0.0  ;;  %v7078_v19 = vsel %vm7059_vm5, %v7075_v8, %v7077_v36  ;;  %v7522_v47 = vrot.slane %v7520_v13, 3  ;;  %v8073_v59 = vrot.slane %v7520_v13, 4 }
 0x7f1   : > { %v6158_v50 = vpop.f32.mrb[36].mxu0  ;;  %14461 = vmatmul.mubr.bf16.gmra.mrb[28].mxu1 %v7078_v19  ;;  %v7525_v52 = vrot.slane %v7523_v60, 4  ;;  %v8074_v14 = vrot.slane %v7523_v60, 5  ;;  %v6871_v44 = vmul.f32 %v6668_v46, %v6493_v40  ;;  %v9639_v6 = vrot.slane %v22223_v12, 1 }
 0x7f2   : > { %v6872_v32 = vmul.f32 %v6673_v24, %v6494_v15  ;;  %v6380_v62 = vmul.f32 %v19904_v5, %v6158_v50  ;;  %v14342_v20 = vpop.f32.mrb[37].mxu0  ;;  %14464 = vmatprep.mubr.msk.bf16.mxu1 %vm17649_vm1, %v22344_v31 }
 0x7f3   : > { %v6161_v63 = vpop.f32.mrb[38].mxu0  ;;  %v7526_v8 = vor.u32 %v7525_v52, %v7522_v47  ;;  %v8075_v27 = vor.u32 %v8074_v14, %v8073_v59  ;;  %v20124_v46 = vsel %vm1645_vm4, %v9635_v39, %v9639_v6  ;;  %v9643_v59 = vor.u32 %v9639_v6, %v22225_v18 }
 0x7f4   : > { %v6923_v19 = vpack.c.bf16 %v6872_v32, %v6871_v44  ;;  %v6441_v13 = vadd.f32 %v19911_v34, %v6380_v62  ;;  %v6381_v40 = vmul.f32 %v19904_v5, %v6161_v63  ;;  %v14343_v60 = vpop.f32.mrb[39].mxu0  ;;  %22384 = vst [vmem:[#allocation16_spill] sm:$0xff] %v20124_v46  ;;  %v6678_v32 = vpop.permute.xlu0 %6677 }
 0x7f5   : > { %v20127_v20 = vsel %vm865_vm3, %v7517_v30, %v7526_v8  ;;  %v20130_v15 = vsel %vm8032_vm6, %v8071_v48, %v8075_v27  ;;  %v20132_v24 = vld [vmem:[#allocation2 + $0x50] sm:$0xff]  ;;  %v6683_v63 = vpop.permute.xlu1 %6682 }
 0x7f6   : > { %22385 = vst [vmem:[#allocation17_spill] sm:$0xff] %v20132_v24  ;;  %6950 = vst [vmem:[#allocation2 + $0x58] sm:$0xff] %v6923_v19  ;;  %v6495_v52 = vmax.f32 %v6441_v13, 0.0  ;;  %v6442_v44 = vadd.f32 %v19911_v34, %v6381_v40  ;;  %v7079_v47 = vrot.slane %v6923_v19, 4  ;;  %v7529_v50 = vshrl.u32 %v6923_v19, 16 }
 0x7f7   : > { %v7532_v14 = vshll.u32 %v6923_v19, 16  ;;  %v22229_v39 = vshll.u32 %v20132_v24, 16  ;;  %v22230_v10 = vshrl.u32 %v20132_v24, 16 }
 0x7f8   : > { %v6496_v30 = vmax.f32 %v6442_v44, 0.0  ;;  %v7080_v62 = vsel %vm7059_vm5, %v7077_v36, %v7079_v47  ;;  %v7531_v48 = vrot.slane %v7529_v50, 3  ;;  %v8077_v23 = vrot.slane %v7529_v50, 4 }
 0x7f9   : > { %v6166_v60 = vpop.f32.mrb[40].mxu0  ;;  %14465 = vmatmul.mubr.bf16.gmra.mrb[32].mxu1 %v7080_v62  ;;  %v7534_v12 = vrot.slane %v7532_v14, 4  ;;  %v8078_v6 = vrot.slane %v7532_v14, 5  ;;  %v6873_v18 = vmul.f32 %v6678_v32, %v6495_v52  ;;  %v9647_v19 = vrot.slane %v22229_v39, 1 }
 0x7fa   : > { %v6874_v13 = vmul.f32 %v6683_v63, %v6496_v30  ;;  %v6382_v40 = vmul.f32 %v19904_v5, %v6166_v60  ;;  %v14346_v28 = vpop.f32.mrb[41].mxu0  ;;  %14468 = vmatprep.mubr.msk.bf16.mxu1 %vm17649_vm1, %v22344_v31 }
 0x7fb   : > { %v6169_v44 = vpop.f32.mrb[42].mxu0  ;;  %v7535_v36 = vor.u32 %v7534_v12, %v7531_v48  ;;  %v8079_v17 = vor.u32 %v8078_v6, %v8077_v23  ;;  %v20148_v32 = vsel %vm1645_vm4, %v9643_v59, %v9647_v19  ;;  %v9651_v23 = vor.u32 %v9647_v19, %v22230_v10  ;;  %v17549_v59 = vld [vmem:[%s22196_s5 + $0x38] sm:$0xff]   ;;  %v6693_v19 = vpop.permute.xlu1 %6692 }
 0x7fc   : > { %v6924_v62 = vpack.c.bf16 %v6874_v13, %v6873_v18  ;;  %v6443_v50 = vadd.f32 %v19911_v34, %v6382_v40  ;;  %v6383_v52 = vmul.f32 %v19904_v5, %v6169_v44  ;;  %v14347_v14 = vpop.f32.mrb[43].mxu0  ;;  %22386 = vst [vmem:[#allocation18_spill] sm:$0xff] %v20148_v32  ;;  %14551 = vmatpush3.bf16.msra.mxu1 %v17549_v59 }
 0x7fd   : > { %v20151_v28 = vsel %vm865_vm3, %v7526_v8, %v7535_v36  ;;  %v20154_v30 = vsel %vm8032_vm6, %v8075_v27, %v8079_v17  ;;  %v20156_v63 = vld [vmem:[#allocation2 + $0x58] sm:$0xff]  ;;  %v6688_v27 = vpop.permute.xlu0 %6687  ;;  %14660 = vmatprep.subr.bf16.mxu1 %v22344_v31 }
 0x7fe   : > { %22387 = vst [vmem:[#allocation19_spill] sm:$0xff] %v20154_v30  ;;  %22388 = vst [vmem:[#allocation20_spill] sm:$0xff] %v20156_v63  ;;  %v6497_v18 = vmax.f32 %v6443_v50, 0.0  ;;  %v6444_v12 = vadd.f32 %v19911_v34, %v6383_v52  ;;  %v7081_v48 = vrot.slane %v6924_v62, 4  ;;  %v7538_v60 = vshrl.u32 %v6924_v62, 16 }
 0x7ff   : > { %6951 = vst [vmem:[#allocation2 + $0x60] sm:$0xff] %v6924_v62  ;;  %v7541_v8 = vshll.u32 %v6924_v62, 16  ;;  %v22234_v6 = vshll.u32 %v20156_v63, 16 }
 0x800   : > { %v6498_v13 = vmax.f32 %v6444_v12, 0.0  ;;  %v7082_v40 = vsel %vm7059_vm5, %v7079_v47, %v7081_v48  ;;  %v7540_v44 = vrot.slane %v7538_v60, 3  ;;  %v8081_v52 = vrot.slane %v7538_v60, 4 }
 0x801   : > { %v6174_v14 = vpop.f32.mrb[44].mxu0  ;;  %14469 = vmatmul.mubr.bf16.gmra.mrb[36].mxu1 %v7082_v40  ;;  %v7543_v50 = vrot.slane %v7541_v8, 4  ;;  %v8082_v39 = vrot.slane %v7541_v8, 5  ;;  %v6875_v10 = vmul.f32 %v6688_v27, %v6497_v18  ;;  %v9655_v47 = vrot.slane %v22234_v6, 1 }
 0x802   : > { %v6876_v7 = vmul.f32 %v6693_v19, %v6498_v13  ;;  %v6384_v62 = vmul.f32 %v19904_v5, %v6174_v14  ;;  %v14350_v61 = vpop.f32.mrb[45].mxu0  ;;  %14472 = vmatprep.mubr.msk.bf16.mxu1 %vm17649_vm1, %v22344_v31  ;;  %v22235_v40 = vshrl.u32 %v20156_v63, 16 }
 0x803   : > { %v6177_v12 = vpop.f32.mrb[46].mxu0  ;;  %v7544_v59 = vor.u32 %v7543_v50, %v7540_v44  ;;  %v8083_v56 = vor.u32 %v8082_v39, %v8081_v52  ;;  %v20176_v27 = vsel %vm1645_vm4, %v9651_v23, %v9655_v47  ;;  %v6698_v50 = vpop.permute.xlu0 %6697 }
 0x804   : > { %v6925_v32 = vpack.c.bf16 %v6876_v7, %v6875_v10  ;;  %v6445_v60 = vadd.f32 %v19911_v34, %v6384_v62  ;;  %v6385_v18 = vmul.f32 %v19904_v5, %v6177_v12  ;;  %v14351_v8 = vpop.f32.mrb[47].mxu0  ;;  %22389 = vst [vmem:[#allocation21_spill] sm:$0xff] %v20176_v27  ;;  %v9659_v39 = vor.u32 %v9655_v47, %v22235_v40  ;;  %v6703_v12 = vpop.permute.xlu1 %6702 }
 0x805   : > { %v20179_v61 = vsel %vm865_vm3, %v7535_v36, %v7544_v59  ;;  %v20182_v13 = vsel %vm8032_vm6, %v8079_v17, %v8083_v56 }
 0x806   : > { %22390 = vst [vmem:[#allocation22_spill] sm:$0xff] %v20182_v13  ;;  %6952 = vst [vmem:[#allocation2 + $0x68] sm:$0xff] %v6925_v32  ;;  %v6499_v44 = vmax.f32 %v6445_v60, 0.0  ;;  %v6446_v7 = vadd.f32 %v19911_v34, %v6385_v18  ;;  %v7083_v10 = vrot.slane %v6925_v32, 4  ;;  %v7547_v19 = vshrl.u32 %v6925_v32, 16  ;;  %v20188_v36 = vld [vmem:[#allocation2 + $0x60] sm:$0xff] }
 0x807   : > { %v7550_v14 = vshll.u32 %v6925_v32, 16  ;;  %22391 = vst [vmem:[#allocation23_spill] sm:$0xff] %v20188_v36  ;;  %v22236_v46 = vshll.u32 %v20188_v36, 16 }
 0x808   : > { %v6500_v52 = vmax.f32 %v6446_v7, 0.0  ;;  %v7084_v23 = vsel %vm7059_vm5, %v7081_v48, %v7083_v10  ;;  %v7549_v62 = vrot.slane %v7547_v19, 3  ;;  %v8085_v6 = vrot.slane %v7547_v19, 4 }
 0x809   : > { %v6182_v17 = vpop.f32.mrb[48].mxu0  ;;  %14473 = vmatmul.mubr.bf16.gmra.mrb[40].mxu1 %v7084_v23  ;;  %v7552_v8 = vrot.slane %v7550_v14, 4  ;;  %v8086_v47 = vrot.slane %v7550_v14, 5  ;;  %v6877_v40 = vmul.f32 %v6698_v50, %v6499_v44 }
 0x80a   : > { %v6878_v60 = vmul.f32 %v6703_v12, %v6500_v52  ;;  %v6386_v18 = vmul.f32 %v19904_v5, %v6182_v17  ;;  %v14354_v27 = vpop.f32.mrb[49].mxu0  ;;  %14476 = vmatprep.mubr.msk.bf16.mxu1 %vm17649_vm1, %v22344_v31  ;;  %v6708_v17 = vpop.permute.xlu0 %6707 }
 0x80b   : > { %v6185_v32 = vpop.f32.mrb[50].mxu0  ;;  %v7553_v7 = vor.u32 %v7552_v8, %v7549_v62  ;;  %v8087_v48 = vor.u32 %v8086_v47, %v8085_v6 }
 0x80c   : > { %v6926_v25 = vpack.c.bf16 %v6878_v60, %v6877_v40  ;;  %v6447_v51 = vadd.f32 %v19911_v34, %v6386_v18  ;;  %v6387_v23 = vmul.f32 %v19904_v5, %v6185_v32  ;;  %v14355_v19 = vpop.f32.mrb[51].mxu0  ;;  %v9663_v40 = vrot.slane %v22236_v46, 1  ;;  %v6713_v60 = vpop.permute.xlu1 %6712 }
 0x80d   : > { %v20197_v44 = vsel %vm865_vm3, %v7544_v59, %v7553_v7  ;;  %v20200_v14 = vsel %vm8032_vm6, %v8083_v56, %v8087_v48  ;;  %v20203_v12 = vld [vmem:[#allocation2 + $0x68] sm:$0xff] }
 0x80e   : > { %22392 = vst [vmem:[#allocation24_spill] sm:$0xff] %v20200_v14  ;;  %6953 = vst [vmem:[#allocation2 + $0x70] sm:$0xff] %v6926_v25  ;;  %v6501_v27 = vmax.f32 %v6447_v51, 0.0  ;;  %v6448_v50 = vadd.f32 %v19911_v34, %v6387_v23  ;;  %v7085_v52 = vrot.slane %v6926_v25, 4  ;;  %v7556_v6 = vshrl.u32 %v6926_v25, 16 }
 0x80f   : > { %v7559_v62 = vshll.u32 %v6926_v25, 16  ;;  %22393 = vst [vmem:[#allocation25_spill] sm:$0xff] %v20203_v12  ;;  %v22237_v23 = vshrl.u32 %v20188_v36, 16 }
 0x810   : > { %v6502_v8 = vmax.f32 %v6448_v50, 0.0  ;;  %v7086_v59 = vsel %vm7059_vm5, %v7083_v10, %v7085_v52  ;;  %v7558_v47 = vrot.slane %v7556_v6, 3  ;;  %v8089_v51 = vrot.slane %v7556_v6, 4 }
 0x811   : > { %v6190_v56 = vpop.f32.mrb[52].mxu0  ;;  %14477 = vmatmul.mubr.bf16.gmra.mrb[44].mxu1 %v7086_v59  ;;  %v7561_v18 = vrot.slane %v7559_v62, 4  ;;  %v8090_v32 = vrot.slane %v7559_v62, 5  ;;  %v6879_v19 = vmul.f32 %v6708_v17, %v6501_v27  ;;  %v22238_v50 = vshll.u32 %v20203_v12, 16 }
 0x812   : > { %v6880_v25 = vmul.f32 %v6713_v60, %v6502_v8  ;;  %v6388_v57 = vmul.f32 %v19904_v5, %v6190_v56  ;;  %v14358_v42 = vpop.f32.mrb[53].mxu0  ;;  %14480 = vmatprep.mubr.msk.bf16.mxu1 %vm17649_vm1, %v22344_v31  ;;  %v20214_v59 = vsel %vm1645_vm4, %v9659_v39, %v9663_v40  ;;  %v9667_v6 = vor.u32 %v9663_v40, %v22237_v23 }
 0x813   : > { %v6193_v10 = vpop.f32.mrb[54].mxu0  ;;  %v7562_v46 = vor.u32 %v7561_v18, %v7558_v47  ;;  %v8091_v33 = vor.u32 %v8090_v32, %v8089_v51  ;;  %22394 = vst [vmem:[#allocation26_spill] sm:$0xff] %v20214_v59  ;;  %v9671_v39 = vrot.slane %v22238_v50, 1 }
 0x814   : > { %v6927_v62 = vpack.c.bf16 %v6880_v25, %v6879_v19  ;;  %v6449_v27 = vadd.f32 %v19911_v34, %v6388_v57  ;;  %v6389_v17 = vmul.f32 %v19904_v5, %v6193_v10  ;;  %v14359_v42 = vpop.f32.mrb[55].mxu0  ;;  %v6718_v19 = vpop.permute.xlu0 %6717  ;;  %v22243_v10 = vshrl.u32 %v20203_v12, 16 }
 0x815   : > { %v20221_v8 = vsel %vm865_vm3, %v7553_v7, %v7562_v46  ;;  %v20224_v60 = vsel %vm8032_vm6, %v8087_v48, %v8091_v33  ;;  %v20226_v47 = vld [vmem:[#allocation2 + $0x70] sm:$0xff]  ;;  %v6723_v42 = vpop.permute.xlu1 %6722 }
 0x816   : > { %22395 = vst [vmem:[#allocation27_spill] sm:$0xff] %v20224_v60  ;;  %22396 = vst [vmem:[#allocation28_spill] sm:$0xff] %v20226_v47  ;;  %v6503_v56 = vmax.f32 %v6449_v27, 0.0  ;;  %v6450_v40 = vadd.f32 %v19911_v34, %v6389_v17  ;;  %v7087_v18 = vrot.slane %v6927_v62, 4  ;;  %v7565_v57 = vshrl.u32 %v6927_v62, 16 }
 0x817   : > { %6954 = vst [vmem:[#allocation2 + $0x78] sm:$0xff] %v6927_v62  ;;  %v7568_v51 = vshll.u32 %v6927_v62, 16 }
 0x818   : > { %v6504_v7 = vmax.f32 %v6450_v40, 0.0  ;;  %v7088_v25 = vsel %vm7059_vm5, %v7085_v52, %v7087_v18  ;;  %v7567_v48 = vrot.slane %v7565_v57, 3  ;;  %v6881_v23 = vmul.f32 %v6718_v19, %v6503_v56 }
 0x819   : > { %v6198_v59 = vpop.f32.mrb[56].mxu0  ;;  %14481 = vmatmul.mubr.bf16.gmra.mrb[48].mxu1 %v7088_v25  ;;  %v7570_v50 = vrot.slane %v7568_v51, 4  ;;  %v8093_v27 = vrot.slane %v7565_v57, 4  ;;  %v8094_v36 = vrot.slane %v7568_v51, 5  ;;  %v20238_v40 = vsel %vm1645_vm4, %v9667_v6, %v9671_v39 }
 0x81a   : > { %v6882_v17 = vmul.f32 %v6723_v42, %v6504_v7  ;;  %v6390_v63 = vmul.f32 %v19904_v5, %v6198_v59  ;;  %v14362_v62 = vpop.f32.mrb[57].mxu0  ;;  %14484 = vmatprep.mubr.msk.bf16.mxu1 %vm17649_vm1, %v22344_v31  ;;  %22397 = vst [vmem:[#allocation29_spill] sm:$0xff] %v20238_v40  ;;  %v9675_v52 = vor.u32 %v9671_v39, %v22243_v10  ;;  %v22398_v25 = vshll.u32 %v20226_v47, 16 }
 0x81b   : > { %v6201_v32 = vpop.f32.mrb[58].mxu0  ;;  %v7571_v56 = vor.u32 %v7570_v50, %v7567_v48  ;;  %v8095_v19 = vor.u32 %v8094_v36, %v8093_v27  ;;  %v22244_v39 = vshrl.u32 %v20226_v47, 16  ;;  %v6728_v48 = vpop.permute.xlu0 %6727 }
 0x81c   : > { %v9679_v57 = vrot.slane %v22398_v25, 1  ;;  %v6928_v51 = vpack.c.bf16 %v6882_v17, %v6881_v23  ;;  %v6451_v7 = vadd.f32 %v19911_v34, %v6390_v63  ;;  %v6391_v59 = vmul.f32 %v19904_v5, %v6201_v32  ;;  %v14363_v42 = vpop.f32.mrb[59].mxu0 }
 0x81d   : > { %v20247_v62 = vsel %vm865_vm3, %v7562_v46, %v7571_v56  ;;  %v20250_v6 = vsel %vm8032_vm6, %v8091_v33, %v8095_v19  ;;  %v6733_v42 = vpop.permute.xlu1 %6732 }
 0x81e   : > { %22399 = vst [vmem:[#allocation30_spill] sm:$0xff] %v20250_v6  ;;  %v20253_v10 = vld [vmem:[#allocation2 + $0x78] sm:$0xff]  ;;  %v20256_v36 = vsel %vm1645_vm4, %v9675_v52, %v9679_v57  ;;  %6955 = vst [vmem:[#allocation2 + $0x80] sm:$0xff] %v6928_v51  ;;  %v6505_v23 = vmax.f32 %v6451_v7, 0.0  ;;  %v6452_v63 = vadd.f32 %v19911_v34, %v6391_v59  ;;  %v7089_v50 = vrot.slane %v6928_v51, 4 }
 0x81f   : > { %22400 = vst [vmem:[#allocation31_spill] sm:$0xff] %v20253_v10  ;;  %22401 = vst [vmem:[#allocation32_spill] sm:$0xff] %v20256_v36  ;;  %v7574_v5 = vshrl.u32 %v6928_v51, 16  ;;  %v7577_v32 = vshll.u32 %v6928_v51, 16  ;;  %v22245_v46 = vshll.u32 %v20253_v10, 16  ;;  %v9683_v33 = vor.u32 %v9679_v57, %v22244_v39 }
 0x820   : > { %v6506_v27 = vmax.f32 %v6452_v63, 0.0  ;;  %v7090_v17 = vsel %vm7059_vm5, %v7087_v18, %v7089_v50  ;;  %v6883_v34 = vmul.f32 %v6728_v48, %v6505_v23  ;;  %v20266_v51 = vld [vmem:[%s22194_s3] ss:$0 sm:$0xff]  ;;  %v22254_v23 = vshrl.u32 %v20253_v10, 16 }
 0x821   : > { %v7576_v25 = vrot.slane %v7574_v5, 3  ;;  %v6206_v52 = vpop.f32.mrb[60].mxu0  ;;  %14485 = vmatmul.mubr.bf16.gmra.mrb[52].mxu1 %v7090_v17  ;;  %v7579_v36 = vrot.slane %v7577_v32, 4  ;;  %v8097_v7 = vrot.slane %v7574_v5, 4  ;;  %v8098_v40 = vrot.slane %v7577_v32, 5  ;;  %v6743_v47 = vpop.permute.xlu1 %6742 }
 0x822   : > { %v6884_v59 = vmul.f32 %v6733_v42, %v6506_v27  ;;  %v6392_v57 = vmul.f32 %v20266_v51, %v6206_v52  ;;  %v14366_v39 = vpop.f32.mrb[61].mxu0  ;;  %14488 = vmatprep.mubr.msk.bf16.mxu1 %vm17649_vm1, %v22344_v31  ;;  %v9687_v18 = vrot.slane %v22245_v46, 1  ;;  %v20277_v48 = vld [vmem:[%s22195_s4] ss:$0 sm:$0xff] }
 0x823   : > { %v6209_v63 = vpop.f32.mrb[62].mxu0  ;;  %v7580_v17 = vor.u32 %v7579_v36, %v7576_v25  ;;  %v8099_v5 = vor.u32 %v8098_v40, %v8097_v7 }
 0x824   : > { %v6929_v32 = vpack.c.bf16 %v6884_v59, %v6883_v34  ;;  %v6453_v27 = vadd.f32 %v20277_v48, %v6392_v57  ;;  %v6393_v39 = vmul.f32 %v20266_v51, %v6209_v63  ;;  %v14367_v42 = vpop.f32.mrb[63].mxu0  ;;  %v20282_v52 = vsel %vm1645_vm4, %v9683_v33, %v9687_v18 }
 0x825   : > { %22402 = vst [vmem:[#allocation33_spill] sm:$0xff] %v20282_v52  ;;  %v20285_v46 = vsel %vm865_vm3, %v7571_v56, %v7580_v17  ;;  %v20288_v40 = vsel %vm8032_vm6, %v8095_v19, %v8099_v5  ;;  %v20290_v36 = vld [vmem:[#allocation2 + $0x80] sm:$0xff]  ;;  %v9691_v25 = vor.u32 %v9687_v18, %v22254_v23  ;;  %v6738_v42 = vpop.permute.xlu0 %6737 }
 0x826   : > { %22403 = vst [vmem:[#allocation34_spill] sm:$0xff] %v20288_v40  ;;  %22404 = vst [vmem:[#allocation35_spill] sm:$0xff] %v20290_v36  ;;  %v6507_v7 = vmax.f32 %v6453_v27, 0.0  ;;  %v6454_v34 = vadd.f32 %v20277_v48, %v6393_v39  ;;  %v7091_v59 = vrot.slane %v6929_v32, 4  ;;  %v7583_v57 = vshrl.u32 %v6929_v32, 16 }
 0x827   : > { %6956 = vst [vmem:[#allocation2 + $0x88] sm:$0xff] %v6929_v32  ;;  %v7586_v63 = vshll.u32 %v6929_v32, 16  ;;  %v22261_v33 = vshll.u32 %v20290_v36, 16  ;;  %v22262_v9 = vshrl.u32 %v20290_v36, 16 }
 0x828   : > { %v6508_v56 = vmax.f32 %v6454_v34, 0.0  ;;  %v7092_v52 = vsel %vm7059_vm5, %v7089_v50, %v7091_v59  ;;  %v7585_v19 = vrot.slane %v7583_v57, 3  ;;  %v8101_v10 = vrot.slane %v7583_v57, 4 }
 0x829   : > { %v6214_v12 = vpop.f32.mrb[64].mxu0  ;;  %14489 = vmatmul.mubr.bf16.gmra.mrb[56].mxu1 %v7092_v52  ;;  %v7588_v24 = vrot.slane %v7586_v63, 4  ;;  %v8102_v18 = vrot.slane %v7586_v63, 5  ;;  %v6885_v23 = vmul.f32 %v6738_v42, %v6507_v7  ;;  %v9695_v32 = vrot.slane %v22261_v33, 1 }
 0x82a   : > { %v6886_v27 = vmul.f32 %v6743_v47, %v6508_v56  ;;  %v6394_v39 = vmul.f32 %v20266_v51, %v6214_v12  ;;  %v14370_v37 = vpop.f32.mrb[65].mxu0  ;;  %14492 = vmatprep.mubr.msk.bf16.mxu1 %vm17649_vm1, %v22344_v31 }
 0x82b   : > { %v6217_v34 = vpop.f32.mrb[66].mxu0  ;;  %v7589_v50 = vor.u32 %v7588_v24, %v7585_v19  ;;  %v8103_v4 = vor.u32 %v8102_v18, %v8101_v10  ;;  %v20306_v12 = vsel %vm1645_vm4, %v9691_v25, %v9695_v32  ;;  %v9699_v24 = vor.u32 %v9695_v32, %v22262_v9 }
 0x82c   : > { %v6930_v52 = vpack.c.bf16 %v6886_v27, %v6885_v23  ;;  %v6455_v57 = vadd.f32 %v20277_v48, %v6394_v39  ;;  %v6395_v7 = vmul.f32 %v20266_v51, %v6217_v34  ;;  %v14371_v47 = vpop.f32.mrb[67].mxu0  ;;  %22405 = vst [vmem:[#allocation36_spill] sm:$0xff] %v20306_v12  ;;  %v6748_v27 = vpop.permute.xlu0 %6747 }
 0x82d   : > { %v20309_v37 = vsel %vm865_vm3, %v7580_v17, %v7589_v50  ;;  %v20312_v63 = vsel %vm8032_vm6, %v8099_v5, %v8103_v4  ;;  %v6753_v34 = vpop.permute.xlu1 %6752 }
 0x82e   : > { %22406 = vst [vmem:[#allocation37_spill] sm:$0xff] %v20312_v63  ;;  %v20314_v42 = vld [vmem:[#allocation2 + $0x88] sm:$0xff]  ;;  %6957 = vst [vmem:[#allocation2 + $0x90] sm:$0xff] %v6930_v52  ;;  %v6509_v10 = vmax.f32 %v6455_v57, 0.0  ;;  %v6456_v23 = vadd.f32 %v20277_v48, %v6395_v7  ;;  %v7093_v56 = vrot.slane %v6930_v52, 4  ;;  %v7592_v19 = vshrl.u32 %v6930_v52, 16 }
 0x82f   : > { %22407 = vst [vmem:[#allocation38_spill] sm:$0xff] %v20314_v42  ;;  %v7595_v18 = vshll.u32 %v6930_v52, 16  ;;  %v22269_v25 = vshll.u32 %v20314_v42, 16  ;;  %v22270_v26 = vshrl.u32 %v20314_v42, 16 }
 0x830   : > { %v6510_v17 = vmax.f32 %v6456_v23, 0.0  ;;  %v7094_v39 = vsel %vm7059_vm5, %v7091_v59, %v7093_v56  ;;  %v7594_v5 = vrot.slane %v7592_v19, 3  ;;  %v8105_v12 = vrot.slane %v7592_v19, 4 }
 0x831   : > { %v6222_v47 = vpop.f32.mrb[68].mxu0  ;;  %14493 = vmatmul.mubr.bf16.gmra.mrb[60].mxu1 %v7094_v39  ;;  %v7597_v33 = vrot.slane %v7595_v18, 4  ;;  %v8106_v32 = vrot.slane %v7595_v18, 5  ;;  %v6887_v9 = vmul.f32 %v6748_v27, %v6509_v10  ;;  %v9703_v52 = vrot.slane %v22269_v25, 1 }
 0x832   : > { %v6888_v57 = vmul.f32 %v6753_v34, %v6510_v17  ;;  %v6396_v7 = vmul.f32 %v20266_v51, %v6222_v47  ;;  %v14374_v36 = vpop.f32.mrb[69].mxu0  ;;  %14496 = vmatprep.mubr.msk.bf16.mxu1 %vm17649_vm1, %v22344_v31 }
 0x833   : > { %v6225_v23 = vpop.f32.mrb[70].mxu0  ;;  %v7598_v59 = vor.u32 %v7597_v33, %v7594_v5  ;;  %v8107_v58 = vor.u32 %v8106_v32, %v8105_v12  ;;  %v20330_v27 = vsel %vm1645_vm4, %v9699_v24, %v9703_v52  ;;  %v9707_v33 = vor.u32 %v9703_v52, %v22270_v26 }
 0x834   : > { %v6931_v39 = vpack.c.bf16 %v6888_v57, %v6887_v9  ;;  %v6457_v19 = vadd.f32 %v20277_v48, %v6396_v7  ;;  %v6397_v10 = vmul.f32 %v20266_v51, %v6225_v23  ;;  %v14375_v18 = vpop.f32.mrb[71].mxu0  ;;  %22408 = vst [vmem:[#allocation39_spill] sm:$0xff] %v20330_v27  ;;  %v6758_v57 = vpop.permute.xlu0 %6757 }
 0x835   : > { %v20333_v36 = vsel %vm865_vm3, %v7589_v50, %v7598_v59  ;;  %v20336_v17 = vsel %vm8032_vm6, %v8103_v4, %v8107_v58  ;;  %v20338_v34 = vld [vmem:[#allocation2 + $0x90] sm:$0xff]  ;;  %v6763_v23 = vpop.permute.xlu1 %6762 }
 0x836   : > { %22409 = vst [vmem:[#allocation40_spill] sm:$0xff] %v20336_v17  ;;  %22410 = vst [vmem:[#allocation41_spill] sm:$0xff] %v20338_v34  ;;  %v6511_v9 = vmax.f32 %v6457_v19, 0.0  ;;  %v6458_v12 = vadd.f32 %v20277_v48, %v6397_v10  ;;  %v7095_v5 = vrot.slane %v6931_v39, 4  ;;  %v7601_v47 = vshrl.u32 %v6931_v39, 16 }
 0x837   : > { %6958 = vst [vmem:[#allocation2 + $0x98] sm:$0xff] %v6931_v39  ;;  %v7604_v32 = vshll.u32 %v6931_v39, 16  ;;  %v22277_v24 = vshll.u32 %v20338_v34, 16  ;;  %v22278_v29 = vshrl.u32 %v20338_v34, 16 }
 0x838   : > { %v6512_v50 = vmax.f32 %v6458_v12, 0.0  ;;  %v7096_v7 = vsel %vm7059_vm5, %v7093_v56, %v7095_v5  ;;  %v7603_v4 = vrot.slane %v7601_v47, 3  ;;  %v8109_v27 = vrot.slane %v7601_v47, 4 }
 0x839   : > { %v6230_v18 = vpop.f32.mrb[72].mxu0  ;;  %14497 = vmatmul.mubr.bf16.gmra.mrb[64].mxu1 %v7096_v7  ;;  %v7606_v25 = vrot.slane %v7604_v32, 4  ;;  %v8110_v52 = vrot.slane %v7604_v32, 5  ;;  %v6889_v26 = vmul.f32 %v6758_v57, %v6511_v9  ;;  %v9711_v39 = vrot.slane %v22277_v24, 1 }
 0x83a   : > { %v6890_v19 = vmul.f32 %v6763_v23, %v6512_v50  ;;  %v6398_v10 = vmul.f32 %v20266_v51, %v6230_v18  ;;  %v14378_v42 = vpop.f32.mrb[73].mxu0  ;;  %14500 = vmatprep.mubr.msk.bf16.mxu1 %vm17649_vm1, %v22344_v31 }
 0x83b   : > { %v6233_v12 = vpop.f32.mrb[74].mxu0  ;;  %v7607_v56 = vor.u32 %v7606_v25, %v7603_v4  ;;  %v8111_v49 = vor.u32 %v8110_v52, %v8109_v27  ;;  %v20354_v57 = vsel %vm1645_vm4, %v9707_v33, %v9711_v39  ;;  %v9715_v25 = vor.u32 %v9711_v39, %v22278_v29 }
 0x83c   : > { %v6932_v7 = vpack.c.bf16 %v6890_v19, %v6889_v26  ;;  %v6459_v47 = vadd.f32 %v20277_v48, %v6398_v10  ;;  %v6399_v9 = vmul.f32 %v20266_v51, %v6233_v12  ;;  %v14379_v32 = vpop.f32.mrb[75].mxu0  ;;  %22411 = vst [vmem:[#allocation42_spill] sm:$0xff] %v20354_v57  ;;  %v6768_v19 = vpop.permute.xlu0 %6767 }
 0x83d   : > { %v20357_v42 = vsel %vm865_vm3, %v7598_v59, %v7607_v56  ;;  %v20360_v50 = vsel %vm8032_vm6, %v8107_v58, %v8111_v49  ;;  %v6773_v12 = vpop.permute.xlu1 %6772 }
 0x83e   : > { %22412 = vst [vmem:[#allocation43_spill] sm:$0xff] %v20360_v50  ;;  %v20362_v23 = vld [vmem:[#allocation2 + $0x98] sm:$0xff]  ;;  %6959 = vst [vmem:[#allocation2 + $0xa0] sm:$0xff] %v6932_v7  ;;  %v6513_v26 = vmax.f32 %v6459_v47, 0.0  ;;  %v6460_v27 = vadd.f32 %v20277_v48, %v6399_v9  ;;  %v7097_v4 = vrot.slane %v6932_v7, 4  ;;  %v7610_v18 = vshrl.u32 %v6932_v7, 16 }
 0x83f   : > { %22413 = vst [vmem:[#allocation44_spill] sm:$0xff] %v20362_v23  ;;  %v7613_v52 = vshll.u32 %v6932_v7, 16  ;;  %v22281_v33 = vshll.u32 %v20362_v23, 16  ;;  %v22282_v17 = vshrl.u32 %v20362_v23, 16 }
 0x840   : > { %v6514_v59 = vmax.f32 %v6460_v27, 0.0  ;;  %v7098_v10 = vsel %vm7059_vm5, %v7095_v5, %v7097_v4  ;;  %v7612_v58 = vrot.slane %v7610_v18, 3  ;;  %v8113_v57 = vrot.slane %v7610_v18, 4 }
 0x841   : > { %v6238_v32 = vpop.f32.mrb[76].mxu0  ;;  %14501 = vmatmul.mubr.bf16.gmra.mrb[68].mxu1 %v7098_v10  ;;  %v7615_v24 = vrot.slane %v7613_v52, 4  ;;  %v8114_v39 = vrot.slane %v7613_v52, 5  ;;  %v6891_v29 = vmul.f32 %v6768_v19, %v6513_v26  ;;  %v9719_v7 = vrot.slane %v22281_v33, 1 }
 0x842   : > { %v6892_v47 = vmul.f32 %v6773_v12, %v6514_v59  ;;  %v6400_v9 = vmul.f32 %v20266_v51, %v6238_v32  ;;  %v14382_v34 = vpop.f32.mrb[77].mxu0  ;;  %14504 = vmatprep.mubr.msk.bf16.mxu1 %vm17649_vm1, %v22344_v31 }
 0x843   : > { %v6241_v27 = vpop.f32.mrb[78].mxu0  ;;  %v7616_v5 = vor.u32 %v7615_v24, %v7612_v58  ;;  %v8115_v50 = vor.u32 %v8114_v39, %v8113_v57  ;;  %v20378_v19 = vsel %vm1645_vm4, %v9715_v25, %v9719_v7  ;;  %v9723_v24 = vor.u32 %v9719_v7, %v22282_v17 }
 0x844   : > { %v6933_v10 = vpack.c.bf16 %v6892_v47, %v6891_v29  ;;  %v6461_v18 = vadd.f32 %v20277_v48, %v6400_v9  ;;  %v6401_v26 = vmul.f32 %v20266_v51, %v6241_v27  ;;  %v14383_v52 = vpop.f32.mrb[79].mxu0  ;;  %22414 = vst [vmem:[#allocation45_spill] sm:$0xff] %v20378_v19  ;;  %v6778_v47 = vpop.permute.xlu0 %6777 }
 0x845   : > { %v20381_v34 = vsel %vm865_vm3, %v7607_v56, %v7616_v5  ;;  %v20384_v59 = vsel %vm8032_vm6, %v8111_v49, %v8115_v50  ;;  %v20386_v12 = vld [vmem:[#allocation2 + $0xa0] sm:$0xff]  ;;  %v6783_v27 = vpop.permute.xlu1 %6782 }
 0x846   : > { %22415 = vst [vmem:[#allocation46_spill] sm:$0xff] %v20384_v59  ;;  %22416 = vst [vmem:[#allocation47_spill] sm:$0xff] %v20386_v12  ;;  %v6515_v29 = vmax.f32 %v6461_v18, 0.0  ;;  %v6462_v57 = vadd.f32 %v20277_v48, %v6401_v26  ;;  %v7099_v58 = vrot.slane %v6933_v10, 4  ;;  %v7619_v32 = vshrl.u32 %v6933_v10, 16 }
 0x847   : > { %6960 = vst [vmem:[#allocation2 + $0xa8] sm:$0xff] %v6933_v10  ;;  %v7622_v39 = vshll.u32 %v6933_v10, 16  ;;  %v22285_v25 = vshll.u32 %v20386_v12, 16  ;;  %v22286_v63 = vshrl.u32 %v20386_v12, 16 }
 0x848   : > { %v6516_v56 = vmax.f32 %v6462_v57, 0.0  ;;  %v7100_v9 = vsel %vm7059_vm5, %v7097_v4, %v7099_v58  ;;  %v7621_v49 = vrot.slane %v7619_v32, 3  ;;  %v8117_v19 = vrot.slane %v7619_v32, 4 }
 0x849   : > { %v6246_v52 = vpop.f32.mrb[80].mxu0  ;;  %14505 = vmatmul.mubr.bf16.gmra.mrb[72].mxu1 %v7100_v9  ;;  %v7624_v33 = vrot.slane %v7622_v39, 4  ;;  %v8118_v7 = vrot.slane %v7622_v39, 5  ;;  %v6893_v17 = vmul.f32 %v6778_v47, %v6515_v29  ;;  %v9727_v10 = vrot.slane %v22285_v25, 1 }
 0x84a   : > { %v6894_v18 = vmul.f32 %v6783_v27, %v6516_v56  ;;  %v6402_v26 = vmul.f32 %v20266_v51, %v6246_v52  ;;  %v14386_v23 = vpop.f32.mrb[81].mxu0  ;;  %14508 = vmatprep.mubr.msk.bf16.mxu1 %vm17649_vm1, %v22344_v31 }
 0x84b   : > { %v6249_v57 = vpop.f32.mrb[82].mxu0  ;;  %v7625_v4 = vor.u32 %v7624_v33, %v7621_v49  ;;  %v8119_v59 = vor.u32 %v8118_v7, %v8117_v19  ;;  %v20402_v47 = vsel %vm1645_vm4, %v9723_v24, %v9727_v10  ;;  %v9731_v33 = vor.u32 %v9727_v10, %v22286_v63 }
 0x84c   : > { %v6934_v9 = vpack.c.bf16 %v6894_v18, %v6893_v17  ;;  %v6463_v32 = vadd.f32 %v20277_v48, %v6402_v26  ;;  %v6403_v29 = vmul.f32 %v20266_v51, %v6249_v57  ;;  %v14387_v39 = vpop.f32.mrb[83].mxu0  ;;  %22417 = vst [vmem:[#allocation48_spill] sm:$0xff] %v20402_v47  ;;  %v6788_v18 = vpop.permute.xlu0 %6787 }
 0x84d   : > { %v20405_v23 = vsel %vm865_vm3, %v7616_v5, %v7625_v4  ;;  %v20408_v56 = vsel %vm8032_vm6, %v8115_v50, %v8119_v59  ;;  %v6793_v57 = vpop.permute.xlu1 %6792 }
 0x84e   : > { %22418 = vst [vmem:[#allocation49_spill] sm:$0xff] %v20408_v56  ;;  %v20410_v27 = vld [vmem:[#allocation2 + $0xa8] sm:$0xff]  ;;  %6961 = vst [vmem:[#allocation2 + $0xb0] sm:$0xff] %v6934_v9  ;;  %v6517_v17 = vmax.f32 %v6463_v32, 0.0  ;;  %v6464_v19 = vadd.f32 %v20277_v48, %v6403_v29  ;;  %v7101_v49 = vrot.slane %v6934_v9, 4  ;;  %v7628_v52 = vshrl.u32 %v6934_v9, 16 }
 0x84f   : > { %22419 = vst [vmem:[#allocation50_spill] sm:$0xff] %v20410_v27  ;;  %v7631_v7 = vshll.u32 %v6934_v9, 16  ;;  %v22289_v24 = vshll.u32 %v20410_v27, 16  ;;  %v22290_v40 = vshrl.u32 %v20410_v27, 16 }
 0x850   : > { %v6518_v5 = vmax.f32 %v6464_v19, 0.0  ;;  %v7102_v26 = vsel %vm7059_vm5, %v7099_v58, %v7101_v49  ;;  %v7630_v50 = vrot.slane %v7628_v52, 3  ;;  %v8121_v47 = vrot.slane %v7628_v52, 4 }
 0x851   : > { %v6254_v39 = vpop.f32.mrb[84].mxu0  ;;  %14509 = vmatmul.mubr.bf16.gmra.mrb[76].mxu1 %v7102_v26  ;;  %v7633_v25 = vrot.slane %v7631_v7, 4  ;;  %v8122_v10 = vrot.slane %v7631_v7, 5  ;;  %v6895_v63 = vmul.f32 %v6788_v18, %v6517_v17  ;;  %v9735_v9 = vrot.slane %v22289_v24, 1 }
 0x852   : > { %v6896_v32 = vmul.f32 %v6793_v57, %v6518_v5  ;;  %v6404_v29 = vmul.f32 %v20266_v51, %v6254_v39  ;;  %v14390_v12 = vpop.f32.mrb[85].mxu0  ;;  %14512 = vmatprep.mubr.msk.bf16.mxu1 %vm17649_vm1, %v22344_v31 }
 0x853   : > { %v6257_v19 = vpop.f32.mrb[86].mxu0  ;;  %v7634_v58 = vor.u32 %v7633_v25, %v7630_v50  ;;  %v8123_v56 = vor.u32 %v8122_v10, %v8121_v47  ;;  %v20426_v18 = vsel %vm1645_vm4, %v9731_v33, %v9735_v9  ;;  %v9739_v25 = vor.u32 %v9735_v9, %v22290_v40 }
 0x854   : > { %v6935_v26 = vpack.c.bf16 %v6896_v32, %v6895_v63  ;;  %v6465_v52 = vadd.f32 %v20277_v48, %v6404_v29  ;;  %v6405_v17 = vmul.f32 %v20266_v51, %v6257_v19  ;;  %v14391_v7 = vpop.f32.mrb[87].mxu0  ;;  %22420 = vst [vmem:[#allocation51_spill] sm:$0xff] %v20426_v18  ;;  %v6798_v32 = vpop.permute.xlu0 %6797 }
 0x855   : > { %v20429_v12 = vsel %vm865_vm3, %v7625_v4, %v7634_v58  ;;  %v20432_v5 = vsel %vm8032_vm6, %v8119_v59, %v8123_v56  ;;  %v20434_v57 = vld [vmem:[#allocation2 + $0xb0] sm:$0xff]  ;;  %v6803_v19 = vpop.permute.xlu1 %6802 }
 0x856   : > { %22421 = vst [vmem:[#allocation52_spill] sm:$0xff] %v20432_v5  ;;  %22422 = vst [vmem:[#allocation53_spill] sm:$0xff] %v20434_v57  ;;  %v6519_v63 = vmax.f32 %v6465_v52, 0.0  ;;  %v6466_v47 = vadd.f32 %v20277_v48, %v6405_v17  ;;  %v7103_v50 = vrot.slane %v6935_v26, 4  ;;  %v7637_v39 = vshrl.u32 %v6935_v26, 16 }
 0x857   : > { %6962 = vst [vmem:[#allocation2 + $0xb8] sm:$0xff] %v6935_v26  ;;  %v7640_v10 = vshll.u32 %v6935_v26, 16  ;;  %v22293_v33 = vshll.u32 %v20434_v57, 16  ;;  %v22294_v6 = vshrl.u32 %v20434_v57, 16 }
 0x858   : > { %v6520_v4 = vmax.f32 %v6466_v47, 0.0  ;;  %v7104_v29 = vsel %vm7059_vm5, %v7101_v49, %v7103_v50  ;;  %v7639_v59 = vrot.slane %v7637_v39, 3  ;;  %v8125_v18 = vrot.slane %v7637_v39, 4 }
 0x859   : > { %v6262_v7 = vpop.f32.mrb[88].mxu0  ;;  %14513 = vmatmul.mubr.bf16.gmra.mrb[80].mxu1 %v7104_v29  ;;  %v7642_v24 = vrot.slane %v7640_v10, 4  ;;  %v8126_v9 = vrot.slane %v7640_v10, 5  ;;  %v6897_v40 = vmul.f32 %v6798_v32, %v6519_v63  ;;  %v9743_v26 = vrot.slane %v22293_v33, 1 }
 0x85a   : > { %v6898_v52 = vmul.f32 %v6803_v19, %v6520_v4  ;;  %v6406_v17 = vmul.f32 %v20266_v51, %v6262_v7  ;;  %v14394_v27 = vpop.f32.mrb[89].mxu0  ;;  %14516 = vmatprep.mubr.msk.bf16.mxu1 %vm17649_vm1, %v22344_v31 }
 0x85b   : > { %v6265_v47 = vpop.f32.mrb[90].mxu0  ;;  %v7643_v49 = vor.u32 %v7642_v24, %v7639_v59  ;;  %v8127_v5 = vor.u32 %v8126_v9, %v8125_v18  ;;  %v20450_v32 = vsel %vm1645_vm4, %v9739_v25, %v9743_v26  ;;  %v9747_v24 = vor.u32 %v9743_v26, %v22294_v6 }
 0x85c   : > { %v6936_v29 = vpack.c.bf16 %v6898_v52, %v6897_v40  ;;  %v6467_v39 = vadd.f32 %v20277_v48, %v6406_v17  ;;  %v6407_v63 = vmul.f32 %v20266_v51, %v6265_v47  ;;  %v14395_v10 = vpop.f32.mrb[91].mxu0  ;;  %22423 = vst [vmem:[#allocation54_spill] sm:$0xff] %v20450_v32  ;;  %v6808_v52 = vpop.permute.xlu0 %6807 }
 0x85d   : > { %v20453_v27 = vsel %vm865_vm3, %v7634_v58, %v7643_v49  ;;  %v20456_v4 = vsel %vm8032_vm6, %v8123_v56, %v8127_v5  ;;  %v6813_v47 = vpop.permute.xlu1 %6812 }
 0x85e   : > { %22424 = vst [vmem:[#allocation55_spill] sm:$0xff] %v20456_v4  ;;  %v20458_v19 = vld [vmem:[#allocation2 + $0xb8] sm:$0xff]  ;;  %6963 = vst [vmem:[#allocation2 + $0xc0] sm:$0xff] %v6936_v29  ;;  %v6521_v40 = vmax.f32 %v6467_v39, 0.0  ;;  %v6468_v18 = vadd.f32 %v20277_v48, %v6407_v63  ;;  %v7105_v59 = vrot.slane %v6936_v29, 4  ;;  %v7646_v7 = vshrl.u32 %v6936_v29, 16 }
 0x85f   : > { %22425 = vst [vmem:[#allocation56_spill] sm:$0xff] %v20458_v19  ;;  %v7649_v9 = vshll.u32 %v6936_v29, 16  ;;  %v22297_v25 = vshll.u32 %v20458_v19, 16  ;;  %v22298_v60 = vshrl.u32 %v20458_v19, 16 }
 0x860   : > { %v6522_v58 = vmax.f32 %v6468_v18, 0.0  ;;  %v7106_v17 = vsel %vm7059_vm5, %v7103_v50, %v7105_v59  ;;  %v7648_v56 = vrot.slane %v7646_v7, 3  ;;  %v8129_v32 = vrot.slane %v7646_v7, 4 }
 0x861   : > { %v6270_v10 = vpop.f32.mrb[92].mxu0  ;;  %14517 = vmatmul.mubr.bf16.gmra.mrb[84].mxu1 %v7106_v17  ;;  %v7651_v33 = vrot.slane %v7649_v9, 4  ;;  %v8130_v26 = vrot.slane %v7649_v9, 5  ;;  %v6899_v6 = vmul.f32 %v6808_v52, %v6521_v40  ;;  %v9751_v29 = vrot.slane %v22297_v25, 1 }
 0x862   : > { %v6900_v39 = vmul.f32 %v6813_v47, %v6522_v58  ;;  %v6408_v63 = vmul.f32 %v20266_v51, %v6270_v10  ;;  %v14398_v57 = vpop.f32.mrb[93].mxu0  ;;  %14520 = vmatprep.mubr.msk.bf16.mxu1 %vm17649_vm1, %v22344_v31 }
 0x863   : > { %v6273_v18 = vpop.f32.mrb[94].mxu0  ;;  %v7652_v50 = vor.u32 %v7651_v33, %v7648_v56  ;;  %v8131_v4 = vor.u32 %v8130_v26, %v8129_v32  ;;  %v20474_v52 = vsel %vm1645_vm4, %v9747_v24, %v9751_v29  ;;  %v9755_v33 = vor.u32 %v9751_v29, %v22298_v60 }
 0x864   : > { %v6937_v17 = vpack.c.bf16 %v6900_v39, %v6899_v6  ;;  %v6469_v7 = vadd.f32 %v20277_v48, %v6408_v63  ;;  %v6409_v40 = vmul.f32 %v20266_v51, %v6273_v18  ;;  %v14399_v9 = vpop.f32.mrb[95].mxu0  ;;  %22426 = vst [vmem:[#allocation57_spill] sm:$0xff] %v20474_v52  ;;  %v6818_v39 = vpop.permute.xlu0 %6817 }
 0x865   : > { %v20477_v57 = vsel %vm865_vm3, %v7643_v49, %v7652_v50  ;;  %v20480_v58 = vsel %vm8032_vm6, %v8127_v5, %v8131_v4  ;;  %v20482_v47 = vld [vmem:[#allocation2 + $0xc0] sm:$0xff]  ;;  %v6823_v18 = vpop.permute.xlu1 %6822 }
 0x866   : > { %22427 = vst [vmem:[#allocation58_spill] sm:$0xff] %v20480_v58  ;;  %22428 = vst [vmem:[#allocation59_spill] sm:$0xff] %v20482_v47  ;;  %v6523_v6 = vmax.f32 %v6469_v7, 0.0  ;;  %v6470_v32 = vadd.f32 %v20277_v48, %v6409_v40  ;;  %v7107_v56 = vrot.slane %v6937_v17, 4  ;;  %v7655_v10 = vshrl.u32 %v6937_v17, 16 }
 0x867   : > { %6964 = vst [vmem:[#allocation2 + $0xc8] sm:$0xff] %v6937_v17  ;;  %v7658_v26 = vshll.u32 %v6937_v17, 16  ;;  %v22301_v24 = vshll.u32 %v20482_v47, 16  ;;  %v22302_v14 = vshrl.u32 %v20482_v47, 16 }
 0x868   : > { %v6524_v49 = vmax.f32 %v6470_v32, 0.0  ;;  %v7108_v63 = vsel %vm7059_vm5, %v7105_v59, %v7107_v56  ;;  %v7657_v5 = vrot.slane %v7655_v10, 3  ;;  %v8133_v52 = vrot.slane %v7655_v10, 4 }
 0x869   : > { %v6278_v9 = vpop.f32.mrb[96].mxu0  ;;  %14521 = vmatmul.mubr.bf16.gmra.mrb[88].mxu1 %v7108_v63  ;;  %v7660_v25 = vrot.slane %v7658_v26, 4  ;;  %v8134_v29 = vrot.slane %v7658_v26, 5  ;;  %v6901_v60 = vmul.f32 %v6818_v39, %v6523_v6  ;;  %v9759_v17 = vrot.slane %v22301_v24, 1 }
 0x86a   : > { %v6902_v7 = vmul.f32 %v6823_v18, %v6524_v49  ;;  %v6410_v40 = vmul.f32 %v20266_v51, %v6278_v9  ;;  %v14402_v19 = vpop.f32.mrb[97].mxu0  ;;  %14524 = vmatprep.mubr.msk.bf16.mxu1 %vm17649_vm1, %v22344_v31 }
 0x86b   : > { %v6281_v32 = vpop.f32.mrb[98].mxu0  ;;  %v7661_v59 = vor.u32 %v7660_v25, %v7657_v5  ;;  %v8135_v58 = vor.u32 %v8134_v29, %v8133_v52  ;;  %v20498_v39 = vsel %vm1645_vm4, %v9755_v33, %v9759_v17  ;;  %v9763_v25 = vor.u32 %v9759_v17, %v22302_v14 }
 0x86c   : > { %v6938_v63 = vpack.c.bf16 %v6902_v7, %v6901_v60  ;;  %v6471_v10 = vadd.f32 %v20277_v48, %v6410_v40  ;;  %v6411_v6 = vmul.f32 %v20266_v51, %v6281_v32  ;;  %v14403_v26 = vpop.f32.mrb[99].mxu0  ;;  %22429 = vst [vmem:[#allocation60_spill] sm:$0xff] %v20498_v39  ;;  %v6828_v7 = vpop.permute.xlu0 %6827 }
 0x86d   : > { %v20501_v19 = vsel %vm865_vm3, %v7652_v50, %v7661_v59  ;;  %v20504_v49 = vsel %vm8032_vm6, %v8131_v4, %v8135_v58  ;;  %v6833_v32 = vpop.permute.xlu1 %6832 }
 0x86e   : > { %22430 = vst [vmem:[#allocation61_spill] sm:$0xff] %v20504_v49  ;;  %v20506_v18 = vld [vmem:[#allocation2 + $0xc8] sm:$0xff]  ;;  %6965 = vst [vmem:[#allocation2 + $0xd0] sm:$0xff] %v6938_v63  ;;  %v6525_v60 = vmax.f32 %v6471_v10, 0.0  ;;  %v6472_v52 = vadd.f32 %v20277_v48, %v6411_v6  ;;  %v7109_v5 = vrot.slane %v6938_v63, 4  ;;  %v7664_v9 = vshrl.u32 %v6938_v63, 16 }
 0x86f   : > { %22431 = vst [vmem:[#allocation62_spill] sm:$0xff] %v20506_v18  ;;  %v7667_v29 = vshll.u32 %v6938_v63, 16  ;;  %v22305_v33 = vshll.u32 %v20506_v18, 16  ;;  %v22306_v13 = vshrl.u32 %v20506_v18, 16 }
 0x870   : > { %v6526_v50 = vmax.f32 %v6472_v52, 0.0  ;;  %v7110_v40 = vsel %vm7059_vm5, %v7107_v56, %v7109_v5  ;;  %v7666_v4 = vrot.slane %v7664_v9, 3  ;;  %v8137_v39 = vrot.slane %v7664_v9, 4 }
 0x871   : > { %v6286_v26 = vpop.f32.mrb[100].mxu0  ;;  %14525 = vmatmul.mubr.bf16.gmra.mrb[92].mxu1 %v7110_v40  ;;  %v7669_v24 = vrot.slane %v7667_v29, 4  ;;  %v8138_v17 = vrot.slane %v7667_v29, 5  ;;  %v6903_v14 = vmul.f32 %v6828_v7, %v6525_v60  ;;  %v9767_v63 = vrot.slane %v22305_v33, 1 }
 0x872   : > { %v6904_v10 = vmul.f32 %v6833_v32, %v6526_v50  ;;  %v6412_v6 = vmul.f32 %v20266_v51, %v6286_v26  ;;  %v14406_v47 = vpop.f32.mrb[101].mxu0  ;;  %14528 = vmatprep.mubr.msk.bf16.mxu1 %vm17649_vm1, %v22344_v31 }
 0x873   : > { %v6289_v52 = vpop.f32.mrb[102].mxu0  ;;  %v7670_v56 = vor.u32 %v7669_v24, %v7666_v4  ;;  %v8139_v49 = vor.u32 %v8138_v17, %v8137_v39  ;;  %v20524_v47 = vsel %vm1645_vm4, %v9763_v25, %v9767_v63 }
 0x874   : > { %v20519_v40 = vpack.c.bf16 %v6904_v10, %v6903_v14  ;;  %v6473_v9 = vadd.f32 %v20277_v48, %v6412_v6  ;;  %v6413_v60 = vmul.f32 %v20266_v51, %v6289_v52  ;;  %v14407_v29 = vpop.f32.mrb[103].mxu0  ;;  %22432 = vst [vmem:[#allocation63_spill] sm:$0xff] %v20524_v47  ;;  %v9771_v14 = vor.u32 %v9767_v63, %v22306_v13  ;;  %v6843_v52 = vpop.permute.xlu1 %6842 }
 0x875   : > { %v20527_v7 = vsel %vm865_vm3, %v7661_v59, %v7670_v56  ;;  %v20530_v50 = vsel %vm8032_vm6, %v8135_v58, %v8139_v49  ;;  %v20532_v24 = vld [vmem:[#allocation2 + $0xd0] sm:$0xff]  ;;  %v6838_v58 = vpop.permute.xlu0 %6837 }
 0x876   : > { %22433 = vst [vmem:[#allocation64_spill] sm:$0xff] %v20530_v50  ;;  %22434 = vst [vmem:[#allocation65_spill] sm:$0xff] %v20532_v24  ;;  %v6527_v39 = vmax.f32 %v6473_v9, 0.0  ;;  %v6474_v4 = vadd.f32 %v20277_v48, %v6413_v60  ;;  %v7111_v32 = vrot.slane %v20519_v40, 4  ;;  %v7673_v25 = vshrl.u32 %v20519_v40, 16 }
 0x877   : > { %6966 = vst [vmem:[#allocation2 + $0xd8] sm:$0xff] %v20519_v40  ;;  %v7676_v59 = vshll.u32 %v20519_v40, 16  ;;  %v22309_v26 = vshll.u32 %v20532_v24, 16 }
 0x878   : > { %v6528_v17 = vmax.f32 %v6474_v4, 0.0  ;;  %v7112_v10 = vsel %vm7059_vm5, %v7109_v5, %v7111_v32  ;;  %v7675_v6 = vrot.slane %v7673_v25, 3  ;;  %v8141_v9 = vrot.slane %v7673_v25, 4 }
 0x879   : > { %v6294_v63 = vpop.f32.mrb[104].mxu0  ;;  %14529 = vmatmul.mubr.bf16.gmra.mrb[96].mxu1 %v7112_v10  ;;  %v7678_v29 = vrot.slane %v7676_v59, 4  ;;  %v8142_v33 = vrot.slane %v7676_v59, 5  ;;  %v6905_v60 = vmul.f32 %v6838_v58, %v6527_v39  ;;  %v9775_v40 = vrot.slane %v22309_v26, 1 }
 0x87a   : > { %v6906_v13 = vmul.f32 %v6843_v52, %v6528_v17  ;;  %v6414_v47 = vmul.f32 %v20266_v51, %v6294_v63  ;;  %v14410_v18 = vpop.f32.mrb[105].mxu0  ;;  %14532 = vmatprep.mubr.msk.bf16.mxu1 %vm17649_vm1, %v22344_v31  ;;  %v22311_v10 = vshrl.u32 %v20532_v24, 16  ;;  %v22437_v24 = vmov 0  }
 0x87b   : > { %v6297_v4 = vpop.f32.mrb[106].mxu0  ;;  %v7679_v5 = vor.u32 %v7678_v29, %v7675_v6  ;;  %v20548_v50 = vor.u32 %v8142_v33, %v8141_v9  ;;  %v20554_v18 = vsel %vm1645_vm4, %v9771_v14, %v9775_v40  ;;  %v6969_v6 = vld [vmem:[#allocation2 + $0x8] sm:$0xf8]  ;;  %v6853_v29 = vpop.permute.xlu1 %6852 }
 0x87c   : > { %v6940_v30 = vpack.c.bf16 %v6906_v13, %v6905_v60  ;;  %v6475_v25 = vadd.f32 %v20277_v48, %v6414_v47  ;;  %v6415_v39 = vmul.f32 %v20266_v51, %v6297_v4  ;;  %v14411_v59 = vpop.f32.mrb[107].mxu0  ;;  %22435 = vst [vmem:[#allocation66_spill] sm:$0xff] %v20554_v18  ;;  %v9779_v13 = vor.u32 %v9775_v40, %v22311_v10 }
 0x87d   : > { %v20557_v58 = vsel %vm865_vm3, %v7670_v56, %v7679_v5  ;;  %v20561_v17 = vsel %vm8032_vm6, %v8139_v49, %v20548_v50  ;;  %v6848_v49 = vpop.permute.xlu0 %6847  ;;  %v7440_v9 = vshrl.u32 %v6969_v6, 16  ;;  %v7443_v60 = vshll.u32 %v6969_v6, 16 }
 0x87e   : > { %v20563_v33 = vld [vmem:[#allocation2 + $0xd8] sm:$0xff]  ;;  %6967 = vst [vmem:[#allocation2 + $0xe0] sm:$0xff] %v6940_v30  ;;  %v6529_v47 = vmax.f32 %v6475_v25, 0.0  ;;  %v6476_v51 = vadd.f32 %v20277_v48, %v6415_v39  ;;  %v7450_v6 = vrot.slane %v22437_v24, 3 }
 0x87f   : > { %v22310_v14 = vshll.u32 %v20563_v33, 16  ;;  %v22319_v56 = vshrl.u32 %v20563_v33, 16  ;;  %v7442_v39 = vrot.slane %v7440_v9, 3 }
 0x880   : > { %v6530_v52 = vmax.f32 %v6476_v51, 0.0  ;;  %v6907_v4 = vmul.f32 %v6848_v49, %v6529_v47 }
 0x881   : > { %v9783_v63 = vrot.slane %v22310_v14, 1  ;;  %v7445_v14 = vrot.slane %v7443_v60, 4 }
 0x882   : > { %v6908_v59 = vmul.f32 %v6853_v29, %v6530_v52 }
 0x883   : > { %v20573_v30 = vsel %vm1645_vm4, %v9779_v13, %v9783_v63  ;;  %v9787_v48 = vor.u32 %v9783_v63, %v22319_v56  ;;  %v7446_v9 = vor.u32 %v7445_v14, %v7442_v39  ;;  %v17550_v14 = vld [vmem:[%s22196_s5 + $0x80] sm:$0xff]  }
 0x884   : > { %22436 = vst [vmem:[#allocation67_spill] sm:$0xff] %v20573_v30  ;;  %v6941_v40 = vpack.c.bf16 %v6908_v59, %v6907_v4 }
 0x885   : > { %v6996_v25 = vld [vmem:[#allocation2 + $0xe0] sm:$0xf] }
 0x886   : > { %v20577_v51 = vld [vmem:[#allocation2 + $0xe0] sm:$0xff]  ;;  %6968 = vst [vmem:[#allocation2 + $0xe8] sm:$0xff] %v6941_v40  ;;  %v7113_v26 = vrot.slane %v6996_v25, 4  ;;  %v7682_v10 = vshrl.u32 %v6996_v25, 16  ;;  %v7685_v18 = vshll.u32 %v6996_v25, 16 }
 0x887   : > { %v22316_v47 = vshll.u32 %v20577_v51, 16  ;;  %v22318_v63 = vshrl.u32 %v20577_v51, 16 }
 0x888   : > { %v7114_v13 = vsel %vm7059_vm5, %v7111_v32, %v7113_v26  ;;  %v7684_v52 = vrot.slane %v7682_v10, 3  ;;  %v7687_v49 = vrot.slane %v7685_v18, 4  ;;  %v7454_v32 = vor.u32 %v19829_v11, %v7450_v6  ;;  %v17552_v6 = vld [vmem:[%s22196_s5 + $0x90] sm:$0xff]  }
 0x889   : > { %14533 = vmatmul.mubr.bf16.gmra.mrb[100].mxu1 %v7114_v13  ;;  %v9791_v29 = vrot.slane %v22316_v47, 1  ;;  %v20695_v11 = vld [vmem:[#allocation2 + $0xb0] sm:$0xff] }
 0x88a   : > { %14552 = vmatprep.mubr.msk.bf16.mxu1 %vm17649_vm1, %v22344_v31  ;;  %v7688_v60 = vor.u32 %v7687_v49, %v7684_v52  ;;  %v7455_v18 = vsel %vm865_vm3, %v7446_v9, %v7454_v32  ;;  %v7464_v13 = vsel %vm865_vm3, %v7454_v32, %v19964_v45  ;;  %v17553_v52 = vld [vmem:[%s22196_s5 + $0x98] sm:$0xff]   ;;  %v17554_v49 = vld [vmem:[%s22196_s5 + $0xa0] sm:$0xff]   ;;  %v17555_v45 = vld [vmem:[%s22196_s5 + $0xa8] sm:$0xff]  }
 0x88b   : > { %v20588_v4 = vsel %vm1645_vm4, %v9787_v48, %v9791_v29  ;;  %v9795_v24 = vor.u32 %v9791_v29, %v22318_v63  ;;  %v20642_v29 = vld [vmem:[#allocation2 + $0x70] sm:$0xff]  ;;  %v20644_v9 = vld [vmem:[#allocation2 + $0x78] sm:$0xff] }
 0x88c   : > { %22438 = vst [vmem:[#allocation68_spill] sm:$0xff] %v20588_v4  ;;  %v20594_v26 = vsel %vm865_vm3, %v7679_v5, %v7688_v60  ;;  %v17551_v5 = vld [vmem:[%s22196_s5 + $0x88] sm:$0xff]   ;;  %22442 = vst [vmem:[#allocation72_spill] sm:$0xff] %v20642_v29  ;;  %v20646_v60 = vld [vmem:[#allocation2 + $0x80] sm:$0xff] }
 0x88d   : > { %v20596_v10 = vld [vmem:[#allocation2 + $0xe8] sm:$0xff]  ;;  %22443 = vst [vmem:[#allocation73_spill] sm:$0xff] %v20644_v9  ;;  %v20652_v32 = vld [vmem:[#allocation2 + $0x98] sm:$0xff]  ;;  %v22462_v30 = vshll.u32 %v20646_v60, 16 }
 0x88e   : > { %22439 = vst [vmem:[#allocation69_spill] sm:$0xff] %v20596_v10  ;;  %v22314_v59 = vshll.u32 %v20596_v10, 16  ;;  %v22315_v48 = vshrl.u32 %v20596_v10, 16 }
 0x890   : > { %v9799_v40 = vrot.slane %v22314_v59, 1  ;;  %v10936_v59 = vrot.slane %v20652_v32, 4 }
 0x891   : > { %14553 = vmatmul.mubr.bf16.vlgmr.msra.gmra.mrb[104].mxu1 %v7455_v18  ;;  %v20654_v18 = vld [vmem:[#allocation2 + $0xa0] sm:$0xff] }
 0x892   : > { %14661 = vmatpush3.bf16.msra.mxu1 %v17550_v14  ;;  %14556 = vmatprep.mubr.msk.bf16.mxu1 %vm17649_vm1, %v22344_v31  ;;  %v20612_v25 = vsel %vm1645_vm4, %v9795_v24, %v9799_v40  ;;  %v20616_v39 = vor.u32 %v9799_v40, %v22315_v48  ;;  %v20648_v24 = vld [vmem:[#allocation2 + $0x88] sm:$0xff]  ;;  %v22317_v14 = vrot.slane %v20642_v29, 4  ;;  %v10928_v40 = vrot.slane %v20644_v9, 4 }
 0x893   : > { %22440 = vst [vmem:[#allocation70_spill] sm:$0xff] %v20612_v25  ;;  %14662 = vmatprep.subr.bf16.mxu1 %v22344_v31  ;;  %v10938_v48 = vrot.slane %v20654_v18, 4 }
 0x894   : > { %22441 = vst [vmem:[#allocation71_spill] sm:$0xff] %v20616_v39 }
 0x896   : > { %14663 = vmatpush3.bf16.msra.mxu1 %v17551_v5  ;;  %v20659_v5 = vld [vmem:[#allocation2 + $0xa8] sm:$0xff] }
 0x897   : > { %14664 = vmatprep.subr.bf16.mxu1 %v22344_v31  ;;  %22444 = vst [vmem:[#allocation74_spill] sm:$0xff] %v20659_v5 }
 0x899   : > { %14557 = vmatmul.mubr.bf16.gmra.mrb[0].mxu1 %v7464_v13  ;;  %v20665_v13 = vsel %vm7059_vm5, %v22317_v14, %v10928_v40  ;;  %v10940_v14 = vrot.slane %v20659_v5, 4 }
 0x89a   : > { %14560 = vmatprep.mubr.msk.bf16.mxu1 %vm17649_vm1, %v22344_v31  ;;  %14665 = vmatpush3.bf16.msra.mxu1 %v17552_v6  ;;  %v10930_v6 = vrot.slane %v20646_v60, 4  ;;  %22445 = vst [vmem:[#allocation75_spill] sm:$0xff] %v20665_v13 }
 0x89b   : > { %14666 = vmatprep.subr.bf16.mxu1 %v22344_v31  ;;  %v20691_v56 = vsel %vm7059_vm5, %v10938_v48, %v10940_v14 }
 0x89c   : > { %22451 = vst [vmem:[#allocation81_spill] sm:$0xff] %v20691_v56  ;;  %v20731_v56 = vld [vmem:[#allocation2 + $0xb8] sm:$0xff] }
 0x89e   : > { %14667 = vmatpush3.bf16.msra.mxu1 %v17553_v52  ;;  %v10932_v52 = vrot.slane %v20648_v24, 4 }
 0x89f   : > { %14668 = vmatprep.subr.bf16.mxu1 %v22344_v31 }
 0x8a0   : > { %v20678_v47 = vsel %vm7059_vm5, %v10930_v6, %v10932_v52 }
 0x8a1   : > { %14561 = vmatmul.mubr.bf16.gmra.mrb[4].mxu1 %v19972_v22  ;;  %v20650_v22 = vld [vmem:[#allocation2 + $0x90] sm:$0xff]  ;;  %22447 = vst [vmem:[#allocation77_spill] sm:$0xff] %v20678_v47 }
 0x8a2   : > { %14564 = vmatprep.mubr.msk.bf16.mxu1 %vm17649_vm1, %v22344_v31  ;;  %14669 = vmatpush3.bf16.msra.mxu1 %v17554_v49  ;;  %v20670_v49 = vsel %vm7059_vm5, %v10928_v40, %v10930_v6  ;;  %v20688_v40 = vsel %vm7059_vm5, %v10936_v59, %v10938_v48  ;;  %v22457_v6 = vshll.u32 %v20642_v29, 16 }
 0x8a3   : > { %14670 = vmatprep.subr.bf16.mxu1 %v22344_v31  ;;  %22446 = vst [vmem:[#allocation76_spill] sm:$0xff] %v20670_v49  ;;  %22450 = vst [vmem:[#allocation80_spill] sm:$0xff] %v20688_v40  ;;  %v20693_v49 = vld [vmem:[#allocation2 + $0x68] sm:$0xff] }
 0x8a4   : > { %22452 = vst [vmem:[#allocation82_spill] sm:$0xff] %v20693_v49  ;;  %v22454_v47 = vshrl.u32 %v20693_v49, 16  ;;  %v11403_v13 = vrot.slane %v22457_v6, 5  ;;  %v22463_v6 = vshrl.u32 %v20648_v24, 16 }
 0x8a6   : > { %14671 = vmatpush3.bf16.msra.mxu1 %v17555_v45  ;;  %v10934_v45 = vrot.slane %v20650_v22, 4  ;;  %v11414_v10 = vrot.slane %v22463_v6, 4 }
 0x8a7   : > { %14672 = vmatprep.subr.bf16.mxu1 %v22344_v31 }
 0x8a8   : > { %v20682_v63 = vsel %vm7059_vm5, %v10932_v52, %v10934_v45  ;;  %v22458_v52 = vshrl.u32 %v20644_v9, 16 }
 0x8a9   : > { %14565 = vmatmul.mubr.bf16.gmra.mrb[8].mxu1 %v19999_v53  ;;  %22448 = vst [vmem:[#allocation78_spill] sm:$0xff] %v20682_v63  ;;  %v20685_v53 = vsel %vm7059_vm5, %v10934_v45, %v10936_v59  ;;  %v10942_v63 = vrot.slane %v20695_v11, 4  ;;  %v17556_v59 = vld [vmem:[%s22196_s5 + $0xb0] sm:$0xff]  }
 0x8aa   : > { %14568 = vmatprep.mubr.msk.bf16.mxu1 %vm17649_vm1, %v22344_v31  ;;  %22449 = vst [vmem:[#allocation79_spill] sm:$0xff] %v20685_v53  ;;  %14673 = vmatpush3.bf16.msra.mxu1 %v17556_v59  ;;  %v11398_v53 = vrot.slane %v22454_v47, 4  ;;  %v22456_v59 = vshrl.u32 %v20642_v29, 16  ;;  %v11406_v39 = vrot.slane %v22458_v52, 4  ;;  %v11411_v29 = vrot.slane %v22462_v30, 5 }
 0x8ab   : > { %v20715_v40 = vsel %vm7059_vm5, %v10940_v14, %v10942_v63  ;;  %14674 = vmatprep.subr.bf16.mxu1 %v22344_v31  ;;  %v10944_v47 = vrot.slane %v20731_v56, 4  ;;  %v22466_v30 = vshrl.u32 %v20650_v22, 16  ;;  %v22473_v52 = vshrl.u32 %v20654_v18, 16 }
 0x8ac   : > { %22453 = vst [vmem:[#allocation83_spill] sm:$0xff] %v20715_v40  ;;  %v11402_v40 = vrot.slane %v22456_v59, 4  ;;  %v22460_v59 = vshrl.u32 %v20646_v60, 16 }
 0x8ae   : > { %v11410_v48 = vrot.slane %v22460_v59, 4  ;;  %v11404_v45 = vor.u32 %v11403_v13, %v11402_v40  ;;  %v11418_v40 = vrot.slane %v22466_v30, 4  ;;  %v22472_v30 = vshll.u32 %v20652_v32, 16 }
 0x8b0   : > { %v11412_v13 = vor.u32 %v11411_v29, %v11410_v48 }
 0x8b1   : > { %14569 = vmatmul.mubr.bf16.gmra.mrb[12].mxu1 %v20027_v16  ;;  %v22455_v16 = vshll.u32 %v20693_v49, 16 }
 0x8b2   : > { %14572 = vmatprep.mubr.msk.bf16.mxu1 %vm17649_vm1, %v22344_v31 }
 0x8b3   : > { %v11399_v14 = vrot.slane %v22455_v16, 5  ;;  %v22459_v16 = vshll.u32 %v20644_v9, 16  ;;  %v22464_v9 = vshll.u32 %v20648_v24, 16 }
 0x8b5   : > { %v11407_v25 = vrot.slane %v22459_v16, 5  ;;  %v20743_v4 = vor.u32 %v11399_v14, %v11398_v53  ;;  %v11415_v16 = vrot.slane %v22464_v9, 5  ;;  %v22467_v14 = vshll.u32 %v20650_v22, 16 }
 0x8b6   : > { %v22470_v9 = vshrl.u32 %v20652_v32, 16 }
 0x8b7   : > { %22461 = vst [vmem:[#allocation84_spill] sm:$0xff] %v20743_v4  ;;  %v11408_v49 = vor.u32 %v11407_v25, %v11406_v39  ;;  %v20756_v53 = vsel %vm8032_vm6, %v20743_v4, %v11404_v45  ;;  %v11419_v59 = vrot.slane %v22467_v14, 5  ;;  %v20765_v25 = vsel %vm7059_vm5, %v10942_v63, %v10944_v47 }
 0x8b8   : > { %22465 = vst [vmem:[#allocation85_spill] sm:$0xff] %v20756_v53  ;;  %22468 = vst [vmem:[#allocation86_spill] sm:$0xff] %v20765_v25  ;;  %v11422_v6 = vrot.slane %v22470_v9, 4  ;;  %v11423_v14 = vrot.slane %v22472_v30, 5  ;;  %v11426_v53 = vrot.slane %v22473_v52, 4  ;;  %v22477_v9 = vshll.u32 %v20659_v5, 16 }
 0x8b9   : > { %14573 = vmatmul.mubr.bf16.gmra.mrb[16].mxu1 %v20051_v41  ;;  %v20768_v39 = vsel %vm8032_vm6, %v11404_v45, %v11408_v49  ;;  %v11416_v41 = vor.u32 %v11415_v16, %v11414_v10  ;;  %v20773_v29 = vsel %vm8032_vm6, %v11408_v49, %v11412_v13  ;;  %v11420_v48 = vor.u32 %v11419_v59, %v11418_v40 }
 0x8ba   : > { %14576 = vmatprep.mubr.msk.bf16.mxu1 %vm17649_vm1, %v22344_v31  ;;  %22469 = vst [vmem:[#allocation87_spill] sm:$0xff] %v20768_v39  ;;  %22471 = vst [vmem:[#allocation88_spill] sm:$0xff] %v20773_v29  ;;  %v22475_v45 = vshll.u32 %v20654_v18, 16  ;;  %v22476_v10 = vshrl.u32 %v20659_v5, 16  ;;  %v11431_v49 = vrot.slane %v22477_v9, 5  ;;  %v20788_v29 = vld [vmem:[#allocation2 + $0xc0] sm:$0xff]  ;;  %v11424_v59 = vor.u32 %v11423_v14, %v11422_v6 }
 0x8bb   : > { %v20780_v63 = vsel %vm8032_vm6, %v11412_v13, %v11416_v41  ;;  %v20791_v40 = vsel %vm8032_vm6, %v11416_v41, %v11420_v48  ;;  %v22478_v52 = vshrl.u32 %v20695_v11, 16  ;;  %v22479_v13 = vshll.u32 %v20695_v11, 16 }
 0x8bc   : > { %22474 = vst [vmem:[#allocation89_spill] sm:$0xff] %v20780_v63  ;;  %v11427_v39 = vrot.slane %v22475_v45, 5  ;;  %v11430_v16 = vrot.slane %v22476_v10, 4  ;;  %v22333_v25 = vshrl.u32 %v20731_v56, 16  ;;  %v20799_v10 = vsel %vm8032_vm6, %v11420_v48, %v11424_v59 }
 0x8bd   : > { %v11434_v30 = vrot.slane %v22478_v52, 4  ;;  %v11435_v63 = vrot.slane %v22479_v13, 5  ;;  %v22332_v5 = vshll.u32 %v20731_v56, 16  ;;  %v10946_v41 = vrot.slane %v20788_v29, 4 }
 0x8be   : > { %v11428_v4 = vor.u32 %v11427_v39, %v11426_v53  ;;  %v11432_v45 = vor.u32 %v11431_v49, %v11430_v16  ;;  %v11438_v48 = vrot.slane %v22333_v25, 4  ;;  %v20822_v16 = vld [vmem:[#allocation2 + $0xc8] sm:$0xff]  ;;  %v10415_v49 = vshll.u32 %v20788_v29, 16 }
 0x8bf   : > { %v11436_v9 = vor.u32 %v11435_v63, %v11434_v30  ;;  %v20816_v39 = vsel %vm7059_vm5, %v10944_v47, %v10946_v41  ;;  %v11439_v63 = vrot.slane %v22332_v5, 5  ;;  %v17557_v47 = vld [vmem:[%s22196_s5 + $0xb8] sm:$0xff]  }
 0x8c0   : > { %v20804_v6 = vsel %vm8032_vm6, %v11424_v59, %v11428_v4  ;;  %v20807_v14 = vsel %vm8032_vm6, %v11428_v4, %v11432_v45  ;;  %v10948_v59 = vrot.slane %v20822_v16, 4  ;;  %14675 = vmatpush3.bf16.msra.mxu1 %v17557_v47 }
 0x8c1   : > { %14577 = vmatmul.mubr.bf16.gmra.mrb[20].mxu1 %v20075_v0  ;;  %v20811_v53 = vsel %vm8032_vm6, %v11432_v45, %v11436_v9  ;;  %v11440_v4 = vor.u32 %v11439_v63, %v11438_v48  ;;  %v10412_v0 = vshrl.u32 %v20788_v29, 16  ;;  %14784 = vmatprep.subr.bf16.mxu1 %v22344_v31  ;;  %v11443_v45 = vrot.slane %v10415_v49, 5  ;;  %v21671_v29 = vld [vmem:[#allocation2 + $0xd0] sm:$0xff] }
 0x8c2   : > { %14580 = vmatprep.mubr.msk.bf16.mxu1 %vm17649_vm1, %v22344_v31  ;;  %v20837_v30 = vsel %vm7059_vm5, %v10946_v41, %v10948_v59  ;;  %v10421_v48 = vshrl.u32 %v20822_v16, 16  ;;  %v10424_v63 = vshll.u32 %v20822_v16, 16 }
 0x8c3   : > { %v20828_v52 = vsel %vm8032_vm6, %v11436_v9, %v11440_v4  ;;  %v11442_v13 = vrot.slane %v10412_v0, 4 }
 0x8c4   : > { %v11446_v47 = vrot.slane %v10421_v48, 4 }
 0x8c5   : > { %v11444_v9 = vor.u32 %v11443_v45, %v11442_v13  ;;  %v11447_v13 = vrot.slane %v10424_v63, 5  ;;  %v20859_v45 = vld [vmem:[#allocation2 + $0xd8] sm:$0xff] }
 0x8c7   : > { %v20847_v25 = vsel %vm8032_vm6, %v11440_v4, %v11444_v9  ;;  %v10952_v4 = vrot.slane %v20859_v45, 4 }
 0x8c9   : > { %14581 = vmatmul.mubr.bf16.gmra.mrb[24].mxu1 %v20103_v38  ;;  %v10209_v38 = vld [vmem:[#allocation2 + $0xd0] sm:$0xff] }
 0x8ca   : > { %14584 = vmatprep.mubr.msk.bf16.mxu1 %vm17649_vm1, %v22344_v31  ;;  %v10950_v5 = vrot.slane %v10209_v38, 4  ;;  %v20861_v38 = vor.u32 %v11447_v13, %v11446_v47  ;;  %v22494_v47 = vld [vmem:[#allocation61_spill] sm:$0xff]  ;;  %v22495_v13 = vld [vmem:[#allocation64_spill] sm:$0xff] }
 0x8cc   : > { %v20853_v41 = vsel %vm7059_vm5, %v10948_v59, %v10950_v5  ;;  %v20874_v59 = vsel %vm7059_vm5, %v10950_v5, %v10952_v4  ;;  %v22492_v5 = vld [vmem:[#allocation55_spill] sm:$0xff] }
 0x8d1   : > { %14585 = vmatmul.mubr.bf16.gmra.mrb[28].mxu1 %v20127_v20  ;;  %v20866_v20 = vsel %vm8032_vm6, %v11444_v9, %v20861_v38  ;;  %v22493_v9 = vld [vmem:[#allocation58_spill] sm:$0xff] }
 0x8d2   : > { %14588 = vmatprep.mubr.msk.bf16.mxu1 %vm17649_vm1, %v22344_v31 }
 0x8d9   : > { %14589 = vmatmul.mubr.bf16.gmra.mrb[32].mxu1 %v20151_v28  ;;  %v7013_v28 = vld [vmem:[#allocation2 + $0x8] sm:$0xf0] }
 0x8da   : > { %14592 = vmatprep.mubr.msk.bf16.mxu1 %vm17649_vm1, %v22344_v31 }
 0x8e1   : > { %14593 = vmatmul.mubr.bf16.gmra.mrb[36].mxu1 %v20179_v61  ;;  %v8034_v61 = vshrl.u32 %v7013_v28, 16 }
 0x8e2   : > { %14596 = vmatprep.mubr.msk.bf16.mxu1 %vm17649_vm1, %v22344_v31 }
 0x8e9   : > { %14597 = vmatmul.mubr.bf16.gmra.mrb[40].mxu1 %v20197_v44  ;;  %v8037_v44 = vshll.u32 %v7013_v28, 16  ;;  %v8014_v28 = vld [vmem:[#allocation2 + $0xe0] sm:$0x1f] }
 0x8ea   : > { %14600 = vmatprep.mubr.msk.bf16.mxu1 %vm17649_vm1, %v22344_v31 }
 0x8f1   : > { %14601 = vmatmul.mubr.bf16.gmra.mrb[44].mxu1 %v20221_v8  ;;  %v8036_v8 = vrot.slane %v8034_v61, 4  ;;  %v8146_v61 = vshrl.u32 %v8014_v28, 16 }
 0x8f2   : > { %14604 = vmatprep.mubr.msk.bf16.mxu1 %vm17649_vm1, %v22344_v31 }
 0x8f9   : > { %14605 = vmatmul.mubr.bf16.gmra.mrb[48].mxu1 %v20247_v62  ;;  %v8039_v62 = vrot.slane %v8037_v44, 5  ;;  %v8149_v44 = vshll.u32 %v8014_v28, 16  ;;  %v22505_v28 = vld [vmem:[#allocation9_spill] sm:$0xff] }
 0x8fa   : > { %14608 = vmatprep.mubr.msk.bf16.mxu1 %vm17649_vm1, %v22344_v31 }
 0x901   : > { %14609 = vmatmul.mubr.bf16.gmra.mrb[52].mxu1 %v20285_v46  ;;  %v8040_v46 = vor.u32 %v8039_v62, %v8036_v8  ;;  %v8148_v8 = vrot.slane %v8146_v61, 4  ;;  %v8151_v62 = vrot.slane %v8149_v44, 5  ;;  %v22506_v61 = vshrl.u32 %v22505_v28, 16 }
 0x902   : > { %14612 = vmatprep.mubr.msk.bf16.mxu1 %vm17649_vm1, %v22344_v31 }
 0x903   : > { %v8609_v44 = vrot.slane %v22506_v61, 7 }
 0x909   : > { %14613 = vmatmul.mubr.bf16.gmra.mrb[56].mxu1 %v20309_v37  ;;  %v8044_v37 = vsel %vm8032_vm6, %v8040_v46, %v19834_v55  ;;  %v17560_v55 = vld [vmem:[%s22196_s5 + $0xd0] sm:$0xff]   ;;  %v8152_v46 = vor.u32 %v8151_v62, %v8148_v8  ;;  %v17571_v8 = vld [vmem:[%s22196_s5 + $0x128] sm:$0xff]   ;;  %v22507_v62 = vshll.u32 %v22505_v28, 16 }
 0x90a   : > { %14616 = vmatprep.mubr.msk.bf16.mxu1 %vm17649_vm1, %v22344_v31 }
 0x911   : > { %14617 = vmatmul.mubr.bf16.gmra.mrb[60].mxu1 %v20333_v36  ;;  %v17558_v36 = vld [vmem:[%s22196_s5 + $0xc0] sm:$0xff]  }
 0x912   : > { %14620 = vmatprep.mubr.msk.bf16.mxu1 %vm17649_vm1, %v22344_v31 }
 0x919   : > { %14621 = vmatmul.mubr.bf16.gmra.mrb[64].mxu1 %v20357_v42  ;;  %v17559_v42 = vld [vmem:[%s22196_s5 + $0xc8] sm:$0xff]  }
 0x91a   : > { %14624 = vmatprep.mubr.msk.bf16.mxu1 %vm17649_vm1, %v22344_v31 }
 0x921   : > { %14625 = vmatmul.mubr.bf16.gmra.mrb[68].mxu1 %v20381_v34  ;;  %v17561_v34 = vld [vmem:[%s22196_s5 + $0xd8] sm:$0xff]  }
 0x922   : > { %14628 = vmatprep.mubr.msk.bf16.mxu1 %vm17649_vm1, %v22344_v31 }
 0x929   : > { %14629 = vmatmul.mubr.bf16.gmra.mrb[72].mxu1 %v20405_v23  ;;  %v17562_v23 = vld [vmem:[%s22196_s5 + $0xe0] sm:$0xff]  }
 0x92a   : > { %14632 = vmatprep.mubr.msk.bf16.mxu1 %vm17649_vm1, %v22344_v31 }
 0x931   : > { %14633 = vmatmul.mubr.bf16.gmra.mrb[76].mxu1 %v20429_v12  ;;  %v22485_v12 = vld [vmem:[#allocation34_spill] sm:$0xff] }
 0x932   : > { %14636 = vmatprep.mubr.msk.bf16.mxu1 %vm17649_vm1, %v22344_v31 }
 0x939   : > { %14637 = vmatmul.mubr.bf16.gmra.mrb[80].mxu1 %v20453_v27  ;;  %v22486_v27 = vld [vmem:[#allocation37_spill] sm:$0xff] }
 0x93a   : > { %14640 = vmatprep.mubr.msk.bf16.mxu1 %vm17649_vm1, %v22344_v31 }
 0x941   : > { %14641 = vmatmul.mubr.bf16.gmra.mrb[84].mxu1 %v20477_v57  ;;  %v22487_v57 = vld [vmem:[#allocation40_spill] sm:$0xff] }
 0x942   : > { %14644 = vmatprep.mubr.msk.bf16.mxu1 %vm17649_vm1, %v22344_v31 }
 0x949   : > { %14645 = vmatmul.mubr.bf16.gmra.mrb[88].mxu1 %v20501_v19  ;;  %v22488_v19 = vld [vmem:[#allocation43_spill] sm:$0xff] }
 0x94a   : > { %14648 = vmatprep.mubr.msk.bf16.mxu1 %vm17649_vm1, %v22344_v31 }
 0x951   : > { %14649 = vmatmul.mubr.bf16.gmra.mrb[92].mxu1 %v20527_v7  ;;  %v22489_v7 = vld [vmem:[#allocation46_spill] sm:$0xff] }
 0x952   : > { %14652 = vmatprep.mubr.msk.bf16.mxu1 %vm17649_vm1, %v22344_v31 }
 0x959   : > { %14653 = vmatmul.mubr.bf16.gmra.mrb[96].mxu1 %v20557_v58  ;;  %v22490_v58 = vld [vmem:[#allocation49_spill] sm:$0xff] }
 0x95a   : > { %14656 = vmatprep.mubr.msk.bf16.mxu1 %vm17649_vm1, %v22344_v31 }
 0x961   : > { %14657 = vmatmul.mubr.bf16.gmra.mrb[100].mxu1 %v20594_v26  ;;  %v22491_v26 = vld [vmem:[#allocation52_spill] sm:$0xff] }
 0x962   : > { %14676 = vmatprep.mubr.msk.bf16.mxu1 %vm17649_vm1, %v22344_v31 }
 0x969   : > { %14677 = vmatmul.mubr.bf16.vlgmr.msra.gmra.mrb[104].mxu1 %v8044_v37  ;;  %v8532_v37 = vld [vmem:[#allocation2 + $0x10] sm:$0x80] }
 0x96a   : > { %14785 = vmatpush3.bf16.msra.mxu1 %v17558_v36  ;;  %14680 = vmatprep.mubr.msk.bf16.mxu1 %vm17649_vm1, %v22344_v31  ;;  %v8153_v36 = vsel %vm8032_vm6, %v20548_v50, %v8152_v46  ;;  %v22499_v50 = vld [vmem:[#allocation5_spill] sm:$0xff]  ;;  %v8612_v46 = vor.u32 %v22507_v62, %v8609_v44 }
 0x96b   : > { %14786 = vmatprep.subr.bf16.mxu1 %v22344_v31 }
 0x96e   : > { %14787 = vmatpush3.bf16.msra.mxu1 %v17559_v42  ;;  %v8579_v42 = vshrl.u32 %v8532_v37, 16 }
 0x96f   : > { %14788 = vmatprep.subr.bf16.mxu1 %v22344_v31 }
 0x971   : > { %14681 = vmatmul.mubr.bf16.gmra.mrb[0].mxu1 %v19939_v43  ;;  %v17563_v43 = vld [vmem:[%s22196_s5 + $0xe8] sm:$0xff]  }
 0x972   : > { %14684 = vmatprep.mubr.msk.bf16.mxu1 %vm17649_vm1, %v22344_v31  ;;  %14789 = vmatpush3.bf16.msra.mxu1 %v17560_v55  ;;  %v22496_v55 = vld [vmem:[#allocation4_spill] sm:$0xff] }
 0x973   : > { %14790 = vmatprep.subr.bf16.mxu1 %v22344_v31 }
 0x976   : > { %14791 = vmatpush3.bf16.msra.mxu1 %v17561_v34  ;;  %v22497_v34 = vshrl.u32 %v22496_v55, 16 }
 0x977   : > { %14792 = vmatprep.subr.bf16.mxu1 %v22344_v31 }
 0x979   : > { %14685 = vmatmul.mubr.bf16.gmra.mrb[4].mxu1 %v19975_v21  ;;  %v17564_v21 = vld [vmem:[%s22196_s5 + $0xf0] sm:$0xff]  }
 0x97a   : > { %14688 = vmatprep.mubr.msk.bf16.mxu1 %vm17649_vm1, %v22344_v31  ;;  %14793 = vmatpush3.bf16.msra.mxu1 %v17562_v23  ;;  %v8585_v23 = vrot.slane %v22497_v34, 7 }
 0x97b   : > { %14794 = vmatprep.subr.bf16.mxu1 %v22344_v31 }
 0x97e   : > { %14795 = vmatpush3.bf16.msra.mxu1 %v17563_v43  ;;  %v8581_v43 = vrot.slane %v8579_v42, 7 }
 0x97f   : > { %14796 = vmatprep.subr.bf16.mxu1 %v22344_v31 }
 0x981   : > { %14689 = vmatmul.mubr.bf16.gmra.mrb[8].mxu1 %v20002_v54  ;;  %v17565_v54 = vld [vmem:[%s22196_s5 + $0xf8] sm:$0xff]  }
 0x982   : > { %14692 = vmatprep.mubr.msk.bf16.mxu1 %vm17649_vm1, %v22344_v31  ;;  %14797 = vmatpush3.bf16.msra.mxu1 %v17564_v21  ;;  %v22498_v21 = vshll.u32 %v22496_v55, 16 }
 0x983   : > { %14798 = vmatprep.subr.bf16.mxu1 %v22344_v31 }
 0x986   : > { %14799 = vmatpush3.bf16.msra.mxu1 %v17565_v54  ;;  %v17566_v54 = vld [vmem:[%s22196_s5 + $0x100] sm:$0xff]  }
 0x987   : > { %14908 = vmatprep.subr.bf16.mxu1 %v22344_v31 }
 0x989   : > { %14693 = vmatmul.mubr.bf16.gmra.mrb[12].mxu1 %v20030_v2  ;;  %v22480_v2 = vld [vmem:[#allocation19_spill] sm:$0xff] }
 0x98a   : > { %14696 = vmatprep.mubr.msk.bf16.mxu1 %vm17649_vm1, %v22344_v31 }
 0x991   : > { %14697 = vmatmul.mubr.bf16.gmra.mrb[16].mxu1 %v20054_v1  ;;  %v22481_v1 = vld [vmem:[#allocation22_spill] sm:$0xff] }
 0x992   : > { %14700 = vmatprep.mubr.msk.bf16.mxu1 %vm17649_vm1, %v22344_v31 }
 0x999   : > { %14701 = vmatmul.mubr.bf16.gmra.mrb[20].mxu1 %v20078_v3  ;;  %v22482_v3 = vld [vmem:[#allocation24_spill] sm:$0xff] }
 0x99a   : > { %14704 = vmatprep.mubr.msk.bf16.mxu1 %vm17649_vm1, %v22344_v31 }
 0x9a1   : > { %14705 = vmatmul.mubr.bf16.gmra.mrb[24].mxu1 %v20106_v35  ;;  %v22483_v35 = vld [vmem:[#allocation27_spill] sm:$0xff] }
 0x9a2   : > { %14708 = vmatprep.mubr.msk.bf16.mxu1 %vm17649_vm1, %v22344_v31 }
 0x9a9   : > { %14709 = vmatmul.mubr.bf16.gmra.mrb[28].mxu1 %v20130_v15  ;;  %v22484_v15 = vld [vmem:[#allocation30_spill] sm:$0xff] }
 0x9aa   : > { %14712 = vmatprep.mubr.msk.bf16.mxu1 %vm17649_vm1, %v22344_v31 }
 0x9b1   : > { %14713 = vmatmul.mubr.bf16.gmra.mrb[32].mxu1 %v22480_v2 }
 0x9b2   : > { %14716 = vmatprep.mubr.msk.bf16.mxu1 %vm17649_vm1, %v22344_v31 }
 0x9b9   : > { %14717 = vmatmul.mubr.bf16.gmra.mrb[36].mxu1 %v22481_v1  ;;  %v22500_v1 = vshrl.u32 %v22499_v50, 16 }
 0x9ba   : > { %14720 = vmatprep.mubr.msk.bf16.mxu1 %vm17649_vm1, %v22344_v31 }
 0x9c1   : > { %14721 = vmatmul.mubr.bf16.gmra.mrb[40].mxu1 %v22482_v3  ;;  %v8593_v3 = vrot.slane %v22500_v1, 7 }
 0x9c2   : > { %14724 = vmatprep.mubr.msk.bf16.mxu1 %vm17649_vm1, %v22344_v31 }
 0x9c9   : > { %14725 = vmatmul.mubr.bf16.gmra.mrb[44].mxu1 %v22483_v35  ;;  %v17567_v35 = vld [vmem:[%s22196_s5 + $0x108] sm:$0xff]  }
 0x9ca   : > { %14728 = vmatprep.mubr.msk.bf16.mxu1 %vm17649_vm1, %v22344_v31 }
 0x9d1   : > { %14729 = vmatmul.mubr.bf16.gmra.mrb[48].mxu1 %v22484_v15  ;;  %v22501_v15 = vshll.u32 %v22499_v50, 16 }
 0x9d2   : > { %14732 = vmatprep.mubr.msk.bf16.mxu1 %vm17649_vm1, %v22344_v31 }
 0x9d9   : > { %14733 = vmatmul.mubr.bf16.gmra.mrb[52].mxu1 %v22485_v12  ;;  %v8596_v12 = vor.u32 %v22501_v15, %v8593_v3 }
 0x9da   : > { %14736 = vmatprep.mubr.msk.bf16.mxu1 %vm17649_vm1, %v22344_v31 }
 0x9e1   : > { %14737 = vmatmul.mubr.bf16.gmra.mrb[56].mxu1 %v22486_v27  ;;  %v17568_v27 = vld [vmem:[%s22196_s5 + $0x110] sm:$0xff]  }
 0x9e2   : > { %14740 = vmatprep.mubr.msk.bf16.mxu1 %vm17649_vm1, %v22344_v31 }
 0x9e9   : > { %14741 = vmatmul.mubr.bf16.gmra.mrb[60].mxu1 %v22487_v57  ;;  %v8597_v57 = vsel %vm8577_vm7, %v8585_v23, %v8596_v12 }
 0x9ea   : > { %14744 = vmatprep.mubr.msk.bf16.mxu1 %vm17649_vm1, %v22344_v31 }
 0x9f1   : > { %14745 = vmatmul.mubr.bf16.gmra.mrb[64].mxu1 %v22488_v19  ;;  %v22502_v19 = vld [vmem:[#allocation7_spill] sm:$0xff] }
 0x9f2   : > { %14748 = vmatprep.mubr.msk.bf16.mxu1 %vm17649_vm1, %v22344_v31 }
 0x9f9   : > { %14749 = vmatmul.mubr.bf16.gmra.mrb[68].mxu1 %v22489_v7  ;;  %v22503_v7 = vshrl.u32 %v22502_v19, 16 }
 0x9fa   : > { %14752 = vmatprep.mubr.msk.bf16.mxu1 %vm17649_vm1, %v22344_v31 }
 0xa01   : > { %14753 = vmatmul.mubr.bf16.gmra.mrb[72].mxu1 %v22490_v58  ;;  %v8601_v58 = vrot.slane %v22503_v7, 7  ;;  %v22517_v7 = vld [vmem:[#allocation17_spill] sm:$0xff] }
 0xa02   : > { %14756 = vmatprep.mubr.msk.bf16.mxu1 %vm17649_vm1, %v22344_v31 }
 0xa03   : > { %v8613_v37 = vsel %vm8577_vm7, %v8601_v58, %v8612_v46 }
 0xa09   : > { %14757 = vmatmul.mubr.bf16.gmra.mrb[76].mxu1 %v22491_v26  ;;  %v17569_v26 = vld [vmem:[%s22196_s5 + $0x118] sm:$0xff]  }
 0xa0a   : > { %14760 = vmatprep.mubr.msk.bf16.mxu1 %vm17649_vm1, %v22344_v31 }
 0xa11   : > { %14761 = vmatmul.mubr.bf16.gmra.mrb[80].mxu1 %v22492_v5  ;;  %v22504_v5 = vshll.u32 %v22502_v19, 16 }
 0xa12   : > { %14764 = vmatprep.mubr.msk.bf16.mxu1 %vm17649_vm1, %v22344_v31 }
 0xa19   : > { %14765 = vmatmul.mubr.bf16.gmra.mrb[84].mxu1 %v22493_v9  ;;  %v8604_v9 = vor.u32 %v22504_v5, %v8601_v58  ;;  %v22518_v58 = vshrl.u32 %v22517_v7, 16  ;;  %v22519_v5 = vshll.u32 %v22517_v7, 16 }
 0xa1a   : > { %14768 = vmatprep.mubr.msk.bf16.mxu1 %vm17649_vm1, %v22344_v31 }
 0xa21   : > { %14769 = vmatmul.mubr.bf16.gmra.mrb[88].mxu1 %v22494_v47  ;;  %v17570_v47 = vld [vmem:[%s22196_s5 + $0x120] sm:$0xff]  }
 0xa22   : > { %14772 = vmatprep.mubr.msk.bf16.mxu1 %vm17649_vm1, %v22344_v31 }
 0xa29   : > { %14773 = vmatmul.mubr.bf16.gmra.mrb[92].mxu1 %v22495_v13  ;;  %v8605_v13 = vsel %vm8577_vm7, %v8593_v3, %v8604_v9 }
 0xa2a   : > { %14776 = vmatprep.mubr.msk.bf16.mxu1 %vm17649_vm1, %v22344_v31 }
 0xa31   : > { %14777 = vmatmul.mubr.bf16.gmra.mrb[96].mxu1 %v20561_v17  ;;  %v8588_v17 = vor.u32 %v22498_v21, %v8585_v23  ;;  %v22511_v21 = vld [vmem:[#allocation13_spill] sm:$0xff] }
 0xa32   : > { %14780 = vmatprep.mubr.msk.bf16.mxu1 %vm17649_vm1, %v22344_v31  ;;  %v22513_v50 = vshll.u32 %v22511_v21, 16 }
 0xa33   : > { %v8589_v2 = vsel %vm8577_vm7, %v8581_v43, %v8588_v17  ;;  %v22512_v17 = vshrl.u32 %v22511_v21, 16 }
 0xa39   : > { %14781 = vmatmul.mubr.bf16.gmra.mrb[100].mxu1 %v8153_v36  ;;  %v22508_v36 = vld [vmem:[#allocation11_spill] sm:$0xff] }
 0xa3a   : > { %14800 = vmatprep.mubr.msk.bf16.mxu1 %vm17649_vm1, %v22344_v31  ;;  %v22509_v42 = vshrl.u32 %v22508_v36, 16  ;;  %v22510_v34 = vshll.u32 %v22508_v36, 16 }
 0xa3c   : > { %v8617_v55 = vrot.slane %v22509_v42, 7 }
 0xa3e   : > { %v8620_v23 = vor.u32 %v22510_v34, %v8617_v55 }
 0xa40   : > { %v8621_v43 = vsel %vm8577_vm7, %v8609_v44, %v8620_v23  ;;  %v17573_v44 = vld [vmem:[%s22196_s5 + $0x138] sm:$0xff]  }
 0xa41   : > { %14801 = vmatmul.mubr.bf16.vlgmr.msra.gmra.mrb[104].mxu1 %v8589_v2  ;;  %v17572_v2 = vld [vmem:[%s22196_s5 + $0x130] sm:$0xff]  }
 0xa42   : > { %14909 = vmatpush3.bf16.msra.mxu1 %v17566_v54  ;;  %14804 = vmatprep.mubr.msk.bf16.mxu1 %vm17649_vm1, %v22344_v31  ;;  %v8625_v54 = vrot.slane %v22512_v17, 7 }
 0xa43   : > { %14910 = vmatprep.subr.bf16.mxu1 %v22344_v31 }
 0xa44   : > { %v8628_v1 = vor.u32 %v22513_v50, %v8625_v54 }
 0xa46   : > { %14911 = vmatpush3.bf16.msra.mxu1 %v17567_v35  ;;  %v8629_v3 = vsel %vm8577_vm7, %v8617_v55, %v8628_v1  ;;  %v22514_v35 = vld [vmem:[#allocation15_spill] sm:$0xff]  ;;  %v22529_v1 = vld [vmem:[#allocation28_spill] sm:$0xff] }
 0xa47   : > { %14912 = vmatprep.subr.bf16.mxu1 %v22344_v31  ;;  %v22515_v15 = vshrl.u32 %v22514_v35, 16 }
 0xa49   : > { %14805 = vmatmul.mubr.bf16.gmra.mrb[0].mxu1 %v8597_v57  ;;  %v8633_v12 = vrot.slane %v22515_v15, 7  ;;  %v22531_v15 = vshll.u32 %v22529_v1, 16 }
 0xa4a   : > { %14808 = vmatprep.mubr.msk.bf16.mxu1 %vm17649_vm1, %v22344_v31  ;;  %14913 = vmatpush3.bf16.msra.mxu1 %v17568_v27  ;;  %v22516_v27 = vshll.u32 %v22514_v35, 16 }
 0xa4b   : > { %14914 = vmatprep.subr.bf16.mxu1 %v22344_v31 }
 0xa4c   : > { %v8636_v57 = vor.u32 %v22516_v27, %v8633_v12 }
 0xa4e   : > { %14915 = vmatpush3.bf16.msra.mxu1 %v17569_v26  ;;  %v8637_v19 = vsel %vm8577_vm7, %v8625_v54, %v8636_v57  ;;  %v8641_v26 = vrot.slane %v22518_v58, 7  ;;  %v22532_v57 = vld [vmem:[#allocation31_spill] sm:$0xff] }
 0xa4f   : > { %14916 = vmatprep.subr.bf16.mxu1 %v22344_v31  ;;  %v22534_v58 = vshll.u32 %v22532_v57, 16 }
 0xa50   : > { %v8644_v9 = vor.u32 %v22519_v5, %v8641_v26 }
 0xa51   : > { %14809 = vmatmul.mubr.bf16.gmra.mrb[4].mxu1 %v8605_v13  ;;  %v22520_v13 = vld [vmem:[#allocation20_spill] sm:$0xff] }
 0xa52   : > { %14812 = vmatprep.mubr.msk.bf16.mxu1 %vm17649_vm1, %v22344_v31  ;;  %14917 = vmatpush3.bf16.msra.mxu1 %v17570_v47  ;;  %v8645_v47 = vsel %vm8577_vm7, %v8633_v12, %v8644_v9  ;;  %v22521_v28 = vshrl.u32 %v22520_v13, 16  ;;  %v22535_v9 = vld [vmem:[#allocation35_spill] sm:$0xff] }
 0xa53   : > { %14918 = vmatprep.subr.bf16.mxu1 %v22344_v31 }
 0xa54   : > { %v8649_v61 = vrot.slane %v22521_v28, 7  ;;  %v22537_v28 = vshll.u32 %v22535_v9, 16 }
 0xa56   : > { %14919 = vmatpush3.bf16.msra.mxu1 %v17571_v8  ;;  %v22522_v8 = vshll.u32 %v22520_v13, 16 }
 0xa57   : > { %14920 = vmatprep.subr.bf16.mxu1 %v22344_v31 }
 0xa58   : > { %v8652_v62 = vor.u32 %v22522_v8, %v8649_v61  ;;  %v22538_v8 = vld [vmem:[#allocation38_spill] sm:$0xff] }
 0xa59   : > { %14813 = vmatmul.mubr.bf16.gmra.mrb[8].mxu1 %v8613_v37  ;;  %v22523_v37 = vld [vmem:[#allocation23_spill] sm:$0xff] }
 0xa5a   : > { %14816 = vmatprep.mubr.msk.bf16.mxu1 %vm17649_vm1, %v22344_v31  ;;  %14921 = vmatpush3.bf16.msra.mxu1 %v17572_v2  ;;  %v8653_v46 = vsel %vm8577_vm7, %v8641_v26, %v8652_v62  ;;  %v22524_v36 = vshrl.u32 %v22523_v37, 16  ;;  %v22525_v55 = vshll.u32 %v22523_v37, 16  ;;  %v22539_v62 = vshrl.u32 %v22538_v8, 16 }
 0xa5b   : > { %14922 = vmatprep.subr.bf16.mxu1 %v22344_v31  ;;  %v22540_v37 = vshll.u32 %v22538_v8, 16 }
 0xa5c   : > { %v8657_v42 = vrot.slane %v22524_v36, 7 }
 0xa5e   : > { %14923 = vmatpush3.bf16.msra.mxu1 %v17573_v44  ;;  %v8660_v34 = vor.u32 %v22525_v55, %v8657_v42  ;;  %v22541_v55 = vld [vmem:[#allocation41_spill] sm:$0xff] }
 0xa5f   : > { %15032 = vmatprep.subr.bf16.mxu1 %v22344_v31 }
 0xa60   : > { %v8661_v23 = vsel %vm8577_vm7, %v8649_v61, %v8660_v34  ;;  %v22542_v34 = vshrl.u32 %v22541_v55, 16 }
 0xa61   : > { %14817 = vmatmul.mubr.bf16.gmra.mrb[12].mxu1 %v8621_v43  ;;  %v22526_v43 = vld [vmem:[#allocation25_spill] sm:$0xff] }
 0xa62   : > { %14820 = vmatprep.mubr.msk.bf16.mxu1 %vm17649_vm1, %v22344_v31  ;;  %v22527_v21 = vshrl.u32 %v22526_v43, 16  ;;  %v22528_v54 = vshll.u32 %v22526_v43, 16  ;;  %v22543_v43 = vshll.u32 %v22541_v55, 16 }
 0xa64   : > { %v8665_v17 = vrot.slane %v22527_v21, 7 }
 0xa66   : > { %v8668_v2 = vor.u32 %v22528_v54, %v8665_v17  ;;  %v22544_v54 = vld [vmem:[#allocation44_spill] sm:$0xff] }
 0xa68   : > { %v8669_v50 = vsel %vm8577_vm7, %v8657_v42, %v8668_v2  ;;  %v22545_v2 = vshrl.u32 %v22544_v54, 16 }
 0xa69   : > { %14821 = vmatmul.mubr.bf16.gmra.mrb[16].mxu1 %v8629_v3  ;;  %v22530_v3 = vshrl.u32 %v22529_v1, 16  ;;  %v22546_v1 = vshll.u32 %v22544_v54, 16 }
 0xa6a   : > { %14824 = vmatprep.mubr.msk.bf16.mxu1 %vm17649_vm1, %v22344_v31 }
 0xa6b   : > { %v8673_v35 = vrot.slane %v22530_v3, 7 }
 0xa6d   : > { %v8676_v12 = vor.u32 %v22531_v15, %v8673_v35  ;;  %v22547_v15 = vld [vmem:[#allocation47_spill] sm:$0xff] }
 0xa6f   : > { %v8677_v27 = vsel %vm8577_vm7, %v8665_v17, %v8676_v12  ;;  %v22548_v12 = vshrl.u32 %v22547_v15, 16 }
 0xa71   : > { %14825 = vmatmul.mubr.bf16.gmra.mrb[20].mxu1 %v8637_v19  ;;  %v22533_v19 = vshrl.u32 %v22532_v57, 16  ;;  %v22549_v57 = vshll.u32 %v22547_v15, 16 }
 0xa72   : > { %14828 = vmatprep.mubr.msk.bf16.mxu1 %vm17649_vm1, %v22344_v31 }
 0xa73   : > { %v8681_v7 = vrot.slane %v22533_v19, 7 }
 0xa75   : > { %v8684_v26 = vor.u32 %v22534_v58, %v8681_v7  ;;  %v22550_v58 = vld [vmem:[#allocation50_spill] sm:$0xff] }
 0xa77   : > { %v8685_v5 = vsel %vm8577_vm7, %v8673_v35, %v8684_v26  ;;  %v22551_v26 = vshrl.u32 %v22550_v58, 16 }
 0xa79   : > { %14829 = vmatmul.mubr.bf16.gmra.mrb[24].mxu1 %v8645_v47  ;;  %v22536_v47 = vshrl.u32 %v22535_v9, 16  ;;  %v22552_v9 = vshll.u32 %v22550_v58, 16 }
 0xa7a   : > { %14832 = vmatprep.mubr.msk.bf16.mxu1 %vm17649_vm1, %v22344_v31 }
 0xa7b   : > { %v8689_v13 = vrot.slane %v22536_v47, 7 }
 0xa7d   : > { %v8692_v61 = vor.u32 %v22537_v28, %v8689_v13  ;;  %v22553_v28 = vld [vmem:[#allocation53_spill] sm:$0xff] }
 0xa7e   : > { %v22555_v8 = vshll.u32 %v22553_v28, 16 }
 0xa7f   : > { %v8693_v44 = vsel %vm8577_vm7, %v8681_v7, %v8692_v61  ;;  %v22554_v61 = vshrl.u32 %v22553_v28, 16 }
 0xa81   : > { %14833 = vmatmul.mubr.bf16.gmra.mrb[28].mxu1 %v8653_v46  ;;  %v8697_v46 = vrot.slane %v22539_v62, 7 }
 0xa82   : > { %14836 = vmatprep.mubr.msk.bf16.mxu1 %vm17649_vm1, %v22344_v31 }
 0xa83   : > { %v8700_v36 = vor.u32 %v22540_v37, %v8697_v46  ;;  %v22556_v37 = vld [vmem:[#allocation56_spill] sm:$0xff] }
 0xa84   : > { %v22558_v55 = vshll.u32 %v22556_v37, 16 }
 0xa85   : > { %v8701_v42 = vsel %vm8577_vm7, %v8689_v13, %v8700_v36  ;;  %v22557_v36 = vshrl.u32 %v22556_v37, 16 }
 0xa89   : > { %14837 = vmatmul.mubr.bf16.gmra.mrb[32].mxu1 %v8661_v23  ;;  %v8705_v23 = vrot.slane %v22542_v34, 7 }
 0xa8a   : > { %14840 = vmatprep.mubr.msk.bf16.mxu1 %vm17649_vm1, %v22344_v31 }
 0xa8b   : > { %v8708_v21 = vor.u32 %v22543_v43, %v8705_v23  ;;  %v22559_v43 = vld [vmem:[#allocation59_spill] sm:$0xff] }
 0xa8c   : > { %v22561_v54 = vshll.u32 %v22559_v43, 16 }
 0xa8d   : > { %v8709_v17 = vsel %vm8577_vm7, %v8697_v46, %v8708_v21  ;;  %v22560_v21 = vshrl.u32 %v22559_v43, 16  ;;  %v17608_v43 = vld [vmem:[#allocation2 + $0x18] sm:$0xff] }
 0xa91   : > { %14841 = vmatmul.mubr.bf16.gmra.mrb[36].mxu1 %v8669_v50  ;;  %v8713_v50 = vrot.slane %v22545_v2, 7 }
 0xa92   : > { %14844 = vmatprep.mubr.msk.bf16.mxu1 %vm17649_vm1, %v22344_v31 }
 0xa93   : > { %v8716_v3 = vor.u32 %v22546_v1, %v8713_v50  ;;  %v22562_v1 = vld [vmem:[#allocation62_spill] sm:$0xff] }
 0xa94   : > { %v22564_v15 = vshll.u32 %v22562_v1, 16 }
 0xa95   : > { %v8717_v35 = vsel %vm8577_vm7, %v8705_v23, %v8716_v3  ;;  %v22563_v3 = vshrl.u32 %v22562_v1, 16  ;;  %v17610_v1 = vld [vmem:[#allocation2 + $0x28] sm:$0xff] }
 0xa99   : > { %14845 = vmatmul.mubr.bf16.gmra.mrb[40].mxu1 %v8677_v27  ;;  %v8721_v27 = vrot.slane %v22548_v12, 7 }
 0xa9a   : > { %14848 = vmatprep.mubr.msk.bf16.mxu1 %vm17649_vm1, %v22344_v31 }
 0xa9b   : > { %v8724_v19 = vor.u32 %v22549_v57, %v8721_v27  ;;  %v22565_v57 = vld [vmem:[#allocation65_spill] sm:$0xff] }
 0xa9c   : > { %v22567_v58 = vshll.u32 %v22565_v57, 16 }
 0xa9d   : > { %v8725_v7 = vsel %vm8577_vm7, %v8713_v50, %v8724_v19  ;;  %v22566_v19 = vshrl.u32 %v22565_v57, 16  ;;  %v17614_v57 = vld [vmem:[#allocation2 + $0x48] sm:$0xff] }
 0xaa1   : > { %14849 = vmatmul.mubr.bf16.gmra.mrb[44].mxu1 %v8685_v5  ;;  %v8729_v5 = vrot.slane %v22551_v26, 7 }
 0xaa2   : > { %14852 = vmatprep.mubr.msk.bf16.mxu1 %vm17649_vm1, %v22344_v31 }
 0xaa3   : > { %v8732_v47 = vor.u32 %v22552_v9, %v8729_v5  ;;  %v22568_v9 = vshrl.u32 %v20563_v33, 16 }
 0xaa5   : > { %v8733_v13 = vsel %vm8577_vm7, %v8721_v27, %v8732_v47  ;;  %v8777_v47 = vrot.slane %v22568_v9, 7  ;;  %v17619_v9 = vld [vmem:[#allocation2 + $0x70] sm:$0xff] }
 0xaa9   : > { %14853 = vmatmul.mubr.bf16.gmra.mrb[48].mxu1 %v8693_v44  ;;  %v8737_v44 = vrot.slane %v22554_v61, 7 }
 0xaaa   : > { %14856 = vmatprep.mubr.msk.bf16.mxu1 %vm17649_vm1, %v22344_v31 }
 0xaab   : > { %v8740_v62 = vor.u32 %v22555_v8, %v8737_v44 }
 0xaad   : > { %v8741_v46 = vsel %vm8577_vm7, %v8729_v5, %v8740_v62  ;;  %v22571_v62 = vshll.u32 %v20577_v51, 16 }
 0xab1   : > { %14857 = vmatmul.mubr.bf16.gmra.mrb[52].mxu1 %v8701_v42  ;;  %v8745_v42 = vrot.slane %v22557_v36, 7  ;;  %v22572_v36 = vld [vmem:[#allocation69_spill] sm:$0xff] }
 0xab2   : > { %14860 = vmatprep.mubr.msk.bf16.mxu1 %vm17649_vm1, %v22344_v31 }
 0xab3   : > { %v8748_v34 = vor.u32 %v22558_v55, %v8745_v42 }
 0xab5   : > { %v8749_v23 = vsel %vm8577_vm7, %v8737_v44, %v8748_v34  ;;  %v22570_v44 = vshrl.u32 %v20577_v51, 16  ;;  %v17574_v51 = vld [vmem:[%s22196_s5 + $0x140] sm:$0xff]  }
 0xab7   : > { %v8785_v8 = vrot.slane %v22570_v44, 7  ;;  %v17624_v44 = vld [vmem:[#allocation2 + $0x98] sm:$0xff] }
 0xab9   : > { %14861 = vmatmul.mubr.bf16.gmra.mrb[56].mxu1 %v8709_v17  ;;  %v8753_v17 = vrot.slane %v22560_v21, 7  ;;  %v17575_v21 = vld [vmem:[%s22196_s5 + $0x148] sm:$0xff]  }
 0xaba   : > { %14864 = vmatprep.mubr.msk.bf16.mxu1 %vm17649_vm1, %v22344_v31 }
 0xabb   : > { %v8756_v2 = vor.u32 %v22561_v54, %v8753_v17  ;;  %v17609_v54 = vld [vmem:[#allocation2 + $0x20] sm:$0xff] }
 0xabd   : > { %v8757_v50 = vsel %vm8577_vm7, %v8745_v42, %v8756_v2  ;;  %v22573_v42 = vshrl.u32 %v22572_v36, 16  ;;  %v17577_v2 = vld [vmem:[%s22196_s5 + $0x158] sm:$0xff]  }
 0xabf   : > { %v8793_v55 = vrot.slane %v22573_v42, 7  ;;  %v17630_v42 = vld [vmem:[#allocation2 + $0xc8] sm:$0xff] }
 0xac1   : > { %14865 = vmatmul.mubr.bf16.gmra.mrb[60].mxu1 %v8717_v35  ;;  %v8761_v35 = vrot.slane %v22563_v3, 7  ;;  %v17579_v3 = vld [vmem:[%s22196_s5 + $0x168] sm:$0xff]  }
 0xac2   : > { %14868 = vmatprep.mubr.msk.bf16.mxu1 %vm17649_vm1, %v22344_v31 }
 0xac3   : > { %v8764_v12 = vor.u32 %v22564_v15, %v8761_v35  ;;  %v17612_v15 = vld [vmem:[#allocation2 + $0x38] sm:$0xff] }
 0xac5   : > { %v8765_v27 = vsel %vm8577_vm7, %v8753_v17, %v8764_v12  ;;  %v17576_v17 = vld [vmem:[%s22196_s5 + $0x150] sm:$0xff]  }
 0xac6   : > { %v17580_v12 = vld [vmem:[%s22196_s5 + $0x170] sm:$0xff]  }
 0xac9   : > { %14869 = vmatmul.mubr.bf16.gmra.mrb[64].mxu1 %v8725_v7  ;;  %v8769_v7 = vrot.slane %v22566_v19, 7  ;;  %v17615_v19 = vld [vmem:[#allocation2 + $0x50] sm:$0xff] }
 0xaca   : > { %14872 = vmatprep.mubr.msk.bf16.mxu1 %vm17649_vm1, %v22344_v31 }
 0xacb   : > { %v8772_v26 = vor.u32 %v22567_v58, %v8769_v7  ;;  %v17616_v58 = vld [vmem:[#allocation2 + $0x58] sm:$0xff] }
 0xacd   : > { %v8773_v5 = vsel %vm8577_vm7, %v8761_v35, %v8772_v26  ;;  %v17611_v35 = vld [vmem:[#allocation2 + $0x30] sm:$0xff]  ;;  %v17617_v26 = vld [vmem:[#allocation2 + $0x60] sm:$0xff] }
 0xad1   : > { %14873 = vmatmul.mubr.bf16.gmra.mrb[68].mxu1 %v8733_v13  ;;  %v22569_v13 = vshll.u32 %v20563_v33, 16  ;;  %v22574_v33 = vshll.u32 %v22572_v36, 16  ;;  %v17629_v36 = vld [vmem:[#allocation2 + $0xc0] sm:$0xff] }
 0xad2   : > { %14876 = vmatprep.mubr.msk.bf16.mxu1 %vm17649_vm1, %v22344_v31 }
 0xad3   : > { %v8780_v28 = vor.u32 %v22569_v13, %v8777_v47  ;;  %v8796_v34 = vor.u32 %v22574_v33, %v8793_v55  ;;  %v17621_v13 = vld [vmem:[#allocation2 + $0x80] sm:$0xff]  ;;  %v17631_v55 = vld [vmem:[#allocation2 + $0xd0] sm:$0xff]  ;;  %v17632_v33 = vld [vmem:[#allocation2 + $0xd8] sm:$0xff] }
 0xad5   : > { %v8781_v61 = vsel %vm8577_vm7, %v8769_v7, %v8780_v28  ;;  %v17581_v7 = vld [vmem:[%s22196_s5 + $0x178] sm:$0xff]   ;;  %v17622_v28 = vld [vmem:[#allocation2 + $0x88] sm:$0xff] }
 0xad9   : > { %14877 = vmatmul.mubr.bf16.gmra.mrb[72].mxu1 %v8741_v46  ;;  %v8788_v46 = vor.u32 %v22571_v62, %v8785_v8  ;;  %v17626_v62 = vld [vmem:[#allocation2 + $0xa8] sm:$0xff] }
 0xada   : > { %14880 = vmatprep.mubr.msk.bf16.mxu1 %vm17649_vm1, %v22344_v31 }
 0xadb   : > { %v8789_v37 = vsel %vm8577_vm7, %v8777_v47, %v8788_v46  ;;  %v17620_v47 = vld [vmem:[#allocation2 + $0x78] sm:$0xff]  ;;  %v17627_v46 = vld [vmem:[#allocation2 + $0xb0] sm:$0xff] }
 0xae1   : > { %14881 = vmatmul.mubr.bf16.gmra.mrb[76].mxu1 %v8749_v23  ;;  %v8797_v23 = vsel %vm8577_vm7, %v8785_v8, %v8796_v34  ;;  %v17625_v8 = vld [vmem:[#allocation2 + $0xa0] sm:$0xff] }
 0xae2   : > { %14884 = vmatprep.mubr.msk.bf16.mxu1 %vm17649_vm1, %v22344_v31  ;;  %v17633_v34 = vld [vmem:[#allocation2 + $0xe0] sm:$0xff] }
 0xae9   : > { %14885 = vmatmul.mubr.bf16.gmra.mrb[80].mxu1 %v8757_v50  ;;  %v17578_v50 = vld [vmem:[%s22196_s5 + $0x160] sm:$0xff]  }
 0xaea   : > { %14888 = vmatprep.mubr.msk.bf16.mxu1 %vm17649_vm1, %v22344_v31 }
 0xaf1   : > { %14889 = vmatmul.mubr.bf16.gmra.mrb[84].mxu1 %v8765_v27  ;;  %v17613_v27 = vld [vmem:[#allocation2 + $0x40] sm:$0xff] }
 0xaf2   : > { %14892 = vmatprep.mubr.msk.bf16.mxu1 %vm17649_vm1, %v22344_v31 }
 0xaf9   : > { %14893 = vmatmul.mubr.bf16.gmra.mrb[88].mxu1 %v8773_v5  ;;  %v17618_v5 = vld [vmem:[#allocation2 + $0x68] sm:$0xff] }
 0xafa   : > { %14896 = vmatprep.mubr.msk.bf16.mxu1 %vm17649_vm1, %v22344_v31 }
 0xb01   : > { %14897 = vmatmul.mubr.bf16.gmra.mrb[92].mxu1 %v8781_v61  ;;  %v17623_v61 = vld [vmem:[#allocation2 + $0x90] sm:$0xff] }
 0xb02   : > { %14900 = vmatprep.mubr.msk.bf16.mxu1 %vm17649_vm1, %v22344_v31 }
 0xb09   : > { %14901 = vmatmul.mubr.bf16.gmra.mrb[96].mxu1 %v8789_v37  ;;  %v17628_v37 = vld [vmem:[#allocation2 + $0xb8] sm:$0xff] }
 0xb0a   : > { %14904 = vmatprep.mubr.msk.bf16.mxu1 %vm17649_vm1, %v22344_v31 }
 0xb11   : > { %14905 = vmatmul.mubr.bf16.gmra.mrb[100].mxu1 %v8797_v23  ;;  %v17634_v23 = vld [vmem:[#allocation2 + $0xe8] sm:$0xff] }
 0xb12   : > { %14924 = vmatprep.mubr.msk.bf16.mxu1 %vm17649_vm1, %v22344_v31 }
 0xb19   : > { %14925 = vmatmul.mubr.bf16.vlgmr.msra.gmra.mrb[104].mxu1 %v17608_v43  ;;  %v22575_v43 = vld [vmem:[#allocation6_spill] sm:$0xff] }
 0xb1a   : > { %15033 = vmatpush3.bf16.msra.mxu1 %v17574_v51  ;;  %14928 = vmatprep.mubr.msk.bf16.mxu1 %vm17649_vm1, %v22344_v31  ;;  %v17582_v51 = vld [vmem:[%s22196_s5 + $0x180] sm:$0xff]  }
 0xb1b   : > { %15034 = vmatprep.subr.bf16.mxu1 %v22344_v31 }
 0xb1e   : > { %15035 = vmatpush3.bf16.msra.mxu1 %v17575_v21  ;;  %v17583_v21 = vld [vmem:[%s22196_s5 + $0x188] sm:$0xff]  }
 0xb1f   : > { %15036 = vmatprep.subr.bf16.mxu1 %v22344_v31 }
 0xb21   : > { %14929 = vmatmul.mubr.bf16.gmra.mrb[0].mxu1 %v17609_v54  ;;  %v22576_v54 = vld [vmem:[#allocation8_spill] sm:$0xff] }
 0xb22   : > { %14932 = vmatprep.mubr.msk.bf16.mxu1 %vm17649_vm1, %v22344_v31  ;;  %15037 = vmatpush3.bf16.msra.mxu1 %v17576_v17  ;;  %v17584_v17 = vld [vmem:[%s22196_s5 + $0x190] sm:$0xff]  }
 0xb23   : > { %15038 = vmatprep.subr.bf16.mxu1 %v22344_v31 }
 0xb26   : > { %15039 = vmatpush3.bf16.msra.mxu1 %v17577_v2  ;;  %v17585_v2 = vld [vmem:[%s22196_s5 + $0x198] sm:$0xff]  }
 0xb27   : > { %15040 = vmatprep.subr.bf16.mxu1 %v22344_v31 }
 0xb29   : > { %14933 = vmatmul.mubr.bf16.gmra.mrb[4].mxu1 %v17610_v1  ;;  %v22577_v1 = vld [vmem:[#allocation10_spill] sm:$0xff] }
 0xb2a   : > { %14936 = vmatprep.mubr.msk.bf16.mxu1 %vm17649_vm1, %v22344_v31  ;;  %15041 = vmatpush3.bf16.msra.mxu1 %v17578_v50  ;;  %v17586_v50 = vld [vmem:[%s22196_s5 + $0x1a0] sm:$0xff]  }
 0xb2b   : > { %15042 = vmatprep.subr.bf16.mxu1 %v22344_v31 }
 0xb2e   : > { %15043 = vmatpush3.bf16.msra.mxu1 %v17579_v3  ;;  %v17587_v3 = vld [vmem:[%s22196_s5 + $0x1a8] sm:$0xff]  }
 0xb2f   : > { %15044 = vmatprep.subr.bf16.mxu1 %v22344_v31 }
 0xb31   : > { %14937 = vmatmul.mubr.bf16.gmra.mrb[8].mxu1 %v17611_v35  ;;  %v22578_v35 = vld [vmem:[#allocation12_spill] sm:$0xff] }
 0xb32   : > { %14940 = vmatprep.mubr.msk.bf16.mxu1 %vm17649_vm1, %v22344_v31  ;;  %15045 = vmatpush3.bf16.msra.mxu1 %v17580_v12  ;;  %v17588_v12 = vld [vmem:[%s22196_s5 + $0x1b0] sm:$0xff]  }
 0xb33   : > { %15046 = vmatprep.subr.bf16.mxu1 %v22344_v31 }
 0xb36   : > { %15047 = vmatpush3.bf16.msra.mxu1 %v17581_v7  ;;  %v17589_v7 = vld [vmem:[%s22196_s5 + $0x1b8] sm:$0xff]  }
 0xb37   : > { %15156 = vmatprep.subr.bf16.mxu1 %v22344_v31 }
 0xb39   : > { %14941 = vmatmul.mubr.bf16.gmra.mrb[12].mxu1 %v17612_v15  ;;  %v22579_v15 = vld [vmem:[#allocation14_spill] sm:$0xff] }
 0xb3a   : > { %14944 = vmatprep.mubr.msk.bf16.mxu1 %vm17649_vm1, %v22344_v31 }
 0xb41   : > { %14945 = vmatmul.mubr.bf16.gmra.mrb[16].mxu1 %v17613_v27  ;;  %v22580_v27 = vld [vmem:[#allocation16_spill] sm:$0xff] }
 0xb42   : > { %14948 = vmatprep.mubr.msk.bf16.mxu1 %vm17649_vm1, %v22344_v31 }
 0xb49   : > { %14949 = vmatmul.mubr.bf16.gmra.mrb[20].mxu1 %v17614_v57  ;;  %v22581_v57 = vld [vmem:[#allocation18_spill] sm:$0xff] }
 0xb4a   : > { %14952 = vmatprep.mubr.msk.bf16.mxu1 %vm17649_vm1, %v22344_v31 }
 0xb51   : > { %14953 = vmatmul.mubr.bf16.gmra.mrb[24].mxu1 %v17615_v19  ;;  %v22582_v19 = vld [vmem:[#allocation21_spill] sm:$0xff] }
 0xb52   : > { %14956 = vmatprep.mubr.msk.bf16.mxu1 %vm17649_vm1, %v22344_v31 }
 0xb59   : > { %14957 = vmatmul.mubr.bf16.gmra.mrb[28].mxu1 %v17616_v58  ;;  %v22583_v58 = vld [vmem:[#allocation26_spill] sm:$0xff] }
 0xb5a   : > { %14960 = vmatprep.mubr.msk.bf16.mxu1 %vm17649_vm1, %v22344_v31 }
 0xb61   : > { %14961 = vmatmul.mubr.bf16.gmra.mrb[32].mxu1 %v17617_v26  ;;  %v22584_v26 = vld [vmem:[#allocation29_spill] sm:$0xff] }
 0xb62   : > { %14964 = vmatprep.mubr.msk.bf16.mxu1 %vm17649_vm1, %v22344_v31 }
 0xb69   : > { %14965 = vmatmul.mubr.bf16.gmra.mrb[36].mxu1 %v17618_v5  ;;  %v22585_v5 = vld [vmem:[#allocation32_spill] sm:$0xff] }
 0xb6a   : > { %14968 = vmatprep.mubr.msk.bf16.mxu1 %vm17649_vm1, %v22344_v31 }
 0xb71   : > { %14969 = vmatmul.mubr.bf16.gmra.mrb[40].mxu1 %v17619_v9  ;;  %v22586_v9 = vld [vmem:[#allocation33_spill] sm:$0xff] }
 0xb72   : > { %14972 = vmatprep.mubr.msk.bf16.mxu1 %vm17649_vm1, %v22344_v31 }
 0xb79   : > { %14973 = vmatmul.mubr.bf16.gmra.mrb[44].mxu1 %v17620_v47  ;;  %v22587_v47 = vld [vmem:[#allocation36_spill] sm:$0xff] }
 0xb7a   : > { %14976 = vmatprep.mubr.msk.bf16.mxu1 %vm17649_vm1, %v22344_v31 }
 0xb81   : > { %14977 = vmatmul.mubr.bf16.gmra.mrb[48].mxu1 %v17621_v13  ;;  %v22588_v13 = vld [vmem:[#allocation39_spill] sm:$0xff] }
 0xb82   : > { %14980 = vmatprep.mubr.msk.bf16.mxu1 %vm17649_vm1, %v22344_v31 }
 0xb89   : > { %14981 = vmatmul.mubr.bf16.gmra.mrb[52].mxu1 %v17622_v28  ;;  %v22589_v28 = vld [vmem:[#allocation42_spill] sm:$0xff] }
 0xb8a   : > { %14984 = vmatprep.mubr.msk.bf16.mxu1 %vm17649_vm1, %v22344_v31 }
 0xb91   : > { %14985 = vmatmul.mubr.bf16.gmra.mrb[56].mxu1 %v17623_v61  ;;  %v22590_v61 = vld [vmem:[#allocation45_spill] sm:$0xff] }
 0xb92   : > { %14988 = vmatprep.mubr.msk.bf16.mxu1 %vm17649_vm1, %v22344_v31 }
 0xb99   : > { %14989 = vmatmul.mubr.bf16.gmra.mrb[60].mxu1 %v17624_v44  ;;  %v22591_v44 = vld [vmem:[#allocation48_spill] sm:$0xff] }
 0xb9a   : > { %14992 = vmatprep.mubr.msk.bf16.mxu1 %vm17649_vm1, %v22344_v31 }
 0xba1   : > { %14993 = vmatmul.mubr.bf16.gmra.mrb[64].mxu1 %v17625_v8  ;;  %v22592_v8 = vld [vmem:[#allocation51_spill] sm:$0xff] }
 0xba2   : > { %14996 = vmatprep.mubr.msk.bf16.mxu1 %vm17649_vm1, %v22344_v31 }
 0xba9   : > { %14997 = vmatmul.mubr.bf16.gmra.mrb[68].mxu1 %v17626_v62  ;;  %v22593_v62 = vld [vmem:[#allocation54_spill] sm:$0xff] }
 0xbaa   : > { %15000 = vmatprep.mubr.msk.bf16.mxu1 %vm17649_vm1, %v22344_v31 }
 0xbb1   : > { %15001 = vmatmul.mubr.bf16.gmra.mrb[72].mxu1 %v17627_v46  ;;  %v22594_v46 = vld [vmem:[#allocation57_spill] sm:$0xff] }
 0xbb2   : > { %15004 = vmatprep.mubr.msk.bf16.mxu1 %vm17649_vm1, %v22344_v31 }
 0xbb9   : > { %15005 = vmatmul.mubr.bf16.gmra.mrb[76].mxu1 %v17628_v37  ;;  %v22595_v37 = vld [vmem:[#allocation60_spill] sm:$0xff] }
 0xbba   : > { %15008 = vmatprep.mubr.msk.bf16.mxu1 %vm17649_vm1, %v22344_v31 }
 0xbc1   : > { %15009 = vmatmul.mubr.bf16.gmra.mrb[80].mxu1 %v17629_v36  ;;  %v22596_v36 = vld [vmem:[#allocation63_spill] sm:$0xff] }
 0xbc2   : > { %15012 = vmatprep.mubr.msk.bf16.mxu1 %vm17649_vm1, %v22344_v31 }
 0xbc9   : > { %15013 = vmatmul.mubr.bf16.gmra.mrb[84].mxu1 %v17630_v42  ;;  %v22597_v42 = vld [vmem:[#allocation66_spill] sm:$0xff] }
 0xbca   : > { %15016 = vmatprep.mubr.msk.bf16.mxu1 %vm17649_vm1, %v22344_v31 }
 0xbd1   : > { %15017 = vmatmul.mubr.bf16.gmra.mrb[88].mxu1 %v17631_v55  ;;  %v22598_v55 = vld [vmem:[#allocation67_spill] sm:$0xff] }
 0xbd2   : > { %15020 = vmatprep.mubr.msk.bf16.mxu1 %vm17649_vm1, %v22344_v31 }
 0xbd9   : > { %15021 = vmatmul.mubr.bf16.gmra.mrb[92].mxu1 %v17632_v33  ;;  %v22599_v33 = vld [vmem:[#allocation68_spill] sm:$0xff] }
 0xbda   : > { %15024 = vmatprep.mubr.msk.bf16.mxu1 %vm17649_vm1, %v22344_v31 }
 0xbe1   : > { %15025 = vmatmul.mubr.bf16.gmra.mrb[96].mxu1 %v17633_v34  ;;  %v9571_v34 = vld [vmem:[#allocation2 + $0xf0] sm:$0x1] }
 0xbe2   : > { %15028 = vmatprep.mubr.msk.bf16.mxu1 %vm17649_vm1, %v22344_v31 }
 0xbe9   : > { %15029 = vmatmul.mubr.bf16.gmra.mrb[100].mxu1 %v17634_v23  ;;  %v9805_v23 = vshll.u32 %v9571_v34, 16  ;;  %v17593_v34 = vld [vmem:[%s22196_s5 + $0x1d8] sm:$0xff]  }
 0xbea   : > { %15048 = vmatprep.mubr.msk.bf16.mxu1 %vm17649_vm1, %v22344_v31 }
 0xbf1   : > { %15049 = vmatmul.mubr.bf16.vlgmr.msra.gmra.mrb[104].mxu1 %v22575_v43  ;;  %v21457_v43 = vld [vmem:[#allocation2 + $0x28] sm:$0xff] }
 0xbf2   : > { %15157 = vmatpush3.bf16.msra.mxu1 %v17582_v51  ;;  %15052 = vmatprep.mubr.msk.bf16.mxu1 %vm17649_vm1, %v22344_v31  ;;  %v22600_v51 = vld [vmem:[#allocation70_spill] sm:$0xff] }
 0xbf3   : > { %15158 = vmatprep.subr.bf16.mxu1 %v22344_v31 }
 0xbf6   : > { %15159 = vmatpush3.bf16.msra.mxu1 %v17583_v21  ;;  %v10187_v21 = vld [vmem:[#allocation2 + $0x20] sm:$0xf8] }
 0xbf7   : > { %15160 = vmatprep.subr.bf16.mxu1 %v22344_v31 }
 0xbf9   : > { %15053 = vmatmul.mubr.bf16.gmra.mrb[0].mxu1 %v22576_v54  ;;  %v10241_v54 = vshrl.u32 %v21457_v43, 16 }
 0xbfa   : > { %15056 = vmatprep.mubr.msk.bf16.mxu1 %vm17649_vm1, %v22344_v31  ;;  %15161 = vmatpush3.bf16.msra.mxu1 %v17584_v17  ;;  %v9807_v17 = vrot.slane %v9805_v23, 1 }
 0xbfb   : > { %15162 = vmatprep.subr.bf16.mxu1 %v22344_v31 }
 0xbfe   : > { %15163 = vmatpush3.bf16.msra.mxu1 %v17585_v2  ;;  %v10244_v2 = vshll.u32 %v21457_v43, 16 }
 0xbff   : > { %15164 = vmatprep.subr.bf16.mxu1 %v22344_v31 }
 0xc01   : > { %15057 = vmatmul.mubr.bf16.gmra.mrb[4].mxu1 %v22577_v1  ;;  %v10236_v1 = vshll.u32 %v10187_v21, 16 }
 0xc02   : > { %15060 = vmatprep.mubr.msk.bf16.mxu1 %vm17649_vm1, %v22344_v31  ;;  %15165 = vmatpush3.bf16.msra.mxu1 %v17586_v50  ;;  %v10233_v50 = vshrl.u32 %v10187_v21, 16 }
 0xc03   : > { %15166 = vmatprep.subr.bf16.mxu1 %v22344_v31 }
 0xc06   : > { %15167 = vmatpush3.bf16.msra.mxu1 %v17587_v3  ;;  %v22601_v3 = vld [vmem:[#allocation71_spill] sm:$0xff] }
 0xc07   : > { %15168 = vmatprep.subr.bf16.mxu1 %v22344_v31 }
 0xc09   : > { %15061 = vmatmul.mubr.bf16.gmra.mrb[8].mxu1 %v22578_v35  ;;  %v9808_v35 = vsel %vm1645_vm4, %v22601_v3, %v9807_v17  ;;  %v17594_v17 = vld [vmem:[%s22196_s5 + $0x1e0] sm:$0xff]  }
 0xc0a   : > { %15064 = vmatprep.mubr.msk.bf16.mxu1 %vm17649_vm1, %v22344_v31  ;;  %15169 = vmatpush3.bf16.msra.mxu1 %v17588_v12  ;;  %v10246_v12 = vrot.slane %v10244_v2, 4 }
 0xc0b   : > { %15170 = vmatprep.subr.bf16.mxu1 %v22344_v31 }
 0xc0e   : > { %15171 = vmatpush3.bf16.msra.mxu1 %v17589_v7 }
 0xc0f   : > { %15280 = vmatprep.subr.bf16.mxu1 %v22344_v31 }
 0xc11   : > { %15065 = vmatmul.mubr.bf16.gmra.mrb[12].mxu1 %v22579_v15  ;;  %v10243_v15 = vrot.slane %v10241_v54, 3 }
 0xc12   : > { %15068 = vmatprep.mubr.msk.bf16.mxu1 %vm17649_vm1, %v22344_v31 }
 0xc13   : > { %v10247_v7 = vor.u32 %v10246_v12, %v10243_v15  ;;  %v17595_v15 = vld [vmem:[%s22196_s5 + $0x1e8] sm:$0xff]  }
 0xc19   : > { %15069 = vmatmul.mubr.bf16.gmra.mrb[16].mxu1 %v22580_v27  ;;  %v21469_v27 = vld [vmem:[#allocation2 + $0x30] sm:$0xff] }
 0xc1a   : > { %15072 = vmatprep.mubr.msk.bf16.mxu1 %vm17649_vm1, %v22344_v31 }
 0xc21   : > { %15073 = vmatmul.mubr.bf16.gmra.mrb[20].mxu1 %v22581_v57  ;;  %v10235_v57 = vrot.slane %v10233_v50, 3 }
 0xc22   : > { %15076 = vmatprep.mubr.msk.bf16.mxu1 %vm17649_vm1, %v22344_v31 }
 0xc29   : > { %15077 = vmatmul.mubr.bf16.gmra.mrb[24].mxu1 %v22582_v19  ;;  %v10238_v19 = vrot.slane %v10236_v1, 4 }
 0xc2a   : > { %15080 = vmatprep.mubr.msk.bf16.mxu1 %vm17649_vm1, %v22344_v31 }
 0xc31   : > { %15081 = vmatmul.mubr.bf16.gmra.mrb[28].mxu1 %v22583_v58  ;;  %v10250_v58 = vshrl.u32 %v21469_v27, 16 }
 0xc32   : > { %15084 = vmatprep.mubr.msk.bf16.mxu1 %vm17649_vm1, %v22344_v31 }
 0xc39   : > { %15085 = vmatmul.mubr.bf16.gmra.mrb[32].mxu1 %v22584_v26  ;;  %v10253_v26 = vshll.u32 %v21469_v27, 16 }
 0xc3a   : > { %15088 = vmatprep.mubr.msk.bf16.mxu1 %vm17649_vm1, %v22344_v31 }
 0xc41   : > { %15089 = vmatmul.mubr.bf16.gmra.mrb[36].mxu1 %v22585_v5  ;;  %v10239_v5 = vor.u32 %v10238_v19, %v10235_v57 }
 0xc42   : > { %15092 = vmatprep.mubr.msk.bf16.mxu1 %vm17649_vm1, %v22344_v31 }
 0xc49   : > { %15093 = vmatmul.mubr.bf16.gmra.mrb[40].mxu1 %v22586_v9  ;;  %v17590_v9 = vld [vmem:[%s22196_s5 + $0x1c0] sm:$0xff]  }
 0xc4a   : > { %15096 = vmatprep.mubr.msk.bf16.mxu1 %vm17649_vm1, %v22344_v31 }
 0xc51   : > { %15097 = vmatmul.mubr.bf16.gmra.mrb[44].mxu1 %v22587_v47  ;;  %v10248_v47 = vsel %vm865_vm3, %v10239_v5, %v10247_v7 }
 0xc52   : > { %15100 = vmatprep.mubr.msk.bf16.mxu1 %vm17649_vm1, %v22344_v31 }
 0xc59   : > { %15101 = vmatmul.mubr.bf16.gmra.mrb[48].mxu1 %v22588_v13  ;;  %v10252_v13 = vrot.slane %v10250_v58, 3 }
 0xc5a   : > { %15104 = vmatprep.mubr.msk.bf16.mxu1 %vm17649_vm1, %v22344_v31 }
 0xc61   : > { %15105 = vmatmul.mubr.bf16.gmra.mrb[52].mxu1 %v22589_v28  ;;  %v10255_v28 = vrot.slane %v10253_v26, 4 }
 0xc62   : > { %15108 = vmatprep.mubr.msk.bf16.mxu1 %vm17649_vm1, %v22344_v31 }
 0xc69   : > { %15109 = vmatmul.mubr.bf16.gmra.mrb[56].mxu1 %v22590_v61  ;;  %v21483_v61 = vld [vmem:[#allocation2 + $0x38] sm:$0xff] }
 0xc6a   : > { %15112 = vmatprep.mubr.msk.bf16.mxu1 %vm17649_vm1, %v22344_v31 }
 0xc71   : > { %15113 = vmatmul.mubr.bf16.gmra.mrb[60].mxu1 %v22591_v44  ;;  %v17591_v44 = vld [vmem:[%s22196_s5 + $0x1c8] sm:$0xff]  }
 0xc72   : > { %15116 = vmatprep.mubr.msk.bf16.mxu1 %vm17649_vm1, %v22344_v31 }
 0xc79   : > { %15117 = vmatmul.mubr.bf16.gmra.mrb[64].mxu1 %v22592_v8  ;;  %v10256_v8 = vor.u32 %v10255_v28, %v10252_v13 }
 0xc7a   : > { %15120 = vmatprep.mubr.msk.bf16.mxu1 %vm17649_vm1, %v22344_v31 }
 0xc81   : > { %15121 = vmatmul.mubr.bf16.gmra.mrb[68].mxu1 %v22593_v62  ;;  %v10259_v62 = vshrl.u32 %v21483_v61, 16 }
 0xc82   : > { %15124 = vmatprep.mubr.msk.bf16.mxu1 %vm17649_vm1, %v22344_v31 }
 0xc89   : > { %15125 = vmatmul.mubr.bf16.gmra.mrb[72].mxu1 %v22594_v46  ;;  %v10262_v46 = vshll.u32 %v21483_v61, 16 }
 0xc8a   : > { %15128 = vmatprep.mubr.msk.bf16.mxu1 %vm17649_vm1, %v22344_v31 }
 0xc91   : > { %15129 = vmatmul.mubr.bf16.gmra.mrb[76].mxu1 %v22595_v37  ;;  %v17592_v37 = vld [vmem:[%s22196_s5 + $0x1d0] sm:$0xff]  }
 0xc92   : > { %15132 = vmatprep.mubr.msk.bf16.mxu1 %vm17649_vm1, %v22344_v31 }
 0xc99   : > { %15133 = vmatmul.mubr.bf16.gmra.mrb[80].mxu1 %v22596_v36  ;;  %v10257_v36 = vsel %vm865_vm3, %v10247_v7, %v10256_v8 }
 0xc9a   : > { %15136 = vmatprep.mubr.msk.bf16.mxu1 %vm17649_vm1, %v22344_v31 }
 0xca1   : > { %15137 = vmatmul.mubr.bf16.gmra.mrb[84].mxu1 %v22597_v42  ;;  %v10261_v42 = vrot.slane %v10259_v62, 3 }
 0xca2   : > { %15140 = vmatprep.mubr.msk.bf16.mxu1 %vm17649_vm1, %v22344_v31 }
 0xca9   : > { %15141 = vmatmul.mubr.bf16.gmra.mrb[88].mxu1 %v22598_v55  ;;  %v10264_v55 = vrot.slane %v10262_v46, 4 }
 0xcaa   : > { %15144 = vmatprep.mubr.msk.bf16.mxu1 %vm17649_vm1, %v22344_v31 }
 0xcab   : > { %v10265_v23 = vor.u32 %v10264_v55, %v10261_v42  ;;  %v21548_v42 = vld [vmem:[#allocation2 + $0x58] sm:$0xff]  ;;  %v17596_v55 = vld [vmem:[%s22196_s5 + $0x1f0] sm:$0xff]  }
 0xcad   : > { %v10266_v50 = vsel %vm865_vm3, %v10256_v8, %v10265_v23 }
 0xcb1   : > { %15145 = vmatmul.mubr.bf16.gmra.mrb[92].mxu1 %v22599_v33  ;;  %v21502_v33 = vld [vmem:[#allocation2 + $0x40] sm:$0xff] }
 0xcb2   : > { %15148 = vmatprep.mubr.msk.bf16.mxu1 %vm17649_vm1, %v22344_v31  ;;  %v10271_v21 = vshll.u32 %v21502_v33, 16 }
 0xcb4   : > { %v10273_v3 = vrot.slane %v10271_v21, 4 }
 0xcb9   : > { %15149 = vmatmul.mubr.bf16.gmra.mrb[96].mxu1 %v22600_v51  ;;  %v10268_v51 = vshrl.u32 %v21502_v33, 16 }
 0xcba   : > { %15152 = vmatprep.mubr.msk.bf16.mxu1 %vm17649_vm1, %v22344_v31 }
 0xcbb   : > { %v10270_v1 = vrot.slane %v10268_v51, 3 }
 0xcbd   : > { %v10274_v12 = vor.u32 %v10273_v3, %v10270_v1 }
 0xcbf   : > { %v10275_v7 = vsel %vm865_vm3, %v10265_v23, %v10274_v12  ;;  %v22337_v23 = vshrl.u32 %v21548_v42, 16 }
 0xcc1   : > { %15153 = vmatmul.mubr.bf16.gmra.mrb[100].mxu1 %v9808_v35  ;;  %v21521_v35 = vld [vmem:[#allocation2 + $0x48] sm:$0xff]  ;;  %v10297_v1 = vrot.slane %v22337_v23, 3 }
 0xcc2   : > { %15172 = vmatprep.mubr.msk.bf16.mxu1 %vm17649_vm1, %v22344_v31  ;;  %v10277_v57 = vshrl.u32 %v21521_v35, 16  ;;  %v10280_v19 = vshll.u32 %v21521_v35, 16 }
 0xcc4   : > { %v10279_v5 = vrot.slane %v10277_v57, 3 }
 0xcc9   : > { %15173 = vmatmul.mubr.bf16.vlgmr.msra.gmra.mrb[104].mxu1 %v10248_v47  ;;  %v21537_v47 = vld [vmem:[#allocation2 + $0x50] sm:$0xff] }
 0xcca   : > { %15281 = vmatpush3.bf16.msra.mxu1 %v17590_v9  ;;  %15176 = vmatprep.mubr.msk.bf16.mxu1 %vm17649_vm1, %v22344_v31  ;;  %v10282_v9 = vrot.slane %v10280_v19, 4  ;;  %v10286_v28 = vshrl.u32 %v21537_v47, 16 }
 0xccb   : > { %15282 = vmatprep.subr.bf16.mxu1 %v22344_v31 }
 0xccc   : > { %v10283_v13 = vor.u32 %v10282_v9, %v10279_v5 }
 0xcce   : > { %15283 = vmatpush3.bf16.msra.mxu1 %v17591_v44  ;;  %v10289_v44 = vshll.u32 %v21537_v47, 16  ;;  %v10284_v8 = vsel %vm865_vm3, %v10274_v12, %v10283_v13 }
 0xccf   : > { %15284 = vmatprep.subr.bf16.mxu1 %v22344_v31 }
 0xcd1   : > { %15177 = vmatmul.mubr.bf16.gmra.mrb[0].mxu1 %v10257_v36  ;;  %v10291_v36 = vrot.slane %v10289_v44, 4 }
 0xcd2   : > { %15180 = vmatprep.mubr.msk.bf16.mxu1 %vm17649_vm1, %v22344_v31  ;;  %15285 = vmatpush3.bf16.msra.mxu1 %v17592_v37  ;;  %v10288_v37 = vrot.slane %v10286_v28, 3 }
 0xcd3   : > { %15286 = vmatprep.subr.bf16.mxu1 %v22344_v31 }
 0xcd6   : > { %15287 = vmatpush3.bf16.msra.mxu1 %v17593_v34  ;;  %v10292_v34 = vor.u32 %v10291_v36, %v10288_v37 }
 0xcd7   : > { %15288 = vmatprep.subr.bf16.mxu1 %v22344_v31 }
 0xcd9   : > { %15181 = vmatmul.mubr.bf16.gmra.mrb[4].mxu1 %v10266_v50  ;;  %v10293_v50 = vsel %vm865_vm3, %v10283_v13, %v10292_v34 }
 0xcda   : > { %15184 = vmatprep.mubr.msk.bf16.mxu1 %vm17649_vm1, %v22344_v31  ;;  %15289 = vmatpush3.bf16.msra.mxu1 %v17594_v17  ;;  %v22334_v17 = vshll.u32 %v21548_v42, 16 }
 0xcdb   : > { %15290 = vmatprep.subr.bf16.mxu1 %v22344_v31 }
 0xcdc   : > { %v10300_v3 = vrot.slane %v22334_v17, 4 }
 0xcde   : > { %15291 = vmatpush3.bf16.msra.mxu1 %v17595_v15  ;;  %v21563_v15 = vld [vmem:[#allocation2 + $0x60] sm:$0xff]  ;;  %v10301_v12 = vor.u32 %v10300_v3, %v10297_v1 }
 0xcdf   : > { %15292 = vmatprep.subr.bf16.mxu1 %v22344_v31  ;;  %v22335_v5 = vshll.u32 %v21563_v15, 16 }
 0xce0   : > { %v10302_v9 = vsel %vm865_vm3, %v10292_v34, %v10301_v12  ;;  %v17597_v34 = vld [vmem:[%s22196_s5 + $0x1f8] sm:$0xff]  }
 0xce1   : > { %15185 = vmatmul.mubr.bf16.gmra.mrb[8].mxu1 %v10275_v7  ;;  %v22336_v7 = vshrl.u32 %v21563_v15, 16 }
 0xce2   : > { %15188 = vmatprep.mubr.msk.bf16.mxu1 %vm17649_vm1, %v22344_v31  ;;  %15293 = vmatpush3.bf16.msra.mxu1 %v17596_v55  ;;  %v22602_v55 = vld [vmem:[#allocation82_spill] sm:$0xff] }
 0xce3   : > { %15294 = vmatprep.subr.bf16.mxu1 %v22344_v31  ;;  %v10306_v13 = vrot.slane %v22336_v7, 3  ;;  %v22604_v3 = vshll.u32 %v22602_v55, 16  ;;  %v22608_v7 = vld [vmem:[#allocation73_spill] sm:$0xff] }
 0xce5   : > { %v10318_v17 = vrot.slane %v22604_v3, 4 }
 0xce6   : > { %15295 = vmatpush3.bf16.msra.mxu1 %v17597_v34  ;;  %v22609_v34 = vshrl.u32 %v22608_v7, 16 }
 0xce7   : > { %15404 = vmatprep.subr.bf16.mxu1 %v22344_v31 }
 0xce9   : > { %15189 = vmatmul.mubr.bf16.gmra.mrb[12].mxu1 %v10284_v8  ;;  %v10309_v8 = vrot.slane %v22335_v5, 4 }
 0xcea   : > { %15192 = vmatprep.mubr.msk.bf16.mxu1 %vm17649_vm1, %v22344_v31 }
 0xceb   : > { %v10310_v37 = vor.u32 %v10309_v8, %v10306_v13  ;;  %v22605_v13 = vld [vmem:[#allocation72_spill] sm:$0xff] }
 0xcec   : > { %v22606_v8 = vshrl.u32 %v22605_v13, 16 }
 0xced   : > { %v10311_v36 = vsel %vm865_vm3, %v10301_v12, %v10310_v37 }
 0xcf1   : > { %15193 = vmatmul.mubr.bf16.gmra.mrb[16].mxu1 %v10293_v50  ;;  %v22603_v50 = vshrl.u32 %v22602_v55, 16  ;;  %v22607_v55 = vshll.u32 %v22605_v13, 16 }
 0xcf2   : > { %15196 = vmatprep.mubr.msk.bf16.mxu1 %vm17649_vm1, %v22344_v31 }
 0xcf3   : > { %v10315_v1 = vrot.slane %v22603_v50, 3  ;;  %v10324_v50 = vrot.slane %v22606_v8, 3  ;;  %v10327_v3 = vrot.slane %v22607_v55, 4 }
 0xcf9   : > { %15197 = vmatmul.mubr.bf16.gmra.mrb[20].mxu1 %v10302_v9  ;;  %v10319_v9 = vor.u32 %v10318_v17, %v10315_v1  ;;  %v10333_v17 = vrot.slane %v22609_v34, 3  ;;  %v22610_v1 = vshll.u32 %v22608_v7, 16 }
 0xcfa   : > { %15200 = vmatprep.mubr.msk.bf16.mxu1 %vm17649_vm1, %v22344_v31 }
 0xcfb   : > { %v10320_v12 = vsel %vm865_vm3, %v10310_v37, %v10319_v9  ;;  %v10336_v23 = vrot.slane %v22610_v1, 4  ;;  %v22615_v1 = vshrl.u32 %v20650_v22, 16 }
 0xcfd   : > { %v10337_v37 = vor.u32 %v10336_v23, %v10333_v17  ;;  %v22614_v23 = vshll.u32 %v20648_v24, 16 }
 0xcff   : > { %v10354_v17 = vrot.slane %v22614_v23, 4 }
 0xd01   : > { %15201 = vmatmul.mubr.bf16.gmra.mrb[24].mxu1 %v10311_v36  ;;  %v10328_v36 = vor.u32 %v10327_v3, %v10324_v50  ;;  %v22612_v50 = vshll.u32 %v20646_v60, 16 }
 0xd02   : > { %15204 = vmatprep.mubr.msk.bf16.mxu1 %vm17649_vm1, %v22344_v31 }
 0xd03   : > { %v10329_v5 = vsel %vm865_vm3, %v10319_v9, %v10328_v36  ;;  %v10338_v8 = vsel %vm865_vm3, %v10328_v36, %v10337_v37  ;;  %v10345_v3 = vrot.slane %v22612_v50, 4  ;;  %v22617_v50 = vshrl.u32 %v20652_v32, 16 }
 0xd09   : > { %15205 = vmatmul.mubr.bf16.gmra.mrb[28].mxu1 %v10320_v12  ;;  %v22611_v12 = vshrl.u32 %v20646_v60, 16 }
 0xd0a   : > { %15208 = vmatprep.mubr.msk.bf16.mxu1 %vm17649_vm1, %v22344_v31 }
 0xd0b   : > { %v10342_v55 = vrot.slane %v22611_v12, 3  ;;  %v22616_v12 = vshll.u32 %v20650_v22, 16 }
 0xd0d   : > { %v10346_v9 = vor.u32 %v10345_v3, %v10342_v55  ;;  %v10363_v55 = vrot.slane %v22616_v12, 4  ;;  %v10369_v3 = vrot.slane %v22617_v50, 3  ;;  %v22624_v50 = vshrl.u32 %v20695_v11, 16 }
 0xd0f   : > { %v10347_v7 = vsel %vm865_vm3, %v10337_v37, %v10346_v9 }
 0xd11   : > { %15209 = vmatmul.mubr.bf16.gmra.mrb[32].mxu1 %v10329_v5  ;;  %v22613_v5 = vshrl.u32 %v20648_v24, 16 }
 0xd12   : > { %15212 = vmatprep.mubr.msk.bf16.mxu1 %vm17649_vm1, %v22344_v31 }
 0xd13   : > { %v10351_v34 = vrot.slane %v22613_v5, 3 }
 0xd15   : > { %v10355_v36 = vor.u32 %v10354_v17, %v10351_v34  ;;  %v22619_v34 = vshrl.u32 %v20654_v18, 16  ;;  %v22620_v17 = vshll.u32 %v20654_v18, 16 }
 0xd17   : > { %v10356_v60 = vsel %vm865_vm3, %v10346_v9, %v10355_v36  ;;  %v10378_v23 = vrot.slane %v22619_v34, 3  ;;  %v22626_v34 = vshrl.u32 %v20731_v56, 16 }
 0xd19   : > { %15213 = vmatmul.mubr.bf16.gmra.mrb[36].mxu1 %v10338_v8  ;;  %v10360_v8 = vrot.slane %v22615_v1, 3  ;;  %v22621_v1 = vld [vmem:[#allocation74_spill] sm:$0xff] }
 0xd1a   : > { %15216 = vmatprep.mubr.msk.bf16.mxu1 %vm17649_vm1, %v22344_v31 }
 0xd1b   : > { %v10364_v37 = vor.u32 %v10363_v55, %v10360_v8  ;;  %v22622_v8 = vshrl.u32 %v22621_v1, 16  ;;  %v22623_v55 = vshll.u32 %v22621_v1, 16  ;;  %v10417_v1 = vrot.slane %v10415_v49, 4 }
 0xd1c   : > { %v10430_v49 = vshrl.u32 %v21671_v29, 16 }
 0xd1d   : > { %v10365_v24 = vsel %vm865_vm3, %v10355_v36, %v10364_v37  ;;  %v10387_v12 = vrot.slane %v22622_v8, 3 }
 0xd21   : > { %15217 = vmatmul.mubr.bf16.gmra.mrb[40].mxu1 %v10347_v7  ;;  %v22618_v7 = vshll.u32 %v20652_v32, 16 }
 0xd22   : > { %15220 = vmatprep.mubr.msk.bf16.mxu1 %vm17649_vm1, %v22344_v31 }
 0xd23   : > { %v10372_v5 = vrot.slane %v22618_v7, 4  ;;  %v22625_v7 = vshll.u32 %v20695_v11, 16 }
 0xd25   : > { %v10373_v9 = vor.u32 %v10372_v5, %v10369_v3  ;;  %v10396_v3 = vrot.slane %v22624_v50, 3  ;;  %v10399_v5 = vrot.slane %v22625_v7, 4 }
 0xd27   : > { %v10374_v22 = vsel %vm865_vm3, %v10364_v37, %v10373_v9 }
 0xd29   : > { %15221 = vmatmul.mubr.bf16.gmra.mrb[44].mxu1 %v10356_v60  ;;  %v10381_v60 = vrot.slane %v22620_v17, 4  ;;  %v22627_v17 = vshll.u32 %v20731_v56, 16 }
 0xd2a   : > { %15224 = vmatprep.mubr.msk.bf16.mxu1 %vm17649_vm1, %v22344_v31 }
 0xd2b   : > { %v10382_v36 = vor.u32 %v10381_v60, %v10378_v23  ;;  %v10405_v23 = vrot.slane %v22626_v34, 3  ;;  %v10408_v60 = vrot.slane %v22627_v17, 4 }
 0xd2d   : > { %v10383_v32 = vsel %vm865_vm3, %v10373_v9, %v10382_v36  ;;  %v10400_v9 = vor.u32 %v10399_v5, %v10396_v3 }
 0xd31   : > { %15225 = vmatmul.mubr.bf16.gmra.mrb[48].mxu1 %v10365_v24  ;;  %v10390_v24 = vrot.slane %v22623_v55, 4  ;;  %v10426_v55 = vrot.slane %v10424_v63, 4  ;;  %v21682_v63 = vld [vmem:[#allocation2 + $0xd8] sm:$0xff] }
 0xd32   : > { %15228 = vmatprep.mubr.msk.bf16.mxu1 %vm17649_vm1, %v22344_v31  ;;  %v10439_v50 = vshrl.u32 %v21682_v63, 16  ;;  %v10442_v3 = vshll.u32 %v21682_v63, 16 }
 0xd33   : > { %v10391_v37 = vor.u32 %v10390_v24, %v10387_v12  ;;  %v10423_v12 = vrot.slane %v10421_v48, 3  ;;  %v10433_v24 = vshll.u32 %v21671_v29, 16 }
 0xd34   : > { %v10441_v5 = vrot.slane %v10439_v50, 3 }
 0xd35   : > { %v10392_v18 = vsel %vm865_vm3, %v10382_v36, %v10391_v37  ;;  %v10409_v36 = vor.u32 %v10408_v60, %v10405_v23  ;;  %v10435_v16 = vrot.slane %v10433_v24, 4 }
 0xd37   : > { %v10410_v11 = vsel %vm865_vm3, %v10400_v9, %v10409_v36 }
 0xd39   : > { %15229 = vmatmul.mubr.bf16.gmra.mrb[52].mxu1 %v10374_v22  ;;  %v10401_v22 = vsel %vm865_vm3, %v10391_v37, %v10400_v9  ;;  %v10444_v9 = vrot.slane %v10442_v3, 4 }
 0xd3a   : > { %15232 = vmatprep.mubr.msk.bf16.mxu1 %vm17649_vm1, %v22344_v31 }
 0xd3b   : > { %v10445_v34 = vor.u32 %v10444_v9, %v10441_v5 }
 0xd41   : > { %15233 = vmatmul.mubr.bf16.gmra.mrb[56].mxu1 %v10383_v32  ;;  %v10414_v32 = vrot.slane %v10412_v0, 3  ;;  %v10427_v0 = vor.u32 %v10426_v55, %v10423_v12 }
 0xd42   : > { %15236 = vmatprep.mubr.msk.bf16.mxu1 %vm17649_vm1, %v22344_v31 }
 0xd43   : > { %v10418_v8 = vor.u32 %v10417_v1, %v10414_v32  ;;  %v21702_v32 = vld [vmem:[#allocation2 + $0xe8] sm:$0xff] }
 0xd45   : > { %v10419_v56 = vsel %vm865_vm3, %v10409_v36, %v10418_v8  ;;  %v10428_v37 = vsel %vm865_vm3, %v10418_v8, %v10427_v0  ;;  %v10457_v8 = vshrl.u32 %v21702_v32, 16 }
 0xd47   : > { %v10459_v55 = vrot.slane %v10457_v8, 3  ;;  %v11462_v63 = vrot.slane %v10457_v8, 4 }
 0xd49   : > { %15237 = vmatmul.mubr.bf16.gmra.mrb[60].mxu1 %v10392_v18  ;;  %v10432_v18 = vrot.slane %v10430_v49, 3 }
 0xd4a   : > { %15240 = vmatprep.mubr.msk.bf16.mxu1 %vm17649_vm1, %v22344_v31 }
 0xd4b   : > { %v10436_v48 = vor.u32 %v10435_v16, %v10432_v18  ;;  %v21715_v18 = vld [vmem:[#allocation2] sm:$0xff] }
 0xd4c   : > { %v22339_v16 = vshrl.u32 %v21715_v18, 16 }
 0xd4d   : > { %v10437_v7 = vsel %vm865_vm3, %v10427_v0, %v10436_v48  ;;  %v10446_v60 = vsel %vm865_vm3, %v10436_v48, %v10445_v34  ;;  %v22338_v48 = vshll.u32 %v21715_v18, 16 }
 0xd4e   : > { %v10468_v9 = vrot.slane %v22339_v16, 3  ;;  %v10908_v16 = vrot.slane %v21457_v43, 4 }
 0xd51   : > { %15241 = vmatmul.mubr.bf16.gmra.mrb[64].mxu1 %v10401_v22  ;;  %v21691_v22 = vld [vmem:[#allocation2 + $0xe0] sm:$0xff] }
 0xd52   : > { %15244 = vmatprep.mubr.msk.bf16.mxu1 %vm17649_vm1, %v22344_v31  ;;  %v10448_v23 = vshrl.u32 %v21691_v22, 16  ;;  %v10451_v17 = vshll.u32 %v21691_v22, 16 }
 0xd54   : > { %v10450_v36 = vrot.slane %v10448_v23, 3  ;;  %v11458_v29 = vrot.slane %v10448_v23, 4 }
 0xd59   : > { %15245 = vmatmul.mubr.bf16.gmra.mrb[68].mxu1 %v10410_v11  ;;  %v10453_v11 = vrot.slane %v10451_v17, 4 }
 0xd5a   : > { %15248 = vmatprep.mubr.msk.bf16.mxu1 %vm17649_vm1, %v22344_v31 }
 0xd5b   : > { %v10454_v1 = vor.u32 %v10453_v11, %v10450_v36 }
 0xd5d   : > { %v10455_v12 = vsel %vm865_vm3, %v10445_v34, %v10454_v1  ;;  %v10471_v34 = vrot.slane %v22338_v48, 4 }
 0xd5f   : > { %v10472_v11 = vor.u32 %v10471_v34, %v10468_v9 }
 0xd61   : > { %15249 = vmatmul.mubr.bf16.gmra.mrb[72].mxu1 %v10419_v56  ;;  %v10460_v56 = vshll.u32 %v21702_v32, 16 }
 0xd62   : > { %15252 = vmatprep.mubr.msk.bf16.mxu1 %vm17649_vm1, %v22344_v31 }
 0xd63   : > { %v10462_v0 = vrot.slane %v10460_v56, 4 }
 0xd69   : > { %15253 = vmatmul.mubr.bf16.gmra.mrb[76].mxu1 %v10428_v37  ;;  %v10463_v37 = vor.u32 %v10462_v0, %v10459_v55 }
 0xd6a   : > { %15256 = vmatprep.mubr.msk.bf16.mxu1 %vm17649_vm1, %v22344_v31 }
 0xd6b   : > { %v10464_v5 = vsel %vm865_vm3, %v10454_v1, %v10463_v37  ;;  %v10473_v0 = vsel %vm865_vm3, %v10463_v37, %v10472_v11  ;;  %v17598_v37 = vld [vmem:[%s22196_s5 + $0x200] sm:$0xff]  }
 0xd71   : > { %15257 = vmatmul.mubr.bf16.gmra.mrb[80].mxu1 %v10437_v7  ;;  %v21719_v7 = vld [vmem:[#allocation2 + $0xf8] sm:$0xf] }
 0xd72   : > { %15260 = vmatprep.mubr.msk.bf16.mxu1 %vm17649_vm1, %v22344_v31  ;;  %v10478_v36 = vshll.u32 %v21719_v7, 16  ;;  %v10960_v45 = vrot.slane %v21719_v7, 4 }
 0xd74   : > { %v10480_v55 = vrot.slane %v10478_v36, 4  ;;  %v17600_v36 = vld [vmem:[%s22196_s5 + $0x210] sm:$0xff]  }
 0xd79   : > { %15261 = vmatmul.mubr.bf16.gmra.mrb[84].mxu1 %v10446_v60  ;;  %v10475_v60 = vshrl.u32 %v21719_v7, 16 }
 0xd7a   : > { %15264 = vmatprep.mubr.msk.bf16.mxu1 %vm17649_vm1, %v22344_v31 }
 0xd81   : > { %15265 = vmatmul.mubr.bf16.gmra.mrb[88].mxu1 %v10455_v12  ;;  %v10477_v12 = vrot.slane %v10475_v60, 3  ;;  %v10910_v60 = vrot.slane %v21469_v27, 4 }
 0xd82   : > { %15268 = vmatprep.mubr.msk.bf16.mxu1 %vm17649_vm1, %v22344_v31 }
 0xd83   : > { %v10481_v1 = vor.u32 %v10480_v55, %v10477_v12  ;;  %v17601_v12 = vld [vmem:[%s22196_s5 + $0x218] sm:$0xff]   ;;  %v10912_v55 = vrot.slane %v21483_v61, 4 }
 0xd85   : > { %v10482_v48 = vsel %vm865_vm3, %v10472_v11, %v10481_v1  ;;  %v10911_v11 = vsel %vm7059_vm5, %v10908_v16, %v10910_v60  ;;  %v17603_v1 = vld [vmem:[%s22196_s5 + $0x228] sm:$0xff]  }
 0xd89   : > { %15269 = vmatmul.mubr.bf16.gmra.mrb[92].mxu1 %v10464_v5  ;;  %v21736_v5 = vld [vmem:[#allocation2 + $0x20] sm:$0xf0] }
 0xd8a   : > { %15272 = vmatprep.mubr.msk.bf16.mxu1 %vm17649_vm1, %v22344_v31  ;;  %v10907_v9 = vrot.slane %v21736_v5, 4 }
 0xd8c   : > { %v10909_v34 = vsel %vm7059_vm5, %v10907_v9, %v10908_v16  ;;  %v10913_v16 = vsel %vm7059_vm5, %v10910_v60, %v10912_v55  ;;  %v10914_v9 = vrot.slane %v21502_v33, 4  ;;  %v17604_v60 = vld [vmem:[%s22196_s5 + $0x230] sm:$0xff]  }
 0xd91   : > { %15273 = vmatmul.mubr.bf16.gmra.mrb[96].mxu1 %v10473_v0  ;;  %v17602_v0 = vld [vmem:[%s22196_s5 + $0x220] sm:$0xff]  }
 0xd92   : > { %15276 = vmatprep.mubr.msk.bf16.mxu1 %vm17649_vm1, %v22344_v31 }
 0xd99   : > { %15277 = vmatmul.mubr.bf16.gmra.mrb[100].mxu1 %v10482_v48  ;;  %v17599_v48 = vld [vmem:[%s22196_s5 + $0x208] sm:$0xff]  }
 0xd9a   : > { %15296 = vmatprep.mubr.msk.bf16.mxu1 %vm17649_vm1, %v22344_v31 }
 0xda1   : > { %15297 = vmatmul.mubr.bf16.vlgmr.msra.gmra.mrb[104].mxu1 %v10909_v34  ;;  %v10916_v34 = vrot.slane %v21521_v35, 4 }
 0xda2   : > { %15405 = vmatpush3.bf16.msra.mxu1 %v17598_v37  ;;  %15300 = vmatprep.mubr.msk.bf16.mxu1 %vm17649_vm1, %v22344_v31  ;;  %v10915_v37 = vsel %vm7059_vm5, %v10912_v55, %v10914_v9 }
 0xda3   : > { %15406 = vmatprep.subr.bf16.mxu1 %v22344_v31 }
 0xda6   : > { %15407 = vmatpush3.bf16.msra.mxu1 %v17599_v48  ;;  %v10917_v48 = vsel %vm7059_vm5, %v10914_v9, %v10916_v34  ;;  %v17638_v9 = vld [vmem:[#allocation2 + $0x68] sm:$0xff] }
 0xda7   : > { %15408 = vmatprep.subr.bf16.mxu1 %v22344_v31 }
 0xda9   : > { %15301 = vmatmul.mubr.bf16.gmra.mrb[0].mxu1 %v10911_v11 }
 0xdaa   : > { %15304 = vmatprep.mubr.msk.bf16.mxu1 %vm17649_vm1, %v22344_v31  ;;  %15409 = vmatpush3.bf16.msra.mxu1 %v17600_v36  ;;  %v10918_v36 = vrot.slane %v21537_v47, 4 }
 0xdab   : > { %15410 = vmatprep.subr.bf16.mxu1 %v22344_v31 }
 0xdac   : > { %v10919_v11 = vsel %vm7059_vm5, %v10916_v34, %v10918_v36 }
 0xdae   : > { %15411 = vmatpush3.bf16.msra.mxu1 %v17601_v12  ;;  %v10920_v12 = vrot.slane %v21548_v42, 4 }
 0xdaf   : > { %15412 = vmatprep.subr.bf16.mxu1 %v22344_v31 }
 0xdb0   : > { %v10921_v55 = vsel %vm7059_vm5, %v10918_v36, %v10920_v12  ;;  %v22629_v36 = vld [vmem:[#allocation75_spill] sm:$0xff] }
 0xdb1   : > { %15305 = vmatmul.mubr.bf16.gmra.mrb[4].mxu1 %v10913_v16 }
 0xdb2   : > { %15308 = vmatprep.mubr.msk.bf16.mxu1 %vm17649_vm1, %v22344_v31  ;;  %15413 = vmatpush3.bf16.msra.mxu1 %v17602_v0  ;;  %v10922_v0 = vrot.slane %v21563_v15, 4 }
 0xdb3   : > { %15414 = vmatprep.subr.bf16.mxu1 %v22344_v31 }
 0xdb4   : > { %v10923_v16 = vsel %vm7059_vm5, %v10920_v12, %v10922_v0 }
 0xdb6   : > { %15415 = vmatpush3.bf16.msra.mxu1 %v17603_v1  ;;  %v17605_v1 = vld [vmem:[%s22196_s5 + $0x238] sm:$0xff]  }
 0xdb7   : > { %15416 = vmatprep.subr.bf16.mxu1 %v22344_v31 }
 0xdb9   : > { %15309 = vmatmul.mubr.bf16.gmra.mrb[8].mxu1 %v10915_v37  ;;  %v10924_v37 = vrot.slane %v17638_v9, 4  ;;  %v22634_v9 = vld [vmem:[#allocation79_spill] sm:$0xff] }
 0xdba   : > { %15312 = vmatprep.mubr.msk.bf16.mxu1 %vm17649_vm1, %v22344_v31  ;;  %15417 = vmatpush3.bf16.msra.mxu1 %v17604_v60 }
 0xdbb   : > { %15418 = vmatprep.subr.bf16.mxu1 %v22344_v31  ;;  %v10925_v34 = vsel %vm7059_vm5, %v10922_v0, %v10924_v37 }
 0xdbe   : > { %15419 = vmatpush3.bf16.msra.mxu1 %v17605_v1  ;;  %v22633_v1 = vld [vmem:[#allocation78_spill] sm:$0xff] }
 0xdc1   : > { %15313 = vmatmul.mubr.bf16.gmra.mrb[12].mxu1 %v10917_v48  ;;  %v22628_v48 = vrot.slane %v22605_v13, 4  ;;  %v22632_v13 = vld [vmem:[#allocation77_spill] sm:$0xff] }
 0xdc2   : > { %15316 = vmatprep.mubr.msk.bf16.mxu1 %vm17649_vm1, %v22344_v31 }
 0xdc3   : > { %v10927_v60 = vsel %vm7059_vm5, %v10924_v37, %v22628_v48  ;;  %v22635_v37 = vld [vmem:[#allocation80_spill] sm:$0xff]  ;;  %v22637_v48 = vld [vmem:[#allocation83_spill] sm:$0xff] }
 0xdc9   : > { %15317 = vmatmul.mubr.bf16.gmra.mrb[16].mxu1 %v10919_v11  ;;  %v17639_v11 = vld [vmem:[#allocation2 + $0x8] sm:$0xf0] }
 0xdca   : > { %15320 = vmatprep.mubr.msk.bf16.mxu1 %vm17649_vm1, %v22344_v31  ;;  %v7060_v12 = vrot.slane %v17639_v11, 4 }
 0xdd1   : > { %15321 = vmatmul.mubr.bf16.gmra.mrb[20].mxu1 %v10921_v55  ;;  %v22630_v55 = vld [vmem:[#allocation3_spill] sm:$0xff] }
 0xdd2   : > { %15324 = vmatprep.mubr.msk.bf16.mxu1 %vm17649_vm1, %v22344_v31  ;;  %v7062_v0 = vsel %vm7059_vm5, %v7060_v12, %v22630_v55  ;;  %v11359_v12 = vshrl.u32 %v21736_v5, 16  ;;  %v11362_v55 = vshll.u32 %v21736_v5, 16  ;;  %v11371_v5 = vrot.slane %v10253_v26, 5 }
 0xdd3   : > { %14429 = vmatmul.mubr.bf16.vlgmr.msra.gmra.mrb[108].mxu0 %v7062_v0  ;;  %v11366_v0 = vrot.slane %v10241_v54, 4  ;;  %v11378_v26 = vrot.slane %v10268_v51, 4 }
 0xdd9   : > { %15325 = vmatmul.mubr.bf16.gmra.mrb[24].mxu1 %v10923_v16  ;;  %v22631_v16 = vld [vmem:[#allocation76_spill] sm:$0xff] }
 0xdda   : > { %15328 = vmatprep.mubr.msk.bf16.mxu1 %vm17649_vm1, %v22344_v31 }
 0xde1   : > { %15329 = vmatmul.mubr.bf16.gmra.mrb[28].mxu1 %v10925_v34  ;;  %v22636_v34 = vld [vmem:[#allocation81_spill] sm:$0xff] }
 0xde2   : > { %15332 = vmatprep.mubr.msk.bf16.mxu1 %vm17649_vm1, %v22344_v31 }
 0xde9   : > { %15333 = vmatmul.mubr.bf16.gmra.mrb[32].mxu1 %v10927_v60  ;;  %v22638_v60 = vld [vmem:[#allocation86_spill] sm:$0xff] }
 0xdea   : > { %15336 = vmatprep.mubr.msk.bf16.mxu1 %vm17649_vm1, %v22344_v31 }
 0xdf1   : > { %15337 = vmatmul.mubr.bf16.gmra.mrb[36].mxu1 %v22629_v36 }
 0xdf2   : > { %15340 = vmatprep.mubr.msk.bf16.mxu1 %vm17649_vm1, %v22344_v31 }
 0xdf9   : > { %15341 = vmatmul.mubr.bf16.gmra.mrb[40].mxu1 %v22631_v16  ;;  %v11367_v16 = vrot.slane %v10244_v2, 5  ;;  %v11374_v2 = vrot.slane %v10259_v62, 4 }
 0xdfa   : > { %15344 = vmatprep.mubr.msk.bf16.mxu1 %vm17649_vm1, %v22344_v31 }
 0xe01   : > { %15345 = vmatmul.mubr.bf16.gmra.mrb[44].mxu1 %v22632_v13  ;;  %v11361_v13 = vrot.slane %v11359_v12, 4 }
 0xe02   : > { %15348 = vmatprep.mubr.msk.bf16.mxu1 %vm17649_vm1, %v22344_v31 }
 0xe09   : > { %15349 = vmatmul.mubr.bf16.gmra.mrb[48].mxu1 %v22633_v1  ;;  %v11364_v1 = vrot.slane %v11362_v55, 5  ;;  %v22643_v55 = vld [vmem:[#allocation84_spill] sm:$0xff] }
 0xe0a   : > { %15352 = vmatprep.mubr.msk.bf16.mxu1 %vm17649_vm1, %v22344_v31 }
 0xe0b   : > { %v11365_v7 = vor.u32 %v11364_v1, %v11361_v13 }
 0xe11   : > { %15353 = vmatmul.mubr.bf16.gmra.mrb[52].mxu1 %v22634_v9  ;;  %v11368_v9 = vor.u32 %v11367_v16, %v11366_v0  ;;  %v22645_v16 = vld [vmem:[#allocation87_spill] sm:$0xff] }
 0xe12   : > { %15356 = vmatprep.mubr.msk.bf16.mxu1 %vm17649_vm1, %v22344_v31 }
 0xe19   : > { %15357 = vmatmul.mubr.bf16.gmra.mrb[56].mxu1 %v22635_v37  ;;  %v11369_v37 = vsel %vm8032_vm6, %v11365_v7, %v11368_v9 }
 0xe1a   : > { %15360 = vmatprep.mubr.msk.bf16.mxu1 %vm17649_vm1, %v22344_v31 }
 0xe21   : > { %15361 = vmatmul.mubr.bf16.gmra.mrb[60].mxu1 %v22636_v34  ;;  %v11370_v34 = vrot.slane %v10250_v58, 4 }
 0xe22   : > { %15364 = vmatprep.mubr.msk.bf16.mxu1 %vm17649_vm1, %v22344_v31 }
 0xe23   : > { %v11372_v43 = vor.u32 %v11371_v5, %v11370_v34  ;;  %v22647_v34 = vld [vmem:[#allocation89_spill] sm:$0xff] }
 0xe25   : > { %v11373_v54 = vsel %vm8032_vm6, %v11368_v9, %v11372_v43  ;;  %v22646_v9 = vld [vmem:[#allocation88_spill] sm:$0xff] }
 0xe29   : > { %15365 = vmatmul.mubr.bf16.gmra.mrb[64].mxu1 %v22637_v48  ;;  %v11375_v48 = vrot.slane %v10262_v46, 5  ;;  %v11382_v46 = vrot.slane %v10277_v57, 4 }
 0xe2a   : > { %15368 = vmatprep.mubr.msk.bf16.mxu1 %vm17649_vm1, %v22344_v31 }
 0xe2b   : > { %v11376_v58 = vor.u32 %v11375_v48, %v11374_v2 }
 0xe2d   : > { %v11377_v27 = vsel %vm8032_vm6, %v11372_v43, %v11376_v58  ;;  %v22649_v43 = vshll.u32 %v21715_v18, 16 }
 0xe31   : > { %15369 = vmatmul.mubr.bf16.gmra.mrb[68].mxu1 %v22638_v60  ;;  %v11379_v60 = vrot.slane %v10271_v21, 5  ;;  %v11386_v21 = vrot.slane %v10286_v28, 4 }
 0xe32   : > { %15372 = vmatprep.mubr.msk.bf16.mxu1 %vm17649_vm1, %v22344_v31 }
 0xe33   : > { %v11380_v62 = vor.u32 %v11379_v60, %v11378_v26  ;;  %v22011_v60 = vld [vmem:[%s22197_s6] ss:$0 sm:$0xff] }
 0xe35   : > { %v11381_v61 = vsel %vm8032_vm6, %v11376_v58, %v11380_v62 }
 0xe39   : > { %15373 = vmatmul.mubr.bf16.gmra.mrb[72].mxu1 %v20816_v39  ;;  %v10954_v39 = vrot.slane %v21691_v22, 4  ;;  %v11340_v22 = vld [vmem:[#allocation2 + $0xf8] sm:$0x1f] }
 0xe3a   : > { %15376 = vmatprep.mubr.msk.bf16.mxu1 %vm17649_vm1, %v22344_v31  ;;  %v11474_v8 = vshll.u32 %v11340_v22, 16 }
 0xe3b   : > { %v10955_v36 = vsel %vm7059_vm5, %v10952_v4, %v10954_v39 }
 0xe3c   : > { %v11476_v48 = vrot.slane %v11474_v8, 5 }
 0xe41   : > { %15377 = vmatmul.mubr.bf16.gmra.mrb[76].mxu1 %v20837_v30  ;;  %v10956_v30 = vrot.slane %v21702_v32, 4  ;;  %v11471_v32 = vshrl.u32 %v11340_v22, 16 }
 0xe42   : > { %15380 = vmatprep.mubr.msk.bf16.mxu1 %vm17649_vm1, %v22344_v31 }
 0xe43   : > { %v11473_v2 = vrot.slane %v11471_v32, 4 }
 0xe49   : > { %15381 = vmatmul.mubr.bf16.gmra.mrb[80].mxu1 %v20853_v41  ;;  %v10957_v41 = vsel %vm7059_vm5, %v10954_v39, %v10956_v30  ;;  %v11383_v39 = vrot.slane %v10280_v19, 5  ;;  %v22639_v19 = vshrl.u32 %v21548_v42, 16 }
 0xe4a   : > { %15384 = vmatprep.mubr.msk.bf16.mxu1 %vm17649_vm1, %v22344_v31 }
 0xe4b   : > { %v11384_v51 = vor.u32 %v11383_v39, %v11382_v46  ;;  %v22018_v46 = vld [vmem:[%s22198_s7] ss:$0 sm:$0xff] }
 0xe4d   : > { %v11385_v33 = vsel %vm8032_vm6, %v11380_v62, %v11384_v51 }
 0xe51   : > { %15385 = vmatmul.mubr.bf16.gmra.mrb[84].mxu1 %v20874_v59  ;;  %v10958_v59 = vrot.slane %v21715_v18, 4 }
 0xe52   : > { %15388 = vmatprep.mubr.msk.bf16.mxu1 %vm17649_vm1, %v22344_v31 }
 0xe53   : > { %v10959_v11 = vsel %vm7059_vm5, %v10956_v30, %v10958_v59  ;;  %v10961_v4 = vsel %vm7059_vm5, %v10958_v59, %v10960_v45  ;;  %v11390_v30 = vrot.slane %v22639_v19, 4  ;;  %v22642_v45 = vshll.u32 %v21563_v15, 16 }
 0xe59   : > { %15389 = vmatmul.mubr.bf16.gmra.mrb[88].mxu1 %v10955_v36  ;;  %v11387_v36 = vrot.slane %v10289_v44, 5  ;;  %v22641_v44 = vshrl.u32 %v21563_v15, 16  ;;  %v22644_v15 = vld [vmem:[#allocation85_spill] sm:$0xff] }
 0xe5a   : > { %15392 = vmatprep.mubr.msk.bf16.mxu1 %vm17649_vm1, %v22344_v31 }
 0xe5b   : > { %v11388_v57 = vor.u32 %v11387_v36, %v11386_v21 }
 0xe5d   : > { %v11389_v35 = vsel %vm8032_vm6, %v11384_v51, %v11388_v57 }
 0xe61   : > { %15393 = vmatmul.mubr.bf16.gmra.mrb[92].mxu1 %v10957_v41  ;;  %v22640_v41 = vshll.u32 %v21548_v42, 16 }
 0xe62   : > { %15396 = vmatprep.mubr.msk.bf16.mxu1 %vm17649_vm1, %v22344_v31 }
 0xe63   : > { %v11391_v59 = vrot.slane %v22640_v41, 5 }
 0xe65   : > { %v11392_v28 = vor.u32 %v11391_v59, %v11390_v30 }
 0xe67   : > { %v11393_v47 = vsel %vm8032_vm6, %v11388_v57, %v11392_v28 }
 0xe69   : > { %15397 = vmatmul.mubr.bf16.gmra.mrb[96].mxu1 %v10959_v11  ;;  %v11394_v11 = vrot.slane %v22641_v44, 4 }
 0xe6a   : > { %15400 = vmatprep.mubr.msk.bf16.mxu1 %vm17649_vm1, %v22344_v31 }
 0xe71   : > { %15401 = vmatmul.mubr.bf16.gmra.mrb[100].mxu1 %v10961_v4  ;;  %v11395_v4 = vrot.slane %v22642_v45, 5 }
 0xe72   : > { %15420 = vmatprep.mubr.msk.bf16.mxu1 %vm17649_vm1, %v22344_v31 }
 0xe73   : > { %v11396_v12 = vor.u32 %v11395_v4, %v11394_v11 }
 0xe75   : > { %v11397_v42 = vsel %vm8032_vm6, %v11392_v28, %v11396_v12  ;;  %v11401_v0 = vsel %vm8032_vm6, %v11396_v12, %v22643_v55 }
 0xe79   : > { %15421 = vmatmul.mubr.bf16.vlgmr.msra.gmra.mrb[104].mxu1 %v11369_v37 }
 0xe7a   : > { %15424 = vmatprep.mubr.msk.bf16.mxu1 %vm17649_vm1, %v22344_v31 }
 0xe81   : > { %15425 = vmatmul.mubr.bf16.gmra.mrb[0].mxu1 %v11373_v54  ;;  %v11467_v54 = vrot.slane %v22649_v43, 5 }
 0xe82   : > { %15428 = vmatprep.mubr.msk.bf16.mxu1 %vm17649_vm1, %v22344_v31 }
 0xe89   : > { %15429 = vmatmul.mubr.bf16.gmra.mrb[4].mxu1 %v11377_v27  ;;  %v11477_v27 = vor.u32 %v11476_v48, %v11473_v2 }
 0xe8a   : > { %15432 = vmatprep.mubr.msk.bf16.mxu1 %vm17649_vm1, %v22344_v31 }
 0xe91   : > { %15433 = vmatmul.mubr.bf16.gmra.mrb[8].mxu1 %v11381_v61 }
 0xe92   : > { %15436 = vmatprep.mubr.msk.bf16.mxu1 %vm17649_vm1, %v22344_v31 }
 0xe99   : > { %15437 = vmatmul.mubr.bf16.gmra.mrb[12].mxu1 %v11385_v33 }
 0xe9a   : > { %15440 = vmatprep.mubr.msk.bf16.mxu1 %vm17649_vm1, %v22344_v31 }
 0xea1   : > { %15441 = vmatmul.mubr.bf16.gmra.mrb[16].mxu1 %v11389_v35 }
 0xea2   : > { %15444 = vmatprep.mubr.msk.bf16.mxu1 %vm17649_vm1, %v22344_v31 }
 0xea6   : > { %v21935_v13 = vpop.f32.mrb[108].mxu0 }
 0xea7   : > { %v14430_v1 = vpop.f32.mrb[109].mxu0 }
 0xea8   : > { %v21942_v7 = vpop.f32.mrb[110].mxu0 }
 0xea9   : > { %15445 = vmatmul.mubr.bf16.gmra.mrb[20].mxu1 %v11393_v47  ;;  %v14431_v37 = vpop.f32.mrb[111].mxu0 }
 0xeaa   : > { %15448 = vmatprep.mubr.msk.bf16.mxu1 %vm17649_vm1, %v22344_v31 }
 0xeb1   : > { %15449 = vmatmul.mubr.bf16.gmra.mrb[24].mxu1 %v11397_v42 }
 0xeb2   : > { %15452 = vmatprep.mubr.msk.bf16.mxu1 %vm17649_vm1, %v22344_v31 }
 0xeb9   : > { %15453 = vmatmul.mubr.bf16.gmra.mrb[28].mxu1 %v11401_v0 }
 0xeba   : > { %15456 = vmatprep.mubr.msk.bf16.mxu1 %vm17649_vm1, %v22344_v31 }
 0xec1   : > { %15457 = vmatmul.mubr.bf16.gmra.mrb[32].mxu1 %v22644_v15 }
 0xec2   : > { %15460 = vmatprep.mubr.msk.bf16.mxu1 %vm17649_vm1, %v22344_v31 }
 0xec9   : > { %15461 = vmatmul.mubr.bf16.gmra.mrb[36].mxu1 %v22645_v16 }
 0xeca   : > { %15464 = vmatprep.mubr.msk.bf16.mxu1 %vm17649_vm1, %v22344_v31 }
 0xed1   : > { %15465 = vmatmul.mubr.bf16.gmra.mrb[40].mxu1 %v22646_v9 }
 0xed2   : > { %15468 = vmatprep.mubr.msk.bf16.mxu1 %vm17649_vm1, %v22344_v31 }
 0xed9   : > { %15469 = vmatmul.mubr.bf16.gmra.mrb[44].mxu1 %v22647_v34 }
 0xeda   : > { %15472 = vmatprep.mubr.msk.bf16.mxu1 %vm17649_vm1, %v22344_v31 }
 0xee1   : > { %15473 = vmatmul.mubr.bf16.gmra.mrb[48].mxu1 %v20791_v40  ;;  %v11450_v40 = vrot.slane %v10430_v49, 4  ;;  %v11459_v49 = vrot.slane %v10451_v17, 5  ;;  %v22648_v17 = vshrl.u32 %v21715_v18, 16 }
 0xee2   : > { %15476 = vmatprep.mubr.msk.bf16.mxu1 %vm17649_vm1, %v22344_v31 }
 0xee3   : > { %v11466_v5 = vrot.slane %v22648_v17, 4 }
 0xee9   : > { %15477 = vmatmul.mubr.bf16.gmra.mrb[52].mxu1 %v20799_v10  ;;  %v11451_v10 = vrot.slane %v10433_v24, 5 }
 0xeea   : > { %15480 = vmatprep.mubr.msk.bf16.mxu1 %vm17649_vm1, %v22344_v31 }
 0xef1   : > { %15481 = vmatmul.mubr.bf16.gmra.mrb[56].mxu1 %v20804_v6  ;;  %v11452_v6 = vor.u32 %v11451_v10, %v11450_v40 }
 0xef2   : > { %15484 = vmatprep.mubr.msk.bf16.mxu1 %vm17649_vm1, %v22344_v31 }
 0xef9   : > { %15485 = vmatmul.mubr.bf16.gmra.mrb[60].mxu1 %v20807_v14  ;;  %v11453_v14 = vsel %vm8032_vm6, %v20861_v38, %v11452_v6  ;;  %v11460_v38 = vor.u32 %v11459_v49, %v11458_v29 }
 0xefa   : > { %15488 = vmatprep.mubr.msk.bf16.mxu1 %vm17649_vm1, %v22344_v31 }
 0xf01   : > { %15489 = vmatmul.mubr.bf16.gmra.mrb[64].mxu1 %v20811_v53  ;;  %v11455_v53 = vrot.slane %v10442_v3, 5 }
 0xf02   : > { %15492 = vmatprep.mubr.msk.bf16.mxu1 %vm17649_vm1, %v22344_v31 }
 0xf09   : > { %15493 = vmatmul.mubr.bf16.gmra.mrb[68].mxu1 %v20828_v52 }
 0xf0a   : > { %15496 = vmatprep.mubr.msk.bf16.mxu1 %vm17649_vm1, %v22344_v31 }
 0xf11   : > { %15497 = vmatmul.mubr.bf16.gmra.mrb[72].mxu1 %v20847_v25  ;;  %v11454_v25 = vrot.slane %v10439_v50, 4  ;;  %v11463_v50 = vrot.slane %v10460_v56, 5  ;;  %v11468_v56 = vor.u32 %v11467_v54, %v11466_v5 }
 0xf12   : > { %15500 = vmatprep.mubr.msk.bf16.mxu1 %vm17649_vm1, %v22344_v31 }
 0xf13   : > { %v11456_v52 = vor.u32 %v11455_v53, %v11454_v25  ;;  %v11464_v3 = vor.u32 %v11463_v50, %v11462_v63  ;;  %v11478_v18 = vsel %vm8032_vm6, %v11468_v56, %v11477_v27 }
 0xf15   : > { %v11461_v24 = vsel %vm8032_vm6, %v11456_v52, %v11460_v38  ;;  %v11465_v23 = vsel %vm8032_vm6, %v11460_v38, %v11464_v3  ;;  %v11469_v58 = vsel %vm8032_vm6, %v11464_v3, %v11468_v56 }
 0xf19   : > { %15501 = vmatmul.mubr.bf16.gmra.mrb[76].mxu1 %v20866_v20  ;;  %v11457_v20 = vsel %vm8032_vm6, %v11452_v6, %v11456_v52 }
 0xf1a   : > { %15504 = vmatprep.mubr.msk.bf16.mxu1 %vm17649_vm1, %v22344_v31 }
 0xf21   : > { %15505 = vmatmul.mubr.bf16.gmra.mrb[80].mxu1 %v11453_v14 }
 0xf22   : > { %15508 = vmatprep.mubr.msk.bf16.mxu1 %vm17649_vm1, %v22344_v31 }
 0xf29   : > { %15509 = vmatmul.mubr.bf16.gmra.mrb[84].mxu1 %v11457_v20 }
 0xf2a   : > { %15512 = vmatprep.mubr.msk.bf16.mxu1 %vm17649_vm1, %v22344_v31 }
 0xf31   : > { %15513 = vmatmul.mubr.bf16.gmra.mrb[88].mxu1 %v11461_v24 }
 0xf32   : > { %15516 = vmatprep.mubr.msk.bf16.mxu1 %vm17649_vm1, %v22344_v31 }
 0xf39   : > { %15517 = vmatmul.mubr.bf16.gmra.mrb[92].mxu1 %v11465_v23 }
 0xf3a   : > { %15520 = vmatprep.mubr.msk.bf16.mxu1 %vm17649_vm1, %v22344_v31 }
 0xf41   : > { %15521 = vmatmul.mubr.bf16.gmra.mrb[96].mxu1 %v11469_v58 }
 0xf42   : > { %15524 = vmatprep.mubr.msk.bf16.mxu1 %vm17649_vm1, %v22344_v31 }
 0xf49   : > { %15525 = vmatmul.mubr.bf16.gmra.mrb[100].mxu1 %v11478_v18 }
 0xf4c   : > { %v11588_v26 = vpop.f32.mrb[104].mxu1 }
 0xf4d   : > { %v15544_v62 = vadd.f32 %v11588_v26, %v21935_v13  ;;  %v15422_v61 = vpop.f32.mrb[105].mxu1 }
 0xf4e   : > { %v11591_v31 = vpop.f32.mrb[106].mxu1 }
 0xf4f   : > { %v11864_v39 = vmul.f32 %v15544_v62, %v22011_v60  ;;  %v15545_v51 = vadd.f32 %v11591_v31, %v21942_v7  ;;  %v15423_v33 = vpop.f32.mrb[107].mxu1 }
 0xf51   : > { %v11925_v21 = vadd.f32 %v22018_v46, %v11864_v39  ;;  %v11865_v36 = vmul.f32 %v15545_v51, %v22011_v60 }
 0xf53   : > { %v11979_v57 = vmax.f32 %v11925_v21, 0.0  ;;  %v11926_v35 = vadd.f32 %v22018_v46, %v11865_v36 }
 0xf54   : > { %v11596_v19 = vpop.f32.mrb[0].mxu1 }
 0xf55   : > { %12033 = vst [vmem:[%s22027_s22] sm:$0xff] %v11979_v57  ;;  %v11980_v30 = vmax.f32 %v11926_v35, 0.0  ;;  %v11866_v41 = vmul.f32 %v22011_v60, %v11596_v19  ;;  %v15426_v59 = vpop.f32.mrb[1].mxu1 }
 0xf56   : > { %v11599_v28 = vpop.f32.mrb[2].mxu1 }
 0xf57   : > { %12034 = vst [vmem:[%s22027_s22 + $0x8] sm:$0xff] %v11980_v30  ;;  %v11927_v47 = vadd.f32 %v22018_v46, %v11866_v41  ;;  %v11867_v44 = vmul.f32 %v22011_v60, %v11599_v28  ;;  %v15427_v11 = vpop.f32.mrb[3].mxu1 }
 0xf59   : > { %v11981_v45 = vmax.f32 %v11927_v47, 0.0  ;;  %v11928_v4 = vadd.f32 %v22018_v46, %v11867_v44 }
 0xf5b   : > { %12035 = vst [vmem:[%s22027_s22 + $0x10] sm:$0xff] %v11981_v45  ;;  %v11982_v12 = vmax.f32 %v11928_v4, 0.0 }
 0xf5c   : > { %v11604_v42 = vpop.f32.mrb[4].mxu1 }
 0xf5d   : > { %12036 = vst [vmem:[%s22027_s22 + $0x18] sm:$0xff] %v11982_v12  ;;  %v11868_v55 = vmul.f32 %v22011_v60, %v11604_v42  ;;  %v15430_v0 = vpop.f32.mrb[5].mxu1 }
 0xf5e   : > { %v11607_v15 = vpop.f32.mrb[6].mxu1 }
 0xf5f   : > { %v11929_v16 = vadd.f32 %v22018_v46, %v11868_v55  ;;  %v11869_v13 = vmul.f32 %v22011_v60, %v11607_v15  ;;  %v15431_v1 = vpop.f32.mrb[7].mxu1 }
 0xf61   : > { %v11983_v9 = vmax.f32 %v11929_v16, 0.0  ;;  %v11930_v7 = vadd.f32 %v22018_v46, %v11869_v13 }
 0xf63   : > { %12037 = vst [vmem:[%s22027_s22 + $0x20] sm:$0xff] %v11983_v9  ;;  %v11984_v37 = vmax.f32 %v11930_v7, 0.0 }
 0xf64   : > { %v11612_v34 = vpop.f32.mrb[8].mxu1 }
 0xf65   : > { %12038 = vst [vmem:[%s22027_s22 + $0x28] sm:$0xff] %v11984_v37  ;;  %v11870_v40 = vmul.f32 %v22011_v60, %v11612_v34  ;;  %v15434_v10 = vpop.f32.mrb[9].mxu1 }
 0xf66   : > { %v11615_v6 = vpop.f32.mrb[10].mxu1 }
 0xf67   : > { %v11931_v14 = vadd.f32 %v22018_v46, %v11870_v40  ;;  %v11871_v25 = vmul.f32 %v22011_v60, %v11615_v6  ;;  %v15435_v53 = vpop.f32.mrb[11].mxu1 }
 0xf69   : > { %v11985_v52 = vmax.f32 %v11931_v14, 0.0  ;;  %v11932_v20 = vadd.f32 %v22018_v46, %v11871_v25 }
 0xf6b   : > { %12039 = vst [vmem:[%s22027_s22 + $0x30] sm:$0xff] %v11985_v52  ;;  %v11986_v29 = vmax.f32 %v11932_v20, 0.0 }
 0xf6c   : > { %v11620_v49 = vpop.f32.mrb[12].mxu1 }
 0xf6d   : > { %12040 = vst [vmem:[%s22027_s22 + $0x38] sm:$0xff] %v11986_v29  ;;  %v11872_v38 = vmul.f32 %v22011_v60, %v11620_v49  ;;  %v15438_v24 = vpop.f32.mrb[13].mxu1 }
 0xf6e   : > { %v11623_v63 = vpop.f32.mrb[14].mxu1 }
 0xf6f   : > { %v11933_v50 = vadd.f32 %v22018_v46, %v11872_v38  ;;  %v11873_v3 = vmul.f32 %v22011_v60, %v11623_v63  ;;  %v15439_v22 = vpop.f32.mrb[15].mxu1 }
 0xf71   : > { %v11987_v23 = vmax.f32 %v11933_v50, 0.0  ;;  %v11934_v17 = vadd.f32 %v22018_v46, %v11873_v3 }
 0xf73   : > { %12041 = vst [vmem:[%s22027_s22 + $0x40] sm:$0xff] %v11987_v23  ;;  %v11988_v5 = vmax.f32 %v11934_v17, 0.0 }
 0xf74   : > { %v11628_v43 = vpop.f32.mrb[16].mxu1 }
 0xf75   : > { %12042 = vst [vmem:[%s22027_s22 + $0x48] sm:$0xff] %v11988_v5  ;;  %v11874_v54 = vmul.f32 %v22011_v60, %v11628_v43  ;;  %v15442_v32 = vpop.f32.mrb[17].mxu1 }
 0xf76   : > { %v11631_v8 = vpop.f32.mrb[18].mxu1 }
 0xf77   : > { %v11935_v56 = vadd.f32 %v22018_v46, %v11874_v54  ;;  %v11875_v2 = vmul.f32 %v22011_v60, %v11631_v8  ;;  %v15443_v48 = vpop.f32.mrb[19].mxu1 }
 0xf79   : > { %v11989_v58 = vmax.f32 %v11935_v56, 0.0  ;;  %v11936_v27 = vadd.f32 %v22018_v46, %v11875_v2 }
 0xf7b   : > { %12043 = vst [vmem:[%s22027_s22 + $0x50] sm:$0xff] %v11989_v58  ;;  %v11990_v18 = vmax.f32 %v11936_v27, 0.0 }
 0xf7c   : > { %v11636_v26 = vpop.f32.mrb[20].mxu1 }
 0xf7d   : > { %12044 = vst [vmem:[%s22027_s22 + $0x58] sm:$0xff] %v11990_v18  ;;  %v11876_v62 = vmul.f32 %v22011_v60, %v11636_v26  ;;  %v15446_v61 = vpop.f32.mrb[21].mxu1 }
 0xf7e   : > { %v11639_v31 = vpop.f32.mrb[22].mxu1 }
 0xf7f   : > { %v11937_v39 = vadd.f32 %v22018_v46, %v11876_v62  ;;  %v11877_v51 = vmul.f32 %v22011_v60, %v11639_v31  ;;  %v15447_v33 = vpop.f32.mrb[23].mxu1 }
 0xf81   : > { %v11991_v21 = vmax.f32 %v11937_v39, 0.0  ;;  %v11938_v36 = vadd.f32 %v22018_v46, %v11877_v51 }
 0xf83   : > { %12045 = vst [vmem:[%s22027_s22 + $0x60] sm:$0xff] %v11991_v21  ;;  %v11992_v57 = vmax.f32 %v11938_v36, 0.0 }
 0xf84   : > { %v11644_v35 = vpop.f32.mrb[24].mxu1 }
 0xf85   : > { %12046 = vst [vmem:[%s22027_s22 + $0x68] sm:$0xff] %v11992_v57  ;;  %v11878_v19 = vmul.f32 %v22011_v60, %v11644_v35  ;;  %v15450_v30 = vpop.f32.mrb[25].mxu1 }
 0xf86   : > { %v11647_v41 = vpop.f32.mrb[26].mxu1 }
 0xf87   : > { %v11939_v59 = vadd.f32 %v22018_v46, %v11878_v19  ;;  %v11879_v28 = vmul.f32 %v22011_v60, %v11647_v41  ;;  %v15451_v47 = vpop.f32.mrb[27].mxu1 }
 0xf89   : > { %v11993_v44 = vmax.f32 %v11939_v59, 0.0  ;;  %v11940_v11 = vadd.f32 %v22018_v46, %v11879_v28 }
 0xf8b   : > { %12047 = vst [vmem:[%s22027_s22 + $0x70] sm:$0xff] %v11993_v44  ;;  %v11994_v45 = vmax.f32 %v11940_v11, 0.0 }
 0xf8c   : > { %v11652_v4 = vpop.f32.mrb[28].mxu1 }
 0xf8d   : > { %12048 = vst [vmem:[%s22027_s22 + $0x78] sm:$0xff] %v11994_v45  ;;  %v11880_v12 = vmul.f32 %v22011_v60, %v11652_v4  ;;  %v15454_v42 = vpop.f32.mrb[29].mxu1 }
 0xf8e   : > { %v11655_v55 = vpop.f32.mrb[30].mxu1 }
 0xf8f   : > { %v11941_v0 = vadd.f32 %v22018_v46, %v11880_v12  ;;  %v11881_v15 = vmul.f32 %v22011_v60, %v11655_v55  ;;  %v15455_v16 = vpop.f32.mrb[31].mxu1 }
 0xf91   : > { %v11995_v13 = vmax.f32 %v11941_v0, 0.0  ;;  %v11942_v1 = vadd.f32 %v22018_v46, %v11881_v15 }
 0xf93   : > { %12049 = vst [vmem:[%s22027_s22 + $0x80] sm:$0xff] %v11995_v13  ;;  %v11996_v9 = vmax.f32 %v11942_v1, 0.0 }
 0xf94   : > { %v11660_v7 = vpop.f32.mrb[32].mxu1 }
 0xf95   : > { %12050 = vst [vmem:[%s22027_s22 + $0x88] sm:$0xff] %v11996_v9  ;;  %v11882_v37 = vmul.f32 %v22011_v60, %v11660_v7  ;;  %v15458_v34 = vpop.f32.mrb[33].mxu1 }
 0xf96   : > { %v11663_v40 = vpop.f32.mrb[34].mxu1 }
 0xf97   : > { %v11943_v10 = vadd.f32 %v22018_v46, %v11882_v37  ;;  %v11883_v6 = vmul.f32 %v22011_v60, %v11663_v40  ;;  %v15459_v14 = vpop.f32.mrb[35].mxu1 }
 0xf99   : > { %v11997_v25 = vmax.f32 %v11943_v10, 0.0  ;;  %v11944_v53 = vadd.f32 %v22018_v46, %v11883_v6 }
 0xf9b   : > { %12051 = vst [vmem:[%s22027_s22 + $0x90] sm:$0xff] %v11997_v25  ;;  %v11998_v52 = vmax.f32 %v11944_v53, 0.0 }
 0xf9c   : > { %v11668_v20 = vpop.f32.mrb[36].mxu1 }
 0xf9d   : > { %12052 = vst [vmem:[%s22027_s22 + $0x98] sm:$0xff] %v11998_v52  ;;  %v11884_v29 = vmul.f32 %v22011_v60, %v11668_v20  ;;  %v15462_v49 = vpop.f32.mrb[37].mxu1 }
 0xf9e   : > { %v11671_v38 = vpop.f32.mrb[38].mxu1 }
 0xf9f   : > { %v11945_v24 = vadd.f32 %v22018_v46, %v11884_v29  ;;  %v11885_v63 = vmul.f32 %v22011_v60, %v11671_v38  ;;  %v15463_v50 = vpop.f32.mrb[39].mxu1 }
 0xfa1   : > { %v11999_v3 = vmax.f32 %v11945_v24, 0.0  ;;  %v11946_v22 = vadd.f32 %v22018_v46, %v11885_v63 }
 0xfa3   : > { %12053 = vst [vmem:[%s22027_s22 + $0xa0] sm:$0xff] %v11999_v3  ;;  %v12000_v23 = vmax.f32 %v11946_v22, 0.0 }
 0xfa4   : > { %v11676_v17 = vpop.f32.mrb[40].mxu1 }
 0xfa5   : > { %12054 = vst [vmem:[%s22027_s22 + $0xa8] sm:$0xff] %v12000_v23  ;;  %v11886_v5 = vmul.f32 %v22011_v60, %v11676_v17  ;;  %v15466_v43 = vpop.f32.mrb[41].mxu1 }
 0xfa6   : > { %v11679_v54 = vpop.f32.mrb[42].mxu1 }
 0xfa7   : > { %v11947_v32 = vadd.f32 %v22018_v46, %v11886_v5  ;;  %v11887_v8 = vmul.f32 %v22011_v60, %v11679_v54  ;;  %v15467_v56 = vpop.f32.mrb[43].mxu1 }
 0xfa9   : > { %v12001_v2 = vmax.f32 %v11947_v32, 0.0  ;;  %v11948_v48 = vadd.f32 %v22018_v46, %v11887_v8 }
 0xfab   : > { %12055 = vst [vmem:[%s22027_s22 + $0xb0] sm:$0xff] %v12001_v2  ;;  %v12002_v58 = vmax.f32 %v11948_v48, 0.0 }
 0xfac   : > { %v11684_v27 = vpop.f32.mrb[44].mxu1 }
 0xfad   : > { %12056 = vst [vmem:[%s22027_s22 + $0xb8] sm:$0xff] %v12002_v58  ;;  %v11888_v18 = vmul.f32 %v22011_v60, %v11684_v27  ;;  %v15470_v26 = vpop.f32.mrb[45].mxu1 }
 0xfae   : > { %v11687_v62 = vpop.f32.mrb[46].mxu1 }
 0xfaf   : > { %v11949_v61 = vadd.f32 %v22018_v46, %v11888_v18  ;;  %v11889_v31 = vmul.f32 %v22011_v60, %v11687_v62  ;;  %v15471_v39 = vpop.f32.mrb[47].mxu1 }
 0xfb1   : > { %v12003_v51 = vmax.f32 %v11949_v61, 0.0  ;;  %v11950_v33 = vadd.f32 %v22018_v46, %v11889_v31 }
 0xfb3   : > { %12057 = vst [vmem:[%s22027_s22 + $0xc0] sm:$0xff] %v12003_v51  ;;  %v12004_v21 = vmax.f32 %v11950_v33, 0.0 }
 0xfb4   : > { %v11692_v36 = vpop.f32.mrb[48].mxu1 }
 0xfb5   : > { %12058 = vst [vmem:[%s22027_s22 + $0xc8] sm:$0xff] %v12004_v21  ;;  %v11890_v57 = vmul.f32 %v22011_v60, %v11692_v36  ;;  %v15474_v35 = vpop.f32.mrb[49].mxu1 }
 0xfb6   : > { %v11695_v19 = vpop.f32.mrb[50].mxu1 }
 0xfb7   : > { %v11951_v30 = vadd.f32 %v22018_v46, %v11890_v57  ;;  %v11891_v41 = vmul.f32 %v22011_v60, %v11695_v19  ;;  %v15475_v59 = vpop.f32.mrb[51].mxu1 }
 0xfb9   : > { %v12005_v28 = vmax.f32 %v11951_v30, 0.0  ;;  %v11952_v47 = vadd.f32 %v22018_v46, %v11891_v41 }
 0xfbb   : > { %12059 = vst [vmem:[%s22027_s22 + $0xd0] sm:$0xff] %v12005_v28  ;;  %v12006_v44 = vmax.f32 %v11952_v47, 0.0 }
 0xfbc   : > { %v11700_v11 = vpop.f32.mrb[52].mxu1 }
 0xfbd   : > { %12060 = vst [vmem:[%s22027_s22 + $0xd8] sm:$0xff] %v12006_v44  ;;  %v11892_v45 = vmul.f32 %v22011_v60, %v11700_v11  ;;  %v15478_v4 = vpop.f32.mrb[53].mxu1 }
 0xfbe   : > { %v11703_v12 = vpop.f32.mrb[54].mxu1 }
 0xfbf   : > { %v11953_v42 = vadd.f32 %v22018_v46, %v11892_v45  ;;  %v11893_v55 = vmul.f32 %v22011_v60, %v11703_v12  ;;  %v15479_v0 = vpop.f32.mrb[55].mxu1 }
 0xfc1   : > { %v12007_v15 = vmax.f32 %v11953_v42, 0.0  ;;  %v11954_v16 = vadd.f32 %v22018_v46, %v11893_v55 }
 0xfc3   : > { %12061 = vst [vmem:[%s22027_s22 + $0xe0] sm:$0xff] %v12007_v15  ;;  %v12008_v13 = vmax.f32 %v11954_v16, 0.0 }
 0xfc4   : > { %v11708_v1 = vpop.f32.mrb[56].mxu1 }
 0xfc5   : > { %12062 = vst [vmem:[%s22027_s22 + $0xe8] sm:$0xff] %v12008_v13  ;;  %v11894_v9 = vmul.f32 %v22011_v60, %v11708_v1  ;;  %v15482_v7 = vpop.f32.mrb[57].mxu1 }
 0xfc6   : > { %v11711_v37 = vpop.f32.mrb[58].mxu1 }
 0xfc7   : > { %v11955_v34 = vadd.f32 %v22018_v46, %v11894_v9  ;;  %v11895_v40 = vmul.f32 %v22011_v60, %v11711_v37  ;;  %v15483_v10 = vpop.f32.mrb[59].mxu1 }
 0xfc9   : > { %v12009_v6 = vmax.f32 %v11955_v34, 0.0  ;;  %v11956_v14 = vadd.f32 %v22018_v46, %v11895_v40 }
 0xfcb   : > { %12063 = vst [vmem:[%s22027_s22 + $0xf0] sm:$0xff] %v12009_v6  ;;  %v12010_v25 = vmax.f32 %v11956_v14, 0.0 }
 0xfcc   : > { %v11716_v53 = vpop.f32.mrb[60].mxu1 }
 0xfcd   : > { %12064 = vst [vmem:[%s22027_s22 + $0xf8] sm:$0xff] %v12010_v25  ;;  %v11896_v52 = vmul.f32 %v22011_v60, %v11716_v53  ;;  %v15486_v20 = vpop.f32.mrb[61].mxu1 }
 0xfce   : > { %v11719_v29 = vpop.f32.mrb[62].mxu1 }
 0xfcf   : > { %v11957_v49 = vadd.f32 %v22018_v46, %v11896_v52  ;;  %v11897_v38 = vmul.f32 %v22011_v60, %v11719_v29  ;;  %v15487_v24 = vpop.f32.mrb[63].mxu1 }
 0xfd1   : > { %v12011_v63 = vmax.f32 %v11957_v49, 0.0  ;;  %v11958_v50 = vadd.f32 %v22018_v46, %v11897_v38 }
 0xfd3   : > { %12065 = vst [vmem:[%s22027_s22 + $0x100] sm:$0xff] %v12011_v63  ;;  %v12012_v3 = vmax.f32 %v11958_v50, 0.0 }
 0xfd4   : > { %v11724_v22 = vpop.f32.mrb[64].mxu1 }
 0xfd5   : > { %12066 = vst [vmem:[%s22027_s22 + $0x108] sm:$0xff] %v12012_v3  ;;  %v11898_v23 = vmul.f32 %v22011_v60, %v11724_v22  ;;  %v15490_v17 = vpop.f32.mrb[65].mxu1 }
 0xfd6   : > { %v11727_v5 = vpop.f32.mrb[66].mxu1 }
 0xfd7   : > { %v11959_v43 = vadd.f32 %v22018_v46, %v11898_v23  ;;  %v11899_v54 = vmul.f32 %v22011_v60, %v11727_v5  ;;  %v15491_v32 = vpop.f32.mrb[67].mxu1 }
 0xfd9   : > { %v12013_v8 = vmax.f32 %v11959_v43, 0.0  ;;  %v11960_v56 = vadd.f32 %v22018_v46, %v11899_v54 }
 0xfdb   : > { %12067 = vst [vmem:[%s22027_s22 + $0x110] sm:$0xff] %v12013_v8  ;;  %v12014_v2 = vmax.f32 %v11960_v56, 0.0 }
 0xfdc   : > { %v11732_v48 = vpop.f32.mrb[68].mxu1 }
 0xfdd   : > { %12068 = vst [vmem:[%s22027_s22 + $0x118] sm:$0xff] %v12014_v2  ;;  %v11900_v58 = vmul.f32 %v22011_v60, %v11732_v48  ;;  %v15494_v27 = vpop.f32.mrb[69].mxu1 }
 0xfde   : > { %v11735_v18 = vpop.f32.mrb[70].mxu1 }
 0xfdf   : > { %v11961_v26 = vadd.f32 %v22018_v46, %v11900_v58  ;;  %v11901_v62 = vmul.f32 %v22011_v60, %v11735_v18  ;;  %v15495_v61 = vpop.f32.mrb[71].mxu1 }
 0xfe1   : > { %v12015_v31 = vmax.f32 %v11961_v26, 0.0  ;;  %v11962_v39 = vadd.f32 %v22018_v46, %v11901_v62 }
 0xfe3   : > { %12069 = vst [vmem:[%s22027_s22 + $0x120] sm:$0xff] %v12015_v31  ;;  %v12016_v51 = vmax.f32 %v11962_v39, 0.0 }
 0xfe4   : > { %v11740_v33 = vpop.f32.mrb[72].mxu1 }
 0xfe5   : > { %12070 = vst [vmem:[%s22027_s22 + $0x128] sm:$0xff] %v12016_v51  ;;  %v11902_v21 = vmul.f32 %v22011_v60, %v11740_v33  ;;  %v15498_v36 = vpop.f32.mrb[73].mxu1 }
 0xfe6   : > { %v11743_v57 = vpop.f32.mrb[74].mxu1 }
 0xfe7   : > { %v11963_v35 = vadd.f32 %v22018_v46, %v11902_v21  ;;  %v11903_v19 = vmul.f32 %v22011_v60, %v11743_v57  ;;  %v15499_v30 = vpop.f32.mrb[75].mxu1 }
 0xfe9   : > { %v12017_v41 = vmax.f32 %v11963_v35, 0.0  ;;  %v11964_v59 = vadd.f32 %v22018_v46, %v11903_v19 }
 0xfeb   : > { %12071 = vst [vmem:[%s22027_s22 + $0x130] sm:$0xff] %v12017_v41  ;;  %v12018_v28 = vmax.f32 %v11964_v59, 0.0 }
 0xfec   : > { %v11748_v47 = vpop.f32.mrb[76].mxu1 }
 0xfed   : > { %12072 = vst [vmem:[%s22027_s22 + $0x138] sm:$0xff] %v12018_v28  ;;  %v11904_v44 = vmul.f32 %v22011_v60, %v11748_v47  ;;  %v15502_v11 = vpop.f32.mrb[77].mxu1 }
 0xfee   : > { %v11751_v45 = vpop.f32.mrb[78].mxu1 }
 0xfef   : > { %v11965_v4 = vadd.f32 %v22018_v46, %v11904_v44  ;;  %v11905_v12 = vmul.f32 %v22011_v60, %v11751_v45  ;;  %v15503_v42 = vpop.f32.mrb[79].mxu1 }
 0xff1   : > { %v12019_v55 = vmax.f32 %v11965_v4, 0.0  ;;  %v11966_v0 = vadd.f32 %v22018_v46, %v11905_v12 }
 0xff3   : > { %12073 = vst [vmem:[%s22027_s22 + $0x140] sm:$0xff] %v12019_v55  ;;  %v12020_v15 = vmax.f32 %v11966_v0, 0.0 }
 0xff4   : > { %v11756_v16 = vpop.f32.mrb[80].mxu1 }
 0xff5   : > { %12074 = vst [vmem:[%s22027_s22 + $0x148] sm:$0xff] %v12020_v15  ;;  %v11906_v13 = vmul.f32 %v22011_v60, %v11756_v16  ;;  %v15506_v1 = vpop.f32.mrb[81].mxu1 }
 0xff6   : > { %v11759_v9 = vpop.f32.mrb[82].mxu1 }
 0xff7   : > { %v11967_v7 = vadd.f32 %v22018_v46, %v11906_v13  ;;  %v11907_v37 = vmul.f32 %v22011_v60, %v11759_v9  ;;  %v15507_v34 = vpop.f32.mrb[83].mxu1 }
 0xff9   : > { %v12021_v40 = vmax.f32 %v11967_v7, 0.0  ;;  %v11968_v10 = vadd.f32 %v22018_v46, %v11907_v37 }
 0xffb   : > { %12075 = vst [vmem:[%s22027_s22 + $0x150] sm:$0xff] %v12021_v40  ;;  %v12022_v6 = vmax.f32 %v11968_v10, 0.0 }
 0xffc   : > { %v11764_v14 = vpop.f32.mrb[84].mxu1 }
 0xffd   : > { %12076 = vst [vmem:[%s22027_s22 + $0x158] sm:$0xff] %v12022_v6  ;;  %v11908_v25 = vmul.f32 %v22011_v60, %v11764_v14  ;;  %v15510_v53 = vpop.f32.mrb[85].mxu1 }
 0xffe   : > { %v11767_v52 = vpop.f32.mrb[86].mxu1 }
 0xfff   : > { %v11969_v20 = vadd.f32 %v22018_v46, %v11908_v25  ;;  %v11909_v29 = vmul.f32 %v22011_v60, %v11767_v52  ;;  %v15511_v49 = vpop.f32.mrb[87].mxu1 }
0x1001   : > { %v12023_v38 = vmax.f32 %v11969_v20, 0.0  ;;  %v11970_v24 = vadd.f32 %v22018_v46, %v11909_v29 }
0x1003   : > { %12077 = vst [vmem:[%s22027_s22 + $0x160] sm:$0xff] %v12023_v38  ;;  %v12024_v63 = vmax.f32 %v11970_v24, 0.0 }
0x1004   : > { %v11772_v50 = vpop.f32.mrb[88].mxu1 }
0x1005   : > { %12078 = vst [vmem:[%s22027_s22 + $0x168] sm:$0xff] %v12024_v63  ;;  %v11910_v3 = vmul.f32 %v22011_v60, %v11772_v50  ;;  %v15514_v22 = vpop.f32.mrb[89].mxu1 }
0x1006   : > { %v11775_v23 = vpop.f32.mrb[90].mxu1 }
0x1007   : > { %v11971_v17 = vadd.f32 %v22018_v46, %v11910_v3  ;;  %v11911_v5 = vmul.f32 %v22011_v60, %v11775_v23  ;;  %v15515_v43 = vpop.f32.mrb[91].mxu1 }
0x1009   : > { %v12025_v54 = vmax.f32 %v11971_v17, 0.0  ;;  %v11972_v32 = vadd.f32 %v22018_v46, %v11911_v5 }
0x100b   : > { %12079 = vst [vmem:[%s22027_s22 + $0x170] sm:$0xff] %v12025_v54  ;;  %v12026_v8 = vmax.f32 %v11972_v32, 0.0 }
0x100c   : > { %v11780_v56 = vpop.f32.mrb[92].mxu1 }
0x100d   : > { %12080 = vst [vmem:[%s22027_s22 + $0x178] sm:$0xff] %v12026_v8  ;;  %v11912_v2 = vmul.f32 %v22011_v60, %v11780_v56  ;;  %v15518_v48 = vpop.f32.mrb[93].mxu1 }
0x100e   : > { %v11783_v58 = vpop.f32.mrb[94].mxu1 }
0x100f   : > { %v11973_v27 = vadd.f32 %v22018_v46, %v11912_v2  ;;  %v11913_v18 = vmul.f32 %v22011_v60, %v11783_v58  ;;  %v15519_v26 = vpop.f32.mrb[95].mxu1 }
0x1011   : > { %v12027_v62 = vmax.f32 %v11973_v27, 0.0  ;;  %v11974_v61 = vadd.f32 %v22018_v46, %v11913_v18 }
0x1013   : > { %12081 = vst [vmem:[%s22027_s22 + $0x180] sm:$0xff] %v12027_v62  ;;  %v12028_v31 = vmax.f32 %v11974_v61, 0.0 }
0x1014   : > { %v11788_v39 = vpop.f32.mrb[96].mxu1 }
0x1015   : > { %12082 = vst [vmem:[%s22027_s22 + $0x188] sm:$0xff] %v12028_v31  ;;  %v11914_v51 = vmul.f32 %v22011_v60, %v11788_v39  ;;  %v15522_v33 = vpop.f32.mrb[97].mxu1 }
0x1016   : > { %v11791_v21 = vpop.f32.mrb[98].mxu1 }
0x1017   : > { %v11975_v36 = vadd.f32 %v22018_v46, %v11914_v51  ;;  %v11915_v57 = vmul.f32 %v22011_v60, %v11791_v21  ;;  %v15523_v35 = vpop.f32.mrb[99].mxu1 }
0x1019   : > { %v12029_v19 = vmax.f32 %v11975_v36, 0.0  ;;  %v11976_v30 = vadd.f32 %v22018_v46, %v11915_v57 }
0x101b   : > { %12083 = vst [vmem:[%s22027_s22 + $0x190] sm:$0xff] %v12029_v19  ;;  %v12030_v41 = vmax.f32 %v11976_v30, 0.0 }
0x101c   : > { %v11796_v59 = vpop.f32.mrb[100].mxu1 }
0x101d   : > { %12084 = vst [vmem:[%s22027_s22 + $0x198] sm:$0xff] %v12030_v41  ;;  %v11916_v28 = vmul.f32 %v22011_v60, %v11796_v59  ;;  %v15526_v47 = vpop.f32.mrb[101].mxu1 }
0x101e   : > { %v11799_v44 = vpop.f32.mrb[102].mxu1 }
0x101f   : > { %v11977_v11 = vadd.f32 %v22018_v46, %v11916_v28  ;;  %v11917_v45 = vmul.f32 %v22011_v60, %v11799_v44  ;;  %v15527_v4 = vpop.f32.mrb[103].mxu1 }
0x1021   : > { %v12031_v12 = vmax.f32 %v11977_v11, 0.0  ;;  %v11978_v42 = vadd.f32 %v22018_v46, %v11917_v45 }
0x1023   : > { %12085 = vst [vmem:[%s22027_s22 + $0x1a0] sm:$0xff] %v12031_v12  ;;  %v12032_v55 = vmax.f32 %v11978_v42, 0.0 }
0x1025   : > { %12086 = vst [vmem:[%s22027_s22 + $0x1a8] sm:$0xff] %v12032_v55 }
0x1026 PF: > { %s18_s27 = sadd.s32 1, %s17646_s27  }
0x1027   : > { %p15_p4 = scmp.ge.s32.totalorder %s18_s27, 4  }
0x1029   :  { %17 = sbr.rel (!%p15_p4) target bundleno = 1 (0x1), region = 98 }

</bundles_post_ra>
